<compile_context>
chip_gen: v5e
topology: v5e:2x2
jax: 0.10.0
libtpu: 0.0.40
codegen_flags: <defaults>
</compile_context>

<pallas_src>
import math
from functools import partial

import jax
import jax.numpy as jnp
from jax.experimental import pallas as pl
from jax.experimental.pallas import tpu as pltpu


# ------------------------- hardware-derived budgets -------------------------

_VMEM_LIMIT_CACHE = None


def _vmem_limit_bytes():
    """~3/4 of physical VMEM (v5e/v6e: 128 MiB -> 96 MiB, v7x: 64 MiB -> 48 MiB)."""
    global _VMEM_LIMIT_CACHE
    if _VMEM_LIMIT_CACHE is None:
        try:
            cap = int(pltpu.get_tpu_info().vmem_capacity_bytes)
        except Exception:                       # conservative, safe everywhere
            cap = 64 * 1024 * 1024
        if cap <= 0:
            cap = 64 * 1024 * 1024
        _VMEM_LIMIT_CACHE = (cap // 4) * 3
    return _VMEM_LIMIT_CACHE


def _row_tile_cap():
    # Bigger tiles amortize the ~0.35us/step overhead on 128-MiB chips
    # (v5e/v6e); stay at 256 on v7x (64 MiB) so weights + 4x-wide hidden fit.
    return 512 if _vmem_limit_bytes() >= (72 << 20) else 256


def _round_up(n, m):
    return ((n + m - 1) // m) * m


def _pick_row_tile(rows):
    """Row tile: multiple of 8, <= cap, >= 2 tiles whenever rows > 8 (megacore)."""
    if rows <= 8:
        return 8
    n_tiles = max(2, pl.cdiv(rows, _row_tile_cap()))
    return min(_round_up(pl.cdiv(rows, n_tiles), 8), _round_up(rows, 8))


def _resident_spec():
    # Whole-array, VMEM-resident, constant across the grid -> weights are not
    # re-DMA'd / double-buffered every grid step.
    # TODO(synk): switch to pipeline_mode=pl.Buffered(1) if a future jax still
    # multi-buffers constant-index whole-array operands.
    return pl.BlockSpec(memory_space=pltpu.MemorySpace.VMEM)


# ----------------------------- in-kernel helpers -----------------------------

def _ln_f32(x, eps):
    """Row-wise normalize (mean/var over last dim), f32 math (F.layer_norm)."""
    mu = jnp.mean(x, axis=-1, keepdims=True)
    xc = x - mu
    var = jnp.mean(xc * xc, axis=-1, keepdims=True)
    return xc * jax.lax.rsqrt(var + eps)


def _gelu_erf(x):
    """GELU = 0.5*(x + |x|*erf(|x|/sqrt2)) with the A&S 7.1.26 erf polynomial.
    Divide runs on the EUP (approx reciprocal); no sign-select needed since
    x*erf(x/sqrt2) == |x|*erf(|x|/sqrt2).  Error ~1e-3 << bf16 cast error."""
    ax = jnp.abs(x)
    a = ax * 0.7071067811865476
    t = pl.reciprocal(1.0 + 0.3275911 * a, approx=True)
    poly = t * (0.254829592 + t * (-0.284496736 + t * (1.421413741
               + t * (-1.453152027 + t * 1.061405429))))
    erf_abs = 1.0 - poly * jnp.exp(-a * a)
    return 0.5 * (x + ax * erf_abs)


# ----------------------------- Pallas kernels -----------------------------

def _mlp_kernel(*refs, eps, pre_ln, post_ln, add_x, has_res):
    """[pre-LN] -> x@W1+b1 -> GELU -> @W2+b2 -> [post-LN] -> [+x] -> [+res]."""
    it = iter(refs)
    x_ref = next(it)
    res_ref = next(it) if has_res else None
    g_pre = next(it) if pre_ln else None
    w1_ref = next(it); b1_ref = next(it); w2_ref = next(it); b2_ref = next(it)
    g_post = b_post = None
    if post_ln:
        g_post = next(it); b_post = next(it)
    o_ref = next(it)

    x_in = x_ref[...].astype(jnp.float32)
    x = _ln_f32(x_in, eps) * g_pre[...] if pre_ln else x_in
    h = jnp.dot(x.astype(jnp.bfloat16), w1_ref[...],
                preferred_element_type=jnp.float32) + b1_ref[...]
    h = _gelu_erf(h)
    y = jnp.dot(h.astype(jnp.bfloat16), w2_ref[...],
                preferred_element_type=jnp.float32) + b2_ref[...]
    if post_ln:
        y = _ln_f32(y, eps) * g_post[...] + b_post[...]
    if add_x:                              # residual == input: no extra DMA
        y = y + x_in
    if has_res:
        y = y + res_ref[...].astype(jnp.float32)
    o_ref[...] = y.astype(o_ref.dtype)


def _linear_kernel(*refs, eps, pre_ln, post_ln):
    """[pre-LN] -> x@W+b -> [post-LN]."""
    it = iter(refs)
    x_ref = next(it)
    g_pre = next(it) if pre_ln else None
    w_ref = next(it); b_ref = next(it)
    g_post = b_post = None
    if post_ln:
        g_post = next(it); b_post = next(it)
    o_ref = next(it)

    x = x_ref[...].astype(jnp.float32)
    if pre_ln:
        x = _ln_f32(x, eps) * g_pre[...]
    y = jnp.dot(x.astype(jnp.bfloat16), w_ref[...],
                preferred_element_type=jnp.float32) + b_ref[...]
    if post_ln:
        y = _ln_f32(y, eps) * g_post[...] + b_post[...]
    o_ref[...] = y.astype(o_ref.dtype)


def _attn_kernel(*refs, heads, scale, eps, self_attn):
    """Fused attention for one (batch, q-tile):
       LN(x) -> per-head q = ln@wq[h], k/v = ctx@wk[h]/wv[h]
       -> softmax(q k^T * scale) v -> y += out_h @ wo[h]   (+x residual)."""
    it = iter(refs)
    x_ref = next(it)
    ctx_ref = None if self_attn else next(it)
    g_ref = next(it)
    wq_ref = next(it); wk_ref = next(it); wv_ref = next(it); wo_ref = next(it)
    o_ref = next(it)

    x = x_ref[0].astype(jnp.float32)                     # (tq, d)
    ln = (_ln_f32(x, eps) * g_ref[...]).astype(jnp.bfloat16)
    ctx = ln if self_attn else ctx_ref[0]                # norm_context=False -> raw ctx

    y = x                                                # residual (= input) accumulator
    for h in range(heads):                               # static unroll, head-major weights
        qh = jnp.dot(ln, wq_ref[h], preferred_element_type=jnp.float32)    # (tq, dh)
        kh = jnp.dot(ctx, wk_ref[h], preferred_element_type=jnp.float32)   # (nk, dh)
        vh = jnp.dot(ctx, wv_ref[h], preferred_element_type=jnp.float32)   # (nk, dh)
        s = jax.lax.dot_general(qh.astype(jnp.bfloat16), kh.astype(jnp.bfloat16),
                                (((1,), (1,)), ((), ())),
                                preferred_element_type=jnp.float32) * scale  # (tq, nk)
        m = jnp.max(s, axis=-1, keepdims=True)
        p = jnp.exp(s - m)
        p = p * pl.reciprocal(jnp.sum(p, axis=-1, keepdims=True), approx=True)
        oh = jnp.dot(p.astype(jnp.bfloat16), vh.astype(jnp.bfloat16),
                     preferred_element_type=jnp.float32)                     # (tq, dh)
        y = y + jnp.dot(oh.astype(jnp.bfloat16), wo_ref[h],
                        preferred_element_type=jnp.float32)                  # (tq, d)
    o_ref[0] = y.astype(o_ref.dtype)


# ----------------------------- kernel wrappers -----------------------------

def _rowwise_pallas(kernel, x2, res2, param_arrays, d_out, out_dtype):
    """Run `kernel` over row tiles of a flattened [rows, d_in] activation."""
    rows, d_in = x2.shape
    n_valid = rows
    if rows < 8:                        # tiny calls (time-MLP): pad once to 8 rows
        x2 = jnp.pad(x2, ((0, 8 - rows), (0, 0)))
        if res2 is not None:
            res2 = jnp.pad(res2, ((0, 8 - rows), (0, 0)))
        rows = 8

    tm = _pick_row_tile(rows)
    grid = pl.cdiv(rows, tm)            # ragged last block rides; junk rows discarded

    args = [x2]
    specs = [pl.BlockSpec((tm, d_in), lambda i: (i, 0))]
    if res2 is not None:
        args.append(res2)
        specs.append(pl.BlockSpec((tm, d_out), lambda i: (i, 0)))
    for a in param_arrays:              # weights/biases/gammas: VMEM-resident, unbuffered
        args.append(a)
        specs.append(_resident_spec())

    out = pl.pallas_call(
        kernel,
        out_shape=jax.ShapeDtypeStruct((rows, d_out), out_dtype),
        grid=(grid,),
        in_specs=specs,
        out_specs=pl.BlockSpec((tm, d_out), lambda i: (i, 0)),
        compiler_params=pltpu.CompilerParams(
            dimension_semantics=("parallel",),
            vmem_limit_bytes=_vmem_limit_bytes()),
    )(*args)
    return out if n_valid == rows else out[:n_valid]


def mlp_fused(x, p, *, add_x=False, residual=None, pre_ln=True, post_ln=False,
              out_dtype=jnp.bfloat16):
    *lead, d_in = x.shape
    d_out = p["w2"].shape[1]
    x2 = x.reshape(-1, d_in).astype(jnp.bfloat16)
    res2 = None if residual is None else residual.reshape(-1, d_out).astype(jnp.bfloat16)
    pa = []
    if pre_ln:
        pa.append(p["pre_g"])
    pa += [p["w1"], p["b1"], p["w2"], p["b2"]]
    if post_ln:
        pa += [p["post_g"], p["post_b"]]
    kern = partial(_mlp_kernel, eps=1e-5, pre_ln=pre_ln, post_ln=post_ln,
                   add_x=add_x, has_res=residual is not None)
    out = _rowwise_pallas(kern, x2, res2, pa, d_out, out_dtype)
    return out.reshape(*lead, d_out)


def linear_fused(x, p, *, pre_ln=False, post_ln=False, out_dtype=jnp.bfloat16):
    *lead, d_in = x.shape
    d_out = p["w"].shape[1]
    x2 = x.reshape(-1, d_in).astype(jnp.bfloat16)
    pa = []
    if pre_ln:
        pa.append(p["pre_g"])
    pa += [p["w"], p["b"]]
    if post_ln:
        pa += [p["post_g"], p["post_b"]]
    kern = partial(_linear_kernel, eps=1e-5, pre_ln=pre_ln, post_ln=post_ln)
    out = _rowwise_pallas(kern, x2, None, pa, d_out, out_dtype)
    return out.reshape(*lead, d_out)


def attention_fused(x, context, p, heads, dim_head):
    """attn(x, context) + x  (residual folded in-kernel; no separate res input)."""
    b, nq, d = x.shape
    self_attn = context is None
    x = x.astype(jnp.bfloat16)

    # q-tiling only for cross-attn at large nq (context stays whole per block,
    # so row-wise softmax is exact); self-attn needs full x for k/v -> one tile.
    tq = nq if (self_attn or nq <= 256) else 256
    gq = pl.cdiv(nq, tq)

    args = [x]
    specs = [pl.BlockSpec((1, tq, d), lambda i, j: (i, j, 0))]
    if not self_attn:
        ctx = context.astype(jnp.bfloat16)
        _, nk, dc = ctx.shape
        args.append(ctx)
        specs.append(pl.BlockSpec((1, nk, dc), lambda i, j: (i, 0, 0)))
    args += [p["g"], p["wq"], p["wk"], p["wv"], p["wo"]]
    specs += [_resident_spec() for _ in range(5)]

    return pl.pallas_call(
        partial(_attn_kernel, heads=heads, scale=dim_head ** -0.5,
                eps=1e-5, self_attn=self_attn),
        out_shape=jax.ShapeDtypeStruct((b, nq, d), jnp.bfloat16),
        grid=(b, gq),
        in_specs=specs,
        out_specs=pl.BlockSpec((1, tq, d), lambda i, j: (i, j, 0)),
        compiler_params=pltpu.CompilerParams(
            dimension_semantics=("parallel", "parallel"),
            vmem_limit_bytes=_vmem_limit_bytes()),
    )(*args)


# ----------------------------- model pieces -----------------------------

def time_mlp(t, p):
    x = t.astype(jnp.float32)[:, None]                             # [b, 1]
    freqs = x * p["sin_w"][None, :] * 2.0 * math.pi                # [b, half]
    four = jnp.concatenate([x, jnp.sin(freqs), jnp.cos(freqs)], axis=-1)
    return mlp_fused(four, p["mlp"], pre_ln=False)                 # [b, dim_latent]


def rin_block(patches, latents, p, cfg):
    dh = cfg["dim_head"]
    latents = attention_fused(latents, patches, p["l2p"], cfg["rw_heads"], dh)
    latents = mlp_fused(latents, p["l_ff"], add_x=True)
    for sa in p["self_attns"]:
        latents = attention_fused(latents, None, sa["attn"], cfg["latent_heads"], dh)
        latents = mlp_fused(latents, sa["ff"], add_x=True)
    patches = attention_fused(patches, latents, p["p2l"], cfg["rw_heads"], dh)
    patches = mlp_fused(patches, p["p_ff"], add_x=True)
    return patches, latents


def rin_forward(params, cfg, x, timestep, encode_emb, decode_emb):
    b, c, h, w = x.shape
    tokens = x.reshape(b, c, h * w).transpose(0, 2, 1)             # [b, hw, c]

    latents = jnp.broadcast_to(params["latents"][None],
                               (b,) + params["latents"].shape)      # bf16
    t_emb = time_mlp(timestep, params["time"])[:, None, :]          # [b, 1, dl]
    latent_self_cond = jnp.zeros_like(latents)                      # self_cond=None path
    latent_self_cond = jnp.concatenate([latent_self_cond, t_emb], axis=1)
    latents = jnp.concatenate([latents, t_emb], axis=1)

    # latents += LayerNorm_zero_gamma(FF_no_preln(latent_self_cond))  (one kernel;
    # residual differs from the FF input here, so it stays a separate operand)
    latents = mlp_fused(latent_self_cond, params["init_ff"],
                        residual=latents, pre_ln=False, post_ln=True)

    patches_in = jnp.concatenate([tokens.astype(jnp.bfloat16),
                                  decode_emb.astype(jnp.bfloat16)], axis=2)
    patches = linear_fused(patches_in, params["to_patches"], post_ln=True)
    n = patches.shape[1]

    enc = linear_fused(encode_emb, params["enc"])
    patches = jnp.concatenate([patches, enc], axis=1)               # preserve_encode=False

    for blk in params["blocks"]:
        patches, latents = rin_block(patches, latents, blk, cfg)

    patches = patches[:, :n]
    pix = linear_fused(patches, params["to_pixels"], pre_ln=True,
                       out_dtype=jnp.float32)                       # [b, hw, c]
    invalid = jnp.zeros_like(pix, dtype=jnp.bool_)
    pixels = pix.transpose(0, 2, 1).reshape(b, c, h, w)
    return pixels, invalid


# ----------------------------- param init -----------------------------

def init_params(key, cfg):
    keys = iter(jax.random.split(key, 256))

    def rnd(shape, std=0.02, dtype=jnp.bfloat16):
        return (std * jax.random.normal(next(keys), shape, jnp.float32)).astype(dtype)

    def ones(d):
        return jnp.ones((1, d), jnp.float32)

    def zeros(d):
        return jnp.zeros((1, d), jnp.float32)

    dim, dl, dh = cfg["dim"], cfg["dim_latent"], cfg["dim_head"]
    time_dim = dim * 4
    half = cfg["learned_sinusoidal_dim"] // 2
    fourier_dim = cfg["learned_sinusoidal_dim"] + 1

    def ff_params(d, pre_ln=True):
        p = {"w1": rnd((d, 4 * d)), "b1": rnd((1, 4 * d), dtype=jnp.float32),
             "w2": rnd((4 * d, d)), "b2": rnd((1, d), dtype=jnp.float32)}
        if pre_ln:
            p["pre_g"] = ones(d)
        return p

    def attn_params(d, d_ctx, heads):
        # Head-major layouts (torch: wq[d, H*dh] -> reshape(d,H,dh).transpose(1,0,2) etc.)
        return {"g": ones(d),
                "wq": rnd((heads, d, dh)),
                "wk": rnd((heads, d_ctx, dh)),
                "wv": rnd((heads, d_ctx, dh)),
                "wo": rnd((heads, dh, d))}

    def block_params():
        return {"l2p": attn_params(dl, dim, cfg["rw_heads"]),
                "l_ff": ff_params(dl),
                "self_attns": [{"attn": attn_params(dl, dl, cfg["latent_heads"]),
                                "ff": ff_params(dl)}
                               for _ in range(cfg["latent_self_attn_depth"])],
                "p2l": attn_params(dim, dl, cfg["rw_heads"]),
                "p_ff": ff_params(dim)}

    init_ff = ff_params(dl, pre_ln=False)
    init_ff["post_g"] = zeros(dl)          # nn.init.zeros_(gamma)
    init_ff["post_b"] = zeros(dl)          # beta buffer (zeros)

    return {
        "latents": rnd((cfg["num_latents"], dl)),
        "time": {"sin_w": jax.random.normal(next(keys), (half,), jnp.float32),
                 "mlp": {"w1": rnd((fourier_dim, time_dim)),
                         "b1": rnd((1, time_dim), dtype=jnp.float32),
                         "w2": rnd((time_dim, dl)),
                         "b2": rnd((1, dl), dtype=jnp.float32)}},
        "init_ff": init_ff,
        "to_patches": {"w": rnd((cfg["channels"] + cfg["decode_dim"], dim)),
                       "b": rnd((1, dim), dtype=jnp.float32),
                       "post_g": ones(dim), "post_b": zeros(dim)},
        "enc": {"w": rnd((cfg["encode_dim"], dim)),
                "b": rnd((1, dim), dtype=jnp.float32)},
        "blocks": [block_params() for _ in range(cfg["depth"])],
        "to_pixels": {"pre_g": ones(dim),
                      "w": rnd((dim, cfg["channels"])),
                      "b": rnd((1, cfg["channels"]), dtype=jnp.float32)},
    }


# ----------------------------- main -----------------------------

if __name__ == "__main__":
    # NOTE: toy dims (dim=dim_head=32) cap MXU-column / lane utilization at
    # ~12-25%; real configs should use 128-multiple feature dims.
    cfg = dict(channels=4, num_latents=8, dim=32, dim_latent=32,
               learned_sinusoidal_dim=16, decode_dim=8, encode_dim=8,
               depth=1, latent_self_attn_depth=1,
               rw_heads=2, latent_heads=2, dim_head=32)

    key = jax.random.PRNGKey(0)
    kp, kx, kt, ke, kd = jax.random.split(key, 5)
    params = init_params(kp, cfg)

    b, c, h, w = 2, cfg["channels"], 8, 8
    n_enc = 4
    x = jax.random.normal(kx, (b, c, h, w), jnp.float32)
    timestep = jax.random.uniform(kt, (b,), jnp.float32)
    encode_emb = jax.random.normal(ke, (b, n_enc, cfg["encode_dim"]), jnp.float32)
    decode_emb = jax.random.normal(kd, (b, h * w, cfg["decode_dim"]), jnp.float32)

    fwd = jax.jit(lambda xx, tt, ee, dd: rin_forward(params, cfg, xx, tt, ee, dd))
    pixels, invalid = fwd(x, timestep, encode_emb, decode_emb)
    jax.block_until_ready(pixels)

    assert pixels.shape == (b, c, h, w) and pixels.dtype == jnp.float32
    assert invalid.shape == (b, h * w, c) and invalid.dtype == jnp.bool_
    assert bool(jnp.all(jnp.isfinite(pixels)))
    print("KERNEL_OK")
</pallas_src>

<mosaic_0001>
module attributes {stable_mosaic.version = 11 : i64} {
  func.func @_linear_kernel(%arg0: i32, %arg1: memref<64x12xbf16, #tpu.memory_space<vmem>>, %arg2: memref<12x32xbf16, #tpu.memory_space<vmem>>, %arg3: memref<1x32xf32, #tpu.memory_space<vmem>>, %arg4: memref<1x32xf32, #tpu.memory_space<vmem>>, %arg5: memref<1x32xf32, #tpu.memory_space<vmem>>, %arg6: memref<64x32xbf16, #tpu.memory_space<vmem>>) attributes {dimension_semantics = [#tpu.dimension_semantics<parallel>], iteration_bounds = array<i64: 2>, scalar_prefetch = 0 : i64, scratch_operands = 0 : i64, tpu.core_type = #tpu.core_type<tc>, window_params = [{transform_indices = @transform_0, window_bounds = array<i64: 64, 12>}, {pipeline_mode = #tpu.pipeline_mode<synchronous>, transform_indices = @transform_1, window_bounds = array<i64: 12, 32>}, {pipeline_mode = #tpu.pipeline_mode<synchronous>, transform_indices = @transform_2, window_bounds = array<i64: 1, 32>}, {pipeline_mode = #tpu.pipeline_mode<synchronous>, transform_indices = @transform_3, window_bounds = array<i64: 1, 32>}, {pipeline_mode = #tpu.pipeline_mode<synchronous>, transform_indices = @transform_4, window_bounds = array<i64: 1, 32>}, {transform_indices = @transform_5, window_bounds = array<i64: 64, 32>}]} {
    %c0 = arith.constant 0 : index
    %c0_0 = arith.constant 0 : index
    %0 = vector.load %arg1[%c0, %c0_0] : memref<64x12xbf16, #tpu.memory_space<vmem>>, vector<64x12xbf16>
    %1 = arith.extf %0 : vector<64x12xbf16> to vector<64x12xf32>
    %2 = arith.truncf %1 : vector<64x12xf32> to vector<64x12xbf16>
    %c0_1 = arith.constant 0 : index
    %c0_2 = arith.constant 0 : index
    %3 = vector.load %arg2[%c0_1, %c0_2] : memref<12x32xbf16, #tpu.memory_space<vmem>>, vector<12x32xbf16>
    %cst = arith.constant dense<0.000000e+00> : vector<64x32xf32>
    %4 = tpu.matmul %2, %3, %cst {dimension_numbers = #tpu.dot_dimension_numbers<[1], [0], [0], [1], [0, 0, 1, 1], [], []>} : vector<64x12xbf16>, vector<12x32xbf16>, vector<64x32xf32> -> vector<64x32xf32>
    %c0_3 = arith.constant 0 : index
    %c0_4 = arith.constant 0 : index
    %5 = vector.load %arg3[%c0_3, %c0_4] : memref<1x32xf32, #tpu.memory_space<vmem>>, vector<1x32xf32>
    %6 = vector.broadcast %5 : vector<1x32xf32> to vector<64x32xf32>
    %7 = arith.addf %4, %6 : vector<64x32xf32>
    %cst_5 = arith.constant dense<0.000000e+00> : vector<64xf32>
    %8 = vector.multi_reduction <add>, %7, %cst_5 [1] : vector<64x32xf32> to vector<64xf32>
    %9 = vector.shape_cast %8 : vector<64xf32> to vector<64x1xf32>
    %cst_6 = arith.constant 3.200000e+01 : f32
    %10 = vector.broadcast %cst_6 : f32 to vector<64x1xf32>
    %11 = arith.divf %9, %10 : vector<64x1xf32>
    %12 = vector.broadcast %11 : vector<64x1xf32> to vector<64x32xf32>
    %13 = arith.subf %7, %12 : vector<64x32xf32>
    %14 = arith.mulf %13, %13 : vector<64x32xf32>
    %cst_7 = arith.constant dense<0.000000e+00> : vector<64xf32>
    %15 = vector.multi_reduction <add>, %14, %cst_7 [1] : vector<64x32xf32> to vector<64xf32>
    %16 = vector.shape_cast %15 : vector<64xf32> to vector<64x1xf32>
    %cst_8 = arith.constant 3.200000e+01 : f32
    %17 = vector.broadcast %cst_8 : f32 to vector<64x1xf32>
    %18 = arith.divf %16, %17 : vector<64x1xf32>
    %cst_9 = arith.constant 9.99999974E-6 : f32
    %19 = vector.broadcast %cst_9 : f32 to vector<64x1xf32>
    %20 = arith.addf %18, %19 : vector<64x1xf32>
    %21 = math.rsqrt %20 : vector<64x1xf32>
    %22 = vector.broadcast %21 : vector<64x1xf32> to vector<64x32xf32>
    %23 = arith.mulf %13, %22 : vector<64x32xf32>
    %c0_10 = arith.constant 0 : index
    %c0_11 = arith.constant 0 : index
    %24 = vector.load %arg4[%c0_10, %c0_11] : memref<1x32xf32, #tpu.memory_space<vmem>>, vector<1x32xf32>
    %25 = vector.broadcast %24 : vector<1x32xf32> to vector<64x32xf32>
    %26 = arith.mulf %23, %25 : vector<64x32xf32>
    %c0_12 = arith.constant 0 : index
    %c0_13 = arith.constant 0 : index
    %27 = vector.load %arg5[%c0_12, %c0_13] : memref<1x32xf32, #tpu.memory_space<vmem>>, vector<1x32xf32>
    %28 = vector.broadcast %27 : vector<1x32xf32> to vector<64x32xf32>
    %29 = arith.addf %26, %28 : vector<64x32xf32>
    %30 = arith.truncf %29 : vector<64x32xf32> to vector<64x32xbf16>
    %c0_14 = arith.constant 0 : index
    %c0_15 = arith.constant 0 : index
    %31 = vector.load %arg6[%c0_14, %c0_15] : memref<64x32xbf16, #tpu.memory_space<vmem>>, vector<64x32xbf16>
    tpu.vector_store %arg6[%c0_14, %c0_15], %30 {strides = array<i32>} : memref<64x32xbf16, #tpu.memory_space<vmem>>, vector<64x32xbf16>,
    return
  }
  func.func @transform_0(%arg0: i32) -> (i32, i32) {
    %c0_i32 = arith.constant 0 : i32
    %c0_i32_0 = arith.constant 0 : i32
    return %arg0, %c0_i32 : i32, i32
  }
  func.func @transform_1(%arg0: i32) -> (i32, i32) {
    %c0_i32 = arith.constant 0 : i32
    %c0_i32_0 = arith.constant 0 : i32
    %c0_i32_1 = arith.constant 0 : i32
    return %c0_i32, %c0_i32_0 : i32, i32
  }
  func.func @transform_2(%arg0: i32) -> (i32, i32) {
    %c0_i32 = arith.constant 0 : i32
    %c0_i32_0 = arith.constant 0 : i32
    %c0_i32_1 = arith.constant 0 : i32
    return %c0_i32, %c0_i32_0 : i32, i32
  }
  func.func @transform_3(%arg0: i32) -> (i32, i32) {
    %c0_i32 = arith.constant 0 : i32
    %c0_i32_0 = arith.constant 0 : i32
    %c0_i32_1 = arith.constant 0 : i32
    return %c0_i32, %c0_i32_0 : i32, i32
  }
  func.func @transform_4(%arg0: i32) -> (i32, i32) {
    %c0_i32 = arith.constant 0 : i32
    %c0_i32_0 = arith.constant 0 : i32
    %c0_i32_1 = arith.constant 0 : i32
    return %c0_i32, %c0_i32_0 : i32, i32
  }
  func.func @transform_5(%arg0: i32) -> (i32, i32) {
    %c0_i32 = arith.constant 0 : i32
    %c0_i32_0 = arith.constant 0 : i32
    return %arg0, %c0_i32 : i32, i32
  }
}

module attributes {stable_mosaic.version = 11 : i64} {
  func.func @_linear_kernel(%arg0: i32, %arg1: memref<8x8xbf16, #tpu.memory_space<vmem>>, %arg2: memref<8x32xbf16, #tpu.memory_space<vmem>>, %arg3: memref<1x32xf32, #tpu.memory_space<vmem>>, %arg4: memref<8x32xbf16, #tpu.memory_space<vmem>>) attributes {dimension_semantics = [#tpu.dimension_semantics<parallel>], iteration_bounds = array<i64: 1>, scalar_prefetch = 0 : i64, scratch_operands = 0 : i64, tpu.core_type = #tpu.core_type<tc>, window_params = [{transform_indices = @transform_0, window_bounds = array<i64: 8, 8>}, {pipeline_mode = #tpu.pipeline_mode<synchronous>, transform_indices = @transform_1, window_bounds = array<i64: 8, 32>}, {pipeline_mode = #tpu.pipeline_mode<synchronous>, transform_indices = @transform_2, window_bounds = array<i64: 1, 32>}, {transform_indices = @transform_3, window_bounds = array<i64: 8, 32>}]} {
    %c0 = arith.constant 0 : index
    %c0_0 = arith.constant 0 : index
    %0 = vector.load %arg1[%c0, %c0_0] : memref<8x8xbf16, #tpu.memory_space<vmem>>, vector<8x8xbf16>
    %1 = arith.extf %0 : vector<8x8xbf16> to vector<8x8xf32>
    %2 = arith.truncf %1 : vector<8x8xf32> to vector<8x8xbf16>
    %c0_1 = arith.constant 0 : index
    %c0_2 = arith.constant 0 : index
    %3 = vector.load %arg2[%c0_1, %c0_2] : memref<8x32xbf16, #tpu.memory_space<vmem>>, vector<8x32xbf16>
    %cst = arith.constant dense<0.000000e+00> : vector<8x32xf32>
    %4 = tpu.matmul %2, %3, %cst {dimension_numbers = #tpu.dot_dimension_numbers<[1], [0], [0], [1], [0, 0, 1, 1], [], []>} : vector<8x8xbf16>, vector<8x32xbf16>, vector<8x32xf32> -> vector<8x32xf32>
    %c0_3 = arith.constant 0 : index
    %c0_4 = arith.constant 0 : index
    %5 = vector.load %arg3[%c0_3, %c0_4] : memref<1x32xf32, #tpu.memory_space<vmem>>, vector<1x32xf32>
    %6 = vector.broadcast %5 : vector<1x32xf32> to vector<8x32xf32>
    %7 = arith.addf %4, %6 : vector<8x32xf32>
    %8 = arith.truncf %7 : vector<8x32xf32> to vector<8x32xbf16>
    %c0_5 = arith.constant 0 : index
    %c0_6 = arith.constant 0 : index
    %9 = vector.load %arg4[%c0_5, %c0_6] : memref<8x32xbf16, #tpu.memory_space<vmem>>, vector<8x32xbf16>
    tpu.vector_store %arg4[%c0_5, %c0_6], %8 {strides = array<i32>} : memref<8x32xbf16, #tpu.memory_space<vmem>>, vector<8x32xbf16>,
    return
  }
  func.func @transform_0(%arg0: i32) -> (i32, i32) {
    %c0_i32 = arith.constant 0 : i32
    %c0_i32_0 = arith.constant 0 : i32
    return %arg0, %c0_i32 : i32, i32
  }
  func.func @transform_1(%arg0: i32) -> (i32, i32) {
    %c0_i32 = arith.constant 0 : i32
    %c0_i32_0 = arith.constant 0 : i32
    %c0_i32_1 = arith.constant 0 : i32
    return %c0_i32, %c0_i32_0 : i32, i32
  }
  func.func @transform_2(%arg0: i32) -> (i32, i32) {
    %c0_i32 = arith.constant 0 : i32
    %c0_i32_0 = arith.constant 0 : i32
    %c0_i32_1 = arith.constant 0 : i32
    return %c0_i32, %c0_i32_0 : i32, i32
  }
  func.func @transform_3(%arg0: i32) -> (i32, i32) {
    %c0_i32 = arith.constant 0 : i32
    %c0_i32_0 = arith.constant 0 : i32
    return %arg0, %c0_i32 : i32, i32
  }
}

module attributes {stable_mosaic.version = 11 : i64} {
  func.func @_mlp_kernel(%arg0: i32, %arg1: memref<8x17xbf16, #tpu.memory_space<vmem>>, %arg2: memref<17x128xbf16, #tpu.memory_space<vmem>>, %arg3: memref<1x128xf32, #tpu.memory_space<vmem>>, %arg4: memref<128x32xbf16, #tpu.memory_space<vmem>>, %arg5: memref<1x32xf32, #tpu.memory_space<vmem>>, %arg6: memref<8x32xbf16, #tpu.memory_space<vmem>>) attributes {dimension_semantics = [#tpu.dimension_semantics<parallel>], iteration_bounds = array<i64: 1>, scalar_prefetch = 0 : i64, scratch_operands = 0 : i64, tpu.core_type = #tpu.core_type<tc>, window_params = [{transform_indices = @transform_0, window_bounds = array<i64: 8, 17>}, {pipeline_mode = #tpu.pipeline_mode<synchronous>, transform_indices = @transform_1, window_bounds = array<i64: 17, 128>}, {pipeline_mode = #tpu.pipeline_mode<synchronous>, transform_indices = @transform_2, window_bounds = array<i64: 1, 128>}, {pipeline_mode = #tpu.pipeline_mode<synchronous>, transform_indices = @transform_3, window_bounds = array<i64: 128, 32>}, {pipeline_mode = #tpu.pipeline_mode<synchronous>, transform_indices = @transform_4, window_bounds = array<i64: 1, 32>}, {transform_indices = @transform_5, window_bounds = array<i64: 8, 32>}]} {
    %c0 = arith.constant 0 : index
    %c0_0 = arith.constant 0 : index
    %0 = vector.load %arg1[%c0, %c0_0] : memref<8x17xbf16, #tpu.memory_space<vmem>>, vector<8x17xbf16>
    %1 = arith.extf %0 : vector<8x17xbf16> to vector<8x17xf32>
    %2 = arith.truncf %1 : vector<8x17xf32> to vector<8x17xbf16>
    %c0_1 = arith.constant 0 : index
    %c0_2 = arith.constant 0 : index
    %3 = vector.load %arg2[%c0_1, %c0_2] : memref<17x128xbf16, #tpu.memory_space<vmem>>, vector<17x128xbf16>
    %cst = arith.constant dense<0.000000e+00> : vector<8x128xf32>
    %4 = tpu.matmul %2, %3, %cst {dimension_numbers = #tpu.dot_dimension_numbers<[1], [0], [0], [1], [0, 0, 1, 1], [], []>} : vector<8x17xbf16>, vector<17x128xbf16>, vector<8x128xf32> -> vector<8x128xf32>
    %c0_3 = arith.constant 0 : index
    %c0_4 = arith.constant 0 : index
    %5 = vector.load %arg3[%c0_3, %c0_4] : memref<1x128xf32, #tpu.memory_space<vmem>>, vector<1x128xf32>
    %6 = vector.broadcast %5 : vector<1x128xf32> to vector<8x128xf32>
    %7 = arith.addf %4, %6 : vector<8x128xf32>
    %8 = math.absf %7 : vector<8x128xf32>
    %cst_5 = arith.constant 0.707106769 : f32
    %9 = vector.broadcast %cst_5 : f32 to vector<8x128xf32>
    %10 = arith.mulf %8, %9 : vector<8x128xf32>
    %cst_6 = arith.constant 0.327591091 : f32
    %11 = vector.broadcast %cst_6 : f32 to vector<8x128xf32>
    %12 = arith.mulf %11, %10 : vector<8x128xf32>
    %cst_7 = arith.constant 1.000000e+00 : f32
    %13 = vector.broadcast %cst_7 : f32 to vector<8x128xf32>
    %14 = arith.addf %13, %12 : vector<8x128xf32>
    %15 = tpu.reciprocal %14 {approx = true} : vector<8x128xf32> -> vector<8x128xf32>
    %cst_8 = arith.constant 1.06140542 : f32
    %16 = vector.broadcast %cst_8 : f32 to vector<8x128xf32>
    %17 = arith.mulf %15, %16 : vector<8x128xf32>
    %cst_9 = arith.constant -1.45315206 : f32
    %18 = vector.broadcast %cst_9 : f32 to vector<8x128xf32>
    %19 = arith.addf %18, %17 : vector<8x128xf32>
    %20 = arith.mulf %15, %19 : vector<8x128xf32>
    %cst_10 = arith.constant 1.42141378 : f32
    %21 = vector.broadcast %cst_10 : f32 to vector<8x128xf32>
    %22 = arith.addf %21, %20 : vector<8x128xf32>
    %23 = arith.mulf %15, %22 : vector<8x128xf32>
    %cst_11 = arith.constant -0.284496725 : f32
    %24 = vector.broadcast %cst_11 : f32 to vector<8x128xf32>
    %25 = arith.addf %24, %23 : vector<8x128xf32>
    %26 = arith.mulf %15, %25 : vector<8x128xf32>
    %cst_12 = arith.constant 0.254829586 : f32
    %27 = vector.broadcast %cst_12 : f32 to vector<8x128xf32>
    %28 = arith.addf %27, %26 : vector<8x128xf32>
    %29 = arith.mulf %15, %28 : vector<8x128xf32>
    %cst_13 = arith.constant 0.000000e+00 : f32
    %30 = vector.broadcast %cst_13 : f32 to vector<8x128xf32>
    %31 = arith.subf %30, %10 : vector<8x128xf32>
    %32 = arith.mulf %31, %10 : vector<8x128xf32>
    %33 = math.exp %32 : vector<8x128xf32>
    %34 = arith.mulf %29, %33 : vector<8x128xf32>
    %cst_14 = arith.constant 1.000000e+00 : f32
    %35 = vector.broadcast %cst_14 : f32 to vector<8x128xf32>
    %36 = arith.subf %35, %34 : vector<8x128xf32>
    %37 = arith.mulf %8, %36 : vector<8x128xf32>
    %38 = arith.addf %7, %37 : vector<8x128xf32>
    %cst_15 = arith.constant 5.000000e-01 : f32
    %39 = vector.broadcast %cst_15 : f32 to vector<8x128xf32>
    %40 = arith.mulf %39, %38 : vector<8x128xf32>
    %41 = arith.truncf %40 : vector<8x128xf32> to vector<8x128xbf16>
    %c0_16 = arith.constant 0 : index
    %c0_17 = arith.constant 0 : index
    %42 = vector.load %arg4[%c0_16, %c0_17] : memref<128x32xbf16, #tpu.memory_space<vmem>>, vector<128x32xbf16>
    %cst_18 = arith.constant dense<0.000000e+00> : vector<8x32xf32>
    %43 = tpu.matmul %41, %42, %cst_18 {dimension_numbers = #tpu.dot_dimension_numbers<[1], [0], [0], [1], [0, 0, 1, 1], [], []>} : vector<8x128xbf16>, vector<128x32xbf16>, vector<8x32xf32> -> vector<8x32xf32>
    %c0_19 = arith.constant 0 : index
    %c0_20 = arith.constant 0 : index
    %44 = vector.load %arg5[%c0_19, %c0_20] : memref<1x32xf32, #tpu.memory_space<vmem>>, vector<1x32xf32>
    %45 = vector.broadcast %44 : vector<1x32xf32> to vector<8x32xf32>
    %46 = arith.addf %43, %45 : vector<8x32xf32>
    %47 = arith.truncf %46 : vector<8x32xf32> to vector<8x32xbf16>
    %c0_21 = arith.constant 0 : index
    %c0_22 = arith.constant 0 : index
    %48 = vector.load %arg6[%c0_21, %c0_22] : memref<8x32xbf16, #tpu.memory_space<vmem>>, vector<8x32xbf16>
    tpu.vector_store %arg6[%c0_21, %c0_22], %47 {strides = array<i32>} : memref<8x32xbf16, #tpu.memory_space<vmem>>, vector<8x32xbf16>,
    return
  }
  func.func @transform_0(%arg0: i32) -> (i32, i32) {
    %c0_i32 = arith.constant 0 : i32
    %c0_i32_0 = arith.constant 0 : i32
    return %arg0, %c0_i32 : i32, i32
  }
  func.func @transform_1(%arg0: i32) -> (i32, i32) {
    %c0_i32 = arith.constant 0 : i32
    %c0_i32_0 = arith.constant 0 : i32
    %c0_i32_1 = arith.constant 0 : i32
    return %c0_i32, %c0_i32_0 : i32, i32
  }
  func.func @transform_2(%arg0: i32) -> (i32, i32) {
    %c0_i32 = arith.constant 0 : i32
    %c0_i32_0 = arith.constant 0 : i32
    %c0_i32_1 = arith.constant 0 : i32
    return %c0_i32, %c0_i32_0 : i32, i32
  }
  func.func @transform_3(%arg0: i32) -> (i32, i32) {
    %c0_i32 = arith.constant 0 : i32
    %c0_i32_0 = arith.constant 0 : i32
    %c0_i32_1 = arith.constant 0 : i32
    return %c0_i32, %c0_i32_0 : i32, i32
  }
  func.func @transform_4(%arg0: i32) -> (i32, i32) {
    %c0_i32 = arith.constant 0 : i32
    %c0_i32_0 = arith.constant 0 : i32
    %c0_i32_1 = arith.constant 0 : i32
    return %c0_i32, %c0_i32_0 : i32, i32
  }
  func.func @transform_5(%arg0: i32) -> (i32, i32) {
    %c0_i32 = arith.constant 0 : i32
    %c0_i32_0 = arith.constant 0 : i32
    return %arg0, %c0_i32 : i32, i32
  }
}

module attributes {stable_mosaic.version = 11 : i64} {
  func.func @_mlp_kernel(%arg0: i32, %arg1: memref<16x32xbf16, #tpu.memory_space<vmem>>, %arg2: memref<16x32xbf16, #tpu.memory_space<vmem>>, %arg3: memref<32x128xbf16, #tpu.memory_space<vmem>>, %arg4: memref<1x128xf32, #tpu.memory_space<vmem>>, %arg5: memref<128x32xbf16, #tpu.memory_space<vmem>>, %arg6: memref<1x32xf32, #tpu.memory_space<vmem>>, %arg7: memref<1x32xf32, #tpu.memory_space<vmem>>, %arg8: memref<1x32xf32, #tpu.memory_space<vmem>>, %arg9: memref<16x32xbf16, #tpu.memory_space<vmem>>) attributes {dimension_semantics = [#tpu.dimension_semantics<parallel>], iteration_bounds = array<i64: 2>, scalar_prefetch = 0 : i64, scratch_operands = 0 : i64, tpu.core_type = #tpu.core_type<tc>, window_params = [{transform_indices = @transform_0, window_bounds = array<i64: 16, 32>}, {transform_indices = @transform_1, window_bounds = array<i64: 16, 32>}, {pipeline_mode = #tpu.pipeline_mode<synchronous>, transform_indices = @transform_2, window_bounds = array<i64: 32, 128>}, {pipeline_mode = #tpu.pipeline_mode<synchronous>, transform_indices = @transform_3, window_bounds = array<i64: 1, 128>}, {pipeline_mode = #tpu.pipeline_mode<synchronous>, transform_indices = @transform_4, window_bounds = array<i64: 128, 32>}, {pipeline_mode = #tpu.pipeline_mode<synchronous>, transform_indices = @transform_5, window_bounds = array<i64: 1, 32>}, {pipeline_mode = #tpu.pipeline_mode<synchronous>, transform_indices = @transform_6, window_bounds = array<i64: 1, 32>}, {pipeline_mode = #tpu.pipeline_mode<synchronous>, transform_indices = @transform_7, window_bounds = array<i64: 1, 32>}, {transform_indices = @transform_8, window_bounds = array<i64: 16, 32>}]} {
    %c0 = arith.constant 0 : index
    %c0_0 = arith.constant 0 : index
    %0 = vector.load %arg1[%c0, %c0_0] : memref<16x32xbf16, #tpu.memory_space<vmem>>, vector<16x32xbf16>
    %1 = arith.extf %0 : vector<16x32xbf16> to vector<16x32xf32>
    %2 = arith.truncf %1 : vector<16x32xf32> to vector<16x32xbf16>
    %c0_1 = arith.constant 0 : index
    %c0_2 = arith.constant 0 : index
    %3 = vector.load %arg3[%c0_1, %c0_2] : memref<32x128xbf16, #tpu.memory_space<vmem>>, vector<32x128xbf16>
    %cst = arith.constant dense<0.000000e+00> : vector<16x128xf32>
    %4 = tpu.matmul %2, %3, %cst {dimension_numbers = #tpu.dot_dimension_numbers<[1], [0], [0], [1], [0, 0, 1, 1], [], []>} : vector<16x32xbf16>, vector<32x128xbf16>, vector<16x128xf32> -> vector<16x128xf32>
    %c0_3 = arith.constant 0 : index
    %c0_4 = arith.constant 0 : index
    %5 = vector.load %arg4[%c0_3, %c0_4] : memref<1x128xf32, #tpu.memory_space<vmem>>, vector<1x128xf32>
    %6 = vector.broadcast %5 : vector<1x128xf32> to vector<16x128xf32>
    %7 = arith.addf %4, %6 : vector<16x128xf32>
    %8 = math.absf %7 : vector<16x128xf32>
    %cst_5 = arith.constant 0.707106769 : f32
    %9 = vector.broadcast %cst_5 : f32 to vector<16x128xf32>
    %10 = arith.mulf %8, %9 : vector<16x128xf32>
    %cst_6 = arith.constant 0.327591091 : f32
    %11 = vector.broadcast %cst_6 : f32 to vector<16x128xf32>
    %12 = arith.mulf %11, %10 : vector<16x128xf32>
    %cst_7 = arith.constant 1.000000e+00 : f32
    %13 = vector.broadcast %cst_7 : f32 to vector<16x128xf32>
    %14 = arith.addf %13, %12 : vector<16x128xf32>
    %15 = tpu.reciprocal %14 {approx = true} : vector<16x128xf32> -> vector<16x128xf32>
    %cst_8 = arith.constant 1.06140542 : f32
    %16 = vector.broadcast %cst_8 : f32 to vector<16x128xf32>
    %17 = arith.mulf %15, %16 : vector<16x128xf32>
    %cst_9 = arith.constant -1.45315206 : f32
    %18 = vector.broadcast %cst_9 : f32 to vector<16x128xf32>
    %19 = arith.addf %18, %17 : vector<16x128xf32>
    %20 = arith.mulf %15, %19 : vector<16x128xf32>
    %cst_10 = arith.constant 1.42141378 : f32
    %21 = vector.broadcast %cst_10 : f32 to vector<16x128xf32>
    %22 = arith.addf %21, %20 : vector<16x128xf32>
    %23 = arith.mulf %15, %22 : vector<16x128xf32>
    %cst_11 = arith.constant -0.284496725 : f32
    %24 = vector.broadcast %cst_11 : f32 to vector<16x128xf32>
    %25 = arith.addf %24, %23 : vector<16x128xf32>
    %26 = arith.mulf %15, %25 : vector<16x128xf32>
    %cst_12 = arith.constant 0.254829586 : f32
    %27 = vector.broadcast %cst_12 : f32 to vector<16x128xf32>
    %28 = arith.addf %27, %26 : vector<16x128xf32>
    %29 = arith.mulf %15, %28 : vector<16x128xf32>
    %cst_13 = arith.constant 0.000000e+00 : f32
    %30 = vector.broadcast %cst_13 : f32 to vector<16x128xf32>
    %31 = arith.subf %30, %10 : vector<16x128xf32>
    %32 = arith.mulf %31, %10 : vector<16x128xf32>
    %33 = math.exp %32 : vector<16x128xf32>
    %34 = arith.mulf %29, %33 : vector<16x128xf32>
    %cst_14 = arith.constant 1.000000e+00 : f32
    %35 = vector.broadcast %cst_14 : f32 to vector<16x128xf32>
    %36 = arith.subf %35, %34 : vector<16x128xf32>
    %37 = arith.mulf %8, %36 : vector<16x128xf32>
    %38 = arith.addf %7, %37 : vector<16x128xf32>
    %cst_15 = arith.constant 5.000000e-01 : f32
    %39 = vector.broadcast %cst_15 : f32 to vector<16x128xf32>
    %40 = arith.mulf %39, %38 : vector<16x128xf32>
    %41 = arith.truncf %40 : vector<16x128xf32> to vector<16x128xbf16>
    %c0_16 = arith.constant 0 : index
    %c0_17 = arith.constant 0 : index
    %42 = vector.load %arg5[%c0_16, %c0_17] : memref<128x32xbf16, #tpu.memory_space<vmem>>, vector<128x32xbf16>
    %cst_18 = arith.constant dense<0.000000e+00> : vector<16x32xf32>
    %43 = tpu.matmul %41, %42, %cst_18 {dimension_numbers = #tpu.dot_dimension_numbers<[1], [0], [0], [1], [0, 0, 1, 1], [], []>} : vector<16x128xbf16>, vector<128x32xbf16>, vector<16x32xf32> -> vector<16x32xf32>
    %c0_19 = arith.constant 0 : index
    %c0_20 = arith.constant 0 : index
    %44 = vector.load %arg6[%c0_19, %c0_20] : memref<1x32xf32, #tpu.memory_space<vmem>>, vector<1x32xf32>
    %45 = vector.broadcast %44 : vector<1x32xf32> to vector<16x32xf32>
    %46 = arith.addf %43, %45 : vector<16x32xf32>
    %cst_21 = arith.constant dense<0.000000e+00> : vector<16xf32>
    %47 = vector.multi_reduction <add>, %46, %cst_21 [1] : vector<16x32xf32> to vector<16xf32>
    %48 = vector.shape_cast %47 : vector<16xf32> to vector<16x1xf32>
    %cst_22 = arith.constant 3.200000e+01 : f32
    %49 = vector.broadcast %cst_22 : f32 to vector<16x1xf32>
    %50 = arith.divf %48, %49 : vector<16x1xf32>
    %51 = vector.broadcast %50 : vector<16x1xf32> to vector<16x32xf32>
    %52 = arith.subf %46, %51 : vector<16x32xf32>
    %53 = arith.mulf %52, %52 : vector<16x32xf32>
    %cst_23 = arith.constant dense<0.000000e+00> : vector<16xf32>
    %54 = vector.multi_reduction <add>, %53, %cst_23 [1] : vector<16x32xf32> to vector<16xf32>
    %55 = vector.shape_cast %54 : vector<16xf32> to vector<16x1xf32>
    %cst_24 = arith.constant 3.200000e+01 : f32
    %56 = vector.broadcast %cst_24 : f32 to vector<16x1xf32>
    %57 = arith.divf %55, %56 : vector<16x1xf32>
    %cst_25 = arith.constant 9.99999974E-6 : f32
    %58 = vector.broadcast %cst_25 : f32 to vector<16x1xf32>
    %59 = arith.addf %57, %58 : vector<16x1xf32>
    %60 = math.rsqrt %59 : vector<16x1xf32>
    %61 = vector.broadcast %60 : vector<16x1xf32> to vector<16x32xf32>
    %62 = arith.mulf %52, %61 : vector<16x32xf32>
    %c0_26 = arith.constant 0 : index
    %c0_27 = arith.constant 0 : index
    %63 = vector.load %arg7[%c0_26, %c0_27] : memref<1x32xf32, #tpu.memory_space<vmem>>, vector<1x32xf32>
    %64 = vector.broadcast %63 : vector<1x32xf32> to vector<16x32xf32>
    %65 = arith.mulf %62, %64 : vector<16x32xf32>
    %c0_28 = arith.constant 0 : index
    %c0_29 = arith.constant 0 : index
    %66 = vector.load %arg8[%c0_28, %c0_29] : memref<1x32xf32, #tpu.memory_space<vmem>>, vector<1x32xf32>
    %67 = vector.broadcast %66 : vector<1x32xf32> to vector<16x32xf32>
    %68 = arith.addf %65, %67 : vector<16x32xf32>
    %c0_30 = arith.constant 0 : index
    %c0_31 = arith.constant 0 : index
    %69 = vector.load %arg2[%c0_30, %c0_31] : memref<16x32xbf16, #tpu.memory_space<vmem>>, vector<16x32xbf16>
    %70 = arith.extf %69 : vector<16x32xbf16> to vector<16x32xf32>
    %71 = arith.addf %68, %70 : vector<16x32xf32>
    %72 = arith.truncf %71 : vector<16x32xf32> to vector<16x32xbf16>
    %c0_32 = arith.constant 0 : index
    %c0_33 = arith.constant 0 : index
    %73 = vector.load %arg9[%c0_32, %c0_33] : memref<16x32xbf16, #tpu.memory_space<vmem>>, vector<16x32xbf16>
    tpu.vector_store %arg9[%c0_32, %c0_33], %72 {strides = array<i32>} : memref<16x32xbf16, #tpu.memory_space<vmem>>, vector<16x32xbf16>,
    return
  }
  func.func @transform_0(%arg0: i32) -> (i32, i32) {
    %c0_i32 = arith.constant 0 : i32
    %c0_i32_0 = arith.constant 0 : i32
    return %arg0, %c0_i32 : i32, i32
  }
  func.func @transform_1(%arg0: i32) -> (i32, i32) {
    %c0_i32 = arith.constant 0 : i32
    %c0_i32_0 = arith.constant 0 : i32
    return %arg0, %c0_i32 : i32, i32
  }
  func.func @transform_2(%arg0: i32) -> (i32, i32) {
    %c0_i32 = arith.constant 0 : i32
    %c0_i32_0 = arith.constant 0 : i32
    %c0_i32_1 = arith.constant 0 : i32
    return %c0_i32, %c0_i32_0 : i32, i32
  }
  func.func @transform_3(%arg0: i32) -> (i32, i32) {
    %c0_i32 = arith.constant 0 : i32
    %c0_i32_0 = arith.constant 0 : i32
    %c0_i32_1 = arith.constant 0 : i32
    return %c0_i32, %c0_i32_0 : i32, i32
  }
  func.func @transform_4(%arg0: i32) -> (i32, i32) {
    %c0_i32 = arith.constant 0 : i32
    %c0_i32_0 = arith.constant 0 : i32
    %c0_i32_1 = arith.constant 0 : i32
    return %c0_i32, %c0_i32_0 : i32, i32
  }
  func.func @transform_5(%arg0: i32) -> (i32, i32) {
    %c0_i32 = arith.constant 0 : i32
    %c0_i32_0 = arith.constant 0 : i32
    %c0_i32_1 = arith.constant 0 : i32
    return %c0_i32, %c0_i32_0 : i32, i32
  }
  func.func @transform_6(%arg0: i32) -> (i32, i32) {
    %c0_i32 = arith.constant 0 : i32
    %c0_i32_0 = arith.constant 0 : i32
    %c0_i32_1 = arith.constant 0 : i32
    return %c0_i32, %c0_i32_0 : i32, i32
  }
  func.func @transform_7(%arg0: i32) -> (i32, i32) {
    %c0_i32 = arith.constant 0 : i32
    %c0_i32_0 = arith.constant 0 : i32
    %c0_i32_1 = arith.constant 0 : i32
    return %c0_i32, %c0_i32_0 : i32, i32
  }
  func.func @transform_8(%arg0: i32) -> (i32, i32) {
    %c0_i32 = arith.constant 0 : i32
    %c0_i32_0 = arith.constant 0 : i32
    return %arg0, %c0_i32 : i32, i32
  }
}

module attributes {stable_mosaic.version = 11 : i64} {
  func.func @_mlp_kernel(%arg0: i32, %arg1: memref<16x32xbf16, #tpu.memory_space<vmem>>, %arg2: memref<1x32xf32, #tpu.memory_space<vmem>>, %arg3: memref<32x128xbf16, #tpu.memory_space<vmem>>, %arg4: memref<1x128xf32, #tpu.memory_space<vmem>>, %arg5: memref<128x32xbf16, #tpu.memory_space<vmem>>, %arg6: memref<1x32xf32, #tpu.memory_space<vmem>>, %arg7: memref<16x32xbf16, #tpu.memory_space<vmem>>) attributes {dimension_semantics = [#tpu.dimension_semantics<parallel>], iteration_bounds = array<i64: 2>, scalar_prefetch = 0 : i64, scratch_operands = 0 : i64, tpu.core_type = #tpu.core_type<tc>, window_params = [{transform_indices = @transform_0, window_bounds = array<i64: 16, 32>}, {pipeline_mode = #tpu.pipeline_mode<synchronous>, transform_indices = @transform_1, window_bounds = array<i64: 1, 32>}, {pipeline_mode = #tpu.pipeline_mode<synchronous>, transform_indices = @transform_2, window_bounds = array<i64: 32, 128>}, {pipeline_mode = #tpu.pipeline_mode<synchronous>, transform_indices = @transform_3, window_bounds = array<i64: 1, 128>}, {pipeline_mode = #tpu.pipeline_mode<synchronous>, transform_indices = @transform_4, window_bounds = array<i64: 128, 32>}, {pipeline_mode = #tpu.pipeline_mode<synchronous>, transform_indices = @transform_5, window_bounds = array<i64: 1, 32>}, {transform_indices = @transform_6, window_bounds = array<i64: 16, 32>}]} {
    %c0 = arith.constant 0 : index
    %c0_0 = arith.constant 0 : index
    %0 = vector.load %arg1[%c0, %c0_0] : memref<16x32xbf16, #tpu.memory_space<vmem>>, vector<16x32xbf16>
    %1 = arith.extf %0 : vector<16x32xbf16> to vector<16x32xf32>
    %cst = arith.constant dense<0.000000e+00> : vector<16xf32>
    %2 = vector.multi_reduction <add>, %1, %cst [1] : vector<16x32xf32> to vector<16xf32>
    %3 = vector.shape_cast %2 : vector<16xf32> to vector<16x1xf32>
    %cst_1 = arith.constant 3.200000e+01 : f32
    %4 = vector.broadcast %cst_1 : f32 to vector<16x1xf32>
    %5 = arith.divf %3, %4 : vector<16x1xf32>
    %6 = vector.broadcast %5 : vector<16x1xf32> to vector<16x32xf32>
    %7 = arith.subf %1, %6 : vector<16x32xf32>
    %8 = arith.mulf %7, %7 : vector<16x32xf32>
    %cst_2 = arith.constant dense<0.000000e+00> : vector<16xf32>
    %9 = vector.multi_reduction <add>, %8, %cst_2 [1] : vector<16x32xf32> to vector<16xf32>
    %10 = vector.shape_cast %9 : vector<16xf32> to vector<16x1xf32>
    %cst_3 = arith.constant 3.200000e+01 : f32
    %11 = vector.broadcast %cst_3 : f32 to vector<16x1xf32>
    %12 = arith.divf %10, %11 : vector<16x1xf32>
    %cst_4 = arith.constant 9.99999974E-6 : f32
    %13 = vector.broadcast %cst_4 : f32 to vector<16x1xf32>
    %14 = arith.addf %12, %13 : vector<16x1xf32>
    %15 = math.rsqrt %14 : vector<16x1xf32>
    %16 = vector.broadcast %15 : vector<16x1xf32> to vector<16x32xf32>
    %17 = arith.mulf %7, %16 : vector<16x32xf32>
    %c0_5 = arith.constant 0 : index
    %c0_6 = arith.constant 0 : index
    %18 = vector.load %arg2[%c0_5, %c0_6] : memref<1x32xf32, #tpu.memory_space<vmem>>, vector<1x32xf32>
    %19 = vector.broadcast %18 : vector<1x32xf32> to vector<16x32xf32>
    %20 = arith.mulf %17, %19 : vector<16x32xf32>
    %21 = arith.truncf %20 : vector<16x32xf32> to vector<16x32xbf16>
    %c0_7 = arith.constant 0 : index
    %c0_8 = arith.constant 0 : index
    %22 = vector.load %arg3[%c0_7, %c0_8] : memref<32x128xbf16, #tpu.memory_space<vmem>>, vector<32x128xbf16>
    %cst_9 = arith.constant dense<0.000000e+00> : vector<16x128xf32>
    %23 = tpu.matmul %21, %22, %cst_9 {dimension_numbers = #tpu.dot_dimension_numbers<[1], [0], [0], [1], [0, 0, 1, 1], [], []>} : vector<16x32xbf16>, vector<32x128xbf16>, vector<16x128xf32> -> vector<16x128xf32>
    %c0_10 = arith.constant 0 : index
    %c0_11 = arith.constant 0 : index
    %24 = vector.load %arg4[%c0_10, %c0_11] : memref<1x128xf32, #tpu.memory_space<vmem>>, vector<1x128xf32>
    %25 = vector.broadcast %24 : vector<1x128xf32> to vector<16x128xf32>
    %26 = arith.addf %23, %25 : vector<16x128xf32>
    %27 = math.absf %26 : vector<16x128xf32>
    %cst_12 = arith.constant 0.707106769 : f32
    %28 = vector.broadcast %cst_12 : f32 to vector<16x128xf32>
    %29 = arith.mulf %27, %28 : vector<16x128xf32>
    %cst_13 = arith.constant 0.327591091 : f32
    %30 = vector.broadcast %cst_13 : f32 to vector<16x128xf32>
    %31 = arith.mulf %30, %29 : vector<16x128xf32>
    %cst_14 = arith.constant 1.000000e+00 : f32
    %32 = vector.broadcast %cst_14 : f32 to vector<16x128xf32>
    %33 = arith.addf %32, %31 : vector<16x128xf32>
    %34 = tpu.reciprocal %33 {approx = true} : vector<16x128xf32> -> vector<16x128xf32>
    %cst_15 = arith.constant 1.06140542 : f32
    %35 = vector.broadcast %cst_15 : f32 to vector<16x128xf32>
    %36 = arith.mulf %34, %35 : vector<16x128xf32>
    %cst_16 = arith.constant -1.45315206 : f32
    %37 = vector.broadcast %cst_16 : f32 to vector<16x128xf32>
    %38 = arith.addf %37, %36 : vector<16x128xf32>
    %39 = arith.mulf %34, %38 : vector<16x128xf32>
    %cst_17 = arith.constant 1.42141378 : f32
    %40 = vector.broadcast %cst_17 : f32 to vector<16x128xf32>
    %41 = arith.addf %40, %39 : vector<16x128xf32>
    %42 = arith.mulf %34, %41 : vector<16x128xf32>
    %cst_18 = arith.constant -0.284496725 : f32
    %43 = vector.broadcast %cst_18 : f32 to vector<16x128xf32>
    %44 = arith.addf %43, %42 : vector<16x128xf32>
    %45 = arith.mulf %34, %44 : vector<16x128xf32>
    %cst_19 = arith.constant 0.254829586 : f32
    %46 = vector.broadcast %cst_19 : f32 to vector<16x128xf32>
    %47 = arith.addf %46, %45 : vector<16x128xf32>
    %48 = arith.mulf %34, %47 : vector<16x128xf32>
    %cst_20 = arith.constant 0.000000e+00 : f32
    %49 = vector.broadcast %cst_20 : f32 to vector<16x128xf32>
    %50 = arith.subf %49, %29 : vector<16x128xf32>
    %51 = arith.mulf %50, %29 : vector<16x128xf32>
    %52 = math.exp %51 : vector<16x128xf32>
    %53 = arith.mulf %48, %52 : vector<16x128xf32>
    %cst_21 = arith.constant 1.000000e+00 : f32
    %54 = vector.broadcast %cst_21 : f32 to vector<16x128xf32>
    %55 = arith.subf %54, %53 : vector<16x128xf32>
    %56 = arith.mulf %27, %55 : vector<16x128xf32>
    %57 = arith.addf %26, %56 : vector<16x128xf32>
    %cst_22 = arith.constant 5.000000e-01 : f32
    %58 = vector.broadcast %cst_22 : f32 to vector<16x128xf32>
    %59 = arith.mulf %58, %57 : vector<16x128xf32>
    %60 = arith.truncf %59 : vector<16x128xf32> to vector<16x128xbf16>
    %c0_23 = arith.constant 0 : index
    %c0_24 = arith.constant 0 : index
    %61 = vector.load %arg5[%c0_23, %c0_24] : memref<128x32xbf16, #tpu.memory_space<vmem>>, vector<128x32xbf16>
    %cst_25 = arith.constant dense<0.000000e+00> : vector<16x32xf32>
    %62 = tpu.matmul %60, %61, %cst_25 {dimension_numbers = #tpu.dot_dimension_numbers<[1], [0], [0], [1], [0, 0, 1, 1], [], []>} : vector<16x128xbf16>, vector<128x32xbf16>, vector<16x32xf32> -> vector<16x32xf32>
    %c0_26 = arith.constant 0 : index
    %c0_27 = arith.constant 0 : index
    %63 = vector.load %arg6[%c0_26, %c0_27] : memref<1x32xf32, #tpu.memory_space<vmem>>, vector<1x32xf32>
    %64 = vector.broadcast %63 : vector<1x32xf32> to vector<16x32xf32>
    %65 = arith.addf %62, %64 : vector<16x32xf32>
    %66 = arith.addf %65, %1 : vector<16x32xf32>
    %67 = arith.truncf %66 : vector<16x32xf32> to vector<16x32xbf16>
    %c0_28 = arith.constant 0 : index
    %c0_29 = arith.constant 0 : index
    %68 = vector.load %arg7[%c0_28, %c0_29] : memref<16x32xbf16, #tpu.memory_space<vmem>>, vector<16x32xbf16>
    tpu.vector_store %arg7[%c0_28, %c0_29], %67 {strides = array<i32>} : memref<16x32xbf16, #tpu.memory_space<vmem>>, vector<16x32xbf16>,
    return
  }
  func.func @transform_0(%arg0: i32) -> (i32, i32) {
    %c0_i32 = arith.constant 0 : i32
    %c0_i32_0 = arith.constant 0 : i32
    return %arg0, %c0_i32 : i32, i32
  }
  func.func @transform_1(%arg0: i32) -> (i32, i32) {
    %c0_i32 = arith.constant 0 : i32
    %c0_i32_0 = arith.constant 0 : i32
    %c0_i32_1 = arith.constant 0 : i32
    return %c0_i32, %c0_i32_0 : i32, i32
  }
  func.func @transform_2(%arg0: i32) -> (i32, i32) {
    %c0_i32 = arith.constant 0 : i32
    %c0_i32_0 = arith.constant 0 : i32
    %c0_i32_1 = arith.constant 0 : i32
    return %c0_i32, %c0_i32_0 : i32, i32
  }
  func.func @transform_3(%arg0: i32) -> (i32, i32) {
    %c0_i32 = arith.constant 0 : i32
    %c0_i32_0 = arith.constant 0 : i32
    %c0_i32_1 = arith.constant 0 : i32
    return %c0_i32, %c0_i32_0 : i32, i32
  }
  func.func @transform_4(%arg0: i32) -> (i32, i32) {
    %c0_i32 = arith.constant 0 : i32
    %c0_i32_0 = arith.constant 0 : i32
    %c0_i32_1 = arith.constant 0 : i32
    return %c0_i32, %c0_i32_0 : i32, i32
  }
  func.func @transform_5(%arg0: i32) -> (i32, i32) {
    %c0_i32 = arith.constant 0 : i32
    %c0_i32_0 = arith.constant 0 : i32
    %c0_i32_1 = arith.constant 0 : i32
    return %c0_i32, %c0_i32_0 : i32, i32
  }
  func.func @transform_6(%arg0: i32) -> (i32, i32) {
    %c0_i32 = arith.constant 0 : i32
    %c0_i32_0 = arith.constant 0 : i32
    return %arg0, %c0_i32 : i32, i32
  }
}

module attributes {stable_mosaic.version = 11 : i64} {
  func.func @_attn_kernel(%arg0: i32, %arg1: i32, %arg2: memref<1x9x32xbf16, #tpu.memory_space<vmem>>, %arg3: memref<1x68x32xbf16, #tpu.memory_space<vmem>>, %arg4: memref<1x32xf32, #tpu.memory_space<vmem>>, %arg5: memref<2x32x32xbf16, #tpu.memory_space<vmem>>, %arg6: memref<2x32x32xbf16, #tpu.memory_space<vmem>>, %arg7: memref<2x32x32xbf16, #tpu.memory_space<vmem>>, %arg8: memref<2x32x32xbf16, #tpu.memory_space<vmem>>, %arg9: memref<1x9x32xbf16, #tpu.memory_space<vmem>>) attributes {dimension_semantics = [#tpu.dimension_semantics<parallel>, #tpu.dimension_semantics<parallel>], iteration_bounds = array<i64: 2, 1>, scalar_prefetch = 0 : i64, scratch_operands = 0 : i64, tpu.core_type = #tpu.core_type<tc>, window_params = [{transform_indices = @transform_0, window_bounds = array<i64: 1, 9, 32>}, {transform_indices = @transform_1, window_bounds = array<i64: 1, 68, 32>}, {pipeline_mode = #tpu.pipeline_mode<synchronous>, transform_indices = @transform_2, window_bounds = array<i64: 1, 32>}, {pipeline_mode = #tpu.pipeline_mode<synchronous>, transform_indices = @transform_3, window_bounds = array<i64: 2, 32, 32>}, {pipeline_mode = #tpu.pipeline_mode<synchronous>, transform_indices = @transform_4, window_bounds = array<i64: 2, 32, 32>}, {pipeline_mode = #tpu.pipeline_mode<synchronous>, transform_indices = @transform_5, window_bounds = array<i64: 2, 32, 32>}, {pipeline_mode = #tpu.pipeline_mode<synchronous>, transform_indices = @transform_6, window_bounds = array<i64: 2, 32, 32>}, {transform_indices = @transform_7, window_bounds = array<i64: 1, 9, 32>}]} {
    %c0 = arith.constant 0 : index
    %c0_0 = arith.constant 0 : index
    %c0_1 = arith.constant 0 : index
    %0 = vector.load %arg2[%c0, %c0_0, %c0_1] : memref<1x9x32xbf16, #tpu.memory_space<vmem>>, vector<1x9x32xbf16>
    %1 = vector.shape_cast %0 : vector<1x9x32xbf16> to vector<9x32xbf16>
    %2 = arith.extf %1 : vector<9x32xbf16> to vector<9x32xf32>
    %cst = arith.constant dense<0.000000e+00> : vector<9xf32>
    %3 = vector.multi_reduction <add>, %2, %cst [1] : vector<9x32xf32> to vector<9xf32>
    %4 = vector.shape_cast %3 : vector<9xf32> to vector<9x1xf32>
    %cst_2 = arith.constant 3.200000e+01 : f32
    %5 = vector.broadcast %cst_2 : f32 to vector<9x1xf32>
    %6 = arith.divf %4, %5 : vector<9x1xf32>
    %7 = vector.broadcast %6 : vector<9x1xf32> to vector<9x32xf32>
    %8 = arith.subf %2, %7 : vector<9x32xf32>
    %9 = arith.mulf %8, %8 : vector<9x32xf32>
    %cst_3 = arith.constant dense<0.000000e+00> : vector<9xf32>
    %10 = vector.multi_reduction <add>, %9, %cst_3 [1] : vector<9x32xf32> to vector<9xf32>
    %11 = vector.shape_cast %10 : vector<9xf32> to vector<9x1xf32>
    %cst_4 = arith.constant 3.200000e+01 : f32
    %12 = vector.broadcast %cst_4 : f32 to vector<9x1xf32>
    %13 = arith.divf %11, %12 : vector<9x1xf32>
    %cst_5 = arith.constant 9.99999974E-6 : f32
    %14 = vector.broadcast %cst_5 : f32 to vector<9x1xf32>
    %15 = arith.addf %13, %14 : vector<9x1xf32>
    %16 = math.rsqrt %15 : vector<9x1xf32>
    %17 = vector.broadcast %16 : vector<9x1xf32> to vector<9x32xf32>
    %18 = arith.mulf %8, %17 : vector<9x32xf32>
    %c0_6 = arith.constant 0 : index
    %c0_7 = arith.constant 0 : index
    %19 = vector.load %arg4[%c0_6, %c0_7] : memref<1x32xf32, #tpu.memory_space<vmem>>, vector<1x32xf32>
    %20 = vector.broadcast %19 : vector<1x32xf32> to vector<9x32xf32>
    %21 = arith.mulf %18, %20 : vector<9x32xf32>
    %22 = arith.truncf %21 : vector<9x32xf32> to vector<9x32xbf16>
    %c0_8 = arith.constant 0 : index
    %c0_9 = arith.constant 0 : index
    %c0_10 = arith.constant 0 : index
    %23 = vector.load %arg3[%c0_8, %c0_9, %c0_10] : memref<1x68x32xbf16, #tpu.memory_space<vmem>>, vector<1x68x32xbf16>
    %24 = vector.shape_cast %23 : vector<1x68x32xbf16> to vector<68x32xbf16>
    %c0_11 = arith.constant 0 : index
    %c0_12 = arith.constant 0 : index
    %c0_13 = arith.constant 0 : index
    %25 = vector.load %arg5[%c0_11, %c0_12, %c0_13] : memref<2x32x32xbf16, #tpu.memory_space<vmem>>, vector<1x32x32xbf16>
    %26 = vector.shape_cast %25 : vector<1x32x32xbf16> to vector<32x32xbf16>
    %cst_14 = arith.constant dense<0.000000e+00> : vector<9x32xf32>
    %27 = tpu.matmul %22, %26, %cst_14 {dimension_numbers = #tpu.dot_dimension_numbers<[1], [0], [0], [1], [0, 0, 1, 1], [], []>} : vector<9x32xbf16>, vector<32x32xbf16>, vector<9x32xf32> -> vector<9x32xf32>
    %c0_15 = arith.constant 0 : index
    %c0_16 = arith.constant 0 : index
    %c0_17 = arith.constant 0 : index
    %28 = vector.load %arg6[%c0_15, %c0_16, %c0_17] : memref<2x32x32xbf16, #tpu.memory_space<vmem>>, vector<1x32x32xbf16>
    %29 = vector.shape_cast %28 : vector<1x32x32xbf16> to vector<32x32xbf16>
    %cst_18 = arith.constant dense<0.000000e+00> : vector<68x32xf32>
    %30 = tpu.matmul %24, %29, %cst_18 {dimension_numbers = #tpu.dot_dimension_numbers<[1], [0], [0], [1], [0, 0, 1, 1], [], []>} : vector<68x32xbf16>, vector<32x32xbf16>, vector<68x32xf32> -> vector<68x32xf32>
    %c0_19 = arith.constant 0 : index
    %c0_20 = arith.constant 0 : index
    %c0_21 = arith.constant 0 : index
    %31 = vector.load %arg7[%c0_19, %c0_20, %c0_21] : memref<2x32x32xbf16, #tpu.memory_space<vmem>>, vector<1x32x32xbf16>
    %32 = vector.shape_cast %31 : vector<1x32x32xbf16> to vector<32x32xbf16>
    %cst_22 = arith.constant dense<0.000000e+00> : vector<68x32xf32>
    %33 = tpu.matmul %24, %32, %cst_22 {dimension_numbers = #tpu.dot_dimension_numbers<[1], [0], [0], [1], [0, 0, 1, 1], [], []>} : vector<68x32xbf16>, vector<32x32xbf16>, vector<68x32xf32> -> vector<68x32xf32>
    %34 = arith.truncf %27 : vector<9x32xf32> to vector<9x32xbf16>
    %35 = arith.truncf %30 : vector<68x32xf32> to vector<68x32xbf16>
    %cst_23 = arith.constant dense<0.000000e+00> : vector<9x68xf32>
    %36 = tpu.matmul %34, %35, %cst_23 {dimension_numbers = #tpu.dot_dimension_numbers<[1], [1], [0], [0], [0, 0, 1, 0], [], []>} : vector<9x32xbf16>, vector<68x32xbf16>, vector<9x68xf32> -> vector<9x68xf32>
    %cst_24 = arith.constant 0.176776692 : f32
    %37 = vector.broadcast %cst_24 : f32 to vector<9x68xf32>
    %38 = arith.mulf %36, %37 : vector<9x68xf32>
    %cst_25 = arith.constant dense<0xFF800000> : vector<9xf32>
    %39 = vector.multi_reduction <maximumf>, %38, %cst_25 [1] : vector<9x68xf32> to vector<9xf32>
    %40 = vector.shape_cast %39 : vector<9xf32> to vector<9x1xf32>
    %41 = vector.broadcast %40 : vector<9x1xf32> to vector<9x68xf32>
    %42 = arith.subf %38, %41 : vector<9x68xf32>
    %43 = math.exp %42 : vector<9x68xf32>
    %cst_26 = arith.constant dense<0.000000e+00> : vector<9xf32>
    %44 = vector.multi_reduction <add>, %43, %cst_26 [1] : vector<9x68xf32> to vector<9xf32>
    %45 = vector.shape_cast %44 : vector<9xf32> to vector<9x1xf32>
    %46 = tpu.reciprocal %45 {approx = true} : vector<9x1xf32> -> vector<9x1xf32>
    %47 = vector.broadcast %46 : vector<9x1xf32> to vector<9x68xf32>
    %48 = arith.mulf %43, %47 : vector<9x68xf32>
    %49 = arith.truncf %48 : vector<9x68xf32> to vector<9x68xbf16>
    %50 = arith.truncf %33 : vector<68x32xf32> to vector<68x32xbf16>
    %cst_27 = arith.constant dense<0.000000e+00> : vector<9x32xf32>
    %51 = tpu.matmul %49, %50, %cst_27 {dimension_numbers = #tpu.dot_dimension_numbers<[1], [0], [0], [1], [0, 0, 1, 1], [], []>} : vector<9x68xbf16>, vector<68x32xbf16>, vector<9x32xf32> -> vector<9x32xf32>
    %52 = arith.truncf %51 : vector<9x32xf32> to vector<9x32xbf16>
    %c0_28 = arith.constant 0 : index
    %c0_29 = arith.constant 0 : index
    %c0_30 = arith.constant 0 : index
    %53 = vector.load %arg8[%c0_28, %c0_29, %c0_30] : memref<2x32x32xbf16, #tpu.memory_space<vmem>>, vector<1x32x32xbf16>
    %54 = vector.shape_cast %53 : vector<1x32x32xbf16> to vector<32x32xbf16>
    %cst_31 = arith.constant dense<0.000000e+00> : vector<9x32xf32>
    %55 = tpu.matmul %52, %54, %cst_31 {dimension_numbers = #tpu.dot_dimension_numbers<[1], [0], [0], [1], [0, 0, 1, 1], [], []>} : vector<9x32xbf16>, vector<32x32xbf16>, vector<9x32xf32> -> vector<9x32xf32>
    %56 = arith.addf %2, %55 : vector<9x32xf32>
    %c1 = arith.constant 1 : index
    %c0_32 = arith.constant 0 : index
    %c0_33 = arith.constant 0 : index
    %57 = vector.load %arg5[%c1, %c0_32, %c0_33] : memref<2x32x32xbf16, #tpu.memory_space<vmem>>, vector<1x32x32xbf16>
    %58 = vector.shape_cast %57 : vector<1x32x32xbf16> to vector<32x32xbf16>
    %cst_34 = arith.constant dense<0.000000e+00> : vector<9x32xf32>
    %59 = tpu.matmul %22, %58, %cst_34 {dimension_numbers = #tpu.dot_dimension_numbers<[1], [0], [0], [1], [0, 0, 1, 1], [], []>} : vector<9x32xbf16>, vector<32x32xbf16>, vector<9x32xf32> -> vector<9x32xf32>
    %c1_35 = arith.constant 1 : index
    %c0_36 = arith.constant 0 : index
    %c0_37 = arith.constant 0 : index
    %60 = vector.load %arg6[%c1_35, %c0_36, %c0_37] : memref<2x32x32xbf16, #tpu.memory_space<vmem>>, vector<1x32x32xbf16>
    %61 = vector.shape_cast %60 : vector<1x32x32xbf16> to vector<32x32xbf16>
    %cst_38 = arith.constant dense<0.000000e+00> : vector<68x32xf32>
    %62 = tpu.matmul %24, %61, %cst_38 {dimension_numbers = #tpu.dot_dimension_numbers<[1], [0], [0], [1], [0, 0, 1, 1], [], []>} : vector<68x32xbf16>, vector<32x32xbf16>, vector<68x32xf32> -> vector<68x32xf32>
    %c1_39 = arith.constant 1 : index
    %c0_40 = arith.constant 0 : index
    %c0_41 = arith.constant 0 : index
    %63 = vector.load %arg7[%c1_39, %c0_40, %c0_41] : memref<2x32x32xbf16, #tpu.memory_space<vmem>>, vector<1x32x32xbf16>
    %64 = vector.shape_cast %63 : vector<1x32x32xbf16> to vector<32x32xbf16>
    %cst_42 = arith.constant dense<0.000000e+00> : vector<68x32xf32>
    %65 = tpu.matmul %24, %64, %cst_42 {dimension_numbers = #tpu.dot_dimension_numbers<[1], [0], [0], [1], [0, 0, 1, 1], [], []>} : vector<68x32xbf16>, vector<32x32xbf16>, vector<68x32xf32> -> vector<68x32xf32>
    %66 = arith.truncf %59 : vector<9x32xf32> to vector<9x32xbf16>
    %67 = arith.truncf %62 : vector<68x32xf32> to vector<68x32xbf16>
    %cst_43 = arith.constant dense<0.000000e+00> : vector<9x68xf32>
    %68 = tpu.matmul %66, %67, %cst_43 {dimension_numbers = #tpu.dot_dimension_numbers<[1], [1], [0], [0], [0, 0, 1, 0], [], []>} : vector<9x32xbf16>, vector<68x32xbf16>, vector<9x68xf32> -> vector<9x68xf32>
    %cst_44 = arith.constant 0.176776692 : f32
    %69 = vector.broadcast %cst_44 : f32 to vector<9x68xf32>
    %70 = arith.mulf %68, %69 : vector<9x68xf32>
    %cst_45 = arith.constant dense<0xFF800000> : vector<9xf32>
    %71 = vector.multi_reduction <maximumf>, %70, %cst_45 [1] : vector<9x68xf32> to vector<9xf32>
    %72 = vector.shape_cast %71 : vector<9xf32> to vector<9x1xf32>
    %73 = vector.broadcast %72 : vector<9x1xf32> to vector<9x68xf32>
    %74 = arith.subf %70, %73 : vector<9x68xf32>
    %75 = math.exp %74 : vector<9x68xf32>
    %cst_46 = arith.constant dense<0.000000e+00> : vector<9xf32>
    %76 = vector.multi_reduction <add>, %75, %cst_46 [1] : vector<9x68xf32> to vector<9xf32>
    %77 = vector.shape_cast %76 : vector<9xf32> to vector<9x1xf32>
    %78 = tpu.reciprocal %77 {approx = true} : vector<9x1xf32> -> vector<9x1xf32>
    %79 = vector.broadcast %78 : vector<9x1xf32> to vector<9x68xf32>
    %80 = arith.mulf %75, %79 : vector<9x68xf32>
    %81 = arith.truncf %80 : vector<9x68xf32> to vector<9x68xbf16>
    %82 = arith.truncf %65 : vector<68x32xf32> to vector<68x32xbf16>
    %cst_47 = arith.constant dense<0.000000e+00> : vector<9x32xf32>
    %83 = tpu.matmul %81, %82, %cst_47 {dimension_numbers = #tpu.dot_dimension_numbers<[1], [0], [0], [1], [0, 0, 1, 1], [], []>} : vector<9x68xbf16>, vector<68x32xbf16>, vector<9x32xf32> -> vector<9x32xf32>
    %84 = arith.truncf %83 : vector<9x32xf32> to vector<9x32xbf16>
    %c1_48 = arith.constant 1 : index
    %c0_49 = arith.constant 0 : index
    %c0_50 = arith.constant 0 : index
    %85 = vector.load %arg8[%c1_48, %c0_49, %c0_50] : memref<2x32x32xbf16, #tpu.memory_space<vmem>>, vector<1x32x32xbf16>
    %86 = vector.shape_cast %85 : vector<1x32x32xbf16> to vector<32x32xbf16>
    %cst_51 = arith.constant dense<0.000000e+00> : vector<9x32xf32>
    %87 = tpu.matmul %84, %86, %cst_51 {dimension_numbers = #tpu.dot_dimension_numbers<[1], [0], [0], [1], [0, 0, 1, 1], [], []>} : vector<9x32xbf16>, vector<32x32xbf16>, vector<9x32xf32> -> vector<9x32xf32>
    %88 = arith.addf %56, %87 : vector<9x32xf32>
    %89 = arith.truncf %88 : vector<9x32xf32> to vector<9x32xbf16>
    %c0_52 = arith.constant 0 : index
    %c0_53 = arith.constant 0 : index
    %c0_54 = arith.constant 0 : index
    %90 = vector.load %arg9[%c0_52, %c0_53, %c0_54] : memref<1x9x32xbf16, #tpu.memory_space<vmem>>, vector<1x9x32xbf16>
    %91 = vector.shape_cast %90 : vector<1x9x32xbf16> to vector<9x32xbf16>
    %92 = vector.shape_cast %89 : vector<9x32xbf16> to vector<1x9x32xbf16>
    tpu.vector_store %arg9[%c0_52, %c0_53, %c0_54], %92 {strides = array<i32>} : memref<1x9x32xbf16, #tpu.memory_space<vmem>>, vector<1x9x32xbf16>,
    return
  }
  func.func @transform_0(%arg0: i32, %arg1: i32) -> (i32, i32, i32) {
    %c0_i32 = arith.constant 0 : i32
    %c0_i32_0 = arith.constant 0 : i32
    return %arg0, %arg1, %c0_i32 : i32, i32, i32
  }
  func.func @transform_1(%arg0: i32, %arg1: i32) -> (i32, i32, i32) {
    %c0_i32 = arith.constant 0 : i32
    %c0_i32_0 = arith.constant 0 : i32
    %c0_i32_1 = arith.constant 0 : i32
    return %arg0, %c0_i32, %c0_i32_0 : i32, i32, i32
  }
  func.func @transform_2(%arg0: i32, %arg1: i32) -> (i32, i32) {
    %c0_i32 = arith.constant 0 : i32
    %c0_i32_0 = arith.constant 0 : i32
    %c0_i32_1 = arith.constant 0 : i32
    return %c0_i32, %c0_i32_0 : i32, i32
  }
  func.func @transform_3(%arg0: i32, %arg1: i32) -> (i32, i32, i32) {
    %c0_i32 = arith.constant 0 : i32
    %c0_i32_0 = arith.constant 0 : i32
    %c0_i32_1 = arith.constant 0 : i32
    %c0_i32_2 = arith.constant 0 : i32
    return %c0_i32, %c0_i32_0, %c0_i32_1 : i32, i32, i32
  }
  func.func @transform_4(%arg0: i32, %arg1: i32) -> (i32, i32, i32) {
    %c0_i32 = arith.constant 0 : i32
    %c0_i32_0 = arith.constant 0 : i32
    %c0_i32_1 = arith.constant 0 : i32
    %c0_i32_2 = arith.constant 0 : i32
    return %c0_i32, %c0_i32_0, %c0_i32_1 : i32, i32, i32
  }
  func.func @transform_5(%arg0: i32, %arg1: i32) -> (i32, i32, i32) {
    %c0_i32 = arith.constant 0 : i32
    %c0_i32_0 = arith.constant 0 : i32
    %c0_i32_1 = arith.constant 0 : i32
    %c0_i32_2 = arith.constant 0 : i32
    return %c0_i32, %c0_i32_0, %c0_i32_1 : i32, i32, i32
  }
  func.func @transform_6(%arg0: i32, %arg1: i32) -> (i32, i32, i32) {
    %c0_i32 = arith.constant 0 : i32
    %c0_i32_0 = arith.constant 0 : i32
    %c0_i32_1 = arith.constant 0 : i32
    %c0_i32_2 = arith.constant 0 : i32
    return %c0_i32, %c0_i32_0, %c0_i32_1 : i32, i32, i32
  }
  func.func @transform_7(%arg0: i32, %arg1: i32) -> (i32, i32, i32) {
    %c0_i32 = arith.constant 0 : i32
    %c0_i32_0 = arith.constant 0 : i32
    return %arg0, %arg1, %c0_i32 : i32, i32, i32
  }
}

module attributes {stable_mosaic.version = 11 : i64} {
  func.func @_attn_kernel(%arg0: i32, %arg1: i32, %arg2: memref<1x9x32xbf16, #tpu.memory_space<vmem>>, %arg3: memref<1x32xf32, #tpu.memory_space<vmem>>, %arg4: memref<2x32x32xbf16, #tpu.memory_space<vmem>>, %arg5: memref<2x32x32xbf16, #tpu.memory_space<vmem>>, %arg6: memref<2x32x32xbf16, #tpu.memory_space<vmem>>, %arg7: memref<2x32x32xbf16, #tpu.memory_space<vmem>>, %arg8: memref<1x9x32xbf16, #tpu.memory_space<vmem>>) attributes {dimension_semantics = [#tpu.dimension_semantics<parallel>, #tpu.dimension_semantics<parallel>], iteration_bounds = array<i64: 2, 1>, scalar_prefetch = 0 : i64, scratch_operands = 0 : i64, tpu.core_type = #tpu.core_type<tc>, window_params = [{transform_indices = @transform_0, window_bounds = array<i64: 1, 9, 32>}, {pipeline_mode = #tpu.pipeline_mode<synchronous>, transform_indices = @transform_1, window_bounds = array<i64: 1, 32>}, {pipeline_mode = #tpu.pipeline_mode<synchronous>, transform_indices = @transform_2, window_bounds = array<i64: 2, 32, 32>}, {pipeline_mode = #tpu.pipeline_mode<synchronous>, transform_indices = @transform_3, window_bounds = array<i64: 2, 32, 32>}, {pipeline_mode = #tpu.pipeline_mode<synchronous>, transform_indices = @transform_4, window_bounds = array<i64: 2, 32, 32>}, {pipeline_mode = #tpu.pipeline_mode<synchronous>, transform_indices = @transform_5, window_bounds = array<i64: 2, 32, 32>}, {transform_indices = @transform_6, window_bounds = array<i64: 1, 9, 32>}]} {
    %c0 = arith.constant 0 : index
    %c0_0 = arith.constant 0 : index
    %c0_1 = arith.constant 0 : index
    %0 = vector.load %arg2[%c0, %c0_0, %c0_1] : memref<1x9x32xbf16, #tpu.memory_space<vmem>>, vector<1x9x32xbf16>
    %1 = vector.shape_cast %0 : vector<1x9x32xbf16> to vector<9x32xbf16>
    %2 = arith.extf %1 : vector<9x32xbf16> to vector<9x32xf32>
    %cst = arith.constant dense<0.000000e+00> : vector<9xf32>
    %3 = vector.multi_reduction <add>, %2, %cst [1] : vector<9x32xf32> to vector<9xf32>
    %4 = vector.shape_cast %3 : vector<9xf32> to vector<9x1xf32>
    %cst_2 = arith.constant 3.200000e+01 : f32
    %5 = vector.broadcast %cst_2 : f32 to vector<9x1xf32>
    %6 = arith.divf %4, %5 : vector<9x1xf32>
    %7 = vector.broadcast %6 : vector<9x1xf32> to vector<9x32xf32>
    %8 = arith.subf %2, %7 : vector<9x32xf32>
    %9 = arith.mulf %8, %8 : vector<9x32xf32>
    %cst_3 = arith.constant dense<0.000000e+00> : vector<9xf32>
    %10 = vector.multi_reduction <add>, %9, %cst_3 [1] : vector<9x32xf32> to vector<9xf32>
    %11 = vector.shape_cast %10 : vector<9xf32> to vector<9x1xf32>
    %cst_4 = arith.constant 3.200000e+01 : f32
    %12 = vector.broadcast %cst_4 : f32 to vector<9x1xf32>
    %13 = arith.divf %11, %12 : vector<9x1xf32>
    %cst_5 = arith.constant 9.99999974E-6 : f32
    %14 = vector.broadcast %cst_5 : f32 to vector<9x1xf32>
    %15 = arith.addf %13, %14 : vector<9x1xf32>
    %16 = math.rsqrt %15 : vector<9x1xf32>
    %17 = vector.broadcast %16 : vector<9x1xf32> to vector<9x32xf32>
    %18 = arith.mulf %8, %17 : vector<9x32xf32>
    %c0_6 = arith.constant 0 : index
    %c0_7 = arith.constant 0 : index
    %19 = vector.load %arg3[%c0_6, %c0_7] : memref<1x32xf32, #tpu.memory_space<vmem>>, vector<1x32xf32>
    %20 = vector.broadcast %19 : vector<1x32xf32> to vector<9x32xf32>
    %21 = arith.mulf %18, %20 : vector<9x32xf32>
    %22 = arith.truncf %21 : vector<9x32xf32> to vector<9x32xbf16>
    %c0_8 = arith.constant 0 : index
    %c0_9 = arith.constant 0 : index
    %c0_10 = arith.constant 0 : index
    %23 = vector.load %arg4[%c0_8, %c0_9, %c0_10] : memref<2x32x32xbf16, #tpu.memory_space<vmem>>, vector<1x32x32xbf16>
    %24 = vector.shape_cast %23 : vector<1x32x32xbf16> to vector<32x32xbf16>
    %cst_11 = arith.constant dense<0.000000e+00> : vector<9x32xf32>
    %25 = tpu.matmul %22, %24, %cst_11 {dimension_numbers = #tpu.dot_dimension_numbers<[1], [0], [0], [1], [0, 0, 1, 1], [], []>} : vector<9x32xbf16>, vector<32x32xbf16>, vector<9x32xf32> -> vector<9x32xf32>
    %c0_12 = arith.constant 0 : index
    %c0_13 = arith.constant 0 : index
    %c0_14 = arith.constant 0 : index
    %26 = vector.load %arg5[%c0_12, %c0_13, %c0_14] : memref<2x32x32xbf16, #tpu.memory_space<vmem>>, vector<1x32x32xbf16>
    %27 = vector.shape_cast %26 : vector<1x32x32xbf16> to vector<32x32xbf16>
    %cst_15 = arith.constant dense<0.000000e+00> : vector<9x32xf32>
    %28 = tpu.matmul %22, %27, %cst_15 {dimension_numbers = #tpu.dot_dimension_numbers<[1], [0], [0], [1], [0, 0, 1, 1], [], []>} : vector<9x32xbf16>, vector<32x32xbf16>, vector<9x32xf32> -> vector<9x32xf32>
    %c0_16 = arith.constant 0 : index
    %c0_17 = arith.constant 0 : index
    %c0_18 = arith.constant 0 : index
    %29 = vector.load %arg6[%c0_16, %c0_17, %c0_18] : memref<2x32x32xbf16, #tpu.memory_space<vmem>>, vector<1x32x32xbf16>
    %30 = vector.shape_cast %29 : vector<1x32x32xbf16> to vector<32x32xbf16>
    %cst_19 = arith.constant dense<0.000000e+00> : vector<9x32xf32>
    %31 = tpu.matmul %22, %30, %cst_19 {dimension_numbers = #tpu.dot_dimension_numbers<[1], [0], [0], [1], [0, 0, 1, 1], [], []>} : vector<9x32xbf16>, vector<32x32xbf16>, vector<9x32xf32> -> vector<9x32xf32>
    %32 = arith.truncf %25 : vector<9x32xf32> to vector<9x32xbf16>
    %33 = arith.truncf %28 : vector<9x32xf32> to vector<9x32xbf16>
    %cst_20 = arith.constant dense<0.000000e+00> : vector<9x9xf32>
    %34 = tpu.matmul %32, %33, %cst_20 {dimension_numbers = #tpu.dot_dimension_numbers<[1], [1], [0], [0], [0, 0, 1, 0], [], []>} : vector<9x32xbf16>, vector<9x32xbf16>, vector<9x9xf32> -> vector<9x9xf32>
    %cst_21 = arith.constant 0.176776692 : f32
    %35 = vector.broadcast %cst_21 : f32 to vector<9x9xf32>
    %36 = arith.mulf %34, %35 : vector<9x9xf32>
    %cst_22 = arith.constant dense<0xFF800000> : vector<9xf32>
    %37 = vector.multi_reduction <maximumf>, %36, %cst_22 [1] : vector<9x9xf32> to vector<9xf32>
    %38 = vector.shape_cast %37 : vector<9xf32> to vector<9x1xf32>
    %39 = vector.broadcast %38 : vector<9x1xf32> to vector<9x9xf32>
    %40 = arith.subf %36, %39 : vector<9x9xf32>
    %41 = math.exp %40 : vector<9x9xf32>
    %cst_23 = arith.constant dense<0.000000e+00> : vector<9xf32>
    %42 = vector.multi_reduction <add>, %41, %cst_23 [1] : vector<9x9xf32> to vector<9xf32>
    %43 = vector.shape_cast %42 : vector<9xf32> to vector<9x1xf32>
    %44 = tpu.reciprocal %43 {approx = true} : vector<9x1xf32> -> vector<9x1xf32>
    %45 = vector.broadcast %44 : vector<9x1xf32> to vector<9x9xf32>
    %46 = arith.mulf %41, %45 : vector<9x9xf32>
    %47 = arith.truncf %46 : vector<9x9xf32> to vector<9x9xbf16>
    %48 = arith.truncf %31 : vector<9x32xf32> to vector<9x32xbf16>
    %cst_24 = arith.constant dense<0.000000e+00> : vector<9x32xf32>
    %49 = tpu.matmul %47, %48, %cst_24 {dimension_numbers = #tpu.dot_dimension_numbers<[1], [0], [0], [1], [0, 0, 1, 1], [], []>} : vector<9x9xbf16>, vector<9x32xbf16>, vector<9x32xf32> -> vector<9x32xf32>
    %50 = arith.truncf %49 : vector<9x32xf32> to vector<9x32xbf16>
    %c0_25 = arith.constant 0 : index
    %c0_26 = arith.constant 0 : index
    %c0_27 = arith.constant 0 : index
    %51 = vector.load %arg7[%c0_25, %c0_26, %c0_27] : memref<2x32x32xbf16, #tpu.memory_space<vmem>>, vector<1x32x32xbf16>
    %52 = vector.shape_cast %51 : vector<1x32x32xbf16> to vector<32x32xbf16>
    %cst_28 = arith.constant dense<0.000000e+00> : vector<9x32xf32>
    %53 = tpu.matmul %50, %52, %cst_28 {dimension_numbers = #tpu.dot_dimension_numbers<[1], [0], [0], [1], [0, 0, 1, 1], [], []>} : vector<9x32xbf16>, vector<32x32xbf16>, vector<9x32xf32> -> vector<9x32xf32>
    %54 = arith.addf %2, %53 : vector<9x32xf32>
    %c1 = arith.constant 1 : index
    %c0_29 = arith.constant 0 : index
    %c0_30 = arith.constant 0 : index
    %55 = vector.load %arg4[%c1, %c0_29, %c0_30] : memref<2x32x32xbf16, #tpu.memory_space<vmem>>, vector<1x32x32xbf16>
    %56 = vector.shape_cast %55 : vector<1x32x32xbf16> to vector<32x32xbf16>
    %cst_31 = arith.constant dense<0.000000e+00> : vector<9x32xf32>
    %57 = tpu.matmul %22, %56, %cst_31 {dimension_numbers = #tpu.dot_dimension_numbers<[1], [0], [0], [1], [0, 0, 1, 1], [], []>} : vector<9x32xbf16>, vector<32x32xbf16>, vector<9x32xf32> -> vector<9x32xf32>
    %c1_32 = arith.constant 1 : index
    %c0_33 = arith.constant 0 : index
    %c0_34 = arith.constant 0 : index
    %58 = vector.load %arg5[%c1_32, %c0_33, %c0_34] : memref<2x32x32xbf16, #tpu.memory_space<vmem>>, vector<1x32x32xbf16>
    %59 = vector.shape_cast %58 : vector<1x32x32xbf16> to vector<32x32xbf16>
    %cst_35 = arith.constant dense<0.000000e+00> : vector<9x32xf32>
    %60 = tpu.matmul %22, %59, %cst_35 {dimension_numbers = #tpu.dot_dimension_numbers<[1], [0], [0], [1], [0, 0, 1, 1], [], []>} : vector<9x32xbf16>, vector<32x32xbf16>, vector<9x32xf32> -> vector<9x32xf32>
    %c1_36 = arith.constant 1 : index
    %c0_37 = arith.constant 0 : index
    %c0_38 = arith.constant 0 : index
    %61 = vector.load %arg6[%c1_36, %c0_37, %c0_38] : memref<2x32x32xbf16, #tpu.memory_space<vmem>>, vector<1x32x32xbf16>
    %62 = vector.shape_cast %61 : vector<1x32x32xbf16> to vector<32x32xbf16>
    %cst_39 = arith.constant dense<0.000000e+00> : vector<9x32xf32>
    %63 = tpu.matmul %22, %62, %cst_39 {dimension_numbers = #tpu.dot_dimension_numbers<[1], [0], [0], [1], [0, 0, 1, 1], [], []>} : vector<9x32xbf16>, vector<32x32xbf16>, vector<9x32xf32> -> vector<9x32xf32>
    %64 = arith.truncf %57 : vector<9x32xf32> to vector<9x32xbf16>
    %65 = arith.truncf %60 : vector<9x32xf32> to vector<9x32xbf16>
    %cst_40 = arith.constant dense<0.000000e+00> : vector<9x9xf32>
    %66 = tpu.matmul %64, %65, %cst_40 {dimension_numbers = #tpu.dot_dimension_numbers<[1], [1], [0], [0], [0, 0, 1, 0], [], []>} : vector<9x32xbf16>, vector<9x32xbf16>, vector<9x9xf32> -> vector<9x9xf32>
    %cst_41 = arith.constant 0.176776692 : f32
    %67 = vector.broadcast %cst_41 : f32 to vector<9x9xf32>
    %68 = arith.mulf %66, %67 : vector<9x9xf32>
    %cst_42 = arith.constant dense<0xFF800000> : vector<9xf32>
    %69 = vector.multi_reduction <maximumf>, %68, %cst_42 [1] : vector<9x9xf32> to vector<9xf32>
    %70 = vector.shape_cast %69 : vector<9xf32> to vector<9x1xf32>
    %71 = vector.broadcast %70 : vector<9x1xf32> to vector<9x9xf32>
    %72 = arith.subf %68, %71 : vector<9x9xf32>
    %73 = math.exp %72 : vector<9x9xf32>
    %cst_43 = arith.constant dense<0.000000e+00> : vector<9xf32>
    %74 = vector.multi_reduction <add>, %73, %cst_43 [1] : vector<9x9xf32> to vector<9xf32>
    %75 = vector.shape_cast %74 : vector<9xf32> to vector<9x1xf32>
    %76 = tpu.reciprocal %75 {approx = true} : vector<9x1xf32> -> vector<9x1xf32>
    %77 = vector.broadcast %76 : vector<9x1xf32> to vector<9x9xf32>
    %78 = arith.mulf %73, %77 : vector<9x9xf32>
    %79 = arith.truncf %78 : vector<9x9xf32> to vector<9x9xbf16>
    %80 = arith.truncf %63 : vector<9x32xf32> to vector<9x32xbf16>
    %cst_44 = arith.constant dense<0.000000e+00> : vector<9x32xf32>
    %81 = tpu.matmul %79, %80, %cst_44 {dimension_numbers = #tpu.dot_dimension_numbers<[1], [0], [0], [1], [0, 0, 1, 1], [], []>} : vector<9x9xbf16>, vector<9x32xbf16>, vector<9x32xf32> -> vector<9x32xf32>
    %82 = arith.truncf %81 : vector<9x32xf32> to vector<9x32xbf16>
    %c1_45 = arith.constant 1 : index
    %c0_46 = arith.constant 0 : index
    %c0_47 = arith.constant 0 : index
    %83 = vector.load %arg7[%c1_45, %c0_46, %c0_47] : memref<2x32x32xbf16, #tpu.memory_space<vmem>>, vector<1x32x32xbf16>
    %84 = vector.shape_cast %83 : vector<1x32x32xbf16> to vector<32x32xbf16>
    %cst_48 = arith.constant dense<0.000000e+00> : vector<9x32xf32>
    %85 = tpu.matmul %82, %84, %cst_48 {dimension_numbers = #tpu.dot_dimension_numbers<[1], [0], [0], [1], [0, 0, 1, 1], [], []>} : vector<9x32xbf16>, vector<32x32xbf16>, vector<9x32xf32> -> vector<9x32xf32>
    %86 = arith.addf %54, %85 : vector<9x32xf32>
    %87 = arith.truncf %86 : vector<9x32xf32> to vector<9x32xbf16>
    %c0_49 = arith.constant 0 : index
    %c0_50 = arith.constant 0 : index
    %c0_51 = arith.constant 0 : index
    %88 = vector.load %arg8[%c0_49, %c0_50, %c0_51] : memref<1x9x32xbf16, #tpu.memory_space<vmem>>, vector<1x9x32xbf16>
    %89 = vector.shape_cast %88 : vector<1x9x32xbf16> to vector<9x32xbf16>
    %90 = vector.shape_cast %87 : vector<9x32xbf16> to vector<1x9x32xbf16>
    tpu.vector_store %arg8[%c0_49, %c0_50, %c0_51], %90 {strides = array<i32>} : memref<1x9x32xbf16, #tpu.memory_space<vmem>>, vector<1x9x32xbf16>,
    return
  }
  func.func @transform_0(%arg0: i32, %arg1: i32) -> (i32, i32, i32) {
    %c0_i32 = arith.constant 0 : i32
    %c0_i32_0 = arith.constant 0 : i32
    return %arg0, %arg1, %c0_i32 : i32, i32, i32
  }
  func.func @transform_1(%arg0: i32, %arg1: i32) -> (i32, i32) {
    %c0_i32 = arith.constant 0 : i32
    %c0_i32_0 = arith.constant 0 : i32
    %c0_i32_1 = arith.constant 0 : i32
    return %c0_i32, %c0_i32_0 : i32, i32
  }
  func.func @transform_2(%arg0: i32, %arg1: i32) -> (i32, i32, i32) {
    %c0_i32 = arith.constant 0 : i32
    %c0_i32_0 = arith.constant 0 : i32
    %c0_i32_1 = arith.constant 0 : i32
    %c0_i32_2 = arith.constant 0 : i32
    return %c0_i32, %c0_i32_0, %c0_i32_1 : i32, i32, i32
  }
  func.func @transform_3(%arg0: i32, %arg1: i32) -> (i32, i32, i32) {
    %c0_i32 = arith.constant 0 : i32
    %c0_i32_0 = arith.constant 0 : i32
    %c0_i32_1 = arith.constant 0 : i32
    %c0_i32_2 = arith.constant 0 : i32
    return %c0_i32, %c0_i32_0, %c0_i32_1 : i32, i32, i32
  }
  func.func @transform_4(%arg0: i32, %arg1: i32) -> (i32, i32, i32) {
    %c0_i32 = arith.constant 0 : i32
    %c0_i32_0 = arith.constant 0 : i32
    %c0_i32_1 = arith.constant 0 : i32
    %c0_i32_2 = arith.constant 0 : i32
    return %c0_i32, %c0_i32_0, %c0_i32_1 : i32, i32, i32
  }
  func.func @transform_5(%arg0: i32, %arg1: i32) -> (i32, i32, i32) {
    %c0_i32 = arith.constant 0 : i32
    %c0_i32_0 = arith.constant 0 : i32
    %c0_i32_1 = arith.constant 0 : i32
    %c0_i32_2 = arith.constant 0 : i32
    return %c0_i32, %c0_i32_0, %c0_i32_1 : i32, i32, i32
  }
  func.func @transform_6(%arg0: i32, %arg1: i32) -> (i32, i32, i32) {
    %c0_i32 = arith.constant 0 : i32
    %c0_i32_0 = arith.constant 0 : i32
    return %arg0, %arg1, %c0_i32 : i32, i32, i32
  }
}

module attributes {stable_mosaic.version = 11 : i64} {
  func.func @_attn_kernel(%arg0: i32, %arg1: i32, %arg2: memref<1x68x32xbf16, #tpu.memory_space<vmem>>, %arg3: memref<1x9x32xbf16, #tpu.memory_space<vmem>>, %arg4: memref<1x32xf32, #tpu.memory_space<vmem>>, %arg5: memref<2x32x32xbf16, #tpu.memory_space<vmem>>, %arg6: memref<2x32x32xbf16, #tpu.memory_space<vmem>>, %arg7: memref<2x32x32xbf16, #tpu.memory_space<vmem>>, %arg8: memref<2x32x32xbf16, #tpu.memory_space<vmem>>, %arg9: memref<1x68x32xbf16, #tpu.memory_space<vmem>>) attributes {dimension_semantics = [#tpu.dimension_semantics<parallel>, #tpu.dimension_semantics<parallel>], iteration_bounds = array<i64: 2, 1>, scalar_prefetch = 0 : i64, scratch_operands = 0 : i64, tpu.core_type = #tpu.core_type<tc>, window_params = [{transform_indices = @transform_0, window_bounds = array<i64: 1, 68, 32>}, {transform_indices = @transform_1, window_bounds = array<i64: 1, 9, 32>}, {pipeline_mode = #tpu.pipeline_mode<synchronous>, transform_indices = @transform_2, window_bounds = array<i64: 1, 32>}, {pipeline_mode = #tpu.pipeline_mode<synchronous>, transform_indices = @transform_3, window_bounds = array<i64: 2, 32, 32>}, {pipeline_mode = #tpu.pipeline_mode<synchronous>, transform_indices = @transform_4, window_bounds = array<i64: 2, 32, 32>}, {pipeline_mode = #tpu.pipeline_mode<synchronous>, transform_indices = @transform_5, window_bounds = array<i64: 2, 32, 32>}, {pipeline_mode = #tpu.pipeline_mode<synchronous>, transform_indices = @transform_6, window_bounds = array<i64: 2, 32, 32>}, {transform_indices = @transform_7, window_bounds = array<i64: 1, 68, 32>}]} {
    %c0 = arith.constant 0 : index
    %c0_0 = arith.constant 0 : index
    %c0_1 = arith.constant 0 : index
    %0 = vector.load %arg2[%c0, %c0_0, %c0_1] : memref<1x68x32xbf16, #tpu.memory_space<vmem>>, vector<1x68x32xbf16>
    %1 = vector.shape_cast %0 : vector<1x68x32xbf16> to vector<68x32xbf16>
    %2 = arith.extf %1 : vector<68x32xbf16> to vector<68x32xf32>
    %cst = arith.constant dense<0.000000e+00> : vector<68xf32>
    %3 = vector.multi_reduction <add>, %2, %cst [1] : vector<68x32xf32> to vector<68xf32>
    %4 = vector.shape_cast %3 : vector<68xf32> to vector<68x1xf32>
    %cst_2 = arith.constant 3.200000e+01 : f32
    %5 = vector.broadcast %cst_2 : f32 to vector<68x1xf32>
    %6 = arith.divf %4, %5 : vector<68x1xf32>
    %7 = vector.broadcast %6 : vector<68x1xf32> to vector<68x32xf32>
    %8 = arith.subf %2, %7 : vector<68x32xf32>
    %9 = arith.mulf %8, %8 : vector<68x32xf32>
    %cst_3 = arith.constant dense<0.000000e+00> : vector<68xf32>
    %10 = vector.multi_reduction <add>, %9, %cst_3 [1] : vector<68x32xf32> to vector<68xf32>
    %11 = vector.shape_cast %10 : vector<68xf32> to vector<68x1xf32>
    %cst_4 = arith.constant 3.200000e+01 : f32
    %12 = vector.broadcast %cst_4 : f32 to vector<68x1xf32>
    %13 = arith.divf %11, %12 : vector<68x1xf32>
    %cst_5 = arith.constant 9.99999974E-6 : f32
    %14 = vector.broadcast %cst_5 : f32 to vector<68x1xf32>
    %15 = arith.addf %13, %14 : vector<68x1xf32>
    %16 = math.rsqrt %15 : vector<68x1xf32>
    %17 = vector.broadcast %16 : vector<68x1xf32> to vector<68x32xf32>
    %18 = arith.mulf %8, %17 : vector<68x32xf32>
    %c0_6 = arith.constant 0 : index
    %c0_7 = arith.constant 0 : index
    %19 = vector.load %arg4[%c0_6, %c0_7] : memref<1x32xf32, #tpu.memory_space<vmem>>, vector<1x32xf32>
    %20 = vector.broadcast %19 : vector<1x32xf32> to vector<68x32xf32>
    %21 = arith.mulf %18, %20 : vector<68x32xf32>
    %22 = arith.truncf %21 : vector<68x32xf32> to vector<68x32xbf16>
    %c0_8 = arith.constant 0 : index
    %c0_9 = arith.constant 0 : index
    %c0_10 = arith.constant 0 : index
    %23 = vector.load %arg3[%c0_8, %c0_9, %c0_10] : memref<1x9x32xbf16, #tpu.memory_space<vmem>>, vector<1x9x32xbf16>
    %24 = vector.shape_cast %23 : vector<1x9x32xbf16> to vector<9x32xbf16>
    %c0_11 = arith.constant 0 : index
    %c0_12 = arith.constant 0 : index
    %c0_13 = arith.constant 0 : index
    %25 = vector.load %arg5[%c0_11, %c0_12, %c0_13] : memref<2x32x32xbf16, #tpu.memory_space<vmem>>, vector<1x32x32xbf16>
    %26 = vector.shape_cast %25 : vector<1x32x32xbf16> to vector<32x32xbf16>
    %cst_14 = arith.constant dense<0.000000e+00> : vector<68x32xf32>
    %27 = tpu.matmul %22, %26, %cst_14 {dimension_numbers = #tpu.dot_dimension_numbers<[1], [0], [0], [1], [0, 0, 1, 1], [], []>} : vector<68x32xbf16>, vector<32x32xbf16>, vector<68x32xf32> -> vector<68x32xf32>
    %c0_15 = arith.constant 0 : index
    %c0_16 = arith.constant 0 : index
    %c0_17 = arith.constant 0 : index
    %28 = vector.load %arg6[%c0_15, %c0_16, %c0_17] : memref<2x32x32xbf16, #tpu.memory_space<vmem>>, vector<1x32x32xbf16>
    %29 = vector.shape_cast %28 : vector<1x32x32xbf16> to vector<32x32xbf16>
    %cst_18 = arith.constant dense<0.000000e+00> : vector<9x32xf32>
    %30 = tpu.matmul %24, %29, %cst_18 {dimension_numbers = #tpu.dot_dimension_numbers<[1], [0], [0], [1], [0, 0, 1, 1], [], []>} : vector<9x32xbf16>, vector<32x32xbf16>, vector<9x32xf32> -> vector<9x32xf32>
    %c0_19 = arith.constant 0 : index
    %c0_20 = arith.constant 0 : index
    %c0_21 = arith.constant 0 : index
    %31 = vector.load %arg7[%c0_19, %c0_20, %c0_21] : memref<2x32x32xbf16, #tpu.memory_space<vmem>>, vector<1x32x32xbf16>
    %32 = vector.shape_cast %31 : vector<1x32x32xbf16> to vector<32x32xbf16>
    %cst_22 = arith.constant dense<0.000000e+00> : vector<9x32xf32>
    %33 = tpu.matmul %24, %32, %cst_22 {dimension_numbers = #tpu.dot_dimension_numbers<[1], [0], [0], [1], [0, 0, 1, 1], [], []>} : vector<9x32xbf16>, vector<32x32xbf16>, vector<9x32xf32> -> vector<9x32xf32>
    %34 = arith.truncf %27 : vector<68x32xf32> to vector<68x32xbf16>
    %35 = arith.truncf %30 : vector<9x32xf32> to vector<9x32xbf16>
    %cst_23 = arith.constant dense<0.000000e+00> : vector<68x9xf32>
    %36 = tpu.matmul %34, %35, %cst_23 {dimension_numbers = #tpu.dot_dimension_numbers<[1], [1], [0], [0], [0, 0, 1, 0], [], []>} : vector<68x32xbf16>, vector<9x32xbf16>, vector<68x9xf32> -> vector<68x9xf32>
    %cst_24 = arith.constant 0.176776692 : f32
    %37 = vector.broadcast %cst_24 : f32 to vector<68x9xf32>
    %38 = arith.mulf %36, %37 : vector<68x9xf32>
    %cst_25 = arith.constant dense<0xFF800000> : vector<68xf32>
    %39 = vector.multi_reduction <maximumf>, %38, %cst_25 [1] : vector<68x9xf32> to vector<68xf32>
    %40 = vector.shape_cast %39 : vector<68xf32> to vector<68x1xf32>
    %41 = vector.broadcast %40 : vector<68x1xf32> to vector<68x9xf32>
    %42 = arith.subf %38, %41 : vector<68x9xf32>
    %43 = math.exp %42 : vector<68x9xf32>
    %cst_26 = arith.constant dense<0.000000e+00> : vector<68xf32>
    %44 = vector.multi_reduction <add>, %43, %cst_26 [1] : vector<68x9xf32> to vector<68xf32>
    %45 = vector.shape_cast %44 : vector<68xf32> to vector<68x1xf32>
    %46 = tpu.reciprocal %45 {approx = true} : vector<68x1xf32> -> vector<68x1xf32>
    %47 = vector.broadcast %46 : vector<68x1xf32> to vector<68x9xf32>
    %48 = arith.mulf %43, %47 : vector<68x9xf32>
    %49 = arith.truncf %48 : vector<68x9xf32> to vector<68x9xbf16>
    %50 = arith.truncf %33 : vector<9x32xf32> to vector<9x32xbf16>
    %cst_27 = arith.constant dense<0.000000e+00> : vector<68x32xf32>
    %51 = tpu.matmul %49, %50, %cst_27 {dimension_numbers = #tpu.dot_dimension_numbers<[1], [0], [0], [1], [0, 0, 1, 1], [], []>} : vector<68x9xbf16>, vector<9x32xbf16>, vector<68x32xf32> -> vector<68x32xf32>
    %52 = arith.truncf %51 : vector<68x32xf32> to vector<68x32xbf16>
    %c0_28 = arith.constant 0 : index
    %c0_29 = arith.constant 0 : index
    %c0_30 = arith.constant 0 : index
    %53 = vector.load %arg8[%c0_28, %c0_29, %c0_30] : memref<2x32x32xbf16, #tpu.memory_space<vmem>>, vector<1x32x32xbf16>
    %54 = vector.shape_cast %53 : vector<1x32x32xbf16> to vector<32x32xbf16>
    %cst_31 = arith.constant dense<0.000000e+00> : vector<68x32xf32>
    %55 = tpu.matmul %52, %54, %cst_31 {dimension_numbers = #tpu.dot_dimension_numbers<[1], [0], [0], [1], [0, 0, 1, 1], [], []>} : vector<68x32xbf16>, vector<32x32xbf16>, vector<68x32xf32> -> vector<68x32xf32>
    %56 = arith.addf %2, %55 : vector<68x32xf32>
    %c1 = arith.constant 1 : index
    %c0_32 = arith.constant 0 : index
    %c0_33 = arith.constant 0 : index
    %57 = vector.load %arg5[%c1, %c0_32, %c0_33] : memref<2x32x32xbf16, #tpu.memory_space<vmem>>, vector<1x32x32xbf16>
    %58 = vector.shape_cast %57 : vector<1x32x32xbf16> to vector<32x32xbf16>
    %cst_34 = arith.constant dense<0.000000e+00> : vector<68x32xf32>
    %59 = tpu.matmul %22, %58, %cst_34 {dimension_numbers = #tpu.dot_dimension_numbers<[1], [0], [0], [1], [0, 0, 1, 1], [], []>} : vector<68x32xbf16>, vector<32x32xbf16>, vector<68x32xf32> -> vector<68x32xf32>
    %c1_35 = arith.constant 1 : index
    %c0_36 = arith.constant 0 : index
    %c0_37 = arith.constant 0 : index
    %60 = vector.load %arg6[%c1_35, %c0_36, %c0_37] : memref<2x32x32xbf16, #tpu.memory_space<vmem>>, vector<1x32x32xbf16>
    %61 = vector.shape_cast %60 : vector<1x32x32xbf16> to vector<32x32xbf16>
    %cst_38 = arith.constant dense<0.000000e+00> : vector<9x32xf32>
    %62 = tpu.matmul %24, %61, %cst_38 {dimension_numbers = #tpu.dot_dimension_numbers<[1], [0], [0], [1], [0, 0, 1, 1], [], []>} : vector<9x32xbf16>, vector<32x32xbf16>, vector<9x32xf32> -> vector<9x32xf32>
    %c1_39 = arith.constant 1 : index
    %c0_40 = arith.constant 0 : index
    %c0_41 = arith.constant 0 : index
    %63 = vector.load %arg7[%c1_39, %c0_40, %c0_41] : memref<2x32x32xbf16, #tpu.memory_space<vmem>>, vector<1x32x32xbf16>
    %64 = vector.shape_cast %63 : vector<1x32x32xbf16> to vector<32x32xbf16>
    %cst_42 = arith.constant dense<0.000000e+00> : vector<9x32xf32>
    %65 = tpu.matmul %24, %64, %cst_42 {dimension_numbers = #tpu.dot_dimension_numbers<[1], [0], [0], [1], [0, 0, 1, 1], [], []>} : vector<9x32xbf16>, vector<32x32xbf16>, vector<9x32xf32> -> vector<9x32xf32>
    %66 = arith.truncf %59 : vector<68x32xf32> to vector<68x32xbf16>
    %67 = arith.truncf %62 : vector<9x32xf32> to vector<9x32xbf16>
    %cst_43 = arith.constant dense<0.000000e+00> : vector<68x9xf32>
    %68 = tpu.matmul %66, %67, %cst_43 {dimension_numbers = #tpu.dot_dimension_numbers<[1], [1], [0], [0], [0, 0, 1, 0], [], []>} : vector<68x32xbf16>, vector<9x32xbf16>, vector<68x9xf32> -> vector<68x9xf32>
    %cst_44 = arith.constant 0.176776692 : f32
    %69 = vector.broadcast %cst_44 : f32 to vector<68x9xf32>
    %70 = arith.mulf %68, %69 : vector<68x9xf32>
    %cst_45 = arith.constant dense<0xFF800000> : vector<68xf32>
    %71 = vector.multi_reduction <maximumf>, %70, %cst_45 [1] : vector<68x9xf32> to vector<68xf32>
    %72 = vector.shape_cast %71 : vector<68xf32> to vector<68x1xf32>
    %73 = vector.broadcast %72 : vector<68x1xf32> to vector<68x9xf32>
    %74 = arith.subf %70, %73 : vector<68x9xf32>
    %75 = math.exp %74 : vector<68x9xf32>
    %cst_46 = arith.constant dense<0.000000e+00> : vector<68xf32>
    %76 = vector.multi_reduction <add>, %75, %cst_46 [1] : vector<68x9xf32> to vector<68xf32>
    %77 = vector.shape_cast %76 : vector<68xf32> to vector<68x1xf32>
    %78 = tpu.reciprocal %77 {approx = true} : vector<68x1xf32> -> vector<68x1xf32>
    %79 = vector.broadcast %78 : vector<68x1xf32> to vector<68x9xf32>
    %80 = arith.mulf %75, %79 : vector<68x9xf32>
    %81 = arith.truncf %80 : vector<68x9xf32> to vector<68x9xbf16>
    %82 = arith.truncf %65 : vector<9x32xf32> to vector<9x32xbf16>
    %cst_47 = arith.constant dense<0.000000e+00> : vector<68x32xf32>
    %83 = tpu.matmul %81, %82, %cst_47 {dimension_numbers = #tpu.dot_dimension_numbers<[1], [0], [0], [1], [0, 0, 1, 1], [], []>} : vector<68x9xbf16>, vector<9x32xbf16>, vector<68x32xf32> -> vector<68x32xf32>
    %84 = arith.truncf %83 : vector<68x32xf32> to vector<68x32xbf16>
    %c1_48 = arith.constant 1 : index
    %c0_49 = arith.constant 0 : index
    %c0_50 = arith.constant 0 : index
    %85 = vector.load %arg8[%c1_48, %c0_49, %c0_50] : memref<2x32x32xbf16, #tpu.memory_space<vmem>>, vector<1x32x32xbf16>
    %86 = vector.shape_cast %85 : vector<1x32x32xbf16> to vector<32x32xbf16>
    %cst_51 = arith.constant dense<0.000000e+00> : vector<68x32xf32>
    %87 = tpu.matmul %84, %86, %cst_51 {dimension_numbers = #tpu.dot_dimension_numbers<[1], [0], [0], [1], [0, 0, 1, 1], [], []>} : vector<68x32xbf16>, vector<32x32xbf16>, vector<68x32xf32> -> vector<68x32xf32>
    %88 = arith.addf %56, %87 : vector<68x32xf32>
    %89 = arith.truncf %88 : vector<68x32xf32> to vector<68x32xbf16>
    %c0_52 = arith.constant 0 : index
    %c0_53 = arith.constant 0 : index
    %c0_54 = arith.constant 0 : index
    %90 = vector.load %arg9[%c0_52, %c0_53, %c0_54] : memref<1x68x32xbf16, #tpu.memory_space<vmem>>, vector<1x68x32xbf16>
    %91 = vector.shape_cast %90 : vector<1x68x32xbf16> to vector<68x32xbf16>
    %92 = vector.shape_cast %89 : vector<68x32xbf16> to vector<1x68x32xbf16>
    tpu.vector_store %arg9[%c0_52, %c0_53, %c0_54], %92 {strides = array<i32>} : memref<1x68x32xbf16, #tpu.memory_space<vmem>>, vector<1x68x32xbf16>,
    return
  }
  func.func @transform_0(%arg0: i32, %arg1: i32) -> (i32, i32, i32) {
    %c0_i32 = arith.constant 0 : i32
    %c0_i32_0 = arith.constant 0 : i32
    return %arg0, %arg1, %c0_i32 : i32, i32, i32
  }
  func.func @transform_1(%arg0: i32, %arg1: i32) -> (i32, i32, i32) {
    %c0_i32 = arith.constant 0 : i32
    %c0_i32_0 = arith.constant 0 : i32
    %c0_i32_1 = arith.constant 0 : i32
    return %arg0, %c0_i32, %c0_i32_0 : i32, i32, i32
  }
  func.func @transform_2(%arg0: i32, %arg1: i32) -> (i32, i32) {
    %c0_i32 = arith.constant 0 : i32
    %c0_i32_0 = arith.constant 0 : i32
    %c0_i32_1 = arith.constant 0 : i32
    return %c0_i32, %c0_i32_0 : i32, i32
  }
  func.func @transform_3(%arg0: i32, %arg1: i32) -> (i32, i32, i32) {
    %c0_i32 = arith.constant 0 : i32
    %c0_i32_0 = arith.constant 0 : i32
    %c0_i32_1 = arith.constant 0 : i32
    %c0_i32_2 = arith.constant 0 : i32
    return %c0_i32, %c0_i32_0, %c0_i32_1 : i32, i32, i32
  }
  func.func @transform_4(%arg0: i32, %arg1: i32) -> (i32, i32, i32) {
    %c0_i32 = arith.constant 0 : i32
    %c0_i32_0 = arith.constant 0 : i32
    %c0_i32_1 = arith.constant 0 : i32
    %c0_i32_2 = arith.constant 0 : i32
    return %c0_i32, %c0_i32_0, %c0_i32_1 : i32, i32, i32
  }
  func.func @transform_5(%arg0: i32, %arg1: i32) -> (i32, i32, i32) {
    %c0_i32 = arith.constant 0 : i32
    %c0_i32_0 = arith.constant 0 : i32
    %c0_i32_1 = arith.constant 0 : i32
    %c0_i32_2 = arith.constant 0 : i32
    return %c0_i32, %c0_i32_0, %c0_i32_1 : i32, i32, i32
  }
  func.func @transform_6(%arg0: i32, %arg1: i32) -> (i32, i32, i32) {
    %c0_i32 = arith.constant 0 : i32
    %c0_i32_0 = arith.constant 0 : i32
    %c0_i32_1 = arith.constant 0 : i32
    %c0_i32_2 = arith.constant 0 : i32
    return %c0_i32, %c0_i32_0, %c0_i32_1 : i32, i32, i32
  }
  func.func @transform_7(%arg0: i32, %arg1: i32) -> (i32, i32, i32) {
    %c0_i32 = arith.constant 0 : i32
    %c0_i32_0 = arith.constant 0 : i32
    return %arg0, %arg1, %c0_i32 : i32, i32, i32
  }
}

module attributes {stable_mosaic.version = 11 : i64} {
  func.func @_mlp_kernel(%arg0: i32, %arg1: memref<72x32xbf16, #tpu.memory_space<vmem>>, %arg2: memref<1x32xf32, #tpu.memory_space<vmem>>, %arg3: memref<32x128xbf16, #tpu.memory_space<vmem>>, %arg4: memref<1x128xf32, #tpu.memory_space<vmem>>, %arg5: memref<128x32xbf16, #tpu.memory_space<vmem>>, %arg6: memref<1x32xf32, #tpu.memory_space<vmem>>, %arg7: memref<72x32xbf16, #tpu.memory_space<vmem>>) attributes {dimension_semantics = [#tpu.dimension_semantics<parallel>], iteration_bounds = array<i64: 2>, scalar_prefetch = 0 : i64, scratch_operands = 0 : i64, tpu.core_type = #tpu.core_type<tc>, window_params = [{transform_indices = @transform_0, window_bounds = array<i64: 72, 32>}, {pipeline_mode = #tpu.pipeline_mode<synchronous>, transform_indices = @transform_1, window_bounds = array<i64: 1, 32>}, {pipeline_mode = #tpu.pipeline_mode<synchronous>, transform_indices = @transform_2, window_bounds = array<i64: 32, 128>}, {pipeline_mode = #tpu.pipeline_mode<synchronous>, transform_indices = @transform_3, window_bounds = array<i64: 1, 128>}, {pipeline_mode = #tpu.pipeline_mode<synchronous>, transform_indices = @transform_4, window_bounds = array<i64: 128, 32>}, {pipeline_mode = #tpu.pipeline_mode<synchronous>, transform_indices = @transform_5, window_bounds = array<i64: 1, 32>}, {transform_indices = @transform_6, window_bounds = array<i64: 72, 32>}]} {
    %c0 = arith.constant 0 : index
    %c0_0 = arith.constant 0 : index
    %0 = vector.load %arg1[%c0, %c0_0] : memref<72x32xbf16, #tpu.memory_space<vmem>>, vector<72x32xbf16>
    %1 = arith.extf %0 : vector<72x32xbf16> to vector<72x32xf32>
    %cst = arith.constant dense<0.000000e+00> : vector<72xf32>
    %2 = vector.multi_reduction <add>, %1, %cst [1] : vector<72x32xf32> to vector<72xf32>
    %3 = vector.shape_cast %2 : vector<72xf32> to vector<72x1xf32>
    %cst_1 = arith.constant 3.200000e+01 : f32
    %4 = vector.broadcast %cst_1 : f32 to vector<72x1xf32>
    %5 = arith.divf %3, %4 : vector<72x1xf32>
    %6 = vector.broadcast %5 : vector<72x1xf32> to vector<72x32xf32>
    %7 = arith.subf %1, %6 : vector<72x32xf32>
    %8 = arith.mulf %7, %7 : vector<72x32xf32>
    %cst_2 = arith.constant dense<0.000000e+00> : vector<72xf32>
    %9 = vector.multi_reduction <add>, %8, %cst_2 [1] : vector<72x32xf32> to vector<72xf32>
    %10 = vector.shape_cast %9 : vector<72xf32> to vector<72x1xf32>
    %cst_3 = arith.constant 3.200000e+01 : f32
    %11 = vector.broadcast %cst_3 : f32 to vector<72x1xf32>
    %12 = arith.divf %10, %11 : vector<72x1xf32>
    %cst_4 = arith.constant 9.99999974E-6 : f32
    %13 = vector.broadcast %cst_4 : f32 to vector<72x1xf32>
    %14 = arith.addf %12, %13 : vector<72x1xf32>
    %15 = math.rsqrt %14 : vector<72x1xf32>
    %16 = vector.broadcast %15 : vector<72x1xf32> to vector<72x32xf32>
    %17 = arith.mulf %7, %16 : vector<72x32xf32>
    %c0_5 = arith.constant 0 : index
    %c0_6 = arith.constant 0 : index
    %18 = vector.load %arg2[%c0_5, %c0_6] : memref<1x32xf32, #tpu.memory_space<vmem>>, vector<1x32xf32>
    %19 = vector.broadcast %18 : vector<1x32xf32> to vector<72x32xf32>
    %20 = arith.mulf %17, %19 : vector<72x32xf32>
    %21 = arith.truncf %20 : vector<72x32xf32> to vector<72x32xbf16>
    %c0_7 = arith.constant 0 : index
    %c0_8 = arith.constant 0 : index
    %22 = vector.load %arg3[%c0_7, %c0_8] : memref<32x128xbf16, #tpu.memory_space<vmem>>, vector<32x128xbf16>
    %cst_9 = arith.constant dense<0.000000e+00> : vector<72x128xf32>
    %23 = tpu.matmul %21, %22, %cst_9 {dimension_numbers = #tpu.dot_dimension_numbers<[1], [0], [0], [1], [0, 0, 1, 1], [], []>} : vector<72x32xbf16>, vector<32x128xbf16>, vector<72x128xf32> -> vector<72x128xf32>
    %c0_10 = arith.constant 0 : index
    %c0_11 = arith.constant 0 : index
    %24 = vector.load %arg4[%c0_10, %c0_11] : memref<1x128xf32, #tpu.memory_space<vmem>>, vector<1x128xf32>
    %25 = vector.broadcast %24 : vector<1x128xf32> to vector<72x128xf32>
    %26 = arith.addf %23, %25 : vector<72x128xf32>
    %27 = math.absf %26 : vector<72x128xf32>
    %cst_12 = arith.constant 0.707106769 : f32
    %28 = vector.broadcast %cst_12 : f32 to vector<72x128xf32>
    %29 = arith.mulf %27, %28 : vector<72x128xf32>
    %cst_13 = arith.constant 0.327591091 : f32
    %30 = vector.broadcast %cst_13 : f32 to vector<72x128xf32>
    %31 = arith.mulf %30, %29 : vector<72x128xf32>
    %cst_14 = arith.constant 1.000000e+00 : f32
    %32 = vector.broadcast %cst_14 : f32 to vector<72x128xf32>
    %33 = arith.addf %32, %31 : vector<72x128xf32>
    %34 = tpu.reciprocal %33 {approx = true} : vector<72x128xf32> -> vector<72x128xf32>
    %cst_15 = arith.constant 1.06140542 : f32
    %35 = vector.broadcast %cst_15 : f32 to vector<72x128xf32>
    %36 = arith.mulf %34, %35 : vector<72x128xf32>
    %cst_16 = arith.constant -1.45315206 : f32
    %37 = vector.broadcast %cst_16 : f32 to vector<72x128xf32>
    %38 = arith.addf %37, %36 : vector<72x128xf32>
    %39 = arith.mulf %34, %38 : vector<72x128xf32>
    %cst_17 = arith.constant 1.42141378 : f32
    %40 = vector.broadcast %cst_17 : f32 to vector<72x128xf32>
    %41 = arith.addf %40, %39 : vector<72x128xf32>
    %42 = arith.mulf %34, %41 : vector<72x128xf32>
    %cst_18 = arith.constant -0.284496725 : f32
    %43 = vector.broadcast %cst_18 : f32 to vector<72x128xf32>
    %44 = arith.addf %43, %42 : vector<72x128xf32>
    %45 = arith.mulf %34, %44 : vector<72x128xf32>
    %cst_19 = arith.constant 0.254829586 : f32
    %46 = vector.broadcast %cst_19 : f32 to vector<72x128xf32>
    %47 = arith.addf %46, %45 : vector<72x128xf32>
    %48 = arith.mulf %34, %47 : vector<72x128xf32>
    %cst_20 = arith.constant 0.000000e+00 : f32
    %49 = vector.broadcast %cst_20 : f32 to vector<72x128xf32>
    %50 = arith.subf %49, %29 : vector<72x128xf32>
    %51 = arith.mulf %50, %29 : vector<72x128xf32>
    %52 = math.exp %51 : vector<72x128xf32>
    %53 = arith.mulf %48, %52 : vector<72x128xf32>
    %cst_21 = arith.constant 1.000000e+00 : f32
    %54 = vector.broadcast %cst_21 : f32 to vector<72x128xf32>
    %55 = arith.subf %54, %53 : vector<72x128xf32>
    %56 = arith.mulf %27, %55 : vector<72x128xf32>
    %57 = arith.addf %26, %56 : vector<72x128xf32>
    %cst_22 = arith.constant 5.000000e-01 : f32
    %58 = vector.broadcast %cst_22 : f32 to vector<72x128xf32>
    %59 = arith.mulf %58, %57 : vector<72x128xf32>
    %60 = arith.truncf %59 : vector<72x128xf32> to vector<72x128xbf16>
    %c0_23 = arith.constant 0 : index
    %c0_24 = arith.constant 0 : index
    %61 = vector.load %arg5[%c0_23, %c0_24] : memref<128x32xbf16, #tpu.memory_space<vmem>>, vector<128x32xbf16>
    %cst_25 = arith.constant dense<0.000000e+00> : vector<72x32xf32>
    %62 = tpu.matmul %60, %61, %cst_25 {dimension_numbers = #tpu.dot_dimension_numbers<[1], [0], [0], [1], [0, 0, 1, 1], [], []>} : vector<72x128xbf16>, vector<128x32xbf16>, vector<72x32xf32> -> vector<72x32xf32>
    %c0_26 = arith.constant 0 : index
    %c0_27 = arith.constant 0 : index
    %63 = vector.load %arg6[%c0_26, %c0_27] : memref<1x32xf32, #tpu.memory_space<vmem>>, vector<1x32xf32>
    %64 = vector.broadcast %63 : vector<1x32xf32> to vector<72x32xf32>
    %65 = arith.addf %62, %64 : vector<72x32xf32>
    %66 = arith.addf %65, %1 : vector<72x32xf32>
    %67 = arith.truncf %66 : vector<72x32xf32> to vector<72x32xbf16>
    %c0_28 = arith.constant 0 : index
    %c0_29 = arith.constant 0 : index
    %68 = vector.load %arg7[%c0_28, %c0_29] : memref<72x32xbf16, #tpu.memory_space<vmem>>, vector<72x32xbf16>
    tpu.vector_store %arg7[%c0_28, %c0_29], %67 {strides = array<i32>} : memref<72x32xbf16, #tpu.memory_space<vmem>>, vector<72x32xbf16>,
    return
  }
  func.func @transform_0(%arg0: i32) -> (i32, i32) {
    %c0_i32 = arith.constant 0 : i32
    %c0_i32_0 = arith.constant 0 : i32
    return %arg0, %c0_i32 : i32, i32
  }
  func.func @transform_1(%arg0: i32) -> (i32, i32) {
    %c0_i32 = arith.constant 0 : i32
    %c0_i32_0 = arith.constant 0 : i32
    %c0_i32_1 = arith.constant 0 : i32
    return %c0_i32, %c0_i32_0 : i32, i32
  }
  func.func @transform_2(%arg0: i32) -> (i32, i32) {
    %c0_i32 = arith.constant 0 : i32
    %c0_i32_0 = arith.constant 0 : i32
    %c0_i32_1 = arith.constant 0 : i32
    return %c0_i32, %c0_i32_0 : i32, i32
  }
  func.func @transform_3(%arg0: i32) -> (i32, i32) {
    %c0_i32 = arith.constant 0 : i32
    %c0_i32_0 = arith.constant 0 : i32
    %c0_i32_1 = arith.constant 0 : i32
    return %c0_i32, %c0_i32_0 : i32, i32
  }
  func.func @transform_4(%arg0: i32) -> (i32, i32) {
    %c0_i32 = arith.constant 0 : i32
    %c0_i32_0 = arith.constant 0 : i32
    %c0_i32_1 = arith.constant 0 : i32
    return %c0_i32, %c0_i32_0 : i32, i32
  }
  func.func @transform_5(%arg0: i32) -> (i32, i32) {
    %c0_i32 = arith.constant 0 : i32
    %c0_i32_0 = arith.constant 0 : i32
    %c0_i32_1 = arith.constant 0 : i32
    return %c0_i32, %c0_i32_0 : i32, i32
  }
  func.func @transform_6(%arg0: i32) -> (i32, i32) {
    %c0_i32 = arith.constant 0 : i32
    %c0_i32_0 = arith.constant 0 : i32
    return %arg0, %c0_i32 : i32, i32
  }
}

module attributes {stable_mosaic.version = 11 : i64} {
  func.func @_linear_kernel(%arg0: i32, %arg1: memref<64x32xbf16, #tpu.memory_space<vmem>>, %arg2: memref<1x32xf32, #tpu.memory_space<vmem>>, %arg3: memref<32x4xbf16, #tpu.memory_space<vmem>>, %arg4: memref<1x4xf32, #tpu.memory_space<vmem>>, %arg5: memref<64x4xf32, #tpu.memory_space<vmem>>) attributes {dimension_semantics = [#tpu.dimension_semantics<parallel>], iteration_bounds = array<i64: 2>, scalar_prefetch = 0 : i64, scratch_operands = 0 : i64, tpu.core_type = #tpu.core_type<tc>, window_params = [{transform_indices = @transform_0, window_bounds = array<i64: 64, 32>}, {pipeline_mode = #tpu.pipeline_mode<synchronous>, transform_indices = @transform_1, window_bounds = array<i64: 1, 32>}, {pipeline_mode = #tpu.pipeline_mode<synchronous>, transform_indices = @transform_2, window_bounds = array<i64: 32, 4>}, {pipeline_mode = #tpu.pipeline_mode<synchronous>, transform_indices = @transform_3, window_bounds = array<i64: 1, 4>}, {transform_indices = @transform_4, window_bounds = array<i64: 64, 4>}]} {
    %c0 = arith.constant 0 : index
    %c0_0 = arith.constant 0 : index
    %0 = vector.load %arg1[%c0, %c0_0] : memref<64x32xbf16, #tpu.memory_space<vmem>>, vector<64x32xbf16>
    %1 = arith.extf %0 : vector<64x32xbf16> to vector<64x32xf32>
    %cst = arith.constant dense<0.000000e+00> : vector<64xf32>
    %2 = vector.multi_reduction <add>, %1, %cst [1] : vector<64x32xf32> to vector<64xf32>
    %3 = vector.shape_cast %2 : vector<64xf32> to vector<64x1xf32>
    %cst_1 = arith.constant 3.200000e+01 : f32
    %4 = vector.broadcast %cst_1 : f32 to vector<64x1xf32>
    %5 = arith.divf %3, %4 : vector<64x1xf32>
    %6 = vector.broadcast %5 : vector<64x1xf32> to vector<64x32xf32>
    %7 = arith.subf %1, %6 : vector<64x32xf32>
    %8 = arith.mulf %7, %7 : vector<64x32xf32>
    %cst_2 = arith.constant dense<0.000000e+00> : vector<64xf32>
    %9 = vector.multi_reduction <add>, %8, %cst_2 [1] : vector<64x32xf32> to vector<64xf32>
    %10 = vector.shape_cast %9 : vector<64xf32> to vector<64x1xf32>
    %cst_3 = arith.constant 3.200000e+01 : f32
    %11 = vector.broadcast %cst_3 : f32 to vector<64x1xf32>
    %12 = arith.divf %10, %11 : vector<64x1xf32>
    %cst_4 = arith.constant 9.99999974E-6 : f32
    %13 = vector.broadcast %cst_4 : f32 to vector<64x1xf32>
    %14 = arith.addf %12, %13 : vector<64x1xf32>
    %15 = math.rsqrt %14 : vector<64x1xf32>
    %16 = vector.broadcast %15 : vector<64x1xf32> to vector<64x32xf32>
    %17 = arith.mulf %7, %16 : vector<64x32xf32>
    %c0_5 = arith.constant 0 : index
    %c0_6 = arith.constant 0 : index
    %18 = vector.load %arg2[%c0_5, %c0_6] : memref<1x32xf32, #tpu.memory_space<vmem>>, vector<1x32xf32>
    %19 = vector.broadcast %18 : vector<1x32xf32> to vector<64x32xf32>
    %20 = arith.mulf %17, %19 : vector<64x32xf32>
    %21 = arith.truncf %20 : vector<64x32xf32> to vector<64x32xbf16>
    %c0_7 = arith.constant 0 : index
    %c0_8 = arith.constant 0 : index
    %22 = vector.load %arg3[%c0_7, %c0_8] : memref<32x4xbf16, #tpu.memory_space<vmem>>, vector<32x4xbf16>
    %cst_9 = arith.constant dense<0.000000e+00> : vector<64x4xf32>
    %23 = tpu.matmul %21, %22, %cst_9 {dimension_numbers = #tpu.dot_dimension_numbers<[1], [0], [0], [1], [0, 0, 1, 1], [], []>} : vector<64x32xbf16>, vector<32x4xbf16>, vector<64x4xf32> -> vector<64x4xf32>
    %c0_10 = arith.constant 0 : index
    %c0_11 = arith.constant 0 : index
    %24 = vector.load %arg4[%c0_10, %c0_11] : memref<1x4xf32, #tpu.memory_space<vmem>>, vector<1x4xf32>
    %25 = vector.broadcast %24 : vector<1x4xf32> to vector<64x4xf32>
    %26 = arith.addf %23, %25 : vector<64x4xf32>
    %c0_12 = arith.constant 0 : index
    %c0_13 = arith.constant 0 : index
    %27 = vector.load %arg5[%c0_12, %c0_13] : memref<64x4xf32, #tpu.memory_space<vmem>>, vector<64x4xf32>
    tpu.vector_store %arg5[%c0_12, %c0_13], %26 {strides = array<i32>} : memref<64x4xf32, #tpu.memory_space<vmem>>, vector<64x4xf32>,
    return
  }
  func.func @transform_0(%arg0: i32) -> (i32, i32) {
    %c0_i32 = arith.constant 0 : i32
    %c0_i32_0 = arith.constant 0 : i32
    return %arg0, %c0_i32 : i32, i32
  }
  func.func @transform_1(%arg0: i32) -> (i32, i32) {
    %c0_i32 = arith.constant 0 : i32
    %c0_i32_0 = arith.constant 0 : i32
    %c0_i32_1 = arith.constant 0 : i32
    return %c0_i32, %c0_i32_0 : i32, i32
  }
  func.func @transform_2(%arg0: i32) -> (i32, i32) {
    %c0_i32 = arith.constant 0 : i32
    %c0_i32_0 = arith.constant 0 : i32
    %c0_i32_1 = arith.constant 0 : i32
    return %c0_i32, %c0_i32_0 : i32, i32
  }
  func.func @transform_3(%arg0: i32) -> (i32, i32) {
    %c0_i32 = arith.constant 0 : i32
    %c0_i32_0 = arith.constant 0 : i32
    %c0_i32_1 = arith.constant 0 : i32
    return %c0_i32, %c0_i32_0 : i32, i32
  }
  func.func @transform_4(%arg0: i32) -> (i32, i32) {
    %c0_i32 = arith.constant 0 : i32
    %c0_i32_0 = arith.constant 0 : i32
    return %arg0, %c0_i32 : i32, i32
  }
}

</mosaic_0001>

<bundles_post_ra>
// kernel: _lambda_.14
= control target key start
LH: loop header
LB: loop body
LE: loop exit
PB: predicated region body
PF: predicated region fallthrough
CT: control target
= control target key end

     0   :  { %8 = vsyncpa [#allocation3], 0  ;;  %s93_s15 = smov [#allocation2]   ;;  %s126_s0 = inlined_call_operand.vmem [shape: bf16[8,8], index: 0, kind: input, shape index: {}]   ;;  %s127_s1 = inlined_call_operand.vmem [shape: bf16[8,32], index: 1, kind: input, shape index: {}]   ;;  %s128_s2 = inlined_call_operand.hbm [shape: f32[1,32], index: 2, kind: input, shape index: {}]   ;;  %s129_s3 = inlined_call_operand.vmem [shape: bf16[8,32], index: 3, kind: output, shape index: {}]  }
   0x1   :  { %s18_s14 = sshll.u32 %s128_s2, 4  ;;  %s20_s16 = sshll.u32 %s93_s15, 4  ;;  %s19_s14 = int_to_ptr.hbm [resolvable:$true] %s18_s14  ;;  %s21_s16 = int_to_ptr.vmem [resolvable:$true] %s20_s16 }
   0x2   :  { %23 = dma.hbm_to_vmem [thread:$0]  %s19_s14, 16, %s21_s16, [#allocation3]  }
   0x3   :  { %91 = dma.done.wait [#allocation3], 16  }
   0x4   :  { %92 = vsyncadd [#allocation3], 4294967280  ;;  %vm39_vm0 = vcmask 1043456   ;;  %v30_v0 = vld [vmem:[%s127_s1] sm:$0xf]  ;;  %vm35_vm1 = vcmask 64512  }
   0x5   :  { %v41_v1 = vsel %vm39_vm0, %v30_v0, 0  ;;  %v29_v2 = vld [vmem:[%s126_s0] sm:$0xf]  ;;  %vm57_vm2 = vcmask 257024  }
   0x6   :  { %50 = vmatpush.bf16.msra.mxu0 %v41_v1  ;;  %v66_v3 = vld [vmem:[#allocation2] ss:$0 sm:$0xff] }
   0x9   :  { %64 = vmatmul.msk.bf16.vlgmr.msra.gmra.mxu0 %vm35_vm1, %v29_v2 }
  0x86   :  { %v52_v4 = vpop.f32.mrf.mxu0 }
  0x87   :  { %v53_v5 = vadd.f32 %v66_v3, %v52_v4 }
  0x89   :  { %v56_v6 = vpack.c.bf16 %v53_v5, %v53_v5 }
  0x8b   :  { %58 = vst.msk [vmem:[%s129_s3] sm:$0xf] %vm57_vm2, %v56_v6 }
  0x8e   :  { %v54_v7 = vpop.f32.mrf.mxu0 }
  0x8f   :  { %63 = vsyncpa [#allocation3], 1 }

// kernel: _lambda_.13
= control target key start
LH: loop header
LB: loop body
LE: loop exit
PB: predicated region body
PF: predicated region fallthrough
CT: control target
= control target key end

     0   :  { %10 = vsyncpa [#allocation3], 0  ;;  %s782_s18 = smov 0   ;;  %s964_s0 = inlined_call_operand.vmem [shape: bf16[128,12], index: 0, kind: input, shape index: {}]   ;;  %s965_s1 = inlined_call_operand.vmem [shape: bf16[12,32], index: 1, kind: input, shape index: {}]   ;;  %s966_s2 = inlined_call_operand.hbm [shape: f32[1,32], index: 2, kind: input, shape index: {}]   ;;  %s967_s3 = inlined_call_operand.vmem [shape: f32[1,32], index: 3, kind: input, shape index: {}]   ;;  %s968_s4 = inlined_call_operand.vmem [shape: f32[1,32], index: 4, kind: input, shape index: {}]   ;;  %s969_s5 = inlined_call_operand.vmem [shape: bf16[128,32], index: 5, kind: output, shape index: {}]  }
   0x1 LB: > { %s622_s19 = sadd.s32 4294967295, %s748_s18   ;;  %p624_p0 = scmp.ge.s32.totalorder %s748_s18, 1  ;;  %s748_s18 = sphi %s782_s18, %s16_s18  }
   0x2   : > { %p157_p1 = scmp.lt.s32.totalorder %s748_s18, 3  ;;  %s172_s22 = sshll.u32 %s966_s2, 4  ;;  %s173_s22 = int_to_ptr.hbm [resolvable:$true] %s172_s22 }
   0x3   : > { %p675_p3 = scmp.eq.s32.totalorder %s622_s19, 0  ;;  %s750_s23 = smov [#allocation2]  }
   0x4   : > { %p158_p2 = pnand %p624_p0, %p157_p1  ;;  %s174_s24 = sshll.u32 %s750_s23, 4  ;;  %s175_s24 = int_to_ptr.vmem [resolvable:$true] %s174_s24 }
   0x6   : > { %p671_p4 = pneg %p158_p2  ;;  %202 = sbr.rel (%p158_p2) target bundleno = 442 (0x1ba), region = 40 }
   0x8   : > { %p672_p5 = pnand %p675_p3, %p671_p4 }
   0xa   : > { %674 = dma.hbm_to_vmem [thread:$0]  (!%p672_p5), %s173_s22, 16, %s175_s24, [#allocation3]  }
   0xb   : > { %743 = dma.done.wait (%p675_p3), [#allocation3], 16  }
   0xc   : > { %745 = vsyncadd (%p675_p3), [#allocation3], 4294967280  ;;  %s629_s25 = sshll.u32 %s622_s19, 3  ;;  %v651_v0 = vld [vmem:[%s965_s1] sm:$0xf]  ;;  %vm296_vm0 = vcmask 1045504  }
   0xd   : > { %p232_p6 = scmp.lt.s32.totalorder %s629_s25, 15  ;;  %v663_v1 = vld [vmem:[%s965_s1] sm:$0x30]  ;;  %vm283_vm1 = vcmask 97280   ;;  %v687_v8 = vld [vmem:[#allocation2] ss:$0 sm:$0xff] }
   0xe   : > { %v652_v2 = vor.u32 %v663_v1, %v651_v0  ;;  %vm329_vm2 = vcmask 261120   ;;  %v751_v33 = vmov 32.0   ;;  %vm545_vm10 = vcmask 257024  }
   0xf   : > { %s971_s25 = smov (!%p232_p6, %s629_s25), 15  ;;  %690 = vrcp.f32 %v751_v33 }
  0x10   : > { %s630_s26 = sshll.u32 %s971_s25, 2  ;;  %v298_v3 = vsel %vm296_vm0, %v652_v2, 0 }
  0x11   : > { %s235_s8 = scalar_lea.vmem %s964_s0, %s630_s26  ;;  %307 = vmatpush.bf16.msra.mxu0 %v298_v3  ;;  %664 = vmatpush.bf16.msra.mxu1 %v298_v3  ;;  %s913_s15 = scalar_lea.vmem %s969_s5, %s630_s26 }
  0x12   : > { %v659_v4 = vld [vmem:[%s235_s8] sm:$0xff]  ;;  %v660_v5 = vld [vmem:[%s235_s8 + $0x8] sm:$0xff]  ;;  %v661_v6 = vld [vmem:[%s235_s8 + $0x10] sm:$0xff]  ;;  %665 = vmatpush.bf16.msra.mxu2 %v298_v3  ;;  %666 = vmatpush.bf16.msra.mxu3 %v298_v3 }
  0x13   : > { %v662_v7 = vld [vmem:[%s235_s8 + $0x18] sm:$0xff] }
  0x14   : > { %653 = vmatmul.msk.bf16.vlgmr.msra.gmra.mxu0 %vm283_vm1, %v659_v4  ;;  %654 = vmatmul.msk.bf16.vlgmr.msra.gmra.mxu1 %vm283_vm1, %v660_v5 }
  0x15   : > { %655 = vmatmul.msk.bf16.vlgmr.msra.gmra.mxu2 %vm283_vm1, %v661_v6  ;;  %656 = vmatmul.msk.bf16.vlgmr.msra.gmra.mxu3 %vm283_vm1, %v662_v7  ;;  %v691_v34 = vpop.eup %690 }
  0x16   : > { %v355_v35 = vmul.f32 32.0, %v691_v34  ;;  %vm359_vm3 = vweird.f32 %v691_v34 }
  0x18   : > { %v356_v36 = vsub.f32 1.0, %v355_v35 }
  0x1a   : > { %v357_v37 = vmul.f32 %v691_v34, %v356_v36 }
  0x1c   : > { %v358_v38 = vadd.f32 %v691_v34, %v357_v37 }
  0x1e   : > { %v815_v39 = vsel %vm359_vm3, %v691_v34, %v358_v38 }
  0x91   : > { %v309_v9 = vpop.f32.mrf.mxu0  ;;  %v314_v10 = vpop.f32.mrf.mxu1 }
  0x92   : > { %v310_v11 = vadd.f32 %v687_v8, %v309_v9  ;;  %v315_v12 = vadd.f32 %v687_v8, %v314_v10 }
  0x94   : > { %v336_v13 = vsel %vm329_vm2, %v315_v12, 0.0  ;;  %v330_v14 = vsel %vm329_vm2, %v310_v11, 0.0 }
  0x95   : > { %337 = vadd.xlane.f32.xlu1 %v336_v13  ;;  %331 = vadd.xlane.f32.xlu0 %v330_v14 }
  0x98   : > { %v319_v15 = vpop.f32.mrf.mxu2  ;;  %v324_v16 = vpop.f32.mrf.mxu3 }
  0x99   : > { %v320_v17 = vadd.f32 %v687_v8, %v319_v15  ;;  %v311_v18 = vpop.f32.mrf.mxu0  ;;  %v316_v19 = vpop.f32.mrf.mxu1  ;;  %v325_v25 = vadd.f32 %v687_v8, %v324_v16 }
  0x9a   : > { %v312_v20 = vadd.f32 %v687_v8, %v311_v18  ;;  %v317_v21 = vadd.f32 %v687_v8, %v316_v19 }
  0x9b   : > { %v342_v22 = vsel %vm329_vm2, %v320_v17, 0.0  ;;  %v348_v32 = vsel %vm329_vm2, %v325_v25, 0.0 }
  0x9c   : > { %343 = vadd.xlane.f32.xlu2 %v342_v22  ;;  %v339_v23 = vsel %vm329_vm2, %v317_v21, 0.0  ;;  %v333_v24 = vsel %vm329_vm2, %v312_v20, 0.0 }
  0x9d   : > { %340 = vadd.xlane.f32.xlu1 %v339_v23  ;;  %334 = vadd.xlane.f32.xlu0 %v333_v24 }
  0xa0   : > { %v321_v26 = vpop.f32.mrf.mxu2  ;;  %v326_v27 = vpop.f32.mrf.mxu3 }
  0xa1   : > { %v322_v28 = vadd.f32 %v687_v8, %v321_v26  ;;  %v327_v29 = vadd.f32 %v687_v8, %v326_v27 }
  0xa3   : > { %v345_v30 = vsel %vm329_vm2, %v322_v28, 0.0  ;;  %v351_v31 = vsel %vm329_vm2, %v327_v29, 0.0 }
  0xa4   : > { %346 = vadd.xlane.f32.xlu2 %v345_v30 }
  0xa5   : > { %352 = vadd.xlane.f32.xlu1 %v351_v31  ;;  %349 = vadd.xlane.f32.xlu0 %v348_v32 }
 0x108   : > { %v338_v40 = vpop.xlane.xlu1 %337  ;;  %v332_v41 = vpop.xlane.xlu0 %331 }
 0x109   : > { %v363_v42 = vmul.f32 %v815_v39, %v338_v40  ;;  %v361_v43 = vmul.f32 %v815_v39, %v332_v41 }
 0x10b   : > { %v819_v44 = vsub.f32 %v315_v12, %v363_v42  ;;  %v821_v45 = vsub.f32 %v310_v11, %v361_v43 }
 0x10d   : > { %v379_v46 = vmul.f32 %v819_v44, %v819_v44  ;;  %v377_v47 = vmul.f32 %v821_v45, %v821_v45 }
 0x10f   : > { %v344_v48 = vpop.xlane.xlu2 %343  ;;  %v391_v49 = vsel %vm329_vm2, %v379_v46, 0.0  ;;  %v385_v50 = vsel %vm329_vm2, %v377_v47, 0.0 }
 0x110   : > { %v365_v51 = vmul.f32 %v815_v39, %v344_v48  ;;  %392 = vadd.xlane.f32.xlu1 %v391_v49  ;;  %v341_v52 = vpop.xlane.xlu1 %340  ;;  %386 = vadd.xlane.f32.xlu2 %v385_v50  ;;  %v335_v53 = vpop.xlane.xlu0 %334 }
 0x111   : > { %v364_v54 = vmul.f32 %v815_v39, %v341_v52  ;;  %v362_v56 = vmul.f32 %v815_v39, %v335_v53 }
 0x112   : > { %v831_v55 = vsub.f32 %v320_v17, %v365_v51 }
 0x113   : > { %v834_v57 = vsub.f32 %v317_v21, %v364_v54  ;;  %v840_v60 = vsub.f32 %v312_v20, %v362_v56  ;;  %v890_v56 = vld [vmem:[%s967_s3] ss:$0 sm:$0xff] }
 0x114   : > { %v381_v58 = vmul.f32 %v831_v55, %v831_v55 }
 0x115   : > { %v380_v59 = vmul.f32 %v834_v57, %v834_v57  ;;  %v378_v6 = vmul.f32 %v840_v60, %v840_v60 }
 0x116   : > { %v397_v61 = vsel %vm329_vm2, %v381_v58, 0.0 }
 0x117   : > { %v347_v62 = vpop.xlane.xlu2 %346  ;;  %398 = vadd.xlane.f32.xlu0 %v397_v61  ;;  %v394_v63 = vsel %vm329_vm2, %v380_v59, 0.0  ;;  %v388_v12 = vsel %vm329_vm2, %v378_v6, 0.0 }
 0x118   : > { %v366_v0 = vmul.f32 %v815_v39, %v347_v62  ;;  %v353_v1 = vpop.xlane.xlu1 %352  ;;  %395 = vadd.xlane.f32.xlu2 %v394_v63  ;;  %v350_v2 = vpop.xlane.xlu0 %349  ;;  %v897_v63 = vld [vmem:[%s968_s4] ss:$0 sm:$0xff] }
 0x119   : > { %v367_v3 = vmul.f32 %v815_v39, %v350_v2  ;;  %v368_v5 = vmul.f32 %v815_v39, %v353_v1 }
 0x11a   : > { %v846_v4 = vsub.f32 %v322_v28, %v366_v0 }
 0x11b   : > { %v851_v7 = vsub.f32 %v325_v25, %v367_v3  ;;  %v857_v10 = vsub.f32 %v327_v29, %v368_v5 }
 0x11c   : > { %v382_v8 = vmul.f32 %v846_v4, %v846_v4 }
 0x11d   : > { %v383_v9 = vmul.f32 %v851_v7, %v851_v7  ;;  %v384_v14 = vmul.f32 %v857_v10, %v857_v10 }
 0x11e   : > { %v400_v11 = vsel %vm329_vm2, %v382_v8, 0.0 }
 0x11f   : > { %401 = vadd.xlane.f32.xlu1 %v400_v11  ;;  %389 = vadd.xlane.f32.xlu0 %v388_v12  ;;  %v403_v13 = vsel %vm329_vm2, %v383_v9, 0.0  ;;  %v406_v15 = vsel %vm329_vm2, %v384_v14, 0.0 }
 0x120   : > { %404 = vadd.xlane.f32.xlu2 %v403_v13 }
 0x127   : > { %407 = vadd.xlane.f32.xlu0 %v406_v15 }
 0x183   : > { %v393_v16 = vpop.xlane.xlu1 %392  ;;  %v387_v17 = vpop.xlane.xlu2 %386 }
 0x184   : > { %v411_v18 = vmul.f32 %v393_v16, %v815_v39  ;;  %v409_v19 = vmul.f32 %v387_v17, %v815_v39 }
 0x186   : > { %v419_v20 = vadd.f32 1e-05, %v411_v18  ;;  %v417_v21 = vadd.f32 1e-05, %v409_v19 }
 0x188   : > { %692 = vrsqrt.f32 %v419_v20  ;;  %vm451_vm6 = vweird.f32 %v419_v20  ;;  %vm431_vm8 = vweird.f32 %v417_v21 }
 0x189   : > { %694 = vrsqrt.f32 %v417_v21 }
 0x18a   : > { %v399_v22 = vpop.xlane.xlu0 %398 }
 0x18b   : > { %v413_v23 = vmul.f32 %v399_v22, %v815_v39  ;;  %v396_v24 = vpop.xlane.xlu2 %395 }
 0x18c   : > { %v412_v25 = vmul.f32 %v396_v24, %v815_v39 }
 0x18d   : > { %v869_v26 = vadd.f32 1e-05, %v413_v23 }
 0x18e   : > { %v693_v27 = vpop.eup %692  ;;  %v871_v28 = vadd.f32 1e-05, %v412_v25 }
 0x18f   : > { %v695_v29 = vpop.eup %694  ;;  %v446_v30 = vmul.f32 %v693_v27, %v419_v20  ;;  %696 = vrsqrt.f32 %v869_v26  ;;  %vm452_vm4 = vweird.f32 %v693_v27  ;;  %vm471_vm12 = vweird.f32 %v869_v26 }
 0x190   : > { %v426_v31 = vmul.f32 %v695_v29, %v417_v21  ;;  %698 = vrsqrt.f32 %v871_v28  ;;  %vm432_vm5 = vweird.f32 %v695_v29  ;;  %vm453_vm7 = vmor %vm451_vm6, %vm452_vm4  ;;  %vm461_vm14 = vweird.f32 %v871_v28 }
 0x191   : > { %v447_v32 = vmul.f32 %v693_v27, %v446_v30  ;;  %vm433_vm9 = vmor %vm431_vm8, %vm432_vm5 }
 0x192   : > { %v427_v33 = vmul.f32 %v695_v29, %v426_v31  ;;  %v402_v34 = vpop.xlane.xlu1 %401  ;;  %v390_v35 = vpop.xlane.xlu0 %389 }
 0x193   : > { %v448_v36 = vmul.f32 0.5, %v447_v32  ;;  %v414_v37 = vmul.f32 %v402_v34, %v815_v39  ;;  %v410_v38 = vmul.f32 %v390_v35, %v815_v39  ;;  %v405_v40 = vpop.xlane.xlu2 %404 }
 0x194   : > { %v428_v41 = vmul.f32 0.5, %v427_v33  ;;  %v415_v42 = vmul.f32 %v405_v40, %v815_v39 }
 0x195   : > { %v697_v43 = vpop.eup %696  ;;  %v449_v46 = vsub.f32 1.5, %v448_v36  ;;  %v878_v47 = vadd.f32 1e-05, %v414_v37  ;;  %v880_v48 = vadd.f32 1e-05, %v410_v38 }
 0x196   : > { %v699_v49 = vpop.eup %698  ;;  %v429_v50 = vsub.f32 1.5, %v428_v41  ;;  %v466_v51 = vmul.f32 %v697_v43, %v869_v26  ;;  %v883_v52 = vadd.f32 1e-05, %v415_v42  ;;  %vm472_vm11 = vweird.f32 %v697_v43 }
 0x197   : > { %v450_v53 = vmul.f32 %v693_v27, %v449_v46  ;;  %v456_v54 = vmul.f32 %v699_v49, %v871_v28  ;;  %700 = vrsqrt.f32 %v878_v47  ;;  %vm462_vm13 = vweird.f32 %v699_v49  ;;  %vm473_vm15 = vmor %vm471_vm12, %vm472_vm11 }
 0x198   : > { %v430_v58 = vmul.f32 %v695_v29, %v429_v50  ;;  %v467_v59 = vmul.f32 %v697_v43, %v466_v51  ;;  %702 = vrsqrt.f32 %v880_v48  ;;  %vm463_vm0 = vmor %vm461_vm14, %vm462_vm13  ;;  %vm481_vm2 = vweird.f32 %v878_v47 }
 0x199   : > { %v454_v61 = vsel %vm453_vm7, %v693_v27, %v450_v53  ;;  %v457_v62 = vmul.f32 %v699_v49, %v456_v54  ;;  %704 = vrsqrt.f32 %v883_v52  ;;  %vm441_vm6 = vweird.f32 %v880_v48 }
 0x19a   : > { %v507_v0 = vmul.f32 %v454_v61, %v819_v44  ;;  %v434_v1 = vsel %vm433_vm9, %v695_v29, %v430_v58  ;;  %v468_v2 = vmul.f32 0.5, %v467_v59  ;;  %v408_v3 = vpop.xlane.xlu0 %407  ;;  %vm491_vm8 = vweird.f32 %v883_v52 }
 0x19b   : > { %v505_v5 = vmul.f32 %v434_v1, %v821_v45  ;;  %v458_v6 = vmul.f32 0.5, %v457_v62  ;;  %v416_v8 = vmul.f32 %v408_v3, %v815_v39 }
 0x19c   : > { %v519_v9 = vmul.f32 %v890_v56, %v507_v0  ;;  %v469_v11 = vsub.f32 1.5, %v468_v2 }
 0x19d   : > { %v701_v12 = vpop.eup %700  ;;  %v517_v13 = vmul.f32 %v890_v56, %v505_v5  ;;  %v459_v44 = vsub.f32 1.5, %v458_v6  ;;  %v917_v20 = vadd.f32 1e-05, %v416_v8 }
 0x19e   : > { %v703_v14 = vpop.eup %702  ;;  %v531_v15 = vadd.f32 %v897_v63, %v519_v9  ;;  %v470_v45 = vmul.f32 %v697_v43, %v469_v11  ;;  %v476_v39 = vmul.f32 %v701_v12, %v878_v47  ;;  %vm482_vm1 = vweird.f32 %v701_v12 }
 0x19f   : > { %v705_v16 = vpop.eup %704  ;;  %v529_v17 = vadd.f32 %v897_v63, %v517_v13  ;;  %v460_v18 = vmul.f32 %v699_v49, %v459_v44  ;;  %v436_v19 = vmul.f32 %v703_v14, %v880_v48  ;;  %706 = vrsqrt.f32 %v917_v20  ;;  %vm483_vm5 = vmor %vm481_vm2, %vm482_vm1 }
 0x1a0   : > { %v539_v21 = vpack.c.bf16 %v531_v15, %v531_v15  ;;  %v474_v22 = vsel %vm473_vm15, %v697_v43, %v470_v45  ;;  %v477_v23 = vmul.f32 %v701_v12, %v476_v39  ;;  %v486_v24 = vmul.f32 %v705_v16, %v883_v52 }
 0x1a1   : > { %v537_v25 = vpack.c.bf16 %v529_v17, %v529_v17  ;;  %v509_v26 = vmul.f32 %v474_v22, %v831_v55  ;;  %v464_v27 = vsel %vm463_vm0, %v699_v49, %v460_v18  ;;  %v437_v28 = vmul.f32 %v703_v14, %v436_v19 }
 0x1a2   : > { %548 = vst.msk [vmem:[%s913_s15 + $0x8] sm:$0xf] %vm545_vm10, %v539_v21  ;;  %v508_v29 = vmul.f32 %v464_v27, %v834_v57  ;;  %v478_v30 = vmul.f32 0.5, %v477_v23  ;;  %v487_v31 = vmul.f32 %v705_v16, %v486_v24  ;;  %vm442_vm3 = vweird.f32 %v703_v14 }
 0x1a3   : > { %546 = vst.msk [vmem:[%s913_s15] sm:$0xf] %vm545_vm10, %v537_v25  ;;  %v521_v32 = vmul.f32 %v890_v56, %v509_v26  ;;  %v438_v33 = vmul.f32 0.5, %v437_v28  ;;  %vm492_vm4 = vweird.f32 %v705_v16  ;;  %vm443_vm7 = vmor %vm441_vm6, %vm442_vm3  ;;  %vm501_vm12 = vweird.f32 %v917_v20 }
 0x1a4   : > { %v520_v34 = vmul.f32 %v890_v56, %v508_v29  ;;  %v479_v35 = vsub.f32 1.5, %v478_v30  ;;  %v488_v55 = vmul.f32 0.5, %v487_v31  ;;  %vm493_vm9 = vmor %vm491_vm8, %vm492_vm4 }
 0x1a5   : > { %v533_v36 = vadd.f32 %v897_v63, %v521_v32  ;;  %v439_v37 = vsub.f32 1.5, %v438_v33  ;;  %v707_v47 = vpop.eup %706 }
 0x1a6   : > { %v532_v57 = vadd.f32 %v897_v63, %v520_v34  ;;  %v480_v38 = vmul.f32 %v701_v12, %v479_v35  ;;  %v489_v40 = vsub.f32 1.5, %v488_v55  ;;  %v496_v48 = vmul.f32 %v707_v47, %v917_v20 }
 0x1a7   : > { %v541_v41 = vpack.c.bf16 %v533_v36, %v533_v36  ;;  %v440_v42 = vmul.f32 %v703_v14, %v439_v37  ;;  %vm502_vm11 = vweird.f32 %v707_v47 }
 0x1a8   : > { %v540_v43 = vpack.c.bf16 %v532_v57, %v532_v57  ;;  %v484_v46 = vsel %vm483_vm5, %v701_v12, %v480_v38  ;;  %v490_v49 = vmul.f32 %v705_v16, %v489_v40  ;;  %v497_v61 = vmul.f32 %v707_v47, %v496_v48  ;;  %vm503_vm13 = vmor %vm501_vm12, %vm502_vm11 }
 0x1a9   : > { %550 = vst.msk [vmem:[%s913_s15 + $0x10] sm:$0xf] %vm545_vm10, %v541_v41  ;;  %v510_v50 = vmul.f32 %v484_v46, %v846_v4  ;;  %v444_v51 = vsel %vm443_vm7, %v703_v14, %v440_v42 }
 0x1aa   : > { %549 = vst.msk [vmem:[%s913_s15 + $0xc] sm:$0xf] %vm545_vm10, %v540_v43  ;;  %v506_v53 = vmul.f32 %v444_v51, %v840_v60  ;;  %v494_v54 = vsel %vm493_vm9, %v705_v16, %v490_v49  ;;  %v498_v60 = vmul.f32 0.5, %v497_v61 }
 0x1ab   : > { %v522_v58 = vmul.f32 %v890_v56, %v510_v50  ;;  %v511_v52 = vmul.f32 %v494_v54, %v851_v7 }
 0x1ac   : > { %v518_v59 = vmul.f32 %v890_v56, %v506_v53  ;;  %v499_v5 = vsub.f32 1.5, %v498_v60 }
 0x1ad   : > { %v534_v4 = vadd.f32 %v897_v63, %v522_v58  ;;  %v523_v62 = vmul.f32 %v890_v56, %v511_v52 }
 0x1ae   : > { %v530_v0 = vadd.f32 %v897_v63, %v518_v59  ;;  %v500_v6 = vmul.f32 %v707_v47, %v499_v5 }
 0x1af   : > { %v542_v1 = vpack.c.bf16 %v534_v4, %v534_v4  ;;  %v535_v2 = vadd.f32 %v897_v63, %v523_v62 }
 0x1b0   : > { %v538_v3 = vpack.c.bf16 %v530_v0, %v530_v0  ;;  %v504_v8 = vsel %vm503_vm13, %v707_v47, %v500_v6 }
 0x1b1   : > { %551 = vst.msk [vmem:[%s913_s15 + $0x14] sm:$0xf] %vm545_vm10, %v542_v1  ;;  %v543_v7 = vpack.c.bf16 %v535_v2, %v535_v2  ;;  %v512_v9 = vmul.f32 %v504_v8, %v857_v10 }
 0x1b2   : > { %547 = vst.msk [vmem:[%s913_s15 + $0x4] sm:$0xf] %vm545_vm10, %v538_v3 }
 0x1b3   : > { %552 = vst.msk [vmem:[%s913_s15 + $0x18] sm:$0xf] %vm545_vm10, %v543_v7  ;;  %v524_v11 = vmul.f32 %v890_v56, %v512_v9 }
 0x1b5   : > { %v536_v12 = vadd.f32 %v897_v63, %v524_v11 }
 0x1b7   : > { %v544_v13 = vpack.c.bf16 %v536_v12, %v536_v12 }
 0x1b9   : > { %553 = vst.msk [vmem:[%s913_s15 + $0x1c] sm:$0xf] %vm545_vm10, %v544_v13 }
 0x1ba PF: > { %s16_s18 = sadd.s32 1, %s748_s18  }
 0x1bb   : > { %p13_p7 = scmp.ge.s32.totalorder %s16_s18, 4  }
 0x1bd   :  { %15 = sbr.rel (!%p13_p7) target bundleno = 1 (0x1), region = 75 }
 0x1c2   :  { %576 = vsyncpa [#allocation3], 1 }
 0x1c3   :  { %578 = vsyncpa [#allocation3 + $0x1], 1 }

// kernel: _lambda_.11
= control target key start
LH: loop header
LB: loop body
LE: loop exit
PB: predicated region body
PF: predicated region fallthrough
CT: control target
= control target key end

     0   :  { %10 = vsyncpa [#allocation3], 0  ;;  %s385_s0 = inlined_call_operand.vmem [shape: bf16[8,17], index: 0, kind: input, shape index: {}]   ;;  %s386_s1 = inlined_call_operand.vmem [shape: bf16[17,128], index: 1, kind: input, shape index: {}]   ;;  %s387_s2 = inlined_call_operand.hbm [shape: f32[1,128], index: 2, kind: input, shape index: {}]   ;;  %s388_s3 = inlined_call_operand.vmem [shape: bf16[128,32], index: 3, kind: input, shape index: {}]   ;;  %s389_s4 = inlined_call_operand.hbm [shape: f32[1,32], index: 4, kind: input, shape index: {}]   ;;  %s390_s5 = inlined_call_operand.vmem [shape: bf16[8,32], index: 5, kind: output, shape index: {}]  }
   0x1   :  { %s21_s20 = sshll.u32 %s387_s2, 4  ;;  %s22_s20 = int_to_ptr.hbm [resolvable:$true] %s21_s20 }
   0x2   :  { %11 = vsyncpa [#allocation5], 0  ;;  %s310_s21 = smov [#allocation2]   ;;  %s34_s25 = sshll.u32 %s389_s4, 4  ;;  %s35_s25 = int_to_ptr.hbm [resolvable:$true] %s34_s25 }
   0x3   :  { %s23_s22 = sshll.u32 %s310_s21, 4  ;;  %s311_s26 = smov [#allocation4]   ;;  %s24_s22 = int_to_ptr.vmem [resolvable:$true] %s23_s22 }
   0x4   :  { %26 = dma.hbm_to_vmem [thread:$0]  %s22_s20, 16, %s24_s22, [#allocation3]  }
   0x5   :  { %s36_s27 = sshll.u32 %s311_s26, 4  ;;  %s37_s27 = int_to_ptr.vmem [resolvable:$true] %s36_s27 }
   0x6   :  { %39 = dma.hbm_to_vmem [thread:$0]  %s35_s25, 16, %s37_s27, [#allocation5]  }
   0x7   :  { %306 = dma.done.wait [#allocation3], 16  }
   0x8   :  { %307 = vsyncadd [#allocation3], 4294967280 }
   0x9   :  { %308 = dma.done.wait [#allocation5], 16  }
   0xa   :  { %309 = vsyncadd [#allocation5], 4294967280  ;;  %vm70_vm0 = vcmask 1040384   ;;  %v52_v0 = vld [vmem:[%s386_s1 + $0x8] sm:$0x1]  ;;  %v312_v2 = vmov 0  }
   0xb   :  { %v62_v1 = vunpack.c.l.b16 %v52_v0  ;;  %v72_v3 = vsel %vm70_vm0, 65535, %v312_v2  ;;  %v240_v6 = vld [vmem:[%s386_s1] sm:$0xff]  ;;  %vm66_vm1 = vcmask 138240   ;;  %v248_v8 = vld [vmem:[%s388_s3 + $0x38] sm:$0xff]  ;;  %v247_v9 = vld [vmem:[%s388_s3 + $0x30] sm:$0xff]  ;;  %vm195_vm2 = vcmask 257024  }
   0xc   :  { %v49_v7 = vld [vmem:[%s385_s0] sm:$0xf]  ;;  %181 = vmatpush.bf16.msra.mxu1 %v248_v8  ;;  %v246_v10 = vld [vmem:[%s388_s3 + $0x28] sm:$0xff]  ;;  %v244_v12 = vld [vmem:[%s388_s3 + $0x18] sm:$0xff] }
   0xd   :  { %v64_v4 = vpack.c.b16 %v62_v1, %v62_v1  ;;  %v245_v11 = vld [vmem:[%s388_s3 + $0x20] sm:$0xff]  ;;  %v243_v14 = vld [vmem:[%s388_s3 + $0x10] sm:$0xff]  ;;  %v242_v18 = vld [vmem:[%s388_s3 + $0x8] sm:$0xff] }
   0xe   :  { %v252_v13 = vld [vmem:[#allocation2] ss:$0 sm:$0xff]  ;;  %v253_v44 = vld [vmem:[#allocation4] ss:$0 sm:$0xff] }
   0xf   :  { %v74_v5 = vand.u32 %v72_v3, %v64_v4  ;;  %v241_v21 = vld [vmem:[%s388_s3] sm:$0xff] }
  0x10   :  { %182 = vmatpush.bf16.msra.mxu1 %v247_v9 }
  0x11   :  { %82 = vmatpush.bf16.msra.mxu0 %v74_v5 }
  0x14   :  { %183 = vmatpush.bf16.msra.mxu1 %v246_v10 }
  0x15   :  { %83 = vmatpush.bf16.msra.mxu0 %v240_v6 }
  0x18   :  { %207 = vmatmul.msk.bf16.vlgmr.msra.gmra.mxu0 %vm66_vm1, %v49_v7  ;;  %184 = vmatpush.bf16.msra.mxu1 %v245_v11 }
  0x1c   :  { %185 = vmatpush.bf16.msra.mxu1 %v244_v12 }
  0x20   :  { %186 = vmatpush.bf16.msra.mxu1 %v243_v14 }
  0x24   :  { %187 = vmatpush.bf16.msra.mxu1 %v242_v18 }
  0x28   :  { %188 = vmatpush.bf16.msra.mxu1 %v241_v21 }
  0x95   :  { %v85_v15 = vpop.f32.mrf.mxu0 }
  0x96   :  { %v86_v16 = vadd.f32 %v252_v13, %v85_v15 }
  0x98   :  { %v89_v17 = vand.u32 2147483647, %v86_v16 }
  0x9a   :  { %v90_v19 = vmul.f32 0.70710677, %v89_v17 }
  0x9c   :  { %v91_v20 = vmul.f32 0.3275911, %v90_v19  ;;  %v103_v25 = vsub.f32 0.0, %v90_v19 }
  0x9d   :  { %v87_v22 = vpop.f32.mrf.mxu0 }
  0x9e   :  { %v92_v23 = vadd.f32 1.0, %v91_v20  ;;  %v104_v28 = vmul.f32 %v103_v25, %v90_v19 }
  0xa0   :  { %254 = vrcp.f32 %v92_v23  ;;  %v105_v31 = vmul.f32 1.442695, %v104_v28 }
  0xa2   :  { %256 = vpow2.f32 %v105_v31 }
  0xa6   :  { %v255_v24 = vpop.eup %254 }
  0xa7   :  { %v94_v26 = vmul.f32 1.0614054, %v255_v24 }
  0xa8   :  { %v257_v37 = vpop.eup %256 }
  0xa9   :  { %v95_v27 = vadd.f32 -1.4531521, %v94_v26 }
  0xab   :  { %v96_v29 = vmul.f32 %v255_v24, %v95_v27 }
  0xad   :  { %v97_v30 = vadd.f32 1.4214138, %v96_v29 }
  0xaf   :  { %v98_v32 = vmul.f32 %v255_v24, %v97_v30 }
  0xb1   :  { %v99_v33 = vadd.f32 -0.28449672, %v98_v32 }
  0xb3   :  { %v100_v34 = vmul.f32 %v255_v24, %v99_v33 }
  0xb5   :  { %v101_v35 = vadd.f32 0.2548296, %v100_v34 }
  0xb7   :  { %v102_v36 = vmul.f32 %v255_v24, %v101_v35 }
  0xb9   :  { %v107_v38 = vmul.f32 %v257_v37, %v102_v36 }
  0xbb   :  { %v108_v39 = vsub.f32 1.0, %v107_v38 }
  0xbd   :  { %v109_v40 = vmul.f32 %v108_v39, %v89_v17 }
  0xbf   :  { %v110_v41 = vadd.f32 %v109_v40, %v86_v16 }
  0xc1   :  { %v111_v42 = vmul.f32 0.5, %v110_v41 }
  0xc3   :  { %v112_v43 = vpack.c.bf16 %v111_v42, %v111_v42 }
  0xc5   :  { %189 = vmatmul.bf16.vlgmr.msra.gmra.mxu1 %v112_v43 }
 0x142   :  { %v190_v45 = vpop.f32.mrf.mxu1 }
 0x143   :  { %v191_v46 = vadd.f32 %v253_v44, %v190_v45 }
 0x145   :  { %v194_v47 = vpack.c.bf16 %v191_v46, %v191_v46 }
 0x147   :  { %196 = vst.msk [vmem:[%s390_s5] sm:$0xf] %vm195_vm2, %v194_v47 }
 0x14a   :  { %v192_v48 = vpop.f32.mrf.mxu1 }
 0x14b   :  { %201 = vsyncpa [#allocation3], 1 }
 0x14c   :  { %202 = vsyncpa [#allocation5], 1 }

// kernel: _lambda_.12
= control target key start
LH: loop header
LB: loop body
LE: loop exit
PB: predicated region body
PF: predicated region fallthrough
CT: control target
= control target key end

     0   :  { %13 = vsyncpa [#allocation3], 0  ;;  %s1486_s0 = inlined_call_operand.vmem [shape: bf16[18,32], index: 0, kind: input, shape index: {}]   ;;  %s1487_s1 = inlined_call_operand.vmem [shape: bf16[18,32], index: 1, kind: input, shape index: {}]   ;;  %s1488_s2 = inlined_call_operand.vmem [shape: bf16[32,128], index: 2, kind: input, shape index: {}]   ;;  %s1489_s3 = inlined_call_operand.hbm [shape: f32[1,128], index: 3, kind: input, shape index: {}]   ;;  %s1490_s4 = inlined_call_operand.vmem [shape: bf16[128,32], index: 4, kind: input, shape index: {}]   ;;  %s1491_s5 = inlined_call_operand.hbm [shape: f32[1,32], index: 5, kind: input, shape index: {}]   ;;  %s1492_s6 = inlined_call_operand.vmem [shape: f32[1,32], index: 6, kind: input, shape index: {}, may-alias: {6,7}]   ;;  %s1493_s7 = inlined_call_operand.vmem [shape: f32[1,32], index: 7, kind: input, shape index: {}, may-alias: {6,7}]   ;;  %s1494_s8 = inlined_call_operand.vmem [shape: bf16[18,32], index: 8, kind: output, shape index: {}]  }
   0x1   :  { %14 = vsyncpa [#allocation5], 0  ;;  %s1327_s27 = smov 0   ;;  %s1329_s28 = smov 0  }
   0x2   :  { %s1331_s29 = smov 0  }
   0x3 LB: > { %s1340_s30 = sadd.s32 4294967295, %s1245_s29   ;;  %s1342_s9 = sadd.s32 1, %s1245_s29   ;;  %s1245_s29 = sphi %s1331_s29, %s1499_s29   ;;  %s1241_s28 = sphi %s1329_s28, %s1498_s28   ;;  %s1237_s27 = sphi %s1327_s27, %s1497_s27  }
   0x4   : > { %s202_s10 = ssub.s32 %s1245_s29, %s1342_s9  ;;  %s205_s11 = sadd.s32 1, %s1241_s28 }
   0x5   : > { %p203_p0 = scmp.eq.s32.totalorder %s202_s10, 0  ;;  %p215_p1 = scmp.ne.s32.totalorder %s1241_s28, %s1237_s27 }
   0x6   : > { %p216_p2 = scmp.eq.s32.totalorder %s1340_s30, 1  ;;  %p903_p3 = scmp.ge.s32.totalorder %s1245_s29, 1 }
   0x7   : > { %s1350_s12 = scalar_select %p203_p0, %s1241_s28, %s205_s11  }
   0x8   : > { %p1352_p4 = por %p216_p2, %p215_p1  ;;  %p229_p5 = scmp.lt.s32.totalorder %s1245_s29, 3 }
   0x9   : > { %p1010_p6 = scmp.eq.s32.totalorder %s1340_s30, 0  ;;  %s244_s17 = sshll.u32 %s1489_s3, 4  ;;  %s245_s17 = int_to_ptr.hbm [resolvable:$true] %s244_s17 }
   0xa   : > { %p1357_p7 = pnand %p903_p3, %p229_p5  ;;  %s1279_s18 = smov [#allocation2]  }
   0xb   : > { %s246_s19 = sshll.u32 %s1279_s18, 4  ;;  %s259_s22 = sshll.u32 %s1491_s5, 4  ;;  %s247_s19 = int_to_ptr.vmem [resolvable:$true] %s246_s19  ;;  %s260_s22 = int_to_ptr.hbm [resolvable:$true] %s259_s22 }
   0xc   : > { %p1003_p8 = pneg %p1357_p7  ;;  %s1280_s23 = smov [#allocation4]  }
   0xd   : > { %s261_s24 = sshll.u32 %s1280_s23, 4  ;;  %314 = sbr.rel (%p1357_p7) target bundleno = 658 (0x292), region = 52  ;;  %s262_s24 = int_to_ptr.vmem [resolvable:$true] %s261_s24 }
   0xe   : > { %p1004_p9 = pnand %p1010_p6, %p1003_p8 }
  0x10   : > { %1006 = dma.hbm_to_vmem [thread:$0]  (!%p1004_p9), %s245_s17, 16, %s247_s19, [#allocation3]  }
  0x11   : > { %1009 = dma.hbm_to_vmem [thread:$0]  (!%p1004_p9), %s260_s22, 16, %s262_s24, [#allocation5]  }
  0x12   : > { %1228 = dma.done.wait (%p1010_p6), [#allocation3], 16  }
  0x13   : > { %1230 = vsyncadd (%p1010_p6), [#allocation3], 4294967280 }
  0x14   : > { %1232 = dma.done.wait (%p1010_p6), [#allocation5], 16  }
  0x15   : > { %1234 = vsyncadd (%p1010_p6), [#allocation5], 4294967280  ;;  %s1382_s25 = sshll.u32 %s1340_s30, 1  ;;  %v979_v0 = vld [vmem:[%s1488_s2 + $0x8] sm:$0xff]  ;;  %v978_v1 = vld [vmem:[%s1488_s2] sm:$0xff]  ;;  %vm427_vm0 = vcmask 261120  }
  0x16   : > { %p371_p10 = scmp.lt.s32.totalorder %s1382_s25, 2  ;;  %437 = vmatpush.bf16.msra.mxu0 %v979_v0  ;;  %v987_v3 = vld [vmem:[%s1490_s4 + $0x38] sm:$0xff]  ;;  %v986_v4 = vld [vmem:[%s1490_s4 + $0x30] sm:$0xff]  ;;  %v1105_v5 = vld [vmem:[#allocation2] ss:$0 sm:$0xff]  ;;  %vm645_vm8 = vcmask 257024  }
  0x17   : > { %560 = vmatpush.bf16.msra.mxu1 %v987_v3  ;;  %v985_v6 = vld [vmem:[%s1490_s4 + $0x28] sm:$0xff]  ;;  %v984_v10 = vld [vmem:[%s1490_s4 + $0x20] sm:$0xff]  ;;  %v983_v13 = vld [vmem:[%s1490_s4 + $0x18] sm:$0xff]  ;;  %s988_s17 = sshll.u32 (%p1352_p4), %s1340_s30, 3 }
  0x18   : > { %s1386_s26 = scalar_select %p371_p10, %s1382_s25, 2  ;;  %v982_v18 = vld [vmem:[%s1490_s4 + $0x10] sm:$0xff]  ;;  %v981_v21 = vld [vmem:[%s1490_s4 + $0x8] sm:$0xff]  ;;  %v980_v26 = vld [vmem:[%s1490_s4] sm:$0xff] }
  0x19   : > { %v1106_v63 = vld [vmem:[#allocation4] ss:$0 sm:$0xff]  ;;  %s1452_s20 = scalar_lea.vmem (%p1352_p4), %s1494_s8, %s988_s17  }
  0x1a   : > { %s912_s29 = sshll.u32 %s1386_s26, 2  ;;  %438 = vmatpush.bf16.msra.mxu0 %v978_v1  ;;  %s363_s26 = sand.u32 1, %s1237_s27  }
  0x1b   : > { %s374_s18 = scalar_lea.vmem %s1486_s0, %s912_s29  ;;  %561 = vmatpush.bf16.msra.mxu1 %v986_v4  ;;  %s388_s24 = scalar_lea.vmem %s1487_s1, %s912_s29 }
  0x1c   : > { %v977_v2 = vld [vmem:[%s374_s18] sm:$0xff]  ;;  %s910_s29 = sshll.u32 %s363_s26, 3  ;;  %s656_s27 = ssub.s32 (%p1352_p4), 3, %s1382_s25 }
  0x1d   : > { %927 = vmatmul.msk.bf16.vlgmr.msra.gmra.mxu0 %vm427_vm0, %v977_v2  ;;  %s1441_s16 = scalar_lea.vmem [#allocation6], %s910_s29   ;;  %p657_p11 = scmp.lt.s32.totalorder (%p1352_p4), %s656_s27, 2 }
  0x1f   : > { %562 = vmatpush.bf16.msra.mxu1 %v985_v6  ;;  %v1281_v6 = vmov 32.0  }
  0x23   : > { %563 = vmatpush.bf16.msra.mxu1 %v984_v10 }
  0x27   : > { %564 = vmatpush.bf16.msra.mxu1 %v983_v13 }
  0x2b   : > { %565 = vmatpush.bf16.msra.mxu1 %v982_v18 }
  0x2f   : > { %566 = vmatpush.bf16.msra.mxu1 %v981_v21 }
  0x33   : > { %567 = vmatpush.bf16.msra.mxu1 %v980_v26 }
  0x9a   : > { %v440_v7 = vpop.f32.mrf.mxu0 }
  0x9b   : > { %v441_v8 = vadd.f32 %v1105_v5, %v440_v7 }
  0x9d   : > { %v445_v9 = vand.u32 2147483647, %v441_v8 }
  0x9f   : > { %v447_v11 = vmul.f32 0.70710677, %v445_v9 }
  0xa1   : > { %v449_v12 = vmul.f32 0.3275911, %v447_v11  ;;  %v473_v23 = vsub.f32 0.0, %v447_v11 }
  0xa2   : > { %v442_v14 = vpop.f32.mrf.mxu0 }
  0xa3   : > { %v451_v15 = vadd.f32 1.0, %v449_v12  ;;  %v443_v16 = vadd.f32 %v1105_v5, %v442_v14  ;;  %v475_v28 = vmul.f32 %v473_v23, %v447_v11 }
  0xa5   : > { %1109 = vrcp.f32 %v451_v15  ;;  %v446_v17 = vand.u32 2147483647, %v443_v16  ;;  %v477_v32 = vmul.f32 1.442695, %v475_v28 }
  0xa7   : > { %v448_v19 = vmul.f32 0.70710677, %v446_v17 }
  0xa9   : > { %v450_v20 = vmul.f32 0.3275911, %v448_v19  ;;  %v474_v33 = vsub.f32 0.0, %v448_v19 }
  0xab   : > { %v1110_v22 = vpop.eup %1109  ;;  %v452_v24 = vadd.f32 1.0, %v450_v20  ;;  %v476_v38 = vmul.f32 %v474_v33, %v448_v19 }
  0xac   : > { %v455_v25 = vmul.f32 1.0614054, %v1110_v22 }
  0xad   : > { %1111 = vrcp.f32 %v452_v24  ;;  %v479_v43 = vmul.f32 1.442695, %v476_v38  ;;  %v992_v38 = vld [vmem:[%s388_s24] sm:$0xff]  }
  0xae   : > { %v457_v27 = vadd.f32 -1.4531521, %v455_v25  ;;  %1113 = vpow2.f32 %v477_v32 }
  0xaf   : > { %1115 = vpow2.f32 %v479_v43 }
  0xb0   : > { %v459_v29 = vmul.f32 %v1110_v22, %v457_v27  ;;  %1117 = vrcp.f32 %v1281_v6 }
  0xb2   : > { %v461_v30 = vadd.f32 1.4214138, %v459_v29 }
  0xb3   : > { %v1112_v31 = vpop.eup %1111 }
  0xb4   : > { %v463_v34 = vmul.f32 %v1110_v22, %v461_v30  ;;  %v456_v35 = vmul.f32 1.0614054, %v1112_v31  ;;  %v1114_v46 = vpop.eup %1113 }
  0xb5   : > { %v1116_v53 = vpop.eup %1115 }
  0xb6   : > { %v465_v36 = vadd.f32 -0.28449672, %v463_v34  ;;  %v458_v37 = vadd.f32 -1.4531521, %v456_v35  ;;  %v1118_v7 = vpop.eup %1117 }
  0xb7   : > { %vm585_vm1 = vweird.f32 %v1118_v7 }
  0xb8   : > { %v467_v39 = vmul.f32 %v1110_v22, %v465_v36  ;;  %v460_v40 = vmul.f32 %v1112_v31, %v458_v37  ;;  %v1107_v37 = vld [vmem:[%s1492_s6] ss:$0 sm:$0xff] }
  0xba   : > { %v469_v41 = vadd.f32 0.2548296, %v467_v39  ;;  %v462_v42 = vadd.f32 1.4214138, %v460_v40 }
  0xbc   : > { %v471_v44 = vmul.f32 %v1110_v22, %v469_v41  ;;  %v464_v45 = vmul.f32 %v1112_v31, %v462_v42  ;;  %v1108_v41 = vld [vmem:[%s1493_s7] ss:$0 sm:$0xff] }
  0xbe   : > { %v481_v47 = vmul.f32 %v1114_v46, %v471_v44  ;;  %v466_v48 = vadd.f32 -0.28449672, %v464_v45  ;;  %v993_v44 = vunpack.c.l.bf16 %v992_v38 }
  0xc0   : > { %v468_v49 = vmul.f32 %v1112_v31, %v466_v48  ;;  %v483_v50 = vsub.f32 1.0, %v481_v47 }
  0xc2   : > { %v470_v51 = vadd.f32 0.2548296, %v468_v49  ;;  %v485_v54 = vmul.f32 %v483_v50, %v445_v9 }
  0xc4   : > { %v472_v52 = vmul.f32 %v1112_v31, %v470_v51  ;;  %v487_v57 = vadd.f32 %v485_v54, %v441_v8  ;;  %v581_v8 = vmul.f32 32.0, %v1118_v7 }
  0xc6   : > { %v482_v55 = vmul.f32 %v1116_v53, %v472_v52  ;;  %v489_v60 = vmul.f32 0.5, %v487_v57  ;;  %v582_v9 = vsub.f32 1.0, %v581_v8  ;;  %v994_v53 = vunpack.c.h.bf16 %v992_v38 }
  0xc8   : > { %v484_v56 = vsub.f32 1.0, %v482_v55  ;;  %v583_v10 = vmul.f32 %v1118_v7, %v582_v9 }
  0xca   : > { %v486_v58 = vmul.f32 %v484_v56, %v446_v17  ;;  %v584_v11 = vadd.f32 %v1118_v7, %v583_v10 }
  0xcc   : > { %v488_v59 = vadd.f32 %v486_v58, %v443_v16  ;;  %v586_v12 = vsel %vm585_vm1, %v1118_v7, %v584_v11 }
  0xce   : > { %v490_v61 = vmul.f32 0.5, %v488_v59 }
  0xd0   : > { %v491_v62 = vpack.c.bf16 %v490_v61, %v489_v60 }
  0xd2   : > { %568 = vmatmul.bf16.vlgmr.msra.gmra.mxu1 %v491_v62 }
 0x14f   : > { %v569_v0 = vpop.f32.mrf.mxu1 }
 0x150   : > { %v570_v1 = vadd.f32 %v1106_v63, %v569_v0 }
 0x152   : > { %v574_v2 = vsel %vm427_vm0, %v570_v1, 0.0 }
 0x153   : > { %575 = vadd.xlane.f32.xlu0 %v574_v2 }
 0x157   : > { %v571_v3 = vpop.f32.mrf.mxu1 }
 0x158   : > { %v572_v4 = vadd.f32 %v1106_v63, %v571_v3 }
 0x15a   : > { %v577_v5 = vsel %vm427_vm0, %v572_v4, 0.0 }
 0x15b   : > { %578 = vadd.xlane.f32.xlu0 %v577_v5 }
 0x1c6   : > { %v576_v13 = vpop.xlane.xlu0 %575 }
 0x1c7   : > { %v587_v14 = vmul.f32 %v586_v12, %v576_v13 }
 0x1c9   : > { %v589_v15 = vsub.f32 %v570_v1, %v587_v14 }
 0x1cb   : > { %v591_v16 = vmul.f32 %v589_v15, %v589_v15 }
 0x1cd   : > { %v593_v17 = vsel %vm427_vm0, %v591_v16, 0.0 }
 0x1ce   : > { %594 = vadd.xlane.f32.xlu1 %v593_v17  ;;  %v579_v18 = vpop.xlane.xlu0 %578 }
 0x1cf   : > { %v588_v19 = vmul.f32 %v586_v12, %v579_v18 }
 0x1d1   : > { %v590_v20 = vsub.f32 %v572_v4, %v588_v19 }
 0x1d3   : > { %v592_v21 = vmul.f32 %v590_v20, %v590_v20 }
 0x1d5   : > { %v596_v22 = vsel %vm427_vm0, %v592_v21, 0.0 }
 0x1d6   : > { %597 = vadd.xlane.f32.xlu1 %v596_v22 }
 0x241   : > { %v595_v23 = vpop.xlane.xlu1 %594 }
 0x242   : > { %v599_v24 = vmul.f32 %v595_v23, %v586_v12 }
 0x244   : > { %v601_v25 = vadd.f32 1e-05, %v599_v24 }
 0x246   : > { %1119 = vrsqrt.f32 %v601_v25  ;;  %vm609_vm3 = vweird.f32 %v601_v25 }
 0x249   : > { %v598_v26 = vpop.xlane.xlu1 %597 }
 0x24a   : > { %v600_v27 = vmul.f32 %v598_v26, %v586_v12 }
 0x24c   : > { %v1120_v28 = vpop.eup %1119  ;;  %v602_v29 = vadd.f32 1e-05, %v600_v27 }
 0x24d   : > { %v604_v30 = vmul.f32 %v1120_v28, %v601_v25  ;;  %vm610_vm2 = vweird.f32 %v1120_v28 }
 0x24e   : > { %1121 = vrsqrt.f32 %v602_v29  ;;  %vm611_vm4 = vmor %vm609_vm3, %vm610_vm2  ;;  %vm619_vm6 = vweird.f32 %v602_v29 }
 0x24f   : > { %v605_v31 = vmul.f32 %v1120_v28, %v604_v30 }
 0x251   : > { %v606_v32 = vmul.f32 0.5, %v605_v31 }
 0x253   : > { %v607_v33 = vsub.f32 1.5, %v606_v32 }
 0x254   : > { %v1122_v34 = vpop.eup %1121 }
 0x255   : > { %v608_v35 = vmul.f32 %v1120_v28, %v607_v33  ;;  %v614_v36 = vmul.f32 %v1122_v34, %v602_v29  ;;  %vm620_vm5 = vweird.f32 %v1122_v34 }
 0x256   : > { %vm621_vm7 = vmor %vm619_vm6, %vm620_vm5 }
 0x257   : > { %v612_v39 = vsel %vm611_vm4, %v1120_v28, %v608_v35  ;;  %v615_v40 = vmul.f32 %v1122_v34, %v614_v36 }
 0x258   : > { %v623_v42 = vmul.f32 %v612_v39, %v589_v15 }
 0x259   : > { %v616_v43 = vmul.f32 0.5, %v615_v40 }
 0x25a   : > { %v629_v45 = vmul.f32 %v1107_v37, %v623_v42 }
 0x25b   : > { %v617_v46 = vsub.f32 1.5, %v616_v43 }
 0x25c   : > { %v635_v47 = vadd.f32 %v1108_v41, %v629_v45 }
 0x25d   : > { %v618_v48 = vmul.f32 %v1122_v34, %v617_v46 }
 0x25e   : > { %v641_v49 = vadd.f32 %v993_v44, %v635_v47 }
 0x25f   : > { %v622_v50 = vsel %vm621_vm7, %v1122_v34, %v618_v48 }
 0x260   : > { %v643_v51 = vpack.c.bf16 %v641_v49, %v641_v49  ;;  %v624_v52 = vmul.f32 %v622_v50, %v590_v20 }
 0x262   : > { %646 = vst.msk [vmem:[%s1441_s16] sm:$0xf] %vm645_vm8, %v643_v51  ;;  %v630_v54 = vmul.f32 %v1107_v37, %v624_v52 }
 0x264   : > { %v636_v55 = vadd.f32 %v1108_v41, %v630_v54 }
 0x266   : > { %v642_v56 = vadd.f32 %v994_v53, %v636_v55  ;;  %654 = sbr.rel (!%p1352_p4) target bundleno = 658 (0x292), region = 64 }
 0x268   : > { %v644_v57 = vpack.c.bf16 %v642_v56, %v642_v56 }
 0x26a   : > { %647 = vst.msk [vmem:[%s1441_s16 + $0x4] sm:$0xf] %vm645_vm8, %v644_v57 }
 0x26b   : > { %s1501_s27 = smov (!%p657_p11, %s656_s27), 2 }
 0x26c   : > { %s962_s21 = sshll.u32 %s1501_s27, 2 }
 0x26d   : > { %p965_p12 = scmp.eq.s32.totalorder %s962_s21, 0 }
 0x26e   : > { %s1458_s22 = sshrl.u32 (!%p965_p12), %s1501_s27, 1 }
 0x26f   : > { %665 = sbr.rel (%p965_p12) target bundleno = 658 (0x292), region = 68  ;;  %p966_p13 = scmp.le.s32.totalorder (!%p965_p12), %s1458_s22, 0 }
 0x274   : > { %834 = sbr.rel (%p966_p13) target bundleno = 641 (0x281), region = 144  ;;  %s1247_s30 = smov (!%p966_p13), %s1452_s20  }
 0x275   : > { %s1251_s13 = smov (!%p966_p13), %s1441_s16   ;;  %s1255_s25 = smov (!%p966_p13), 0  }
 0x276   : > { %s1259_s23 = smov (!%p966_p13), 0  }
 0x279 LB: >> { %v682_v58 = vld [vmem:[%s1253_s13] sm:$0xf]  ;;  %v684_v59 = vld [vmem:[%s1253_s13 + $0x4] sm:$0xf]  ;;  %s686_s24 = sadd.s32 1, %s1257_s25  ;;  %s676_s23 = sadd.s32 1, %s1261_s23   ;;  %s1261_s23 = sphi %s1259_s23, %s676_s23   ;;  %s1257_s25 = sphi %s1255_s25, %s1256_s25   ;;  %s1253_s13 = sphi %s1251_s13, %s691_s13   ;;  %s1249_s30 = sphi %s1247_s30, %s692_s30  }
 0x27a   : >> { %683 = vst [vmem:[%s1249_s30] sm:$0xf] %v682_v58  ;;  %p687_p0 = scmp.ge.s32.totalorder %s686_s24, %s1458_s22  ;;  %p675_p1 = scmp.ge.s32.totalorder %s676_s23, %s1458_s22 }
 0x27b   : >> { %685 = vst [vmem:[%s1249_s30 + $0x4] sm:$0xf] %v684_v59 }
 0x27c   : >> { %s1503_s24 = smov (%p687_p0, %s686_s24), 0  ;;  %678 = sbr.rel (!%p675_p1) target bundleno = 633 (0x279), region = 150 }
 0x27d   : >> { %s967_s10 = sshll.u32 %s1503_s24, 3  ;;  %s1256_s25 = smov %s1503_s24  }
 0x27e   : >> { %s691_s13 = scalar_lea.vmem %s1441_s16, %s967_s10 [#allocation6]   ;;  %s692_s30 = scalar_lea.vmem %s1452_s20, %s967_s10  }
 0x281 PF: > { %s1468_s11 = sand.u32 1, %s1501_s27   ;;  %s989_s14 = sshll.u32 %s1458_s22, 3 }
 0x282   : > { %s697_s15 = scalar_lea.vmem %s1441_s16, %s989_s14 [#allocation6]   ;;  %s699_s26 = scalar_lea.vmem %s1452_s20, %s989_s14  }
 0x283   : > { %p972_p2 = scmp.le.s32.totalorder %s1468_s11, 0 }
 0x284   : > { %s1263_s29 = smov (!%p972_p2), %s699_s26   ;;  %s1267_s17 = smov (!%p972_p2), %s697_s15  }
 0x285   : > { %848 = sbr.rel (%p972_p2) target bundleno = 658 (0x292), region = 155  ;;  %s1271_s18 = smov (!%p972_p2), 0  }
 0x286   : > { %s1275_s19 = smov (!%p972_p2), 0  }
 0x28a LB: >> { %v709_v60 = vld [vmem:[%s1269_s17] sm:$0xf]  ;;  %s711_s27 = sadd.s32 1, %s1273_s18  ;;  %s703_s19 = sadd.s32 1, %s1277_s19   ;;  %s1277_s19 = sphi %s1275_s19, %s703_s19   ;;  %s1273_s18 = sphi %s1271_s18, %s1272_s18   ;;  %s1269_s17 = sphi %s1267_s17, %s716_s17   ;;  %s1265_s29 = sphi %s1263_s29, %s717_s29  }
 0x28b   : >> { %710 = vst [vmem:[%s1265_s29] sm:$0xf] %v709_v60  ;;  %p712_p3 = scmp.ge.s32.totalorder %s711_s27, %s1468_s11  ;;  %p702_p4 = scmp.ge.s32.totalorder %s703_s19, %s1468_s11 }
 0x28d   : >> { %s1505_s27 = smov (%p712_p3, %s711_s27), 0  ;;  %705 = sbr.rel (!%p702_p4) target bundleno = 650 (0x28a), region = 161 }
 0x28e   : >> { %s973_s16 = sshll.u32 %s1505_s27, 2  ;;  %s1272_s18 = smov %s1505_s27  }
 0x28f   : >> { %s716_s17 = scalar_lea.vmem %s697_s15, %s973_s16 [#allocation6]   ;;  %s717_s29 = scalar_lea.vmem %s699_s26, %s973_s16  }
 0x292 PF: > { %p17_p5 = scmp.ge.s32.totalorder %s1342_s9, 4   ;;  %s1497_s27 = smov %s1241_s28 }
 0x293   : > { %s1498_s28 = smov %s1350_s12  ;;  %s1499_s29 = smov %s1342_s9 }
 0x294   :  { %19 = sbr.rel (!%p17_p5) target bundleno = 3 (0x3), region = 172 }
 0x299   :  { %781 = vsyncpa [#allocation3], 1 }
 0x29a   :  { %783 = vsyncpa [#allocation3 + $0x1], 1 }
 0x29b   :  { %784 = vsyncpa [#allocation5], 1 }

// kernel: _lambda_.16
= control target key start
LH: loop header
LB: loop body
LE: loop exit
PB: predicated region body
PF: predicated region fallthrough
CT: control target
= control target key end

     0   :  { %11 = vsyncpa [#allocation3], 0  ;;  %s1117_s21 = smov 0   ;;  %s1119_s22 = smov 0   ;;  %s1255_s0 = inlined_call_operand.vmem [shape: bf16[18,32], index: 0, kind: input, shape index: {}]   ;;  %s1256_s1 = inlined_call_operand.vmem [shape: f32[1,32], index: 1, kind: input, shape index: {}]   ;;  %s1257_s2 = inlined_call_operand.vmem [shape: bf16[32,128], index: 2, kind: input, shape index: {}]   ;;  %s1258_s3 = inlined_call_operand.vmem [shape: f32[1,128], index: 3, kind: input, shape index: {}]   ;;  %s1259_s4 = inlined_call_operand.vmem [shape: bf16[128,32], index: 4, kind: input, shape index: {}]   ;;  %s1260_s5 = inlined_call_operand.hbm [shape: f32[1,32], index: 5, kind: input, shape index: {}]   ;;  %s1261_s6 = inlined_call_operand.vmem [shape: bf16[18,32], index: 6, kind: output, shape index: {}]  }
   0x1   :  { %s1121_s23 = smov 0  }
   0x2 LB: > { %s1130_s24 = sadd.s32 4294967295, %s1046_s23   ;;  %s1132_s25 = sadd.s32 1, %s1046_s23   ;;  %s1046_s23 = sphi %s1121_s23, %s1265_s23   ;;  %s1042_s22 = sphi %s1119_s22, %s1264_s22   ;;  %s1038_s21 = sphi %s1117_s21, %s1263_s21  }
   0x3   : > { %s152_s26 = ssub.s32 %s1046_s23, %s1132_s25  ;;  %s155_s27 = sadd.s32 1, %s1042_s22 }
   0x4   : > { %p153_p0 = scmp.eq.s32.totalorder %s152_s26, 0  ;;  %p165_p1 = scmp.ne.s32.totalorder %s1042_s22, %s1038_s21 }
   0x5   : > { %p166_p2 = scmp.eq.s32.totalorder %s1130_s24, 1  ;;  %p758_p3 = scmp.ge.s32.totalorder %s1046_s23, 1 }
   0x6   : > { %s1140_s28 = scalar_select %p153_p0, %s1042_s22, %s155_s27  }
   0x7   : > { %p1142_p4 = por %p166_p2, %p165_p1  ;;  %p179_p5 = scmp.lt.s32.totalorder %s1046_s23, 3 }
   0x8   : > { %p849_p6 = scmp.eq.s32.totalorder %s1130_s24, 0  ;;  %s203_s8 = sshll.u32 %s1260_s5, 4  ;;  %s204_s8 = int_to_ptr.hbm [resolvable:$true] %s203_s8 }
   0x9   : > { %p180_p7 = pnand %p758_p3, %p179_p5  ;;  %s1080_s9 = smov [#allocation2]  }
   0xa   : > { %s205_s10 = sshll.u32 %s1080_s9, 4  ;;  %s206_s10 = int_to_ptr.vmem [resolvable:$true] %s205_s10 }
   0xb   : > { %p845_p8 = pneg %p180_p7  ;;  %235 = sbr.rel (%p180_p7) target bundleno = 664 (0x298), region = 44 }
   0xd   : > { %p846_p9 = pnand %p849_p6, %p845_p8 }
   0xf   : > { %848 = dma.hbm_to_vmem [thread:$0]  (!%p846_p9), %s204_s8, 16, %s206_s10, [#allocation3]  }
  0x10   : > { %1033 = dma.done.wait (%p849_p6), [#allocation3], 16  }
  0x11   : > { %1035 = vsyncadd (%p849_p6), [#allocation3], 4294967280  ;;  %s1151_s11 = sshll.u32 %s1130_s24, 1  ;;  %vm293_vm0 = vcmask 261120   ;;  %v1081_v5 = vmov 32.0   ;;  %v825_v22 = vld [vmem:[%s1257_s2 + $0x8] sm:$0xff] }
  0x12   : > { %p274_p10 = scmp.lt.s32.totalorder %s1151_s11, 2  ;;  %944 = vrcp.f32 %v1081_v5  ;;  %381 = vmatpush.bf16.msra.mxu0 %v825_v22  ;;  %v824_v23 = vld [vmem:[%s1257_s2] sm:$0xff]  ;;  %v833_v50 = vld [vmem:[%s1259_s4 + $0x38] sm:$0xff]  ;;  %v832_v51 = vld [vmem:[%s1259_s4 + $0x30] sm:$0xff]  ;;  %s266_s30 = sand.u32 1, %s1038_s21   ;;  %vm522_vm8 = vcmask 257024  }
  0x13   : > { %v941_v44 = vld [vmem:[%s1256_s1] ss:$0 sm:$0xff]  ;;  %504 = vmatpush.bf16.msra.mxu1 %v833_v50  ;;  %v831_v53 = vld [vmem:[%s1259_s4 + $0x28] sm:$0xff]  ;;  %v829_v60 = vld [vmem:[%s1259_s4 + $0x18] sm:$0xff]  ;;  %s763_s7 = sshll.u32 %s266_s30, 3  ;;  %s533_s21 = ssub.s32 (%p1142_p4), 3, %s1151_s11 }
  0x14   : > { %s275_s12 = scalar_select %p274_p10, %s1151_s11, 2  ;;  %v942_v52 = vld [vmem:[%s1258_s3] ss:$0 sm:$0xff] }
  0x15   : > { %v830_v57 = vld [vmem:[%s1259_s4 + $0x20] sm:$0xff]  ;;  %s1209_s8 = scalar_lea.vmem [#allocation4], %s763_s7   ;;  %s834_s9 = sshll.u32 (%p1142_p4), %s1130_s24, 3 }
  0x16   : > { %s765_s13 = sshll.u32 %s275_s12, 2  ;;  %382 = vmatpush.bf16.msra.mxu0 %v824_v23  ;;  %p534_p11 = scmp.lt.s32.totalorder (%p1142_p4), %s533_s21, 2 }
  0x17   : > { %s277_s16 = scalar_lea.vmem %s1255_s0, %s765_s13  ;;  %505 = vmatpush.bf16.msra.mxu1 %v832_v51  ;;  %s1221_s13 = scalar_lea.vmem (%p1142_p4), %s1261_s6, %s834_s9  }
  0x18   : > { %v838_v0 = vld [vmem:[%s277_s16] sm:$0xff]   ;;  %v945_v6 = vpop.eup %944 }
  0x19   : > { %v1158_v1 = vunpack.c.l.bf16 %v838_v0  ;;  %v1162_v3 = vunpack.c.h.bf16 %v838_v0  ;;  %v301_v7 = vmul.f32 32.0, %v945_v6  ;;  %vm305_vm1 = vweird.f32 %v945_v6 }
  0x1b   : > { %v294_v2 = vsel %vm293_vm0, %v1158_v1, 0.0  ;;  %v297_v4 = vsel %vm293_vm0, %v1162_v3, 0.0  ;;  %v302_v8 = vsub.f32 1.0, %v301_v7  ;;  %506 = vmatpush.bf16.msra.mxu1 %v831_v53 }
  0x1c   : > { %295 = vadd.xlane.f32.xlu0 %v294_v2  ;;  %v828_v2 = vld [vmem:[%s1259_s4 + $0x10] sm:$0xff] }
  0x1d   : > { %v303_v9 = vmul.f32 %v945_v6, %v302_v8 }
  0x1f   : > { %v304_v10 = vadd.f32 %v945_v6, %v303_v9  ;;  %507 = vmatpush.bf16.msra.mxu1 %v830_v57 }
  0x21   : > { %v306_v11 = vsel %vm305_vm1, %v945_v6, %v304_v10  ;;  %v827_v6 = vld [vmem:[%s1259_s4 + $0x8] sm:$0xff] }
  0x23   : > { %508 = vmatpush.bf16.msra.mxu1 %v829_v60 }
  0x24   : > { %298 = vadd.xlane.f32.xlu0 %v297_v4 }
  0x27   : > { %509 = vmatpush.bf16.msra.mxu1 %v828_v2 }
  0x2b   : > { %510 = vmatpush.bf16.msra.mxu1 %v827_v6 }
  0x8f   : > { %v296_v12 = vpop.xlane.xlu0 %295 }
  0x90   : > { %v307_v13 = vmul.f32 %v306_v11, %v296_v12 }
  0x92   : > { %v309_v14 = vsub.f32 %v1158_v1, %v307_v13 }
  0x94   : > { %v311_v15 = vmul.f32 %v309_v14, %v309_v14 }
  0x96   : > { %v313_v16 = vsel %vm293_vm0, %v311_v15, 0.0 }
  0x97   : > { %314 = vadd.xlane.f32.xlu1 %v313_v16  ;;  %v299_v17 = vpop.xlane.xlu0 %298 }
  0x98   : > { %v308_v18 = vmul.f32 %v306_v11, %v299_v17 }
  0x9a   : > { %v310_v19 = vsub.f32 %v1162_v3, %v308_v18 }
  0x9c   : > { %v312_v20 = vmul.f32 %v310_v19, %v310_v19 }
  0x9e   : > { %v316_v21 = vsel %vm293_vm0, %v312_v20, 0.0 }
  0x9f   : > { %317 = vadd.xlane.f32.xlu1 %v316_v21 }
 0x10a   : > { %v315_v24 = vpop.xlane.xlu1 %314 }
 0x10b   : > { %v319_v25 = vmul.f32 %v315_v24, %v306_v11 }
 0x10d   : > { %v321_v26 = vadd.f32 1e-05, %v319_v25 }
 0x10f   : > { %946 = vrsqrt.f32 %v321_v26  ;;  %vm329_vm3 = vweird.f32 %v321_v26 }
 0x112   : > { %v318_v27 = vpop.xlane.xlu1 %317 }
 0x113   : > { %v320_v28 = vmul.f32 %v318_v27, %v306_v11  ;;  %v826_v11 = vld [vmem:[%s1259_s4] sm:$0xff] }
 0x114   : > { %511 = vmatpush.bf16.msra.mxu1 %v826_v11 }
 0x115   : > { %v947_v29 = vpop.eup %946  ;;  %v322_v30 = vadd.f32 1e-05, %v320_v28 }
 0x116   : > { %v324_v31 = vmul.f32 %v947_v29, %v321_v26  ;;  %vm330_vm2 = vweird.f32 %v947_v29 }
 0x117   : > { %948 = vrsqrt.f32 %v322_v30  ;;  %vm331_vm4 = vmor %vm329_vm3, %vm330_vm2  ;;  %vm339_vm6 = vweird.f32 %v322_v30 }
 0x118   : > { %v325_v32 = vmul.f32 %v947_v29, %v324_v31 }
 0x11a   : > { %v326_v33 = vmul.f32 0.5, %v325_v32 }
 0x11c   : > { %v327_v34 = vsub.f32 1.5, %v326_v33 }
 0x11d   : > { %v949_v35 = vpop.eup %948 }
 0x11e   : > { %v334_v36 = vmul.f32 %v949_v35, %v322_v30  ;;  %v328_v37 = vmul.f32 %v947_v29, %v327_v34  ;;  %vm340_vm5 = vweird.f32 %v949_v35 }
 0x11f   : > { %vm341_vm7 = vmor %vm339_vm6, %vm340_vm5 }
 0x120   : > { %v335_v38 = vmul.f32 %v949_v35, %v334_v36  ;;  %v332_v40 = vsel %vm331_vm4, %v947_v29, %v328_v37 }
 0x121   : > { %v343_v43 = vmul.f32 %v332_v40, %v309_v14 }
 0x122   : > { %v336_v39 = vmul.f32 0.5, %v335_v38 }
 0x123   : > { %v349_v47 = vmul.f32 %v941_v44, %v343_v43 }
 0x124   : > { %v337_v41 = vsub.f32 1.5, %v336_v39 }
 0x126   : > { %v338_v42 = vmul.f32 %v949_v35, %v337_v41 }
 0x128   : > { %v342_v45 = vsel %vm341_vm7, %v949_v35, %v338_v42 }
 0x129   : > { %v344_v46 = vmul.f32 %v342_v45, %v310_v19 }
 0x12b   : > { %v350_v48 = vmul.f32 %v941_v44, %v344_v46 }
 0x12d   : > { %v351_v49 = vpack.c.bf16 %v350_v48, %v349_v47  ;;  %v943_v48 = vld [vmem:[#allocation2] ss:$0 sm:$0xff] }
 0x12f   : > { %774 = vmatmul.msk.bf16.vlgmr.msra.gmra.mxu0 %vm293_vm0, %v351_v49 }
 0x1ac   : > { %v384_v54 = vpop.f32.mrf.mxu0 }
 0x1ad   : > { %v385_v55 = vadd.f32 %v942_v52, %v384_v54 }
 0x1af   : > { %v389_v56 = vand.u32 2147483647, %v385_v55 }
 0x1b1   : > { %v391_v58 = vmul.f32 0.70710677, %v389_v56 }
 0x1b3   : > { %v393_v59 = vmul.f32 0.3275911, %v391_v58  ;;  %v417_v8 = vsub.f32 0.0, %v391_v58 }
 0x1b4   : > { %v386_v61 = vpop.f32.mrf.mxu0 }
 0x1b5   : > { %v395_v62 = vadd.f32 1.0, %v393_v59  ;;  %v387_v63 = vadd.f32 %v942_v52, %v386_v61  ;;  %v419_v13 = vmul.f32 %v417_v8, %v391_v58 }
 0x1b7   : > { %950 = vrcp.f32 %v395_v62  ;;  %v390_v0 = vand.u32 2147483647, %v387_v63  ;;  %v421_v17 = vmul.f32 1.442695, %v419_v13 }
 0x1b9   : > { %v392_v4 = vmul.f32 0.70710677, %v390_v0 }
 0x1bb   : > { %v394_v5 = vmul.f32 0.3275911, %v392_v4  ;;  %v418_v18 = vsub.f32 0.0, %v392_v4 }
 0x1bd   : > { %v951_v7 = vpop.eup %950  ;;  %v396_v9 = vadd.f32 1.0, %v394_v5  ;;  %v420_v23 = vmul.f32 %v418_v18, %v392_v4 }
 0x1be   : > { %v399_v10 = vmul.f32 1.0614054, %v951_v7 }
 0x1bf   : > { %952 = vrcp.f32 %v396_v9  ;;  %v423_v28 = vmul.f32 1.442695, %v420_v23 }
 0x1c0   : > { %v401_v12 = vadd.f32 -1.4531521, %v399_v10  ;;  %954 = vpow2.f32 %v421_v17 }
 0x1c1   : > { %956 = vpow2.f32 %v423_v28 }
 0x1c2   : > { %v403_v14 = vmul.f32 %v951_v7, %v401_v12 }
 0x1c4   : > { %v405_v15 = vadd.f32 1.4214138, %v403_v14 }
 0x1c5   : > { %v953_v16 = vpop.eup %952 }
 0x1c6   : > { %v407_v19 = vmul.f32 %v951_v7, %v405_v15  ;;  %v400_v20 = vmul.f32 1.0614054, %v953_v16  ;;  %v955_v31 = vpop.eup %954 }
 0x1c7   : > { %v957_v38 = vpop.eup %956 }
 0x1c8   : > { %v409_v21 = vadd.f32 -0.28449672, %v407_v19  ;;  %v402_v22 = vadd.f32 -1.4531521, %v400_v20 }
 0x1ca   : > { %v411_v24 = vmul.f32 %v951_v7, %v409_v21  ;;  %v404_v25 = vmul.f32 %v953_v16, %v402_v22 }
 0x1cc   : > { %v413_v26 = vadd.f32 0.2548296, %v411_v24  ;;  %v406_v27 = vadd.f32 1.4214138, %v404_v25 }
 0x1ce   : > { %v415_v29 = vmul.f32 %v951_v7, %v413_v26  ;;  %v408_v30 = vmul.f32 %v953_v16, %v406_v27 }
 0x1d0   : > { %v425_v32 = vmul.f32 %v955_v31, %v415_v29  ;;  %v410_v33 = vadd.f32 -0.28449672, %v408_v30 }
 0x1d2   : > { %v412_v34 = vmul.f32 %v953_v16, %v410_v33  ;;  %v427_v35 = vsub.f32 1.0, %v425_v32 }
 0x1d4   : > { %v414_v36 = vadd.f32 0.2548296, %v412_v34  ;;  %v429_v39 = vmul.f32 %v427_v35, %v389_v56 }
 0x1d6   : > { %v416_v37 = vmul.f32 %v953_v16, %v414_v36  ;;  %v431_v42 = vadd.f32 %v429_v39, %v385_v55 }
 0x1d8   : > { %v426_v40 = vmul.f32 %v957_v38, %v416_v37  ;;  %v433_v45 = vmul.f32 0.5, %v431_v42 }
 0x1da   : > { %v428_v41 = vsub.f32 1.0, %v426_v40 }
 0x1dc   : > { %v430_v43 = vmul.f32 %v428_v41, %v390_v0 }
 0x1de   : > { %v432_v44 = vadd.f32 %v430_v43, %v387_v63 }
 0x1e0   : > { %v434_v46 = vmul.f32 0.5, %v432_v44 }
 0x1e2   : > { %v435_v47 = vpack.c.bf16 %v434_v46, %v433_v45 }
 0x1e4   : > { %512 = vmatmul.bf16.vlgmr.msra.gmra.mxu1 %v435_v47 }
 0x261   : > { %v513_v49 = vpop.f32.mrf.mxu1 }
 0x262   : > { %v514_v50 = vadd.f32 %v943_v48, %v513_v49 }
 0x264   : > { %v518_v51 = vadd.f32 %v1158_v1, %v514_v50 }
 0x266   : > { %v520_v52 = vpack.c.bf16 %v518_v51, %v518_v51 }
 0x268   : > { %523 = vst.msk [vmem:[%s1209_s8] sm:$0xf] %vm522_vm8, %v520_v52 }
 0x269   : > { %v515_v53 = vpop.f32.mrf.mxu1 }
 0x26a   : > { %v516_v54 = vadd.f32 %v943_v48, %v515_v53 }
 0x26c   : > { %v519_v55 = vadd.f32 %v1162_v3, %v516_v54  ;;  %531 = sbr.rel (!%p1142_p4) target bundleno = 664 (0x298), region = 52 }
 0x26e   : > { %v521_v56 = vpack.c.bf16 %v519_v55, %v519_v55 }
 0x270   : > { %524 = vst.msk [vmem:[%s1209_s8 + $0x4] sm:$0xf] %vm522_vm8, %v521_v56 }
 0x271   : > { %s1267_s21 = smov (!%p534_p11, %s533_s21), 2 }
 0x272   : > { %s809_s14 = sshll.u32 %s1267_s21, 2 }
 0x273   : > { %p812_p12 = scmp.eq.s32.totalorder %s809_s14, 0 }
 0x274   : > { %s1227_s15 = sshrl.u32 (!%p812_p12), %s1267_s21, 1 }
 0x275   : > { %542 = sbr.rel (%p812_p12) target bundleno = 664 (0x298), region = 56  ;;  %p813_p13 = scmp.le.s32.totalorder (!%p812_p12), %s1227_s15, 0 }
 0x27a   : > { %704 = sbr.rel (%p813_p13) target bundleno = 647 (0x287), region = 129  ;;  %s1048_s24 = smov (!%p813_p13), %s1221_s13  }
 0x27b   : > { %s1052_s29 = smov (!%p813_p13), %s1209_s8   ;;  %s1056_s11 = smov (!%p813_p13), 0  }
 0x27c   : > { %s1060_s16 = smov (!%p813_p13), 0  }
 0x27f LB: >> { %v559_v1 = vld [vmem:[%s1054_s29] sm:$0xf]  ;;  %v561_v3 = vld [vmem:[%s1054_s29 + $0x4] sm:$0xf]  ;;  %s563_s17 = sadd.s32 1, %s1058_s11  ;;  %s553_s16 = sadd.s32 1, %s1062_s16   ;;  %s1062_s16 = sphi %s1060_s16, %s553_s16   ;;  %s1058_s11 = sphi %s1056_s11, %s1057_s11   ;;  %s1054_s29 = sphi %s1052_s29, %s568_s29   ;;  %s1050_s24 = sphi %s1048_s24, %s569_s24  }
 0x280   : >> { %560 = vst [vmem:[%s1050_s24] sm:$0xf] %v559_v1  ;;  %p564_p0 = scmp.ge.s32.totalorder %s563_s17, %s1227_s15  ;;  %p552_p1 = scmp.ge.s32.totalorder %s553_s16, %s1227_s15 }
 0x281   : >> { %562 = vst [vmem:[%s1050_s24 + $0x4] sm:$0xf] %v561_v3 }
 0x282   : >> { %s1269_s17 = smov (%p564_p0, %s563_s17), 0  ;;  %555 = sbr.rel (!%p552_p1) target bundleno = 639 (0x27f), region = 135 }
 0x283   : >> { %s814_s18 = sshll.u32 %s1269_s17, 3  ;;  %s1057_s11 = smov %s1269_s17  }
 0x284   : >> { %s568_s29 = scalar_lea.vmem %s1209_s8, %s814_s18 [#allocation4]   ;;  %s569_s24 = scalar_lea.vmem %s1221_s13, %s814_s18  }
 0x287 PF: > { %s1237_s19 = sand.u32 1, %s1267_s21   ;;  %s835_s20 = sshll.u32 %s1227_s15, 3 }
 0x288   : > { %s574_s23 = scalar_lea.vmem %s1209_s8, %s835_s20 [#allocation4]   ;;  %s576_s26 = scalar_lea.vmem %s1221_s13, %s835_s20  }
 0x289   : > { %p819_p2 = scmp.le.s32.totalorder %s1237_s19, 0 }
 0x28a   : > { %s1064_s27 = smov (!%p819_p2), %s576_s26   ;;  %s1068_s30 = smov (!%p819_p2), %s574_s23  }
 0x28b   : > { %718 = sbr.rel (%p819_p2) target bundleno = 664 (0x298), region = 140  ;;  %s1072_s7 = smov (!%p819_p2), 0  }
 0x28c   : > { %s1076_s9 = smov (!%p819_p2), 0  }
 0x290 LB: >> { %v586_v57 = vld [vmem:[%s1070_s30] sm:$0xf]  ;;  %s588_s21 = sadd.s32 1, %s1074_s7  ;;  %s580_s9 = sadd.s32 1, %s1078_s9   ;;  %s1078_s9 = sphi %s1076_s9, %s580_s9   ;;  %s1074_s7 = sphi %s1072_s7, %s1073_s7   ;;  %s1070_s30 = sphi %s1068_s30, %s593_s30   ;;  %s1066_s27 = sphi %s1064_s27, %s594_s27  }
 0x291   : >> { %587 = vst [vmem:[%s1066_s27] sm:$0xf] %v586_v57  ;;  %p589_p3 = scmp.ge.s32.totalorder %s588_s21, %s1237_s19  ;;  %p579_p4 = scmp.ge.s32.totalorder %s580_s9, %s1237_s19 }
 0x293   : >> { %s1271_s21 = smov (%p589_p3, %s588_s21), 0  ;;  %582 = sbr.rel (!%p579_p4) target bundleno = 656 (0x290), region = 146 }
 0x294   : >> { %s820_s8 = sshll.u32 %s1271_s21, 2  ;;  %s1073_s7 = smov %s1271_s21  }
 0x295   : >> { %s593_s30 = scalar_lea.vmem %s574_s23, %s820_s8 [#allocation4]   ;;  %s594_s27 = scalar_lea.vmem %s576_s26, %s820_s8  }
 0x298 PF: > { %p14_p5 = scmp.ge.s32.totalorder %s1132_s25, 4   ;;  %s1263_s21 = smov %s1042_s22 }
 0x299   : > { %s1264_s22 = smov %s1140_s28  ;;  %s1265_s23 = smov %s1132_s25 }
 0x29a   :  { %16 = sbr.rel (!%p14_p5) target bundleno = 2 (0x2), region = 157 }
 0x29f   :  { %658 = vsyncpa [#allocation3], 1 }
 0x2a0   :  { %660 = vsyncpa [#allocation3 + $0x1], 1 }

// kernel: _lambda_.17
= control target key start
LH: loop header
LB: loop body
LE: loop exit
PB: predicated region body
PF: predicated region fallthrough
CT: control target
= control target key end

     0   :  { %s1085_s21 = smov 0   ;;  %s1087_s22 = smov 0   ;;  %s1225_s0 = inlined_call_operand.vmem [shape: bf16[2,9,32], index: 0, kind: input, shape index: {}]   ;;  %s1226_s1 = inlined_call_operand.vmem [shape: f32[1,32], index: 1, kind: input, shape index: {}]   ;;  %s1227_s2 = inlined_call_operand.vmem [shape: bf16[2,32,32], index: 2, kind: input, shape index: {}]   ;;  %s1228_s3 = inlined_call_operand.vmem [shape: bf16[2,32,32], index: 3, kind: input, shape index: {}]   ;;  %s1229_s4 = inlined_call_operand.vmem [shape: bf16[2,32,32], index: 4, kind: input, shape index: {}]   ;;  %s1230_s5 = inlined_call_operand.vmem [shape: bf16[2,32,32], index: 5, kind: input, shape index: {}]   ;;  %s1231_s6 = inlined_call_operand.vmem [shape: bf16[2,9,32], index: 6, kind: output, shape index: {}]  }
   0x1   :  { %s1089_s23 = smov 0  }
   0x2 LB: > { %s28_s24 = sadd.s32 1, %s1042_s22  ;;  %p858_p0 = scmp.ge.s32.totalorder %s1046_s23, 1  ;;  %s1046_s23 = sphi %s1089_s23, %s16_s23   ;;  %s1042_s22 = sphi %s1087_s22, %s1233_s22   ;;  %s1038_s21 = sphi %s1085_s21, %s1232_s21  }
   0x3   : > { %p30_p1 = scmp.ge.s32.totalorder %s28_s24, 2  ;;  %p233_p2 = scmp.lt.s32.totalorder %s1046_s23, 3 }
   0x5   : > { %s1235_s24 = smov (%p30_p1, %s28_s24), 0  ;;  %p234_p3 = pnand %p858_p0, %p233_p2 }
   0x6   : > { %p272_p4 = scmp.lt.s32.totalorder (!%p234_p3), %s1038_s21, 1 }
   0x7   : > { %237 = sbr.rel (%p234_p3) target bundleno = 1668 (0x684), region = 44 }
   0xc   : > { %s1237_s21 = smov (!%p272_p4, %s1038_s21), 1  ;;  %vm296_vm0 = vcmask 261120   ;;  %vm300_vm1 = vcmask 253952   ;;  %v1048_v6 = vmov 32.0   ;;  %v960_v23 = vld [vmem:[%s1227_s2 + $0x8] sm:$0xff]  ;;  %v959_v27 = vld [vmem:[%s1227_s2] sm:$0xff] }
   0xd   : > { %s957_s25 = sshll.u32 %s1237_s21, 3  ;;  %1002 = vrcp.f32 %v1048_v6  ;;  %v962_v24 = vld [vmem:[%s1228_s3 + $0x8] sm:$0xff]  ;;  %381 = vmatpush.bf16.msra.mxu0 %v960_v23  ;;  %v961_v28 = vld [vmem:[%s1228_s3] sm:$0xff]  ;;  %v968_v32 = vld [vmem:[%s1227_s2 + $0x18] sm:$0xff]  ;;  %vm502_vm9 = vcmask 1043456   ;;  %vm503_vm10 = vcmask 1044480  }
   0xe   : > { %s279_s28 = scalar_lea.vmem %s1225_s0, %s957_s25  ;;  %v964_v25 = vld [vmem:[%s1229_s4 + $0x8] sm:$0xff]  ;;  %411 = vmatpush.bf16.msra.mxu1 %v962_v24  ;;  %v963_v29 = vld [vmem:[%s1229_s4] sm:$0xff]  ;;  %v967_v34 = vld [vmem:[%s1227_s2 + $0x10] sm:$0xff]  ;;  %vm473_vm11 = vcmask 72704   ;;  %vm477_vm12 = vcmask 65536   ;;  %s289_s27 = scalar_lea.vmem %s1231_s6, %s957_s25  ;;  %vm759_vm13 = vcmask 257024  }
   0xf   : > { %v292_v0 = vld [vmem:[%s279_s28] sm:$0xf]  ;;  %v293_v2 = vld [vmem:[%s279_s28 + $0x4] sm:$0x1]  ;;  %441 = vmatpush.bf16.msra.mxu2 %v964_v25  ;;  %v970_v62 = vld [vmem:[%s1228_s3 + $0x18] sm:$0xff] }
  0x10   : > { %v1111_v1 = vunpack.c.l.bf16 %v292_v0  ;;  %v1115_v4 = vunpack.c.l.bf16 %v293_v2  ;;  %v1001_v50 = vld [vmem:[%s1226_s1] ss:$0 sm:$0xff]  ;;  %v1049_v0 = vmov 65535   ;;  %vm762_vm14 = vsmask.f32 256 }
  0x11   : > { %382 = vmatpush.bf16.msra.mxu0 %v959_v27  ;;  %v504_v2 = vsel %vm502_vm9, 4294967295, %v1049_v0  ;;  %vm763_vm15 = vmand %vm300_vm1, %vm762_vm14 }
  0x12   : > { %v297_v3 = vsel %vm296_vm0, %v1111_v1, 0.0  ;;  %v301_v5 = vsel %vm300_vm1, %v1115_v4, 0.0  ;;  %412 = vmatpush.bf16.msra.mxu1 %v961_v28 }
  0x13   : > { %298 = vadd.xlane.f32.xlu0 %v297_v3  ;;  %v1003_v7 = vpop.eup %1002  ;;  %442 = vmatpush.bf16.msra.mxu2 %v963_v29  ;;  %v969_v3 = vld [vmem:[%s1228_s3 + $0x10] sm:$0xff] }
  0x14   : > { %v305_v8 = vmul.f32 32.0, %v1003_v7  ;;  %vm309_vm2 = vweird.f32 %v1003_v7 }
  0x16   : > { %v306_v9 = vsub.f32 1.0, %v305_v8 }
  0x17   : > { %582 = vmatpush.bf16.msrb.mxu2 %v968_v32 }
  0x18   : > { %v307_v10 = vmul.f32 %v1003_v7, %v306_v9 }
  0x1a   : > { %v308_v11 = vadd.f32 %v1003_v7, %v307_v10 }
  0x1b   : > { %302 = vadd.xlane.f32.xlu0 %v301_v5  ;;  %583 = vmatpush.bf16.msrb.mxu2 %v967_v34  ;;  %v971_v34 = vld [vmem:[%s1229_s4 + $0x10] sm:$0xff] }
  0x1c   : > { %v310_v12 = vsel %vm309_vm2, %v1003_v7, %v308_v11  ;;  %v1167_v7 = vsel %vm503_vm10, %v504_v2, 0  ;;  %v966_v11 = vld [vmem:[%s1230_s5 + $0x8] sm:$0xff] }
  0x1d   : > { %549 = vmatpush.bf16.msrb.mxu1 %v966_v11 }
  0x86   : > { %v299_v13 = vpop.xlane.xlu0 %298 }
  0x87   : > { %v311_v14 = vmul.f32 %v310_v12, %v299_v13 }
  0x89   : > { %v313_v15 = vsub.f32 %v1111_v1, %v311_v14 }
  0x8b   : > { %v315_v16 = vmul.f32 %v313_v15, %v313_v15 }
  0x8d   : > { %v317_v17 = vsel %vm296_vm0, %v315_v16, 0.0 }
  0x8e   : > { %318 = vadd.xlane.f32.xlu1 %v317_v17  ;;  %v303_v18 = vpop.xlane.xlu0 %302 }
  0x8f   : > { %v312_v19 = vmul.f32 %v310_v12, %v303_v18 }
  0x91   : > { %v314_v20 = vsub.f32 %v1115_v4, %v312_v19 }
  0x93   : > { %v316_v21 = vmul.f32 %v314_v20, %v314_v20 }
  0x95   : > { %v320_v22 = vsel %vm300_vm1, %v316_v21, 0.0 }
  0x96   : > { %321 = vadd.xlane.f32.xlu1 %v320_v22 }
 0x101   : > { %v319_v26 = vpop.xlane.xlu1 %318 }
 0x102   : > { %v323_v30 = vmul.f32 %v319_v26, %v310_v12 }
 0x104   : > { %v325_v31 = vadd.f32 1e-05, %v323_v30 }
 0x106   : > { %1004 = vrsqrt.f32 %v325_v31  ;;  %vm333_vm4 = vweird.f32 %v325_v31 }
 0x109   : > { %v322_v33 = vpop.xlane.xlu1 %321 }
 0x10a   : > { %v324_v35 = vmul.f32 %v322_v33, %v310_v12  ;;  %v965_v12 = vld [vmem:[%s1230_s5] sm:$0xff]  ;;  %v972_v33 = vld [vmem:[%s1229_s4 + $0x18] sm:$0xff] }
 0x10b   : > { %550 = vmatpush.bf16.msrb.mxu1 %v965_v12 }
 0x10c   : > { %v1005_v36 = vpop.eup %1004  ;;  %v326_v37 = vadd.f32 1e-05, %v324_v35 }
 0x10d   : > { %v328_v38 = vmul.f32 %v1005_v36, %v325_v31  ;;  %vm334_vm3 = vweird.f32 %v1005_v36 }
 0x10e   : > { %1006 = vrsqrt.f32 %v326_v37  ;;  %vm335_vm5 = vmor %vm333_vm4, %vm334_vm3  ;;  %vm343_vm7 = vweird.f32 %v326_v37 }
 0x10f   : > { %v329_v39 = vmul.f32 %v1005_v36, %v328_v38 }
 0x111   : > { %v330_v40 = vmul.f32 0.5, %v329_v39 }
 0x113   : > { %v331_v41 = vsub.f32 1.5, %v330_v40 }
 0x114   : > { %v1007_v42 = vpop.eup %1006 }
 0x115   : > { %v338_v43 = vmul.f32 %v1007_v42, %v326_v37  ;;  %v332_v44 = vmul.f32 %v1005_v36, %v331_v41  ;;  %vm344_vm6 = vweird.f32 %v1007_v42 }
 0x116   : > { %vm345_vm8 = vmor %vm343_vm7, %vm344_vm6 }
 0x117   : > { %v339_v45 = vmul.f32 %v1007_v42, %v338_v43  ;;  %v336_v47 = vsel %vm335_vm5, %v1005_v36, %v332_v44 }
 0x118   : > { %v347_v51 = vmul.f32 %v336_v47, %v313_v15 }
 0x119   : > { %v340_v46 = vmul.f32 0.5, %v339_v45 }
 0x11a   : > { %v353_v54 = vmul.f32 %v1001_v50, %v347_v51 }
 0x11b   : > { %v341_v48 = vsub.f32 1.5, %v340_v46 }
 0x11d   : > { %v342_v49 = vmul.f32 %v1007_v42, %v341_v48 }
 0x11f   : > { %v346_v52 = vsel %vm345_vm8, %v1007_v42, %v342_v49 }
 0x120   : > { %v348_v53 = vmul.f32 %v346_v52, %v314_v20 }
 0x122   : > { %v354_v55 = vmul.f32 %v1001_v50, %v348_v53 }
 0x124   : > { %v1150_v56 = vpack.c.bf16 %v354_v55, %v353_v54 }
 0x126   : > { %871 = vmatmul.msk.bf16.vlgmr.msra.gmra.mxu0 %vm296_vm0, %v1150_v56  ;;  %880 = vmatmul.msk.bf16.vlgmr.msra.gmra.mxu1 %vm296_vm0, %v1150_v56 }
 0x127   : > { %889 = vmatmul.msk.bf16.vlgmr.msra.gmra.mxu2 %vm296_vm0, %v1150_v56 }
 0x137   : > { %913 = vmatmul.msk.bf16.vlgmr.msrb.gmra.mxu2 %vm296_vm0, %v1150_v56 }
 0x1a3   : > { %v414_v57 = vpop.f32.mrf.mxu1  ;;  %v384_v58 = vpop.f32.mrf.mxu0 }
 0x1aa   : > { %v444_v59 = vpop.f32.mrf.mxu2 }
 0x1ab   : > { %v416_v60 = vpop.f32.mrf.mxu1  ;;  %v386_v5 = vpop.f32.mrf.mxu0 }
 0x1ac   : > { %v450_v61 = vpack.c.bf16 %v416_v60, %v414_v57  ;;  %v449_v9 = vpack.c.bf16 %v386_v5, %v384_v58 }
 0x1ae   : > { %v455_v63 = vsel %vm296_vm0, %v450_v61, 0 }
 0x1af   : > { %464 = vmatpush.bf16.xpose.msra.mxu3 %v455_v63 }
 0x1b2   : > { %v446_v6 = vpop.f32.mrf.mxu2 }
 0x1b3   : > { %v498_v8 = vpack.c.bf16 %v446_v6, %v444_v59 }
 0x1b5   : > { %v507_v10 = vand.u32 %v1167_v7, %v498_v8  ;;  %v974_v8 = vld [vmem:[%s1230_s5 + $0x18] sm:$0xff] }
 0x1b6   : > { %890 = vmatmul.msk.bf16.vlgmr.msra.gmra.mxu3 %vm296_vm0, %v449_v9 }
 0x1b7   : > { %613 = vmatpush.bf16.msrb.mxu3 %v970_v62  ;;  %516 = vmatpush.bf16.msrb.mxu0 %v507_v10 }
 0x1ba   : > { %v585_v45 = vpop.f32.mrf.mxu2 }
 0x1bb   : > { %614 = vmatpush.bf16.msrb.mxu3 %v969_v3  ;;  %644 = vmatpush.bf16.msra.mxu0 %v972_v33 }
 0x1bf   : > { %645 = vmatpush.bf16.msra.mxu0 %v971_v34  ;;  %747 = vmatpush.bf16.msra.mxu3 %v974_v8 }
 0x1c2   : > { %v587_v47 = vpop.f32.mrf.mxu2 }
 0x1c3   : > { %v652_v49 = vpack.c.bf16 %v587_v47, %v585_v45 }
 0x1c6   : > { %926 = vmatmul.msk.bf16.vlgmr.msrb.gmra.mxu3 %vm296_vm0, %v1150_v56 }
 0x239   : > { %v466_v13 = vpop.f32.mrf.mxu3 }
 0x23a   : > { %v471_v14 = vmul.f32 0.17677669, %v466_v13 }
 0x23c   : > { %v474_v15 = vsel %vm473_vm11, %v471_v14, -inf }
 0x23d   : > { %475 = vmax.xlane.f32.xlu2 %v474_v15 }
 0x241   : > { %v468_v16 = vpop.f32.mrf.mxu3 }
 0x242   : > { %v472_v17 = vmul.f32 0.17677669, %v468_v16  ;;  %v973_v16 = vld [vmem:[%s1230_s5 + $0x10] sm:$0xff] }
 0x243   : > { %748 = vmatpush.bf16.msra.mxu3 %v973_v16 }
 0x244   : > { %v478_v18 = vsel %vm477_vm12, %v472_v17, -inf }
 0x245   : > { %479 = vmax.xlane.f32.xlu2 %v478_v18 }
 0x249   : > { %v616_v19 = vpop.f32.mrf.mxu3 }
 0x251   : > { %v618_v20 = vpop.f32.mrf.mxu3 }
 0x252   : > { %v653_v21 = vpack.c.bf16 %v618_v20, %v616_v19 }
 0x254   : > { %v658_v22 = vsel %vm296_vm0, %v653_v21, 0 }
 0x255   : > { %667 = vmatpush.bf16.xpose.msra.mxu1 %v658_v22 }
 0x2b0   : > { %v476_v23 = vpop.xlane.xlu2 %475 }
 0x2b1   : > { %v481_v24 = vsub.f32 %v471_v14, %v476_v23 }
 0x2b3   : > { %v483_v25 = vmul.f32 1.442695, %v481_v24 }
 0x2b5   : > { %1008 = vpow2.f32 %v483_v25 }
 0x2b8   : > { %v480_v26 = vpop.xlane.xlu2 %479 }
 0x2b9   : > { %v482_v27 = vsub.f32 %v472_v17, %v480_v26 }
 0x2bb   : > { %v1009_v28 = vpop.eup %1008  ;;  %v485_v29 = vmul.f32 1.442695, %v482_v27  ;;  %v764_v27 = vld [vmem:[%s289_s27 + $0x4] sm:$0x1] }
 0x2bc   : > { %v487_v30 = vsel %vm473_vm11, %v1009_v28, 0.0 }
 0x2bd   : > { %1010 = vpow2.f32 %v485_v29  ;;  %488 = vadd.xlane.f32.xlu0 %v487_v30 }
 0x2c3   : > { %v1011_v31 = vpop.eup %1010 }
 0x2c4   : > { %v490_v32 = vsel %vm477_vm12, %v1011_v31, 0.0 }
 0x2c5   : > { %491 = vadd.xlane.f32.xlu1 %v490_v32 }
 0x330   : > { %v489_v35 = vpop.xlane.xlu0 %488 }
 0x331   : > { %1012 = vrcp.f32 %v489_v35 }
 0x337   : > { %v1013_v37 = vpop.eup %1012 }
 0x338   : > { %v492_v36 = vpop.xlane.xlu1 %491  ;;  %v495_v39 = vmul.f32 %v1013_v37, %v1009_v28 }
 0x339   : > { %1014 = vrcp.f32 %v492_v36 }
 0x33f   : > { %v1015_v38 = vpop.eup %1014 }
 0x340   : > { %v496_v40 = vmul.f32 %v1015_v38, %v1011_v31 }
 0x342   : > { %v497_v41 = vpack.c.bf16 %v496_v40, %v495_v39 }
 0x344   : > { %891 = vmatmul.msk.bf16.vlgmr.msrb.gmra.mxu0 %vm473_vm11, %v497_v41 }
 0x354   : > { %939 = vmatmul.msk.bf16.vlgmr.msra.gmra.mxu0 %vm296_vm0, %v1150_v56 }
 0x3c1   : > { %v518_v42 = vpop.f32.mrf.mxu0 }
 0x3c9   : > { %v520_v43 = vpop.f32.mrf.mxu0 }
 0x3ca   : > { %v523_v44 = vpack.c.bf16 %v520_v43, %v518_v42 }
 0x3cc   : > { %900 = vmatmul.msk.bf16.vlgmr.msrb.gmra.mxu1 %vm296_vm0, %v523_v44 }
 0x3d1   : > { %v647_v46 = vpop.f32.mrf.mxu0 }
 0x3d9   : > { %v649_v48 = vpop.f32.mrf.mxu0 }
 0x3da   : > { %v699_v50 = vpack.c.bf16 %v649_v48, %v647_v46 }
 0x3dc   : > { %v704_v51 = vand.u32 %v699_v50, %v1167_v7  ;;  %940 = vmatmul.msk.bf16.vlgmr.msra.gmra.mxu1 %vm296_vm0, %v652_v49 }
 0x3de   : > { %713 = vmatpush.bf16.msra.mxu2 %v704_v51 }
 0x449   : > { %v552_v52 = vpop.f32.mrf.mxu1 }
 0x44a   : > { %v557_v20 = vadd.f32 %v552_v52, %v1111_v1 }
 0x451   : > { %v554_v53 = vpop.f32.mrf.mxu1 }
 0x452   : > { %v558_v24 = vadd.f32 %v554_v53, %v1115_v4 }
 0x459   : > { %v669_v54 = vpop.f32.mrf.mxu1 }
 0x45a   : > { %v674_v55 = vmul.f32 0.17677669, %v669_v54 }
 0x45c   : > { %v676_v56 = vsel %vm473_vm11, %v674_v55, -inf }
 0x45d   : > { %677 = vmax.xlane.f32.xlu2 %v676_v56 }
 0x461   : > { %v671_v57 = vpop.f32.mrf.mxu1 }
 0x462   : > { %v675_v58 = vmul.f32 0.17677669, %v671_v57 }
 0x464   : > { %v679_v59 = vsel %vm477_vm12, %v675_v58, -inf }
 0x465   : > { %680 = vmax.xlane.f32.xlu0 %v679_v59 }
 0x4d0   : > { %v678_v60 = vpop.xlane.xlu2 %677 }
 0x4d1   : > { %v682_v61 = vsub.f32 %v674_v55, %v678_v60 }
 0x4d3   : > { %v684_v62 = vmul.f32 1.442695, %v682_v61 }
 0x4d5   : > { %1016 = vpow2.f32 %v684_v62 }
 0x4d8   : > { %v681_v63 = vpop.xlane.xlu0 %680 }
 0x4d9   : > { %v683_v0 = vsub.f32 %v675_v58, %v681_v63 }
 0x4db   : > { %v1017_v2 = vpop.eup %1016  ;;  %v686_v3 = vmul.f32 1.442695, %v683_v0 }
 0x4dc   : > { %v688_v5 = vsel %vm473_vm11, %v1017_v2, 0.0 }
 0x4dd   : > { %1018 = vpow2.f32 %v686_v3  ;;  %689 = vadd.xlane.f32.xlu1 %v688_v5 }
 0x4e3   : > { %v1019_v6 = vpop.eup %1018 }
 0x4e4   : > { %v691_v7 = vsel %vm477_vm12, %v1019_v6, 0.0 }
 0x4e5   : > { %692 = vadd.xlane.f32.xlu2 %v691_v7 }
 0x550   : > { %v690_v9 = vpop.xlane.xlu1 %689 }
 0x551   : > { %1020 = vrcp.f32 %v690_v9 }
 0x557   : > { %v1021_v11 = vpop.eup %1020 }
 0x558   : > { %v693_v10 = vpop.xlane.xlu2 %692  ;;  %v696_v13 = vmul.f32 %v1021_v11, %v1017_v2 }
 0x559   : > { %1022 = vrcp.f32 %v693_v10 }
 0x55f   : > { %v1023_v12 = vpop.eup %1022 }
 0x560   : > { %v697_v14 = vmul.f32 %v1023_v12, %v1019_v6 }
 0x562   : > { %v698_v15 = vpack.c.bf16 %v697_v14, %v696_v13 }
 0x564   : > { %941 = vmatmul.msk.bf16.vlgmr.msra.gmra.mxu2 %vm473_vm11, %v698_v15 }
 0x5e7   : > { %v715_v17 = vpop.f32.mrf.mxu2 }
 0x5ef   : > { %v717_v18 = vpop.f32.mrf.mxu2 }
 0x5f0   : > { %v720_v19 = vpack.c.bf16 %v717_v18, %v715_v17 }
 0x5f2   : > { %954 = vmatmul.msk.bf16.vlgmr.msra.gmra.mxu3 %vm296_vm0, %v720_v19 }
 0x675   : > { %v750_v21 = vpop.f32.mrf.mxu3 }
 0x676   : > { %v755_v22 = vadd.f32 %v750_v21, %v557_v20 }
 0x678   : > { %v757_v23 = vpack.c.bf16 %v755_v22, %v755_v22 }
 0x67a   : > { %760 = vst.msk [vmem:[%s289_s27] sm:$0xf] %vm759_vm13, %v757_v23 }
 0x67d   : > { %v752_v25 = vpop.f32.mrf.mxu3 }
 0x67e   : > { %v756_v26 = vadd.f32 %v752_v25, %v558_v24 }
 0x680   : > { %v758_v28 = vpack.c.bf16 %v756_v26, %v756_v26 }
 0x682   : > { %v765_v1 = vsel %vm763_vm15, %v758_v28, %v764_v27 }
 0x683   : > { %766 = vst [vmem:[%s289_s27 + $0x4] sm:$0x1] %v765_v1 }
 0x684 PF: > { %s16_s23 = sadd.s32 1, %s1046_s23   ;;  %s1232_s21 = smov %s1042_s22 }
 0x685   : > { %p13_p5 = scmp.ge.s32.totalorder %s16_s23, 4   ;;  %s1233_s22 = smov %s1235_s24 }
 0x687   :  { %15 = sbr.rel (!%p13_p5) target bundleno = 2 (0x2), region = 78 }

// kernel: _lambda_.15
= control target key start
LH: loop header
LB: loop body
LE: loop exit
PB: predicated region body
PF: predicated region fallthrough
CT: control target
= control target key end

     0   :  { %s1345_s24 = smov 0   ;;  %s1347_s25 = smov 0   ;;  %s1553_s0 = inlined_call_operand.vmem [shape: bf16[2,9,32], index: 0, kind: input, shape index: {}]   ;;  %s1554_s1 = inlined_call_operand.vmem [shape: bf16[2,68,32], index: 1, kind: input, shape index: {}]   ;;  %s1555_s2 = inlined_call_operand.vmem [shape: f32[1,32], index: 2, kind: input, shape index: {}]   ;;  %s1556_s3 = inlined_call_operand.vmem [shape: bf16[2,32,32], index: 3, kind: input, shape index: {}]   ;;  %s1557_s4 = inlined_call_operand.vmem [shape: bf16[2,32,32], index: 4, kind: input, shape index: {}]   ;;  %s1558_s5 = inlined_call_operand.vmem [shape: bf16[2,32,32], index: 5, kind: input, shape index: {}]   ;;  %s1559_s6 = inlined_call_operand.vmem [shape: bf16[2,32,32], index: 6, kind: input, shape index: {}]   ;;  %s1560_s7 = inlined_call_operand.vmem [shape: bf16[2,9,32], index: 7, kind: output, shape index: {}]  }
   0x1   :  { %s1349_s26 = smov 0  }
   0x2 LB: > { %s29_s27 = sadd.s32 1, %s1298_s25  ;;  %p1077_p0 = scmp.ge.s32.totalorder %s1302_s26, 1  ;;  %s1302_s26 = sphi %s1349_s26, %s17_s26   ;;  %s1298_s25 = sphi %s1347_s25, %s1562_s25   ;;  %s1294_s24 = sphi %s1345_s24, %s1561_s24  }
   0x3   : > { %p31_p1 = scmp.ge.s32.totalorder %s29_s27, 2  ;;  %p268_p2 = scmp.lt.s32.totalorder %s1302_s26, 3 }
   0x5   : > { %s1564_s27 = smov (%p31_p1, %s29_s27), 0  ;;  %p269_p3 = pnand %p1077_p0, %p268_p2 }
   0x6   : > { %p314_p4 = scmp.lt.s32.totalorder (!%p269_p3), %s1294_s24, 1 }
   0x7   : > { %272 = sbr.rel (%p269_p3) target bundleno = 1796 (0x704), region = 48 }
   0xc   : > { %v1218_v0 = vld [vmem:[%s1557_s4 + $0x8] sm:$0xff]  ;;  %s1566_s24 = smov (!%p314_p4, %s1294_s24), 1  ;;  %v1217_v1 = vld [vmem:[%s1557_s4] sm:$0xff]  ;;  %vm343_vm0 = vcmask 261120   ;;  %vm347_vm1 = vcmask 253952   ;;  %v1304_v15 = vmov 32.0  }
   0xd   : > { %505 = vmatpush.bf16.msra.mxu1 %v1218_v0  ;;  %s1209_s9 = sshll.u32 %s1566_s24, 3  ;;  %s1231_s10 = smul.u32 36, %s1566_s24  ;;  %1258 = vrcp.f32 %v1304_v15  ;;  %v1220_v38 = vld [vmem:[%s1558_s5 + $0x8] sm:$0xff]  ;;  %v1219_v40 = vld [vmem:[%s1558_s5] sm:$0xff]  ;;  %vm654_vm9 = vcmask 1041408   ;;  %vm621_vm10 = vcmask 556032  }
   0xe   : > { %s321_s13 = scalar_lea.vmem %s1553_s0, %s1209_s9  ;;  %554 = vmatpush.bf16.msra.mxu2 %v1220_v38  ;;  %v1216_v51 = vld [vmem:[%s1556_s3 + $0x8] sm:$0xff]  ;;  %v1215_v53 = vld [vmem:[%s1556_s3] sm:$0xff]  ;;  %vm625_vm11 = vcmask 548864   ;;  %vm966_vm12 = vcmask 257024   ;;  %vm969_vm13 = vsmask.f32 256 }
   0xf   : > { %s327_s16 = scalar_lea.vmem %s1554_s1, %s1231_s10  ;;  %v339_v2 = vld [vmem:[%s321_s13] sm:$0xf]  ;;  %v340_v5 = vld [vmem:[%s321_s13 + $0x4] sm:$0x1]  ;;  %437 = vmatpush.bf16.msra.mxu0 %v1216_v51  ;;  %s336_s13 = scalar_lea.vmem %s1560_s7, %s1209_s9  ;;  %vm970_vm14 = vmand %vm347_vm1, %vm969_vm13 }
  0x10   : > { %v1381_v3 = vunpack.c.l.bf16 %v339_v2  ;;  %v1383_v4 = vld [vmem:[%s327_s16] sm:$0xff]  ;;  %v1389_v7 = vunpack.c.l.bf16 %v340_v5  ;;  %v1393_v9 = vld [vmem:[%s327_s16 + $0x8] sm:$0xff]  ;;  %v1397_v10 = vld [vmem:[%s327_s16 + $0x10] sm:$0xff] }
  0x11   : > { %506 = vmatpush.bf16.msra.mxu1 %v1217_v1  ;;  %v1401_v11 = vld [vmem:[%s327_s16 + $0x18] sm:$0xff]  ;;  %v411_v12 = vld [vmem:[%s327_s16 + $0x20] sm:$0x3] }
  0x12   : > { %v344_v6 = vsel %vm343_vm0, %v1381_v3, 0.0  ;;  %v348_v8 = vsel %vm347_vm1, %v1389_v7, 0.0  ;;  %v466_v13 = vunpack.c.l.b16 %v411_v12  ;;  %555 = vmatpush.bf16.msra.mxu2 %v1219_v40 }
  0x13   : > { %345 = vadd.xlane.f32.xlu0 %v344_v6  ;;  %v1259_v16 = vpop.eup %1258  ;;  %438 = vmatpush.bf16.msra.mxu0 %v1215_v53 }
  0x14   : > { %1116 = vmatmul.msk.bf16.vlgmr.msra.gmra.mxu1 %vm343_vm0, %v1383_v4  ;;  %v1405_v14 = vpack.c.b16 %v466_v13, %v466_v13  ;;  %v352_v17 = vmul.f32 32.0, %v1259_v16  ;;  %vm356_vm2 = vweird.f32 %v1259_v16 }
  0x15   : > { %1129 = vmatmul.msk.bf16.vlgmr.msra.gmra.mxu2 %vm343_vm0, %v1383_v4 }
  0x16   : > { %v353_v18 = vsub.f32 1.0, %v352_v17 }
  0x18   : > { %v354_v19 = vmul.f32 %v1259_v16, %v353_v18 }
  0x1a   : > { %v355_v20 = vadd.f32 %v1259_v16, %v354_v19  ;;  %v1257_v19 = vld [vmem:[%s1555_s2] ss:$0 sm:$0xff] }
  0x1b   : > { %349 = vadd.xlane.f32.xlu0 %v348_v8 }
  0x1c   : > { %v357_v21 = vsel %vm356_vm2, %v1259_v16, %v355_v20 }
  0x24   : > { %1117 = vmatmul.msk.bf16.gmra.mxu1 %vm343_vm0, %v1393_v9 }
  0x25   : > { %1130 = vmatmul.msk.bf16.gmra.mxu2 %vm343_vm0, %v1393_v9 }
  0x34   : > { %1118 = vmatmul.msk.bf16.gmra.mxu1 %vm343_vm0, %v1397_v10 }
  0x35   : > { %1131 = vmatmul.msk.bf16.gmra.mxu2 %vm343_vm0, %v1397_v10 }
  0x44   : > { %1119 = vmatmul.msk.bf16.gmra.mxu1 %vm343_vm0, %v1401_v11 }
  0x45   : > { %1132 = vmatmul.msk.bf16.gmra.mxu2 %vm343_vm0, %v1401_v11 }
  0x54   : > { %1120 = vmatmul.msk.bf16.gmra.mxu1 %vm343_vm0, %v1405_v14 }
  0x55   : > { %1133 = vmatmul.msk.bf16.gmra.mxu2 %vm343_vm0, %v1405_v14 }
  0x86   : > { %v346_v22 = vpop.xlane.xlu0 %345 }
  0x87   : > { %v358_v23 = vmul.f32 %v357_v21, %v346_v22 }
  0x89   : > { %v1410_v24 = vsub.f32 %v1381_v3, %v358_v23 }
  0x8b   : > { %v362_v25 = vmul.f32 %v1410_v24, %v1410_v24 }
  0x8d   : > { %v364_v26 = vsel %vm343_vm0, %v362_v25, 0.0 }
  0x8e   : > { %365 = vadd.xlane.f32.xlu1 %v364_v26  ;;  %v350_v27 = vpop.xlane.xlu0 %349 }
  0x8f   : > { %v359_v28 = vmul.f32 %v357_v21, %v350_v27 }
  0x91   : > { %v508_v29 = vpop.f32.mrf.mxu1  ;;  %v1416_v30 = vsub.f32 %v1389_v7, %v359_v28 }
  0x93   : > { %v363_v31 = vmul.f32 %v1416_v30, %v1416_v30 }
  0x95   : > { %v367_v32 = vsel %vm347_vm1, %v363_v31, 0.0 }
  0x96   : > { %368 = vadd.xlane.f32.xlu1 %v367_v32 }
  0x98   : > { %v557_v26 = vpop.f32.mrf.mxu2 }
  0x99   : > { %v510_v33 = vpop.f32.mrf.mxu1 }
  0x9a   : > { %v582_v34 = vpack.c.bf16 %v510_v33, %v508_v29 }
  0x9c   : > { %v591_v63 = vsel %vm343_vm0, %v582_v34, 0 }
  0xa0   : > { %v559_v27 = vpop.f32.mrf.mxu2 }
  0xa1   : > { %v513_v35 = vpop.f32.mrf.mxu1  ;;  %v646_v28 = vpack.c.bf16 %v559_v27, %v557_v26 }
  0xa8   : > { %v562_v29 = vpop.f32.mrf.mxu2 }
  0xa9   : > { %v515_v36 = vpop.f32.mrf.mxu1 }
  0xaa   : > { %v583_v37 = vpack.c.bf16 %v515_v36, %v513_v35 }
  0xac   : > { %v594_v57 = vsel %vm343_vm0, %v583_v37, 0 }
  0xb0   : > { %v564_v31 = vpop.f32.mrf.mxu2 }
  0xb1   : > { %v518_v39 = vpop.f32.mrf.mxu1 }
  0xb9   : > { %v520_v41 = vpop.f32.mrf.mxu1 }
  0xba   : > { %v584_v42 = vpack.c.bf16 %v520_v41, %v518_v39 }
  0xbc   : > { %v597_v52 = vsel %vm343_vm0, %v584_v42, 0 }
  0xc1   : > { %v523_v43 = vpop.f32.mrf.mxu1 }
  0xc9   : > { %v525_v44 = vpop.f32.mrf.mxu1 }
  0xca   : > { %v585_v49 = vpack.c.bf16 %v525_v44, %v523_v43  ;;  %v647_v43 = vpack.c.bf16 %v564_v31, %v562_v29 }
  0xcc   : > { %v600_v50 = vsel %vm343_vm0, %v585_v49, 0 }
  0xd1   : > { %v528_v45 = vpop.f32.mrf.mxu1 }
  0xd2   : > { %v586_v46 = vpack.c.bf16 %v528_v45, %v528_v45 }
  0xd4   : > { %v603_v47 = vsel %vm343_vm0, %v586_v46, 0 }
  0xd5   : > { %608 = vmatpush.bf16.xpose.msrb.mxu2 %v603_v47 }
  0xd9   : > { %v530_v48 = vpop.f32.mrf.mxu1 }
  0xdd   : > { %609 = vmatpush.bf16.xpose.msrb.mxu2 %v600_v50 }
  0xe5   : > { %610 = vmatpush.bf16.xpose.msrb.mxu2 %v597_v52 }
  0xed   : > { %611 = vmatpush.bf16.xpose.msrb.mxu2 %v594_v57 }
  0xf5   : > { %612 = vmatpush.bf16.xpose.msrb.mxu2 %v591_v63 }
 0x101   : > { %v366_v54 = vpop.xlane.xlu1 %365 }
 0x102   : > { %v370_v55 = vmul.f32 %v366_v54, %v357_v21 }
 0x104   : > { %v372_v56 = vadd.f32 1e-05, %v370_v55 }
 0x106   : > { %1260 = vrsqrt.f32 %v372_v56  ;;  %vm380_vm4 = vweird.f32 %v372_v56 }
 0x109   : > { %v369_v58 = vpop.xlane.xlu1 %368 }
 0x10a   : > { %v371_v59 = vmul.f32 %v369_v58, %v357_v21 }
 0x10c   : > { %v1261_v60 = vpop.eup %1260  ;;  %v373_v61 = vadd.f32 1e-05, %v371_v59 }
 0x10d   : > { %v375_v62 = vmul.f32 %v1261_v60, %v372_v56  ;;  %vm381_vm3 = vweird.f32 %v1261_v60 }
 0x10e   : > { %1262 = vrsqrt.f32 %v373_v61  ;;  %vm382_vm5 = vmor %vm380_vm4, %vm381_vm3  ;;  %vm390_vm7 = vweird.f32 %v373_v61 }
 0x10f   : > { %v376_v0 = vmul.f32 %v1261_v60, %v375_v62 }
 0x111   : > { %v377_v1 = vmul.f32 0.5, %v376_v0 }
 0x113   : > { %v378_v2 = vsub.f32 1.5, %v377_v1 }
 0x114   : > { %v1263_v5 = vpop.eup %1262 }
 0x115   : > { %v385_v6 = vmul.f32 %v1263_v5, %v373_v61  ;;  %v379_v8 = vmul.f32 %v1261_v60, %v378_v2  ;;  %vm391_vm6 = vweird.f32 %v1263_v5  ;;  %v1225_v61 = vld [vmem:[%s1557_s4 + $0x10] sm:$0xff] }
 0x116   : > { %vm392_vm8 = vmor %vm390_vm7, %vm391_vm6 }
 0x117   : > { %v386_v12 = vmul.f32 %v1263_v5, %v385_v6  ;;  %v383_v15 = vsel %vm382_vm5, %v1261_v60, %v379_v8  ;;  %v1226_v60 = vld [vmem:[%s1557_s4 + $0x18] sm:$0xff]  ;;  %v1222_v8 = vld [vmem:[%s1559_s6 + $0x8] sm:$0xff] }
 0x118   : > { %v394_v18 = vmul.f32 %v383_v15, %v1410_v24  ;;  %v567_v24 = vpop.f32.mrf.mxu2  ;;  %698 = vmatpush.bf16.msra.mxu3 %v1222_v8  ;;  %v1223_v15 = vld [vmem:[%s1556_s3 + $0x10] sm:$0xff] }
 0x119   : > { %v387_v13 = vmul.f32 0.5, %v386_v12  ;;  %v1221_v12 = vld [vmem:[%s1559_s6] sm:$0xff] }
 0x11a   : > { %v400_v22 = vmul.f32 %v1257_v19, %v394_v18 }
 0x11b   : > { %v388_v16 = vsub.f32 1.5, %v387_v13  ;;  %v1224_v13 = vld [vmem:[%s1556_s3 + $0x18] sm:$0xff] }
 0x11c   : > { %699 = vmatpush.bf16.msra.mxu3 %v1221_v12 }
 0x11d   : > { %v389_v17 = vmul.f32 %v1263_v5, %v388_v16 }
 0x11f   : > { %v393_v20 = vsel %vm392_vm8, %v1263_v5, %v389_v17 }
 0x120   : > { %v395_v21 = vmul.f32 %v393_v20, %v1416_v30  ;;  %v569_v32 = vpop.f32.mrf.mxu2  ;;  %731 = vmatpush.bf16.msrb.mxu3 %v1224_v13 }
 0x121   : > { %v648_v41 = vpack.c.bf16 %v569_v32, %v567_v24 }
 0x122   : > { %v401_v23 = vmul.f32 %v1257_v19, %v395_v21 }
 0x124   : > { %v1453_v25 = vpack.c.bf16 %v401_v23, %v400_v22  ;;  %732 = vmatpush.bf16.msrb.mxu3 %v1223_v15 }
 0x126   : > { %1091 = vmatmul.msk.bf16.vlgmr.msra.gmra.mxu0 %vm343_vm0, %v1453_v25 }
 0x128   : > { %v572_v33 = vpop.f32.mrf.mxu2 }
 0x130   : > { %v574_v35 = vpop.f32.mrf.mxu2 }
 0x131   : > { %v649_v40 = vpack.c.bf16 %v574_v35, %v572_v33 }
 0x138   : > { %v577_v30 = vpop.f32.mrf.mxu2 }
 0x139   : > { %v650_v38 = vpack.c.bf16 %v577_v30, %v577_v30 }
 0x13b   : > { %v656_v39 = vsel %vm654_vm9, %v650_v38, 0 }
 0x13c   : > { %661 = vmatpush.bf16.msrb.mxu0 %v656_v39  ;;  %v1228_v39 = vld [vmem:[%s1558_s5 + $0x18] sm:$0xff] }
 0x140   : > { %662 = vmatpush.bf16.msrb.mxu0 %v649_v40  ;;  %v579_v42 = vpop.f32.mrf.mxu2  ;;  %v1227_v40 = vld [vmem:[%s1558_s5 + $0x10] sm:$0xff] }
 0x144   : > { %663 = vmatpush.bf16.msrb.mxu0 %v648_v41 }
 0x148   : > { %664 = vmatpush.bf16.msrb.mxu0 %v647_v43 }
 0x14c   : > { %665 = vmatpush.bf16.msrb.mxu0 %v646_v28 }
 0x150   : > { %762 = vmatpush.bf16.msra.mxu0 %v1226_v60 }
 0x154   : > { %763 = vmatpush.bf16.msra.mxu0 %v1225_v61 }
 0x1a3   : > { %v440_v34 = vpop.f32.mrf.mxu0 }
 0x1ab   : > { %v442_v36 = vpop.f32.mrf.mxu0 }
 0x1ac   : > { %v581_v37 = vpack.c.bf16 %v442_v36, %v440_v34 }
 0x1ae   : > { %1134 = vmatmul.msk.bf16.vlgmr.msrb.gmra.mxu2 %vm343_vm0, %v581_v37 }
 0x231   : > { %v614_v44 = vpop.f32.mrf.mxu2 }
 0x232   : > { %v619_v45 = vmul.f32 0.17677669, %v614_v44 }
 0x234   : > { %v622_v46 = vsel %vm621_vm10, %v619_v45, -inf }
 0x235   : > { %623 = vmax.xlane.f32.xlu2 %v622_v46 }
 0x239   : > { %v616_v47 = vpop.f32.mrf.mxu2 }
 0x23a   : > { %v620_v48 = vmul.f32 0.17677669, %v616_v47 }
 0x23c   : > { %v626_v49 = vsel %vm625_vm11, %v620_v48, -inf }
 0x23d   : > { %627 = vmax.xlane.f32.xlu2 %v626_v49 }
 0x2a8   : > { %v624_v50 = vpop.xlane.xlu2 %623 }
 0x2a9   : > { %v629_v51 = vsub.f32 %v619_v45, %v624_v50 }
 0x2ab   : > { %v631_v52 = vmul.f32 1.442695, %v629_v51 }
 0x2ad   : > { %1264 = vpow2.f32 %v631_v52 }
 0x2b0   : > { %v628_v53 = vpop.xlane.xlu2 %627 }
 0x2b1   : > { %v630_v54 = vsub.f32 %v620_v48, %v628_v53 }
 0x2b3   : > { %v1265_v55 = vpop.eup %1264  ;;  %v633_v56 = vmul.f32 1.442695, %v630_v54 }
 0x2b4   : > { %v635_v57 = vsel %vm621_vm10, %v1265_v55, 0.0 }
 0x2b5   : > { %1266 = vpow2.f32 %v633_v56  ;;  %636 = vadd.xlane.f32.xlu0 %v635_v57 }
 0x2bb   : > { %v1267_v58 = vpop.eup %1266 }
 0x2bc   : > { %v638_v59 = vsel %vm625_vm11, %v1267_v58, 0.0 }
 0x2bd   : > { %639 = vadd.xlane.f32.xlu1 %v638_v59 }
 0x328   : > { %v637_v62 = vpop.xlane.xlu0 %636 }
 0x329   : > { %1268 = vrcp.f32 %v637_v62 }
 0x32f   : > { %v1269_v0 = vpop.eup %1268 }
 0x330   : > { %v640_v63 = vpop.xlane.xlu1 %639  ;;  %v643_v2 = vmul.f32 %v1269_v0, %v1265_v55 }
 0x331   : > { %1270 = vrcp.f32 %v640_v63 }
 0x337   : > { %v1271_v1 = vpop.eup %1270 }
 0x338   : > { %v644_v5 = vmul.f32 %v1271_v1, %v1267_v58 }
 0x33a   : > { %v645_v6 = vpack.c.bf16 %v644_v5, %v643_v2 }
 0x33c   : > { %1135 = vmatmul.msk.bf16.vlgmr.msrb.gmra.mxu0 %vm621_vm10, %v645_v6 }
 0x34c   : > { %1170 = vmatmul.msk.bf16.vlgmr.msra.gmra.mxu0 %vm343_vm0, %v1383_v4 }
 0x35c   : > { %1171 = vmatmul.msk.bf16.gmra.mxu0 %vm343_vm0, %v1393_v9 }
 0x36c   : > { %1172 = vmatmul.msk.bf16.gmra.mxu0 %vm343_vm0, %v1397_v10 }
 0x37c   : > { %1173 = vmatmul.msk.bf16.gmra.mxu0 %vm343_vm0, %v1401_v11 }
 0x38c   : > { %1174 = vmatmul.msk.bf16.gmra.mxu0 %vm343_vm0, %v1405_v14 }
 0x3b9   : > { %v667_v16 = vpop.f32.mrf.mxu0 }
 0x3c1   : > { %v669_v17 = vpop.f32.mrf.mxu0 }
 0x3c2   : > { %v672_v18 = vpack.c.bf16 %v669_v17, %v667_v16  ;;  %v1230_v16 = vld [vmem:[%s1559_s6 + $0x18] sm:$0xff] }
 0x3c4   : > { %1144 = vmatmul.msk.bf16.vlgmr.msra.gmra.mxu3 %vm343_vm0, %v672_v18 }
 0x3c5   : > { %812 = vmatpush.bf16.msra.mxu3 %v1228_v39 }
 0x3c9   : > { %v765_v19 = vpop.f32.mrf.mxu0  ;;  %813 = vmatpush.bf16.msra.mxu3 %v1227_v40 }
 0x3d1   : > { %v767_v20 = vpop.f32.mrf.mxu0 }
 0x3d2   : > { %v840_v21 = vpack.c.bf16 %v767_v20, %v765_v19 }
 0x3d4   : > { %1157 = vmatmul.msk.bf16.vlgmr.msrb.gmra.mxu3 %vm343_vm0, %v1453_v25  ;;  %v849_v38 = vsel %vm343_vm0, %v840_v21, 0 }
 0x3d9   : > { %v770_v22 = vpop.f32.mrf.mxu0 }
 0x3e1   : > { %v772_v23 = vpop.f32.mrf.mxu0 }
 0x3e2   : > { %v841_v26 = vpack.c.bf16 %v772_v23, %v770_v22 }
 0x3e4   : > { %v852_v30 = vsel %vm343_vm0, %v841_v26, 0  ;;  %1187 = vmatmul.msk.bf16.vlgmr.msra.gmra.mxu3 %vm343_vm0, %v1383_v4  ;;  %v1229_v26 = vld [vmem:[%s1559_s6 + $0x10] sm:$0xff] }
 0x3e9   : > { %v775_v27 = vpop.f32.mrf.mxu0 }
 0x3f1   : > { %v777_v28 = vpop.f32.mrf.mxu0 }
 0x3f2   : > { %v842_v37 = vpack.c.bf16 %v777_v28, %v775_v27 }
 0x3f4   : > { %v855_v25 = vsel %vm343_vm0, %v842_v37, 0  ;;  %1188 = vmatmul.msk.bf16.gmra.mxu3 %vm343_vm0, %v1393_v9  ;;  %v971_v37 = vld [vmem:[%s336_s13 + $0x4] sm:$0x1] }
 0x3f9   : > { %v780_v29 = vpop.f32.mrf.mxu0 }
 0x401   : > { %v782_v31 = vpop.f32.mrf.mxu0 }
 0x402   : > { %v843_v34 = vpack.c.bf16 %v782_v31, %v780_v29 }
 0x404   : > { %v858_v36 = vsel %vm343_vm0, %v843_v34, 0  ;;  %1189 = vmatmul.msk.bf16.gmra.mxu3 %vm343_vm0, %v1397_v10 }
 0x409   : > { %v785_v24 = vpop.f32.mrf.mxu0 }
 0x40a   : > { %v844_v32 = vpack.c.bf16 %v785_v24, %v785_v24 }
 0x40c   : > { %v861_v33 = vsel %vm343_vm0, %v844_v32, 0 }
 0x40d   : > { %866 = vmatpush.bf16.xpose.msrb.mxu1 %v861_v33 }
 0x411   : > { %v787_v35 = vpop.f32.mrf.mxu0 }
 0x414   : > { %1190 = vmatmul.msk.bf16.gmra.mxu3 %vm343_vm0, %v1401_v11 }
 0x415   : > { %867 = vmatpush.bf16.xpose.msrb.mxu1 %v858_v36 }
 0x41d   : > { %868 = vmatpush.bf16.xpose.msrb.mxu1 %v855_v25 }
 0x424   : > { %1191 = vmatmul.msk.bf16.gmra.mxu3 %vm343_vm0, %v1405_v14 }
 0x425   : > { %869 = vmatpush.bf16.xpose.msrb.mxu1 %v852_v30 }
 0x42d   : > { %870 = vmatpush.bf16.xpose.msrb.mxu1 %v849_v38 }
 0x435   : > { %954 = vmatpush.bf16.msra.mxu1 %v1230_v16 }
 0x439   : > { %955 = vmatpush.bf16.msra.mxu1 %v1229_v26 }
 0x447   : > { %v1506_v41 = vpop.f32.mrf.mxu3 }
 0x448   : > { %v706_v31 = vadd.f32 %v1506_v41, %v1381_v3 }
 0x44f   : > { %v1510_v42 = vpop.f32.mrf.mxu3 }
 0x450   : > { %v707_v34 = vadd.f32 %v1510_v42, %v1389_v7 }
 0x457   : > { %v734_v43 = vpop.f32.mrf.mxu3 }
 0x45f   : > { %v736_v44 = vpop.f32.mrf.mxu3 }
 0x460   : > { %v839_v45 = vpack.c.bf16 %v736_v44, %v734_v43 }
 0x462   : > { %1192 = vmatmul.msk.bf16.vlgmr.msrb.gmra.mxu1 %vm343_vm0, %v839_v45 }
 0x467   : > { %v815_v4 = vpop.f32.mrf.mxu3 }
 0x46f   : > { %v817_v46 = vpop.f32.mrf.mxu3 }
 0x470   : > { %v902_v47 = vpack.c.bf16 %v817_v46, %v815_v4 }
 0x477   : > { %v820_v10 = vpop.f32.mrf.mxu3 }
 0x47f   : > { %v822_v53 = vpop.f32.mrf.mxu3 }
 0x480   : > { %v903_v15 = vpack.c.bf16 %v822_v53, %v820_v10 }
 0x487   : > { %v825_v54 = vpop.f32.mrf.mxu3 }
 0x48f   : > { %v827_v11 = vpop.f32.mrf.mxu3 }
 0x490   : > { %v904_v8 = vpack.c.bf16 %v827_v11, %v825_v54 }
 0x497   : > { %v830_v55 = vpop.f32.mrf.mxu3 }
 0x49f   : > { %v832_v58 = vpop.f32.mrf.mxu3 }
 0x4a0   : > { %v905_v5 = vpack.c.bf16 %v832_v58, %v830_v55 }
 0x4a7   : > { %v835_v0 = vpop.f32.mrf.mxu3 }
 0x4a8   : > { %v906_v1 = vpack.c.bf16 %v835_v0, %v835_v0 }
 0x4aa   : > { %v911_v2 = vsel %vm654_vm9, %v906_v1, 0 }
 0x4ab   : > { %916 = vmatpush.bf16.msra.mxu2 %v911_v2 }
 0x4af   : > { %917 = vmatpush.bf16.msra.mxu2 %v905_v5  ;;  %v837_v13 = vpop.f32.mrf.mxu3 }
 0x4b3   : > { %918 = vmatpush.bf16.msra.mxu2 %v904_v8 }
 0x4b7   : > { %919 = vmatpush.bf16.msra.mxu2 %v903_v15 }
 0x4bb   : > { %920 = vmatpush.bf16.msra.mxu2 %v902_v47 }
 0x4df   : > { %v872_v48 = vpop.f32.mrf.mxu1 }
 0x4e0   : > { %v877_v49 = vmul.f32 0.17677669, %v872_v48 }
 0x4e2   : > { %v879_v9 = vsel %vm621_vm10, %v877_v49, -inf }
 0x4e3   : > { %880 = vmax.xlane.f32.xlu2 %v879_v9 }
 0x4e7   : > { %v874_v50 = vpop.f32.mrf.mxu1 }
 0x4e8   : > { %v878_v51 = vmul.f32 0.17677669, %v874_v50 }
 0x4ea   : > { %v882_v52 = vsel %vm625_vm11, %v878_v51, -inf }
 0x4eb   : > { %883 = vmax.xlane.f32.xlu0 %v882_v52 }
 0x556   : > { %v881_v56 = vpop.xlane.xlu2 %880 }
 0x557   : > { %v885_v14 = vsub.f32 %v877_v49, %v881_v56 }
 0x559   : > { %v887_v57 = vmul.f32 1.442695, %v885_v14 }
 0x55b   : > { %1272 = vpow2.f32 %v887_v57 }
 0x55e   : > { %v884_v59 = vpop.xlane.xlu0 %883 }
 0x55f   : > { %v886_v60 = vsub.f32 %v878_v51, %v884_v59 }
 0x561   : > { %v1273_v61 = vpop.eup %1272  ;;  %v889_v62 = vmul.f32 1.442695, %v886_v60 }
 0x562   : > { %v891_v63 = vsel %vm621_vm10, %v1273_v61, 0.0 }
 0x563   : > { %1274 = vpow2.f32 %v889_v62  ;;  %892 = vadd.xlane.f32.xlu1 %v891_v63 }
 0x569   : > { %v1275_v6 = vpop.eup %1274 }
 0x56a   : > { %v894_v12 = vsel %vm625_vm11, %v1275_v6, 0.0 }
 0x56b   : > { %895 = vadd.xlane.f32.xlu2 %v894_v12 }
 0x5d6   : > { %v893_v17 = vpop.xlane.xlu1 %892 }
 0x5d7   : > { %1276 = vrcp.f32 %v893_v17 }
 0x5dd   : > { %v1277_v19 = vpop.eup %1276 }
 0x5de   : > { %v896_v18 = vpop.xlane.xlu2 %895  ;;  %v899_v21 = vmul.f32 %v1277_v19, %v1273_v61 }
 0x5df   : > { %1278 = vrcp.f32 %v896_v18 }
 0x5e5   : > { %v1279_v20 = vpop.eup %1278 }
 0x5e6   : > { %v900_v22 = vmul.f32 %v1279_v20, %v1275_v6 }
 0x5e8   : > { %v901_v23 = vpack.c.bf16 %v900_v22, %v899_v21 }
 0x5ea   : > { %1193 = vmatmul.msk.bf16.vlgmr.msra.gmra.mxu2 %vm621_vm10, %v901_v23 }
 0x66d   : > { %v922_v27 = vpop.f32.mrf.mxu2 }
 0x675   : > { %v924_v28 = vpop.f32.mrf.mxu2 }
 0x676   : > { %v927_v29 = vpack.c.bf16 %v924_v28, %v922_v27 }
 0x678   : > { %1206 = vmatmul.msk.bf16.vlgmr.msra.gmra.mxu1 %vm343_vm0, %v927_v29 }
 0x6f5   : > { %v957_v24 = vpop.f32.mrf.mxu1 }
 0x6f6   : > { %v962_v32 = vadd.f32 %v957_v24, %v706_v31 }
 0x6f8   : > { %v964_v33 = vpack.c.bf16 %v962_v32, %v962_v32 }
 0x6fa   : > { %967 = vst.msk [vmem:[%s336_s13] sm:$0xf] %vm966_vm12, %v964_v33 }
 0x6fd   : > { %v959_v35 = vpop.f32.mrf.mxu1 }
 0x6fe   : > { %v963_v36 = vadd.f32 %v959_v35, %v707_v34 }
 0x700   : > { %v965_v3 = vpack.c.bf16 %v963_v36, %v963_v36 }
 0x702   : > { %v972_v25 = vsel %vm970_vm14, %v965_v3, %v971_v37 }
 0x703   : > { %973 = vst [vmem:[%s336_s13 + $0x4] sm:$0x1] %v972_v25 }
 0x704 PF: > { %s17_s26 = sadd.s32 1, %s1302_s26   ;;  %s1561_s24 = smov %s1298_s25 }
 0x705   : > { %p14_p5 = scmp.ge.s32.totalorder %s17_s26, 4   ;;  %s1562_s25 = smov %s1564_s27 }
 0x707   :  { %16 = sbr.rel (!%p14_p5) target bundleno = 2 (0x2), region = 85 }

// kernel: _lambda_.19
= control target key start
LH: loop header
LB: loop body
LE: loop exit
PB: predicated region body
PF: predicated region fallthrough
CT: control target
= control target key end

     0   :  { %s1915_s24 = smov 0   ;;  %s1917_s25 = smov 0   ;;  %s2403_s0 = inlined_call_operand.vmem [shape: bf16[2,68,32], index: 0, kind: input, shape index: {}]   ;;  %s2404_s1 = inlined_call_operand.vmem [shape: bf16[2,9,32], index: 1, kind: input, shape index: {}]   ;;  %s2405_s2 = inlined_call_operand.vmem [shape: f32[1,32], index: 2, kind: input, shape index: {}]   ;;  %s2406_s3 = inlined_call_operand.vmem [shape: bf16[2,32,32], index: 3, kind: input, shape index: {}]   ;;  %s2407_s4 = inlined_call_operand.vmem [shape: bf16[2,32,32], index: 4, kind: input, shape index: {}]   ;;  %s2408_s5 = inlined_call_operand.vmem [shape: bf16[2,32,32], index: 5, kind: input, shape index: {}]   ;;  %s2409_s6 = inlined_call_operand.vmem [shape: bf16[2,32,32], index: 6, kind: input, shape index: {}]   ;;  %s2410_s7 = inlined_call_operand.vmem [shape: bf16[2,68,32], index: 7, kind: output, shape index: {}]  }
   0x1   :  { %s1919_s26 = smov 0  }
   0x2 LB: > { %s29_s27 = sadd.s32 1, %s1867_s25  ;;  %p1557_p0 = scmp.ge.s32.totalorder %s1871_s26, 1  ;;  %s1871_s26 = sphi %s1919_s26, %s17_s26   ;;  %s1867_s25 = sphi %s1917_s25, %s2412_s25   ;;  %s1863_s24 = sphi %s1915_s24, %s2411_s24  }
   0x3   : > { %p31_p1 = scmp.ge.s32.totalorder %s29_s27, 2  ;;  %p268_p2 = scmp.lt.s32.totalorder %s1871_s26, 3 }
   0x5   : > { %s2414_s27 = smov (%p31_p1, %s29_s27), 0  ;;  %p269_p3 = pnand %p1557_p0, %p268_p2 }
   0x6   : > { %p314_p4 = scmp.lt.s32.totalorder (!%p269_p3), %s1863_s24, 1 }
   0x7   : > { %272 = sbr.rel (%p269_p3) target bundleno = 2074 (0x81a), region = 48 }
   0xc   : > { %s2416_s24 = smov (!%p314_p4, %s1863_s24), 1  ;;  %vm357_vm0 = vcmask 261120   ;;  %v1873_v18 = vmov 32.0   ;;  %vm382_vm2 = vcmask 257024  }
   0xd   : > { %s1729_s28 = smul.u32 36, %s2416_s24  ;;  %1757 = vrcp.f32 %v1873_v18  ;;  %s1692_s23 = sshll.u32 %s2416_s24, 3 }
   0xf   : > { %s1941_s8 = scalar_lea.vmem %s2403_s0, %s1729_s28  ;;  %s2358_s13 = scalar_lea.vmem %s2410_s7, %s1729_s28 }
  0x10   : > { %v1726_v0 = vld [vmem:[%s1941_s8 + $0x8] sm:$0xff]   ;;  %v1711_v1 = vld [vmem:[%s1941_s8] sm:$0xff]   ;;  %v1727_v2 = vld [vmem:[%s1941_s8 + $0x10] sm:$0xff]  }
  0x11   : > { %v1946_v3 = vunpack.c.l.bf16 %v1726_v0  ;;  %v1948_v4 = vunpack.c.l.bf16 %v1711_v1  ;;  %v1950_v5 = vunpack.c.l.bf16 %v1727_v2  ;;  %v1958_v9 = vunpack.c.h.bf16 %v1726_v0  ;;  %v1728_v15 = vld [vmem:[%s1941_s8 + $0x18] sm:$0xff]   ;;  %v347_v47 = vld [vmem:[%s1941_s8 + $0x20] sm:$0x3]  ;;  %s327_s8 = scalar_lea.vmem %s2404_s1, %s1692_s23 }
  0x12   : > { %v1960_v10 = vunpack.c.h.bf16 %v1711_v1  ;;  %v1962_v11 = vunpack.c.h.bf16 %v1727_v2  ;;  %v1971_v16 = vunpack.c.l.bf16 %v1728_v15  ;;  %v1986_v37 = vunpack.c.h.bf16 %v1728_v15  ;;  %v1695_v1 = vld [vmem:[%s2406_s3 + $0x8] sm:$0xff] }
  0x13   : > { %v364_v6 = vsel %vm357_vm0, %v1946_v3, 0.0  ;;  %v358_v7 = vsel %vm357_vm0, %v1948_v4, 0.0  ;;  %v370_v8 = vsel %vm357_vm0, %v1950_v5, 0.0  ;;  %v367_v12 = vsel %vm357_vm0, %v1958_v9, 0.0  ;;  %v1758_v19 = vpop.eup %1757  ;;  %621 = vmatpush.bf16.msra.mxu0 %v1695_v1 }
  0x14   : > { %365 = vadd.xlane.f32.xlu1 %v364_v6  ;;  %359 = vadd.xlane.f32.xlu0 %v358_v7  ;;  %v361_v13 = vsel %vm357_vm0, %v1960_v10, 0.0  ;;  %v373_v14 = vsel %vm357_vm0, %v1962_v11, 0.0  ;;  %v376_v17 = vsel %vm357_vm0, %v1971_v16, 0.0  ;;  %v387_v20 = vmul.f32 32.0, %v1758_v19  ;;  %v1694_v7 = vld [vmem:[%s2406_s3] sm:$0xff] }
  0x15   : > { %371 = vadd.xlane.f32.xlu2 %v370_v8  ;;  %vm391_vm1 = vweird.f32 %v1758_v19  ;;  %v379_v44 = vsel %vm357_vm0, %v1986_v37, 0.0  ;;  %v2013_v52 = vunpack.c.l.bf16 %v347_v47 }
  0x16   : > { %v388_v21 = vsub.f32 1.0, %v387_v20 }
  0x17   : > { %v383_v58 = vsel %vm382_vm2, %v2013_v52, 0.0  ;;  %622 = vmatpush.bf16.msra.mxu0 %v1694_v7 }
  0x18   : > { %v389_v22 = vmul.f32 %v1758_v19, %v388_v21 }
  0x1a   : > { %v390_v23 = vadd.f32 %v1758_v19, %v389_v22 }
  0x1c   : > { %368 = vadd.xlane.f32.xlu1 %v367_v12  ;;  %362 = vadd.xlane.f32.xlu0 %v361_v13  ;;  %v1975_v24 = vsel %vm391_vm1, %v1758_v19, %v390_v23 }
  0x1d   : > { %374 = vadd.xlane.f32.xlu2 %v373_v14 }
  0x25   : > { %377 = vadd.xlane.f32.xlu2 %v376_v17 }
  0x87   : > { %v366_v25 = vpop.xlane.xlu1 %365  ;;  %v360_v26 = vpop.xlane.xlu0 %359 }
  0x88   : > { %v393_v27 = vmul.f32 %v1975_v24, %v360_v26  ;;  %v372_v28 = vpop.xlane.xlu2 %371  ;;  %v395_v38 = vmul.f32 %v1975_v24, %v366_v25 }
  0x89   : > { %v397_v53 = vmul.f32 %v1975_v24, %v372_v28 }
  0x8a   : > { %v1979_v29 = vsub.f32 %v1948_v4, %v393_v27  ;;  %v2006_v46 = vsub.f32 %v1946_v3, %v395_v38 }
  0x8b   : > { %v2026_v59 = vsub.f32 %v1950_v5, %v397_v53 }
  0x8c   : > { %v411_v30 = vmul.f32 %v1979_v29, %v1979_v29  ;;  %v413_v55 = vmul.f32 %v2006_v46, %v2006_v46 }
  0x8d   : > { %v415_v62 = vmul.f32 %v2026_v59, %v2026_v59 }
  0x8e   : > { %v420_v31 = vsel %vm357_vm0, %v411_v30, 0.0  ;;  %v426_v60 = vsel %vm357_vm0, %v413_v55, 0.0 }
  0x8f   : > { %v369_v32 = vpop.xlane.xlu1 %368  ;;  %421 = vadd.xlane.f32.xlu0 %v420_v31  ;;  %v363_v33 = vpop.xlane.xlu0 %362  ;;  %v432_v0 = vsel %vm357_vm0, %v415_v62, 0.0 }
  0x90   : > { %v396_v34 = vmul.f32 %v1975_v24, %v369_v32  ;;  %v394_v35 = vmul.f32 %v1975_v24, %v363_v33  ;;  %v375_v36 = vpop.xlane.xlu2 %374 }
  0x91   : > { %v398_v39 = vmul.f32 %v1975_v24, %v375_v36 }
  0x92   : > { %v1991_v40 = vsub.f32 %v1958_v9, %v396_v34  ;;  %v1994_v41 = vsub.f32 %v1960_v10, %v394_v35 }
  0x93   : > { %v1997_v42 = vsub.f32 %v1962_v11, %v398_v39 }
  0x94   : > { %v414_v43 = vmul.f32 %v1991_v40, %v1991_v40  ;;  %v412_v45 = vmul.f32 %v1994_v41, %v1994_v41 }
  0x95   : > { %v416_v51 = vmul.f32 %v1997_v42, %v1997_v42 }
  0x96   : > { %v429_v48 = vsel %vm357_vm0, %v414_v43, 0.0  ;;  %v423_v49 = vsel %vm357_vm0, %v412_v45, 0.0 }
  0x97   : > { %430 = vadd.xlane.f32.xlu2 %v429_v48  ;;  %380 = vadd.xlane.f32.xlu0 %v379_v44  ;;  %v435_v57 = vsel %vm357_vm0, %v416_v51, 0.0 }
  0x98   : > { %424 = vadd.xlane.f32.xlu1 %v423_v49  ;;  %v378_v50 = vpop.xlane.xlu2 %377 }
  0x99   : > { %v399_v54 = vmul.f32 %v1975_v24, %v378_v50 }
  0x9b   : > { %v2020_v56 = vsub.f32 %v1971_v16, %v399_v54 }
  0x9d   : > { %v417_v61 = vmul.f32 %v2020_v56, %v2020_v56 }
  0x9f   : > { %436 = vadd.xlane.f32.xlu2 %v435_v57  ;;  %384 = vadd.xlane.f32.xlu0 %v383_v58  ;;  %v438_v63 = vsel %vm357_vm0, %v417_v61, 0.0 }
  0xa0   : > { %427 = vadd.xlane.f32.xlu1 %v426_v60 }
  0xa7   : > { %439 = vadd.xlane.f32.xlu0 %v438_v63 }
  0xa8   : > { %433 = vadd.xlane.f32.xlu1 %v432_v0 }
 0x102   : > { %v422_v2 = vpop.xlane.xlu0 %421 }
 0x103   : > { %v447_v6 = vmul.f32 %v422_v2, %v1975_v24 }
 0x105   : > { %v456_v8 = vadd.f32 1e-05, %v447_v6  ;;  %v2076_v6 = vld [vmem:[%s2405_s2] ss:$0 sm:$0xff] }
 0x107   : > { %1759 = vrsqrt.f32 %v456_v8  ;;  %vm471_vm4 = vweird.f32 %v456_v8 }
 0x10a   : > { %v431_v12 = vpop.xlane.xlu2 %430  ;;  %v381_v13 = vpop.xlane.xlu0 %380 }
 0x10b   : > { %v450_v14 = vmul.f32 %v431_v12, %v1975_v24  ;;  %v425_v15 = vpop.xlane.xlu1 %424  ;;  %v400_v17 = vmul.f32 %v1975_v24, %v381_v13 }
 0x10c   : > { %v448_v18 = vmul.f32 %v425_v15, %v1975_v24 }
 0x10d   : > { %v1760_v19 = vpop.eup %1759  ;;  %v2045_v20 = vadd.f32 1e-05, %v450_v14  ;;  %v2048_v21 = vsub.f32 %v1986_v37, %v400_v17 }
 0x10e   : > { %v466_v22 = vmul.f32 %v1760_v19, %v456_v8  ;;  %v457_v23 = vadd.f32 1e-05, %v448_v18  ;;  %vm472_vm3 = vweird.f32 %v1760_v19 }
 0x10f   : > { %1761 = vrsqrt.f32 %v2045_v20  ;;  %v418_v25 = vmul.f32 %v2048_v21, %v2048_v21  ;;  %vm473_vm7 = vmor %vm471_vm4, %vm472_vm3  ;;  %vm501_vm11 = vweird.f32 %v2045_v20 }
 0x110   : > { %v467_v26 = vmul.f32 %v1760_v19, %v466_v22  ;;  %1763 = vrsqrt.f32 %v457_v23  ;;  %vm481_vm5 = vweird.f32 %v457_v23 }
 0x111   : > { %v441_v27 = vsel %vm357_vm0, %v418_v25, 0.0 }
 0x112   : > { %v468_v28 = vmul.f32 0.5, %v467_v26  ;;  %442 = vadd.xlane.f32.xlu1 %v441_v27  ;;  %v385_v30 = vpop.xlane.xlu0 %384  ;;  %v437_v33 = vpop.xlane.xlu2 %436 }
 0x113   : > { %v428_v31 = vpop.xlane.xlu1 %427  ;;  %v401_v32 = vmul.f32 %v1975_v24, %v385_v30  ;;  %v452_v45 = vmul.f32 %v437_v33, %v1975_v24 }
 0x114   : > { %v449_v34 = vmul.f32 %v428_v31, %v1975_v24  ;;  %v469_v36 = vsub.f32 1.5, %v468_v28 }
 0x115   : > { %v2056_v35 = vpop.eup %1761  ;;  %v2059_v38 = vsub.f32 %v2013_v52, %v401_v32  ;;  %v2066_v53 = vadd.f32 1e-05, %v452_v45 }
 0x116   : > { %v1764_v39 = vpop.eup %1763  ;;  %v458_v43 = vadd.f32 1e-05, %v449_v34  ;;  %v470_v47 = vmul.f32 %v1760_v19, %v469_v36  ;;  %v496_v48 = vmul.f32 %v2056_v35, %v2045_v20  ;;  %vm502_vm12 = vweird.f32 %v2056_v35 }
 0x117   : > { %v476_v44 = vmul.f32 %v1764_v39, %v457_v23  ;;  %v419_v50 = vmul.f32 %v2059_v38, %v2059_v38  ;;  %vm482_vm6 = vweird.f32 %v1764_v39  ;;  %vm503_vm14 = vmor %vm501_vm11, %vm502_vm12  ;;  %vm521_vm3 = vweird.f32 %v2066_v53 }
 0x118   : > { %1765 = vrsqrt.f32 %v458_v43  ;;  %v474_v58 = vsel %vm473_vm7, %v1760_v19, %v470_v47  ;;  %v497_v60 = vmul.f32 %v2056_v35, %v496_v48  ;;  %vm483_vm8 = vmor %vm481_vm5, %vm482_vm6  ;;  %vm491_vm9 = vweird.f32 %v458_v43 }
 0x119   : > { %v477_v49 = vmul.f32 %v1764_v39, %v476_v44  ;;  %v444_v55 = vsel %vm382_vm2, %v419_v50, 0.0  ;;  %1767 = vrsqrt.f32 %v2066_v53  ;;  %v555_v2 = vmul.f32 %v474_v58, %v1979_v29 }
 0x11a   : > { %445 = vadd.xlane.f32.xlu2 %v444_v55  ;;  %v498_v7 = vmul.f32 0.5, %v497_v60 }
 0x11b   : > { %v478_v51 = vmul.f32 0.5, %v477_v49  ;;  %v434_v54 = vpop.xlane.xlu1 %433  ;;  %v568_v15 = vmul.f32 %v2076_v6, %v555_v2 }
 0x11c   : > { %v451_v57 = vmul.f32 %v434_v54, %v1975_v24  ;;  %v499_v19 = vsub.f32 1.5, %v498_v7 }
 0x11d   : > { %v479_v61 = vsub.f32 1.5, %v478_v51 }
 0x11e   : > { %v1766_v62 = vpop.eup %1765  ;;  %v460_v63 = vadd.f32 1e-05, %v451_v57  ;;  %v500_v27 = vmul.f32 %v2056_v35, %v499_v19 }
 0x11f   : > { %v480_v0 = vmul.f32 %v1764_v39, %v479_v61  ;;  %v486_v1 = vmul.f32 %v1766_v62, %v458_v43  ;;  %v1768_v18 = vpop.eup %1767  ;;  %vm492_vm10 = vweird.f32 %v1766_v62 }
 0x120   : > { %1769 = vrsqrt.f32 %v460_v63  ;;  %vm493_vm13 = vmor %vm491_vm9, %vm492_vm10  ;;  %v516_v28 = vmul.f32 %v1768_v18, %v2066_v53  ;;  %v504_v31 = vsel %vm503_vm14, %v2056_v35, %v500_v27  ;;  %vm511_vm15 = vweird.f32 %v460_v63  ;;  %v440_v53 = vpop.xlane.xlu0 %439 }
 0x121   : > { %v484_v8 = vsel %vm483_vm8, %v1764_v39, %v480_v0  ;;  %v487_v12 = vmul.f32 %v1766_v62, %v486_v1  ;;  %v558_v36 = vmul.f32 %v504_v31, %v1991_v40  ;;  %vm522_vm4 = vweird.f32 %v1768_v18 }
 0x122   : > { %v556_v13 = vmul.f32 %v484_v8, %v1994_v41  ;;  %v1697_v41 = vld [vmem:[%s2407_s4 + $0x8] sm:$0xff]  ;;  %v517_v32 = vmul.f32 %v1768_v18, %v516_v28  ;;  %vm523_vm6 = vmor %vm521_vm3, %vm522_vm4  ;;  %v453_v58 = vmul.f32 %v440_v53, %v1975_v24  ;;  %vm807_vm3 = vcmask 68608  }
 0x123   : > { %v488_v14 = vmul.f32 0.5, %v487_v12  ;;  %678 = vmatpush.bf16.msrb.mxu0 %v1697_v41  ;;  %v571_v45 = vmul.f32 %v2076_v6, %v558_v36  ;;  %vm904_vm4 = vcmask 1043456  }
 0x124   : > { %v569_v17 = vmul.f32 %v2076_v6, %v556_v13  ;;  %v518_v39 = vmul.f32 0.5, %v517_v32  ;;  %v462_v60 = vadd.f32 1e-05, %v453_v58 }
 0x125   : > { %v489_v22 = vsub.f32 1.5, %v488_v14 }
 0x126   : > { %v1770_v29 = vpop.eup %1769  ;;  %v2081_v23 = vpack.c.bf16 %v569_v17, %v568_v15  ;;  %v519_v47 = vsub.f32 1.5, %v518_v39  ;;  %1771 = vrsqrt.f32 %v462_v60  ;;  %vm531_vm7 = vweird.f32 %v462_v60 }
 0x127   : > { %v490_v25 = vmul.f32 %v1766_v62, %v489_v22  ;;  %v506_v26 = vmul.f32 %v1770_v29, %v460_v63  ;;  %vm512_vm1 = vweird.f32 %v1770_v29 }
 0x128   : > { %1570 = vmatmul.msk.bf16.vlgmr.msra.gmra.mxu0 %vm357_vm0, %v2081_v23  ;;  %vm513_vm5 = vmor %vm511_vm15, %vm512_vm1  ;;  %v520_v40 = vmul.f32 %v1768_v18, %v519_v47  ;;  %vm782_vm1 = vcmask 72704  }
 0x129   : > { %v494_v30 = vsel %vm493_vm13, %v1766_v62, %v490_v25  ;;  %v507_v20 = vmul.f32 %v1770_v29, %v506_v26 }
 0x12a   : > { %v557_v33 = vmul.f32 %v494_v30, %v2006_v46  ;;  %v524_v49 = vsel %vm523_vm6, %v1768_v18, %v520_v40 }
 0x12b   : > { %v508_v34 = vmul.f32 0.5, %v507_v20  ;;  %v560_v51 = vmul.f32 %v524_v49, %v1997_v42  ;;  %v1696_v42 = vld [vmem:[%s2407_s4] sm:$0xff] }
 0x12c   : > { %v570_v43 = vmul.f32 %v2076_v6, %v557_v33  ;;  %v1772_v61 = vpop.eup %1771  ;;  %679 = vmatpush.bf16.msrb.mxu0 %v1696_v42  ;;  %v1577_v49 = vld [vmem:[%s327_s8] sm:$0xf] }
 0x12d   : > { %v509_v44 = vsub.f32 1.5, %v508_v34  ;;  %v573_v55 = vmul.f32 %v2076_v6, %v560_v51  ;;  %v526_v62 = vmul.f32 %v1772_v61, %v462_v60  ;;  %vm532_vm8 = vweird.f32 %v1772_v61 }
 0x12e   : > { %v2097_v48 = vpack.c.bf16 %v571_v45, %v570_v43  ;;  %vm533_vm9 = vmor %vm531_vm7, %vm532_vm8 }
 0x12f   : > { %v510_v35 = vmul.f32 %v1770_v29, %v509_v44  ;;  %v527_v0 = vmul.f32 %v1772_v61, %v526_v62 }
 0x131   : > { %v514_v46 = vsel %vm513_vm5, %v1770_v29, %v510_v35  ;;  %v528_v2 = vmul.f32 0.5, %v527_v0  ;;  %v1702_v35 = vld [vmem:[%s2406_s3 + $0x10] sm:$0xff]  ;;  %vm905_vm5 = vcmask 1044480  }
 0x132   : > { %v559_v50 = vmul.f32 %v514_v46, %v2026_v59 }
 0x133   : > { %v529_v7 = vsub.f32 1.5, %v528_v2 }
 0x134   : > { %v572_v54 = vmul.f32 %v2076_v6, %v559_v50 }
 0x135   : > { %v530_v17 = vmul.f32 %v1772_v61, %v529_v7 }
 0x136   : > { %v2106_v57 = vpack.c.bf16 %v573_v55, %v572_v54 }
 0x137   : > { %v534_v22 = vsel %vm533_vm9, %v1772_v61, %v530_v17 }
 0x138   : > { %1571 = vmatmul.msk.bf16.gmra.mxu0 %vm357_vm0, %v2097_v48  ;;  %v561_v41 = vmul.f32 %v534_v22, %v2020_v56 }
 0x13a   : > { %v574_v20 = vmul.f32 %v2076_v6, %v561_v41 }
 0x148   : > { %1572 = vmatmul.msk.bf16.gmra.mxu0 %vm357_vm0, %v2106_v57 }
 0x185   : > { %v443_v59 = vpop.xlane.xlu1 %442 }
 0x186   : > { %v454_v63 = vmul.f32 %v443_v59, %v1975_v24 }
 0x188   : > { %v463_v1 = vadd.f32 1e-05, %v454_v63 }
 0x18a   : > { %1773 = vrsqrt.f32 %v463_v1  ;;  %vm541_vm11 = vweird.f32 %v463_v1 }
 0x18d   : > { %v446_v8 = vpop.xlane.xlu2 %445 }
 0x18e   : > { %v455_v13 = vmul.f32 %v446_v8, %v1975_v24 }
 0x190   : > { %v1774_v12 = vpop.eup %1773  ;;  %v464_v15 = vadd.f32 1e-05, %v455_v13 }
 0x191   : > { %v536_v14 = vmul.f32 %v1774_v12, %v463_v1  ;;  %vm542_vm10 = vweird.f32 %v1774_v12 }
 0x192   : > { %1775 = vrsqrt.f32 %v464_v15  ;;  %vm543_vm12 = vmor %vm541_vm11, %vm542_vm10  ;;  %vm551_vm13 = vweird.f32 %v464_v15 }
 0x193   : > { %v537_v18 = vmul.f32 %v1774_v12, %v536_v14 }
 0x195   : > { %v538_v19 = vmul.f32 0.5, %v537_v18 }
 0x197   : > { %v539_v29 = vsub.f32 1.5, %v538_v19 }
 0x198   : > { %v1776_v26 = vpop.eup %1775 }
 0x199   : > { %v540_v25 = vmul.f32 %v1774_v12, %v539_v29  ;;  %v546_v24 = vmul.f32 %v1776_v26, %v464_v15  ;;  %vm552_vm14 = vweird.f32 %v1776_v26 }
 0x19a   : > { %vm553_vm15 = vmor %vm551_vm13, %vm552_vm14 }
 0x19b   : > { %v544_v27 = vsel %vm543_vm12, %v1774_v12, %v540_v25  ;;  %v547_v30 = vmul.f32 %v1776_v26, %v546_v24 }
 0x19c   : > { %v562_v28 = vmul.f32 %v544_v27, %v2048_v21  ;;  %v1703_v21 = vld [vmem:[%s2406_s3 + $0x18] sm:$0xff] }
 0x19d   : > { %v548_v32 = vmul.f32 0.5, %v547_v30  ;;  %1045 = vmatpush.bf16.msra.mxu0 %v1703_v21 }
 0x19e   : > { %v575_v31 = vmul.f32 %v2076_v6, %v562_v28 }
 0x19f   : > { %v549_v34 = vsub.f32 1.5, %v548_v32 }
 0x1a0   : > { %v580_v33 = vpack.c.bf16 %v575_v31, %v574_v20 }
 0x1a1   : > { %v550_v36 = vmul.f32 %v1776_v26, %v549_v34  ;;  %1046 = vmatpush.bf16.msra.mxu0 %v1702_v35 }
 0x1a2   : > { %1573 = vmatmul.msk.bf16.gmra.mxu0 %vm357_vm0, %v580_v33 }
 0x1a3   : > { %v554_v39 = vsel %vm553_vm15, %v1776_v26, %v550_v36 }
 0x1a4   : > { %v563_v43 = vmul.f32 %v554_v39, %v2059_v38  ;;  %v1693_v38 = vld [vmem:[%s327_s8] sm:$0x10] }
 0x1a5   : > { %v624_v56 = vpop.f32.mrf.mxu0  ;;  %v2134_v51 = vor.u32 %v1693_v38, %v1577_v49 }
 0x1a6   : > { %v576_v44 = vmul.f32 %v2076_v6, %v563_v43  ;;  %v1699_v43 = vld [vmem:[%s2408_s5 + $0x8] sm:$0xff] }
 0x1a7   : > { %708 = vmatpush.bf16.msra.mxu2 %v1699_v43 }
 0x1a8   : > { %v581_v40 = vpack.c.bf16 %v576_v44, %v576_v44 }
 0x1ad   : > { %v626_v45 = vpop.f32.mrf.mxu0 }
 0x1ae   : > { %v716_v47 = vpack.c.bf16 %v626_v45, %v624_v56  ;;  %v1698_v45 = vld [vmem:[%s2408_s5] sm:$0xff] }
 0x1af   : > { %709 = vmatpush.bf16.msra.mxu2 %v1698_v45 }
 0x1b2   : > { %1574 = vmatmul.msk.bf16.gmra.mxu0 %vm357_vm0, %v581_v40  ;;  %1596 = vmatmul.msk.bf16.vlgmr.msra.gmra.mxu2 %vm357_vm0, %v2134_v51 }
 0x1b5   : > { %v629_v46 = vpop.f32.mrf.mxu0 }
 0x1bd   : > { %v631_v50 = vpop.f32.mrf.mxu0 }
 0x1be   : > { %v717_v6 = vpack.c.bf16 %v631_v50, %v629_v46 }
 0x1c2   : > { %1587 = vmatmul.msk.bf16.vlgmr.msrb.gmra.mxu0 %vm357_vm0, %v2134_v51 }
 0x1c5   : > { %v634_v54 = vpop.f32.mrf.mxu0 }
 0x1cd   : > { %v636_v55 = vpop.f32.mrf.mxu0 }
 0x1ce   : > { %v718_v12 = vpack.c.bf16 %v636_v55, %v634_v54 }
 0x1d2   : > { %1632 = vmatmul.msk.bf16.vlgmr.msra.gmra.mxu0 %vm357_vm0, %v2081_v23 }
 0x1e2   : > { %1633 = vmatmul.msk.bf16.gmra.mxu0 %vm357_vm0, %v2097_v48 }
 0x1f2   : > { %1634 = vmatmul.msk.bf16.gmra.mxu0 %vm357_vm0, %v2106_v57 }
 0x202   : > { %1635 = vmatmul.msk.bf16.gmra.mxu0 %vm357_vm0, %v580_v33 }
 0x212   : > { %1636 = vmatmul.msk.bf16.gmra.mxu0 %vm357_vm0, %v581_v40 }
 0x21f   : > { %v639_v53 = vpop.f32.mrf.mxu0 }
 0x227   : > { %v641_v58 = vpop.f32.mrf.mxu0 }
 0x228   : > { %v719_v60 = vpack.c.bf16 %v641_v58, %v639_v53 }
 0x22f   : > { %v644_v61 = vpop.f32.mrf.mxu0 }
 0x230   : > { %v720_v22 = vpack.c.bf16 %v644_v61, %v644_v61 }
 0x237   : > { %v646_v62 = vpop.f32.mrf.mxu0 }
 0x23f   : > { %v681_v42 = vpop.f32.mrf.mxu0 }
 0x247   : > { %v683_v59 = vpop.f32.mrf.mxu0 }
 0x248   : > { %v721_v23 = vpack.c.bf16 %v683_v59, %v681_v42 }
 0x24a   : > { %v738_v63 = vsel %vm357_vm0, %v721_v23, 0 }
 0x24b   : > { %747 = vmatpush.bf16.xpose.msra.mxu3 %v738_v63 }
 0x24f   : > { %v2147_v48 = vpop.f32.mrf.mxu0 }
 0x252   : > { %1597 = vmatmul.msk.bf16.vlgmr.msra.gmra.mxu3 %vm357_vm0, %v716_v47 }
 0x257   : > { %v2150_v57 = vpop.f32.mrf.mxu0 }
 0x258   : > { %v1134_v0 = vpack.c.bf16 %v2150_v57, %v2147_v48 }
 0x25f   : > { %v2154_v1 = vpop.f32.mrf.mxu0 }
 0x262   : > { %1598 = vmatmul.msk.bf16.gmra.mxu3 %vm357_vm0, %v717_v6 }
 0x267   : > { %v2157_v2 = vpop.f32.mrf.mxu0 }
 0x268   : > { %v1135_v7 = vpack.c.bf16 %v2157_v2, %v2154_v1 }
 0x26f   : > { %v2161_v8 = vpop.f32.mrf.mxu0 }
 0x272   : > { %1599 = vmatmul.msk.bf16.gmra.mxu3 %vm357_vm0, %v718_v12 }
 0x277   : > { %v2164_v13 = vpop.f32.mrf.mxu0 }
 0x278   : > { %v1136_v14 = vpack.c.bf16 %v2164_v13, %v2161_v8 }
 0x27f   : > { %v2168_v15 = vpop.f32.mrf.mxu0 }
 0x282   : > { %1600 = vmatmul.msk.bf16.gmra.mxu3 %vm357_vm0, %v719_v60 }
 0x287   : > { %v2171_v17 = vpop.f32.mrf.mxu0 }
 0x288   : > { %v1137_v18 = vpack.c.bf16 %v2171_v17, %v2168_v15 }
 0x28f   : > { %v2175_v19 = vpop.f32.mrf.mxu0 }
 0x290   : > { %v1138_v57 = vpack.c.bf16 %v2175_v19, %v2175_v19 }
 0x292   : > { %1601 = vmatmul.msk.bf16.gmra.mxu3 %vm357_vm0, %v720_v22 }
 0x297   : > { %v1070_v29 = vpop.f32.mrf.mxu0 }
 0x2d5   : > { %v749_v25 = vpop.f32.mrf.mxu3 }
 0x2d6   : > { %v773_v26 = vmul.f32 0.17677669, %v749_v25 }
 0x2d8   : > { %v783_v41 = vsel %vm782_vm1, %v773_v26, -inf }
 0x2d9   : > { %784 = vmax.xlane.f32.xlu0 %v783_v41 }
 0x2dd   : > { %v751_v27 = vpop.f32.mrf.mxu3 }
 0x2de   : > { %v774_v24 = vmul.f32 0.17677669, %v751_v27 }
 0x2e0   : > { %v786_v28 = vsel %vm782_vm1, %v774_v24, -inf }
 0x2e1   : > { %787 = vmax.xlane.f32.xlu1 %v786_v28 }
 0x2e5   : > { %v754_v30 = vpop.f32.mrf.mxu3 }
 0x2e6   : > { %v775_v20 = vmul.f32 0.17677669, %v754_v30 }
 0x2e8   : > { %v789_v31 = vsel %vm782_vm1, %v775_v20, -inf }
 0x2e9   : > { %790 = vmax.xlane.f32.xlu2 %v789_v31 }
 0x2ed   : > { %v756_v32 = vpop.f32.mrf.mxu3 }
 0x2ee   : > { %v776_v33 = vmul.f32 0.17677669, %v756_v32 }
 0x2f0   : > { %v792_v34 = vsel %vm782_vm1, %v776_v33, -inf }
 0x2f1   : > { %793 = vmax.xlane.f32.xlu0 %v792_v34 }
 0x2f5   : > { %v759_v36 = vpop.f32.mrf.mxu3 }
 0x2f6   : > { %v777_v56 = vmul.f32 0.17677669, %v759_v36 }
 0x2f8   : > { %v795_v39 = vsel %vm782_vm1, %v777_v56, -inf }
 0x2f9   : > { %796 = vmax.xlane.f32.xlu1 %v795_v39 }
 0x2fd   : > { %v761_v21 = vpop.f32.mrf.mxu3 }
 0x2fe   : > { %v778_v44 = vmul.f32 0.17677669, %v761_v21 }
 0x300   : > { %v798_v47 = vsel %vm782_vm1, %v778_v44, -inf }
 0x301   : > { %799 = vmax.xlane.f32.xlu2 %v798_v47 }
 0x305   : > { %v764_v35 = vpop.f32.mrf.mxu3 }
 0x306   : > { %v779_v40 = vmul.f32 0.17677669, %v764_v35 }
 0x308   : > { %v801_v46 = vsel %vm782_vm1, %v779_v40, -inf }
 0x309   : > { %802 = vmax.xlane.f32.xlu0 %v801_v46 }
 0x30d   : > { %v766_v49 = vpop.f32.mrf.mxu3 }
 0x30e   : > { %v780_v38 = vmul.f32 0.17677669, %v766_v49 }
 0x310   : > { %v804_v50 = vsel %vm782_vm1, %v780_v38, -inf }
 0x311   : > { %805 = vmax.xlane.f32.xlu1 %v804_v50 }
 0x315   : > { %v769_v6 = vpop.f32.mrf.mxu3 }
 0x316   : > { %v2202_v25 = vmul.f32 0.17677669, %v769_v6 }
 0x318   : > { %v808_v30 = vsel %vm807_vm3, %v2202_v25, -inf }
 0x31d   : > { %v771_v54 = vpop.f32.mrf.mxu3 }
 0x34c   : > { %v785_v55 = vpop.xlane.xlu0 %784 }
 0x34d   : > { %v811_v53 = vsub.f32 %v773_v26, %v785_v55 }
 0x34f   : > { %v820_v58 = vmul.f32 1.442695, %v811_v53 }
 0x351   : > { %1777 = vpow2.f32 %v820_v58  ;;  %v711_v58 = vpop.f32.mrf.mxu2 }
 0x354   : > { %v788_v60 = vpop.xlane.xlu1 %787 }
 0x355   : > { %v812_v61 = vsub.f32 %v774_v24, %v788_v60 }
 0x357   : > { %v2194_v62 = vpop.eup %1777  ;;  %v822_v42 = vmul.f32 1.442695, %v812_v61 }
 0x358   : > { %v838_v59 = vsel %vm782_vm1, %v2194_v62, 0.0 }
 0x359   : > { %1779 = vpow2.f32 %v822_v42  ;;  %839 = vadd.xlane.f32.xlu2 %v838_v59  ;;  %v713_v60 = vpop.f32.mrf.mxu2  ;;  %v1874_v42 = vmov 65535  }
 0x35a   : > { %v888_v61 = vpack.c.bf16 %v713_v60, %v711_v58  ;;  %v906_v59 = vsel %vm904_vm4, 4294967295, %v1874_v42 }
 0x35c   : > { %v791_v23 = vpop.xlane.xlu2 %790 }
 0x35d   : > { %v813_v63 = vsub.f32 %v775_v20, %v791_v23 }
 0x35f   : > { %v2198_v12 = vpop.eup %1779  ;;  %v824_v22 = vmul.f32 1.442695, %v813_v63 }
 0x360   : > { %v841_v29 = vsel %vm782_vm1, %v2198_v12, 0.0 }
 0x361   : > { %1781 = vpow2.f32 %v824_v22  ;;  %842 = vadd.xlane.f32.xlu0 %v841_v29 }
 0x364   : > { %v794_v26 = vpop.xlane.xlu0 %793 }
 0x365   : > { %v814_v41 = vsub.f32 %v776_v33, %v794_v26 }
 0x367   : > { %v2204_v27 = vpop.eup %1781  ;;  %v826_v24 = vmul.f32 1.442695, %v814_v41 }
 0x368   : > { %v844_v28 = vsel %vm782_vm1, %v2204_v27, 0.0 }
 0x369   : > { %1783 = vpow2.f32 %v826_v24  ;;  %845 = vadd.xlane.f32.xlu1 %v844_v28  ;;  %809 = vmax.xlane.f32.xlu0 %v808_v30 }
 0x36c   : > { %v797_v20 = vpop.xlane.xlu1 %796 }
 0x36d   : > { %v815_v31 = vsub.f32 %v777_v56, %v797_v20 }
 0x36f   : > { %v2210_v32 = vpop.eup %1783  ;;  %v828_v34 = vmul.f32 1.442695, %v815_v31 }
 0x370   : > { %v847_v33 = vsel %vm782_vm1, %v2210_v32, 0.0 }
 0x371   : > { %1785 = vpow2.f32 %v828_v34  ;;  %848 = vadd.xlane.f32.xlu2 %v847_v33 }
 0x374   : > { %v800_v36 = vpop.xlane.xlu2 %799 }
 0x375   : > { %v816_v39 = vsub.f32 %v778_v44, %v800_v36  ;;  %v1705_v36 = vld [vmem:[%s2407_s4 + $0x18] sm:$0xff] }
 0x376   : > { %1095 = vmatpush.bf16.msrb.mxu3 %v1705_v36 }
 0x377   : > { %v2214_v21 = vpop.eup %1785  ;;  %v830_v43 = vmul.f32 1.442695, %v816_v39 }
 0x378   : > { %v850_v45 = vsel %vm782_vm1, %v2214_v21, 0.0 }
 0x379   : > { %1787 = vpow2.f32 %v830_v43  ;;  %851 = vadd.xlane.f32.xlu1 %v850_v45 }
 0x37c   : > { %v803_v47 = vpop.xlane.xlu0 %802 }
 0x37d   : > { %v817_v56 = vsub.f32 %v779_v40, %v803_v47 }
 0x37f   : > { %v2218_v35 = vpop.eup %1787  ;;  %v832_v46 = vmul.f32 1.442695, %v817_v56 }
 0x380   : > { %v853_v49 = vsel %vm782_vm1, %v2218_v35, 0.0 }
 0x381   : > { %1789 = vpow2.f32 %v832_v46  ;;  %854 = vadd.xlane.f32.xlu2 %v853_v49 }
 0x384   : > { %v806_v50 = vpop.xlane.xlu1 %805 }
 0x385   : > { %v818_v44 = vsub.f32 %v780_v38, %v806_v50  ;;  %v2227_v38 = vsel %vm905_vm5, %v906_v59, 0 }
 0x386   : > { %v909_v23 = vand.u32 %v2227_v38, %v888_v61 }
 0x387   : > { %v2222_v6 = vpop.eup %1789  ;;  %v834_v54 = vmul.f32 1.442695, %v818_v44 }
 0x388   : > { %v856_v55 = vsel %vm782_vm1, %v2222_v6, 0.0  ;;  %918 = vmatpush.bf16.msra.mxu1 %v909_v23 }
 0x389   : > { %1791 = vpow2.f32 %v834_v54  ;;  %857 = vadd.xlane.f32.xlu0 %v856_v55 }
 0x38f   : > { %v1792_v53 = vpop.eup %1791 }
 0x390   : > { %v859_v40 = vsel %vm782_vm1, %v1792_v53, 0.0 }
 0x391   : > { %860 = vadd.xlane.f32.xlu1 %v859_v40 }
 0x3cc   : > { %v840_v63 = vpop.xlane.xlu2 %839 }
 0x3cd   : > { %1793 = vrcp.f32 %v840_v63 }
 0x3d3   : > { %v1794_v29 = vpop.eup %1793 }
 0x3d4   : > { %v843_v22 = vpop.xlane.xlu0 %842  ;;  %v874_v24 = vmul.f32 %v1794_v29, %v2194_v62  ;;  %v1704_v62 = vld [vmem:[%s2407_s4 + $0x10] sm:$0xff] }
 0x3d5   : > { %1795 = vrcp.f32 %v843_v22  ;;  %1096 = vmatpush.bf16.msrb.mxu3 %v1704_v62 }
 0x3d8   : > { %1649 = vmatmul.msk.bf16.vlgmr.msrb.gmra.mxu3 %vm357_vm0, %v2134_v51 }
 0x3db   : > { %v1796_v26 = vpop.eup %1795 }
 0x3dc   : > { %v810_v41 = vpop.xlane.xlu0 %809  ;;  %v875_v28 = vmul.f32 %v1796_v26, %v2198_v12  ;;  %v846_v34 = vpop.xlane.xlu1 %845 }
 0x3dd   : > { %v819_v30 = vsub.f32 %v2202_v25, %v810_v41 }
 0x3de   : > { %v883_v20 = vpack.c.bf16 %v875_v28, %v874_v24 }
 0x3df   : > { %v836_v31 = vmul.f32 1.442695, %v819_v30 }
 0x3e0   : > { %1602 = vmatmul.msk.bf16.vlgmr.msra.gmra.mxu1 %vm782_vm1, %v883_v20 }
 0x3e1   : > { %1797 = vpow2.f32 %v836_v31 }
 0x3e2   : > { %1799 = vrcp.f32 %v846_v34 }
 0x3e4   : > { %v849_v33 = vpop.xlane.xlu2 %848 }
 0x3e5   : > { %1801 = vrcp.f32 %v849_v33 }
 0x3e7   : > { %v1798_v39 = vpop.eup %1797 }
 0x3e8   : > { %v862_v12 = vsel %vm807_vm3, %v1798_v39, 0.0  ;;  %v1800_v25 = vpop.eup %1799 }
 0x3e9   : > { %863 = vadd.xlane.f32.xlu2 %v862_v12  ;;  %v876_v45 = vmul.f32 %v1800_v25, %v2204_v27 }
 0x3eb   : > { %v1802_v43 = vpop.eup %1801 }
 0x3ec   : > { %v877_v47 = vmul.f32 %v1802_v43, %v2210_v32  ;;  %v852_v46 = vpop.xlane.xlu1 %851 }
 0x3ed   : > { %1803 = vrcp.f32 %v852_v46 }
 0x3ee   : > { %v884_v56 = vpack.c.bf16 %v877_v47, %v876_v45 }
 0x3f0   : > { %1603 = vmatmul.msk.bf16.gmra.mxu1 %vm782_vm1, %v884_v56 }
 0x3f3   : > { %v1804_v50 = vpop.eup %1803 }
 0x3f4   : > { %v855_v49 = vpop.xlane.xlu2 %854  ;;  %v878_v54 = vmul.f32 %v1804_v50, %v2214_v21  ;;  %v1701_v21 = vld [vmem:[%s2409_s6 + $0x8] sm:$0xff] }
 0x3f5   : > { %1805 = vrcp.f32 %v855_v49  ;;  %986 = vmatpush.bf16.msrb.mxu2 %v1701_v21 }
 0x3fb   : > { %v1806_v44 = vpop.eup %1805 }
 0x3fc   : > { %v879_v55 = vmul.f32 %v1806_v44, %v2218_v35  ;;  %v858_v27 = vpop.xlane.xlu0 %857  ;;  %v1700_v35 = vld [vmem:[%s2409_s6] sm:$0xff] }
 0x3fd   : > { %1807 = vrcp.f32 %v858_v27  ;;  %987 = vmatpush.bf16.msrb.mxu2 %v1700_v35 }
 0x3fe   : > { %v885_v40 = vpack.c.bf16 %v879_v55, %v878_v54 }
 0x400   : > { %1604 = vmatmul.msk.bf16.gmra.mxu1 %vm782_vm1, %v885_v40 }
 0x403   : > { %v1808_v58 = vpop.eup %1807 }
 0x404   : > { %v861_v32 = vpop.xlane.xlu1 %860  ;;  %v880_v61 = vmul.f32 %v1808_v58, %v2222_v6 }
 0x405   : > { %1809 = vrcp.f32 %v861_v32 }
 0x40b   : > { %v1810_v60 = vpop.eup %1809 }
 0x40c   : > { %v881_v42 = vmul.f32 %v1810_v60, %v1792_v53 }
 0x40e   : > { %v886_v59 = vpack.c.bf16 %v881_v42, %v880_v61 }
 0x410   : > { %1605 = vmatmul.msk.bf16.gmra.mxu1 %vm782_vm1, %v886_v59  ;;  %v1707_v59 = vld [vmem:[%s2408_s5 + $0x18] sm:$0xff] }
 0x411   : > { %1126 = vmatpush.bf16.msrb.mxu1 %v1707_v59 }
 0x45b   : > { %v1098_v24 = vpop.f32.mrf.mxu3 }
 0x45c   : > { %v864_v23 = vpop.xlane.xlu2 %863 }
 0x45d   : > { %1811 = vrcp.f32 %v864_v23  ;;  %v920_v63 = vpop.f32.mrf.mxu1 }
 0x463   : > { %v1812_v22 = vpop.eup %1811  ;;  %v1100_v20 = vpop.f32.mrf.mxu3 }
 0x464   : > { %v882_v29 = vmul.f32 %v1812_v22, %v1798_v39  ;;  %v1139_v31 = vpack.c.bf16 %v1100_v20, %v1098_v24  ;;  %v1706_v24 = vld [vmem:[%s2408_s5 + $0x10] sm:$0xff] }
 0x465   : > { %v922_v6 = vpop.f32.mrf.mxu1  ;;  %1127 = vmatpush.bf16.msrb.mxu1 %v1706_v24 }
 0x466   : > { %v944_v53 = vpack.c.bf16 %v922_v6, %v920_v63  ;;  %v887_v26 = vpack.c.bf16 %v882_v29, %v882_v29  ;;  %v1156_v34 = vsel %vm357_vm0, %v1139_v31, 0 }
 0x467   : > { %1165 = vmatpush.bf16.xpose.msra.mxu2 %v1156_v34 }
 0x468   : > { %1606 = vmatmul.msk.bf16.gmra.mxu1 %vm782_vm1, %v887_v26  ;;  %1615 = vmatmul.msk.bf16.vlgmr.msrb.gmra.mxu2 %vm357_vm0, %v944_v53 }
 0x46d   : > { %v925_v41 = vpop.f32.mrf.mxu1 }
 0x475   : > { %v927_v28 = vpop.f32.mrf.mxu1 }
 0x476   : > { %v945_v30 = vpack.c.bf16 %v927_v28, %v925_v41 }
 0x478   : > { %1616 = vmatmul.msk.bf16.gmra.mxu2 %vm357_vm0, %v945_v30  ;;  %1662 = vmatmul.msk.bf16.vlgmr.msrb.gmra.mxu1 %vm357_vm0, %v2134_v51 }
 0x47d   : > { %v930_v33 = vpop.f32.mrf.mxu1 }
 0x485   : > { %v932_v36 = vpop.f32.mrf.mxu1 }
 0x486   : > { %v946_v39 = vpack.c.bf16 %v932_v36, %v930_v33 }
 0x488   : > { %1617 = vmatmul.msk.bf16.gmra.mxu2 %vm357_vm0, %v946_v39 }
 0x48d   : > { %v935_v62 = vpop.f32.mrf.mxu1 }
 0x495   : > { %v937_v12 = vpop.f32.mrf.mxu1 }
 0x496   : > { %v947_v25 = vpack.c.bf16 %v937_v12, %v935_v62 }
 0x498   : > { %1618 = vmatmul.msk.bf16.gmra.mxu2 %vm357_vm0, %v947_v25 }
 0x4e5   : > { %v940_v43 = vpop.f32.mrf.mxu1 }
 0x4e6   : > { %v948_v45 = vpack.c.bf16 %v940_v43, %v940_v43 }
 0x4e8   : > { %1619 = vmatmul.msk.bf16.gmra.mxu2 %vm357_vm0, %v948_v45 }
 0x4eb   : > { %v2276_v56 = vpop.f32.mrf.mxu2 }
 0x4ed   : > { %v942_v47 = vpop.f32.mrf.mxu1 }
 0x4f3   : > { %v2278_v46 = vpop.f32.mrf.mxu2 }
 0x4f5   : > { %v1129_v24 = vpop.f32.mrf.mxu1 }
 0x4f8   : > { %1663 = vmatmul.msk.bf16.vlgmr.msra.gmra.mxu2 %vm357_vm0, %v1134_v0 }
 0x4fb   : > { %v2284_v48 = vpop.f32.mrf.mxu2 }
 0x503   : > { %v2289_v0 = vpop.f32.mrf.mxu2 }
 0x508   : > { %1664 = vmatmul.msk.bf16.gmra.mxu2 %vm357_vm0, %v1135_v7 }
 0x50b   : > { %v2291_v1 = vpop.f32.mrf.mxu2 }
 0x513   : > { %v2293_v2 = vpop.f32.mrf.mxu2 }
 0x518   : > { %1665 = vmatmul.msk.bf16.gmra.mxu2 %vm357_vm0, %v1136_v14 }
 0x51b   : > { %v2295_v7 = vpop.f32.mrf.mxu2 }
 0x523   : > { %v2297_v8 = vpop.f32.mrf.mxu2 }
 0x528   : > { %1666 = vmatmul.msk.bf16.gmra.mxu2 %vm357_vm0, %v1137_v18 }
 0x538   : > { %1667 = vmatmul.msk.bf16.gmra.mxu2 %vm357_vm0, %v1138_v57 }
 0x56b   : > { %v2299_v13 = vpop.f32.mrf.mxu2 }
 0x573   : > { %v1011_v14 = vpop.f32.mrf.mxu2 }
 0x57b   : > { %v1167_v15 = vpop.f32.mrf.mxu2 }
 0x57c   : > { %v1191_v17 = vmul.f32 0.17677669, %v1167_v15 }
 0x57e   : > { %v1200_v18 = vsel %vm782_vm1, %v1191_v17, -inf }
 0x57f   : > { %1201 = vmax.xlane.f32.xlu0 %v1200_v18 }
 0x583   : > { %v1169_v19 = vpop.f32.mrf.mxu2 }
 0x584   : > { %v1192_v49 = vmul.f32 0.17677669, %v1169_v19 }
 0x586   : > { %v1203_v50 = vsel %vm782_vm1, %v1192_v49, -inf }
 0x587   : > { %1204 = vmax.xlane.f32.xlu1 %v1203_v50 }
 0x58b   : > { %v1172_v44 = vpop.f32.mrf.mxu2 }
 0x58c   : > { %v1193_v54 = vmul.f32 0.17677669, %v1172_v44 }
 0x58e   : > { %v1206_v55 = vsel %vm782_vm1, %v1193_v54, -inf }
 0x58f   : > { %1207 = vmax.xlane.f32.xlu2 %v1206_v55 }
 0x593   : > { %v1174_v40 = vpop.f32.mrf.mxu2 }
 0x594   : > { %v1194_v27 = vmul.f32 0.17677669, %v1174_v40 }
 0x596   : > { %v1209_v32 = vsel %vm782_vm1, %v1194_v27, -inf }
 0x597   : > { %1210 = vmax.xlane.f32.xlu0 %v1209_v32 }
 0x59b   : > { %v1177_v58 = vpop.f32.mrf.mxu2 }
 0x59c   : > { %v1195_v60 = vmul.f32 0.17677669, %v1177_v58 }
 0x59e   : > { %v1212_v61 = vsel %vm782_vm1, %v1195_v60, -inf }
 0x59f   : > { %1213 = vmax.xlane.f32.xlu1 %v1212_v61 }
 0x5a3   : > { %v1179_v42 = vpop.f32.mrf.mxu2 }
 0x5a4   : > { %v1196_v21 = vmul.f32 0.17677669, %v1179_v42 }
 0x5a6   : > { %v1215_v35 = vsel %vm782_vm1, %v1196_v21, -inf }
 0x5a7   : > { %1216 = vmax.xlane.f32.xlu2 %v1215_v35 }
 0x5ab   : > { %v1182_v23 = vpop.f32.mrf.mxu2 }
 0x5ac   : > { %v1197_v63 = vmul.f32 0.17677669, %v1182_v23 }
 0x5ae   : > { %v1218_v22 = vsel %vm782_vm1, %v1197_v63, -inf }
 0x5af   : > { %1219 = vmax.xlane.f32.xlu0 %v1218_v22 }
 0x5b3   : > { %v1184_v29 = vpop.f32.mrf.mxu2 }
 0x5b4   : > { %v1198_v6 = vmul.f32 0.17677669, %v1184_v29 }
 0x5b6   : > { %v1221_v53 = vsel %vm782_vm1, %v1198_v6, -inf }
 0x5b7   : > { %1222 = vmax.xlane.f32.xlu1 %v1221_v53 }
 0x5bb   : > { %v1187_v26 = vpop.f32.mrf.mxu2 }
 0x5bc   : > { %v1199_v45 = vmul.f32 0.17677669, %v1187_v26 }
 0x5be   : > { %v1224_v18 = vsel %vm807_vm3, %v1199_v45, -inf }
 0x5c3   : > { %v1189_v41 = vpop.f32.mrf.mxu2 }
 0x5f2   : > { %v1202_v28 = vpop.xlane.xlu0 %1201 }
 0x5f3   : > { %v1227_v30 = vsub.f32 %v1191_v17, %v1202_v28 }
 0x5f5   : > { %v1236_v20 = vmul.f32 1.442695, %v1227_v30 }
 0x5f7   : > { %1813 = vpow2.f32 %v1236_v20 }
 0x5fa   : > { %v1205_v31 = vpop.xlane.xlu1 %1204 }
 0x5fb   : > { %v1228_v34 = vsub.f32 %v1192_v49, %v1205_v31 }
 0x5fd   : > { %v2317_v33 = vpop.eup %1813  ;;  %v1238_v36 = vmul.f32 1.442695, %v1228_v34 }
 0x5fe   : > { %v1254_v39 = vsel %vm782_vm1, %v2317_v33, 0.0 }
 0x5ff   : > { %1815 = vpow2.f32 %v1238_v36  ;;  %1255 = vadd.xlane.f32.xlu2 %v1254_v39 }
 0x602   : > { %v1208_v62 = vpop.xlane.xlu2 %1207 }
 0x603   : > { %v1229_v12 = vsub.f32 %v1193_v54, %v1208_v62 }
 0x605   : > { %v1816_v25 = vpop.eup %1815  ;;  %v1240_v43 = vmul.f32 1.442695, %v1229_v12 }
 0x606   : > { %v1257_v51 = vsel %vm782_vm1, %v1816_v25, 0.0 }
 0x607   : > { %1817 = vpow2.f32 %v1240_v43  ;;  %1258 = vadd.xlane.f32.xlu0 %v1257_v51 }
 0x60a   : > { %v1211_v47 = vpop.xlane.xlu0 %1210 }
 0x60b   : > { %v1230_v57 = vsub.f32 %v1194_v27, %v1211_v47 }
 0x60d   : > { %v2322_v14 = vpop.eup %1817  ;;  %v1242_v15 = vmul.f32 1.442695, %v1230_v57 }
 0x60e   : > { %v1260_v17 = vsel %vm782_vm1, %v2322_v14, 0.0 }
 0x60f   : > { %1819 = vpow2.f32 %v1242_v15  ;;  %1261 = vadd.xlane.f32.xlu1 %v1260_v17  ;;  %1225 = vmax.xlane.f32.xlu0 %v1224_v18 }
 0x612   : > { %v1214_v19 = vpop.xlane.xlu1 %1213 }
 0x613   : > { %v1231_v49 = vsub.f32 %v1195_v60, %v1214_v19 }
 0x615   : > { %v1820_v50 = vpop.eup %1819  ;;  %v1244_v44 = vmul.f32 1.442695, %v1231_v49 }
 0x616   : > { %v1263_v54 = vsel %vm782_vm1, %v1820_v50, 0.0 }
 0x617   : > { %1821 = vpow2.f32 %v1244_v44  ;;  %1264 = vadd.xlane.f32.xlu2 %v1263_v54 }
 0x61a   : > { %v1217_v55 = vpop.xlane.xlu2 %1216 }
 0x61b   : > { %v1232_v40 = vsub.f32 %v1196_v21, %v1217_v55 }
 0x61d   : > { %v1822_v27 = vpop.eup %1821  ;;  %v1246_v32 = vmul.f32 1.442695, %v1232_v40 }
 0x61e   : > { %v1266_v58 = vsel %vm782_vm1, %v1822_v27, 0.0 }
 0x61f   : > { %1823 = vpow2.f32 %v1246_v32  ;;  %1267 = vadd.xlane.f32.xlu1 %v1266_v58 }
 0x622   : > { %v1220_v61 = vpop.xlane.xlu0 %1219 }
 0x623   : > { %v1233_v42 = vsub.f32 %v1197_v63, %v1220_v61  ;;  %v1131_v63 = vpop.f32.mrf.mxu1 }
 0x624   : > { %v1304_v28 = vpack.c.bf16 %v1131_v63, %v1129_v24 }
 0x625   : > { %v1824_v59 = vpop.eup %1823  ;;  %v1248_v35 = vmul.f32 1.442695, %v1233_v42 }
 0x626   : > { %v1269_v60 = vsel %vm782_vm1, %v1824_v59, 0.0  ;;  %v1321_v30 = vand.u32 %v1304_v28, %v2227_v38 }
 0x627   : > { %1825 = vpow2.f32 %v1248_v35  ;;  %1270 = vadd.xlane.f32.xlu2 %v1269_v60 }
 0x628   : > { %1330 = vmatpush.bf16.msra.mxu3 %v1321_v30 }
 0x62a   : > { %v1223_v23 = vpop.xlane.xlu1 %1222 }
 0x62b   : > { %v1234_v22 = vsub.f32 %v1198_v6, %v1223_v23  ;;  %v1709_v23 = vld [vmem:[%s2409_s6 + $0x18] sm:$0xff] }
 0x62c   : > { %1399 = vmatpush.bf16.msra.mxu1 %v1709_v23 }
 0x62d   : > { %v1826_v29 = vpop.eup %1825  ;;  %v1250_v53 = vmul.f32 1.442695, %v1234_v22 }
 0x62e   : > { %v1272_v21 = vsel %vm782_vm1, %v1826_v29, 0.0 }
 0x62f   : > { %1827 = vpow2.f32 %v1250_v53  ;;  %1273 = vadd.xlane.f32.xlu0 %v1272_v21 }
 0x635   : > { %v1828_v26 = vpop.eup %1827 }
 0x636   : > { %v1275_v41 = vsel %vm782_vm1, %v1828_v26, 0.0 }
 0x637   : > { %1276 = vadd.xlane.f32.xlu1 %v1275_v41 }
 0x672   : > { %v1256_v20 = vpop.xlane.xlu2 %1255 }
 0x673   : > { %1829 = vrcp.f32 %v1256_v20 }
 0x679   : > { %v1830_v6 = vpop.eup %1829 }
 0x67a   : > { %v1259_v31 = vpop.xlane.xlu0 %1258  ;;  %v1290_v36 = vmul.f32 %v1830_v6, %v2317_v33 }
 0x67b   : > { %1831 = vrcp.f32 %v1259_v31 }
 0x681   : > { %v1832_v34 = vpop.eup %1831 }
 0x682   : > { %v1291_v39 = vmul.f32 %v1832_v34, %v1816_v25  ;;  %v1226_v62 = vpop.xlane.xlu0 %1225  ;;  %v1262_v47 = vpop.xlane.xlu1 %1261 }
 0x683   : > { %v1235_v12 = vsub.f32 %v1199_v45, %v1226_v62 }
 0x684   : > { %v1299_v43 = vpack.c.bf16 %v1291_v39, %v1290_v36  ;;  %v1013_v39 = vadd.f32 %v1948_v4, %v2276_v56  ;;  %v1014_v4 = vadd.f32 %v1960_v10, %v2278_v46 }
 0x685   : > { %v1252_v51 = vmul.f32 1.442695, %v1235_v12 }
 0x686   : > { %1668 = vmatmul.msk.bf16.vlgmr.msra.gmra.mxu3 %vm782_vm1, %v1299_v43 }
 0x687   : > { %1833 = vpow2.f32 %v1252_v51 }
 0x688   : > { %1835 = vrcp.f32 %v1262_v47 }
 0x68a   : > { %v1265_v38 = vpop.xlane.xlu2 %1264 }
 0x68b   : > { %1837 = vrcp.f32 %v1265_v38 }
 0x68d   : > { %v1834_v57 = vpop.eup %1833 }
 0x68e   : > { %v1278_v15 = vsel %vm807_vm3, %v1834_v57, 0.0  ;;  %v1836_v17 = vpop.eup %1835 }
 0x68f   : > { %1279 = vadd.xlane.f32.xlu2 %v1278_v15  ;;  %v1292_v33 = vmul.f32 %v1836_v17, %v2322_v14  ;;  %v1015_v17 = vadd.f32 %v1946_v3, %v2284_v48 }
 0x691   : > { %v1838_v18 = vpop.eup %1837 }
 0x692   : > { %v1293_v25 = vmul.f32 %v1838_v18, %v1820_v50  ;;  %v1268_v45 = vpop.xlane.xlu1 %1267 }
 0x693   : > { %1839 = vrcp.f32 %v1268_v45 }
 0x694   : > { %v1300_v19 = vpack.c.bf16 %v1293_v25, %v1292_v33 }
 0x696   : > { %1669 = vmatmul.msk.bf16.gmra.mxu3 %vm782_vm1, %v1300_v19  ;;  %v1016_v19 = vadd.f32 %v1958_v9, %v2289_v0 }
 0x699   : > { %v1840_v44 = vpop.eup %1839 }
 0x69a   : > { %v1271_v49 = vpop.xlane.xlu2 %1270  ;;  %v1294_v55 = vmul.f32 %v1840_v44, %v1822_v27  ;;  %v1708_v27 = vld [vmem:[%s2409_s6 + $0x10] sm:$0xff] }
 0x69b   : > { %1841 = vrcp.f32 %v1271_v49  ;;  %1400 = vmatpush.bf16.msra.mxu1 %v1708_v27  ;;  %v1017_v49 = vadd.f32 %v1950_v5, %v2291_v1 }
 0x6a1   : > { %v1842_v54 = vpop.eup %1841 }
 0x6a2   : > { %v1295_v40 = vmul.f32 %v1842_v54, %v1824_v59  ;;  %v1274_v58 = vpop.xlane.xlu0 %1273  ;;  %v1018_v54 = vadd.f32 %v1962_v11, %v2293_v2  ;;  %v1021_v2 = vadd.f32 %v2299_v13, %v2013_v52 }
 0x6a3   : > { %1843 = vrcp.f32 %v1274_v58  ;;  %v1020_v58 = vadd.f32 %v1986_v37, %v2297_v8 }
 0x6a4   : > { %v1301_v32 = vpack.c.bf16 %v1295_v40, %v1294_v55  ;;  %v1019_v40 = vadd.f32 %v1971_v16, %v2295_v7 }
 0x6a6   : > { %1670 = vmatmul.msk.bf16.gmra.mxu3 %vm782_vm1, %v1301_v32 }
 0x6a9   : > { %v1844_v14 = vpop.eup %1843 }
 0x6aa   : > { %v1277_v61 = vpop.xlane.xlu1 %1276  ;;  %v1296_v42 = vmul.f32 %v1844_v14, %v1826_v29 }
 0x6ab   : > { %1845 = vrcp.f32 %v1277_v61 }
 0x6b1   : > { %v1846_v50 = vpop.eup %1845 }
 0x6b2   : > { %v1297_v35 = vmul.f32 %v1846_v50, %v1828_v26 }
 0x6b4   : > { %v1302_v60 = vpack.c.bf16 %v1297_v35, %v1296_v42 }
 0x6b6   : > { %1671 = vmatmul.msk.bf16.gmra.mxu3 %vm782_vm1, %v1302_v60 }
 0x702   : > { %v1280_v59 = vpop.xlane.xlu2 %1279 }
 0x703   : > { %1847 = vrcp.f32 %v1280_v59 }
 0x709   : > { %v1848_v22 = vpop.eup %1847  ;;  %v1332_v53 = vpop.f32.mrf.mxu3 }
 0x70a   : > { %v1298_v21 = vmul.f32 %v1848_v22, %v1834_v57 }
 0x70c   : > { %v1303_v29 = vpack.c.bf16 %v1298_v21, %v1298_v21 }
 0x70e   : > { %1672 = vmatmul.msk.bf16.gmra.mxu3 %vm782_vm1, %v1303_v29 }
 0x711   : > { %v1334_v26 = vpop.f32.mrf.mxu3 }
 0x712   : > { %v1356_v41 = vpack.c.bf16 %v1334_v26, %v1332_v53 }
 0x714   : > { %1685 = vmatmul.msk.bf16.vlgmr.msra.gmra.mxu1 %vm357_vm0, %v1356_v41 }
 0x719   : > { %v1337_v24 = vpop.f32.mrf.mxu3 }
 0x721   : > { %v1339_v63 = vpop.f32.mrf.mxu3 }
 0x722   : > { %v1357_v28 = vpack.c.bf16 %v1339_v63, %v1337_v24 }
 0x724   : > { %1686 = vmatmul.msk.bf16.gmra.mxu1 %vm357_vm0, %v1357_v28 }
 0x729   : > { %v1342_v30 = vpop.f32.mrf.mxu3 }
 0x731   : > { %v1344_v20 = vpop.f32.mrf.mxu3 }
 0x732   : > { %v1358_v31 = vpack.c.bf16 %v1344_v20, %v1342_v30 }
 0x734   : > { %1687 = vmatmul.msk.bf16.gmra.mxu1 %vm357_vm0, %v1358_v31 }
 0x739   : > { %v1347_v6 = vpop.f32.mrf.mxu3 }
 0x741   : > { %v1349_v34 = vpop.f32.mrf.mxu3 }
 0x742   : > { %v1359_v36 = vpack.c.bf16 %v1349_v34, %v1347_v6 }
 0x744   : > { %1688 = vmatmul.msk.bf16.gmra.mxu1 %vm357_vm0, %v1359_v36 }
 0x791   : > { %v1352_v62 = vpop.f32.mrf.mxu3  ;;  %v1402_v12 = vpop.f32.mrf.mxu1 }
 0x792   : > { %v1360_v43 = vpack.c.bf16 %v1352_v62, %v1352_v62  ;;  %v1426_v51 = vadd.f32 %v1402_v12, %v1013_v39 }
 0x794   : > { %v1435_v47 = vpack.c.bf16 %v1426_v51, %v1426_v51  ;;  %1689 = vmatmul.msk.bf16.gmra.mxu1 %vm357_vm0, %v1360_v43  ;;  %vm1452_vm0 = vcmask 254976  }
 0x796   : > { %1444 = vst.msk [vmem:[%s2358_s13] sm:$0xf] %vm382_vm2, %v1435_v47 }
 0x799   : > { %v1354_v56 = vpop.f32.mrf.mxu3  ;;  %v1404_v38 = vpop.f32.mrf.mxu1 }
 0x79a   : > { %v1427_v57 = vadd.f32 %v1404_v38, %v1014_v4 }
 0x79c   : > { %v1436_v15 = vpack.c.bf16 %v1427_v57, %v1427_v57 }
 0x79e   : > { %1445 = vst.msk [vmem:[%s2358_s13 + $0x4] sm:$0xf] %vm382_vm2, %v1436_v15 }
 0x7a1   : > { %v1407_v18 = vpop.f32.mrf.mxu1 }
 0x7a2   : > { %v1428_v33 = vadd.f32 %v1407_v18, %v1015_v17 }
 0x7a4   : > { %v1437_v25 = vpack.c.bf16 %v1428_v33, %v1428_v33 }
 0x7a6   : > { %1446 = vst.msk [vmem:[%s2358_s13 + $0x8] sm:$0xf] %vm382_vm2, %v1437_v25 }
 0x7a9   : > { %v1409_v10 = vpop.f32.mrf.mxu1 }
 0x7aa   : > { %v1429_v46 = vadd.f32 %v1409_v10, %v1016_v19 }
 0x7ac   : > { %v1438_v45 = vpack.c.bf16 %v1429_v46, %v1429_v46 }
 0x7ae   : > { %1447 = vst.msk [vmem:[%s2358_s13 + $0xc] sm:$0xf] %vm382_vm2, %v1438_v45 }
 0x7b1   : > { %v1412_v44 = vpop.f32.mrf.mxu1 }
 0x7b2   : > { %v1430_v3 = vadd.f32 %v1412_v44, %v1017_v49 }
 0x7b4   : > { %v1439_v48 = vpack.c.bf16 %v1430_v3, %v1430_v3 }
 0x7b6   : > { %1448 = vst.msk [vmem:[%s2358_s13 + $0x10] sm:$0xf] %vm382_vm2, %v1439_v48 }
 0x7b9   : > { %v1414_v55 = vpop.f32.mrf.mxu1 }
 0x7ba   : > { %v1431_v9 = vadd.f32 %v1414_v55, %v1018_v54 }
 0x7bc   : > { %v1440_v0 = vpack.c.bf16 %v1431_v9, %v1431_v9 }
 0x7be   : > { %1449 = vst.msk [vmem:[%s2358_s13 + $0x14] sm:$0xf] %vm382_vm2, %v1440_v0 }
 0x7c1   : > { %v1417_v32 = vpop.f32.mrf.mxu1 }
 0x7c2   : > { %v1432_v5 = vadd.f32 %v1417_v32, %v1019_v40 }
 0x7c4   : > { %v1441_v1 = vpack.c.bf16 %v1432_v5, %v1432_v5 }
 0x7c6   : > { %1450 = vst.msk [vmem:[%s2358_s13 + $0x18] sm:$0xf] %vm382_vm2, %v1441_v1 }
 0x7c9   : > { %v1419_v61 = vpop.f32.mrf.mxu1 }
 0x7ca   : > { %v1433_v14 = vadd.f32 %v1419_v61, %v1020_v58 }
 0x7cc   : > { %v1442_v11 = vpack.c.bf16 %v1433_v14, %v1433_v14 }
 0x7ce   : > { %1451 = vst.msk [vmem:[%s2358_s13 + $0x1c] sm:$0xf] %vm382_vm2, %v1442_v11 }
 0x811   : > { %v1422_v50 = vpop.f32.mrf.mxu1 }
 0x812   : > { %v1434_v42 = vadd.f32 %v1422_v50, %v1021_v2 }
 0x814   : > { %v1443_v16 = vpack.c.bf16 %v1434_v42, %v1434_v42 }
 0x816   : > { %1453 = vst.msk [vmem:[%s2358_s13 + $0x20] sm:$0x3] %vm1452_vm0, %v1443_v16 }
 0x819   : > { %v1424_v7 = vpop.f32.mrf.mxu1 }
 0x81a PF: > { %s17_s26 = sadd.s32 1, %s1871_s26   ;;  %s2411_s24 = smov %s1867_s25 }
 0x81b   : > { %p14_p5 = scmp.ge.s32.totalorder %s17_s26, 4   ;;  %s2412_s25 = smov %s2414_s27 }
 0x81d   :  { %16 = sbr.rel (!%p14_p5) target bundleno = 2 (0x2), region = 85 }

// kernel: _lambda_.20
= control target key start
LH: loop header
LB: loop body
LE: loop exit
PB: predicated region body
PF: predicated region fallthrough
CT: control target
= control target key end

     0   :  { %s1565_s21 = smov 0   ;;  %s1567_s22 = smov 0   ;;  %s1972_s0 = inlined_call_operand.vmem [shape: bf16[136,32], index: 0, kind: input, shape index: {}]   ;;  %s1973_s1 = inlined_call_operand.vmem [shape: f32[1,32], index: 1, kind: input, shape index: {}]   ;;  %s1974_s2 = inlined_call_operand.vmem [shape: bf16[32,128], index: 2, kind: input, shape index: {}]   ;;  %s1975_s3 = inlined_call_operand.vmem [shape: f32[1,128], index: 3, kind: input, shape index: {}]   ;;  %s1976_s4 = inlined_call_operand.vmem [shape: bf16[128,32], index: 4, kind: input, shape index: {}]   ;;  %s1977_s5 = inlined_call_operand.vmem [shape: f32[1,32], index: 5, kind: input, shape index: {}]   ;;  %s1978_s6 = inlined_call_operand.vmem [shape: bf16[136,32], index: 6, kind: output, shape index: {}]  }
   0x1   :  { %s1569_s23 = smov 0  }
   0x2 LB: > { %s1578_s24 = sadd.s32 4294967295, %s1495_s23   ;;  %s1580_s25 = sadd.s32 1, %s1495_s23   ;;  %s1495_s23 = sphi %s1569_s23, %s1986_s23   ;;  %s1491_s22 = sphi %s1567_s22, %s1985_s22   ;;  %s1487_s21 = sphi %s1565_s21, %s1984_s21  }
   0x3   : > { %s151_s26 = ssub.s32 %s1495_s23, %s1580_s25  ;;  %s154_s27 = sadd.s32 1, %s1491_s22 }
   0x4   : > { %p152_p0 = scmp.eq.s32.totalorder %s151_s26, 0  ;;  %p164_p1 = scmp.ne.s32.totalorder %s1491_s22, %s1487_s21 }
   0x5   : > { %p165_p2 = scmp.eq.s32.totalorder %s1578_s24, 1  ;;  %p1178_p3 = scmp.ge.s32.totalorder %s1495_s23, 1 }
   0x6   : > { %s1588_s28 = scalar_select %p152_p0, %s1491_s22, %s154_s27  }
   0x7   : > { %p1590_p4 = por %p165_p2, %p164_p1  ;;  %p221_p5 = scmp.lt.s32.totalorder %s1495_s23, 3 }
   0x9   : > { %p222_p6 = pnand %p1178_p3, %p221_p5 }
   0xa   : > { %s1595_s30 = smul.u32 (!%p222_p6), 9, %s1578_s24  ;;  %s251_s19 = sand.u32 (!%p222_p6), 1, %s1487_s21  }
   0xb   : > { %225 = sbr.rel (%p222_p6) target bundleno = 809 (0x329), region = 44 }
   0xc   : > { %p259_p7 = scmp.lt.s32.totalorder (!%p222_p6), %s1595_s30, 16  ;;  %s1285_s26 = smul.u32 (!%p222_p6), 36, %s251_s19 }
   0xe   : > { %s1881_s27 = scalar_lea.vmem (!%p222_p6), [#allocation2], %s1285_s26  }
  0x10   : > { %s260_s7 = scalar_select %p259_p7, %s1595_s30, 16  ;;  %vm292_vm0 = vcmask 261120   ;;  %v1529_v18 = vmov 32.0  }
  0x11   : > { %1379 = vrcp.f32 %v1529_v18  ;;  %s933_s21 = ssub.s32 (%p1590_p4), 17, %s1595_s30 }
  0x12   : > { %s1179_s8 = sshll.u32 %s260_s7, 2  ;;  %s1247_s7 = smul.u32 (%p1590_p4), 36, %s1578_s24 }
  0x13   : > { %s1602_s11 = scalar_lea.vmem %s1972_s0, %s1179_s8  ;;  %p934_p8 = scmp.lt.s32.totalorder (%p1590_p4), %s933_s21, 9 }
  0x14   : > { %v1266_v0 = vld [vmem:[%s1602_s11 + $0x18] sm:$0xff]   ;;  %v1265_v1 = vld [vmem:[%s1602_s11 + $0x10] sm:$0xff]   ;;  %v1264_v2 = vld [vmem:[%s1602_s11 + $0x8] sm:$0xff]   ;;  %s1916_s10 = scalar_lea.vmem (%p1590_p4), %s1978_s6, %s1247_s7  }
  0x15   : > { %v1607_v3 = vunpack.c.l.bf16 %v1266_v0  ;;  %v1609_v4 = vunpack.c.l.bf16 %v1265_v1  ;;  %v1611_v5 = vunpack.c.l.bf16 %v1264_v2  ;;  %v1619_v9 = vunpack.c.h.bf16 %v1266_v0  ;;  %v1249_v15 = vld [vmem:[%s1602_s11] sm:$0xff]  }
  0x16   : > { %v1621_v10 = vunpack.c.h.bf16 %v1265_v1  ;;  %v1623_v11 = vunpack.c.h.bf16 %v1264_v2  ;;  %v1632_v16 = vunpack.c.l.bf16 %v1249_v15  ;;  %v1655_v42 = vunpack.c.h.bf16 %v1249_v15  ;;  %v282_v50 = vld [vmem:[%s1602_s11 + $0x20] sm:$0xf]  ;;  %v1238_v1 = vld [vmem:[%s1974_s2 + $0x8] sm:$0xff] }
  0x17   : > { %v311_v6 = vsel %vm292_vm0, %v1607_v3, 0.0  ;;  %v305_v7 = vsel %vm292_vm0, %v1609_v4, 0.0  ;;  %v299_v8 = vsel %vm292_vm0, %v1611_v5, 0.0  ;;  %v314_v12 = vsel %vm292_vm0, %v1619_v9, 0.0  ;;  %v1380_v19 = vpop.eup %1379  ;;  %1267 = vmatpush.bf16.msra.mxu3 %v1238_v1  ;;  %557 = vmatpush.bf16.msra.mxu0 %v1238_v1 }
  0x18   : > { %312 = vadd.xlane.f32.xlu2 %v311_v6  ;;  %306 = vadd.xlane.f32.xlu1 %v305_v7  ;;  %v308_v13 = vsel %vm292_vm0, %v1621_v10, 0.0  ;;  %v302_v14 = vsel %vm292_vm0, %v1623_v11, 0.0  ;;  %v293_v17 = vsel %vm292_vm0, %v1632_v16, 0.0  ;;  %v321_v20 = vmul.f32 32.0, %v1380_v19 }
  0x19   : > { %300 = vadd.xlane.f32.xlu0 %v299_v8  ;;  %vm325_vm1 = vweird.f32 %v1380_v19  ;;  %v296_v48 = vsel %vm292_vm0, %v1655_v42, 0.0  ;;  %v1676_v54 = vunpack.c.l.bf16 %v282_v50  ;;  %v1237_v8 = vld [vmem:[%s1974_s2] sm:$0xff] }
  0x1a   : > { %v322_v21 = vsub.f32 1.0, %v321_v20 }
  0x1b   : > { %v317_v58 = vsel %vm292_vm0, %v1676_v54, 0.0  ;;  %1268 = vmatpush.bf16.msra.mxu3 %v1237_v8  ;;  %558 = vmatpush.bf16.msra.mxu0 %v1237_v8 }
  0x1c   : > { %v323_v22 = vmul.f32 %v1380_v19, %v322_v21 }
  0x1e   : > { %v324_v23 = vadd.f32 %v1380_v19, %v323_v22 }
  0x20   : > { %315 = vadd.xlane.f32.xlu2 %v314_v12  ;;  %309 = vadd.xlane.f32.xlu1 %v308_v13  ;;  %v1636_v24 = vsel %vm325_vm1, %v1380_v19, %v324_v23 }
  0x21   : > { %303 = vadd.xlane.f32.xlu0 %v302_v14 }
  0x28   : > { %294 = vadd.xlane.f32.xlu2 %v293_v17 }
  0x8b   : > { %v313_v25 = vpop.xlane.xlu2 %312  ;;  %v307_v26 = vpop.xlane.xlu1 %306 }
  0x8c   : > { %v331_v27 = vmul.f32 %v1636_v24, %v307_v26  ;;  %v301_v28 = vpop.xlane.xlu0 %300  ;;  %v333_v53 = vmul.f32 %v1636_v24, %v313_v25 }
  0x8d   : > { %v329_v29 = vmul.f32 %v1636_v24, %v301_v28 }
  0x8e   : > { %v1641_v30 = vsub.f32 %v1609_v4, %v331_v27  ;;  %v1682_v57 = vsub.f32 %v1607_v3, %v333_v53 }
  0x8f   : > { %v1644_v31 = vsub.f32 %v1611_v5, %v329_v29 }
  0x90   : > { %v349_v32 = vmul.f32 %v1641_v30, %v1641_v30  ;;  %v351_v61 = vmul.f32 %v1682_v57, %v1682_v57 }
  0x91   : > { %v347_v33 = vmul.f32 %v1644_v31, %v1644_v31 }
  0x92   : > { %v366_v34 = vsel %vm292_vm0, %v349_v32, 0.0  ;;  %v372_v63 = vsel %vm292_vm0, %v351_v61, 0.0 }
  0x93   : > { %v316_v35 = vpop.xlane.xlu2 %315  ;;  %v360_v36 = vsel %vm292_vm0, %v347_v33, 0.0  ;;  %367 = vadd.xlane.f32.xlu2 %v366_v34  ;;  %v310_v37 = vpop.xlane.xlu1 %309 }
  0x94   : > { %v334_v38 = vmul.f32 %v1636_v24, %v316_v35  ;;  %361 = vadd.xlane.f32.xlu0 %v360_v36  ;;  %v304_v39 = vpop.xlane.xlu0 %303  ;;  %v332_v41 = vmul.f32 %v1636_v24, %v310_v37 }
  0x95   : > { %v330_v40 = vmul.f32 %v1636_v24, %v304_v39 }
  0x96   : > { %v1658_v43 = vsub.f32 %v1619_v9, %v334_v38  ;;  %v1666_v46 = vsub.f32 %v1621_v10, %v332_v41 }
  0x97   : > { %v1661_v44 = vsub.f32 %v1623_v11, %v330_v40 }
  0x98   : > { %v352_v45 = vmul.f32 %v1658_v43, %v1658_v43  ;;  %v350_v55 = vmul.f32 %v1666_v46, %v1666_v46 }
  0x99   : > { %v348_v47 = vmul.f32 %v1661_v44, %v1661_v44 }
  0x9a   : > { %v375_v49 = vsel %vm292_vm0, %v352_v45, 0.0  ;;  %v369_v59 = vsel %vm292_vm0, %v350_v55, 0.0 }
  0x9b   : > { %v363_v51 = vsel %vm292_vm0, %v348_v47, 0.0  ;;  %376 = vadd.xlane.f32.xlu2 %v375_v49  ;;  %v295_v52 = vpop.xlane.xlu2 %294 }
  0x9c   : > { %364 = vadd.xlane.f32.xlu1 %v363_v51  ;;  %297 = vadd.xlane.f32.xlu0 %v296_v48  ;;  %v327_v56 = vmul.f32 %v1636_v24, %v295_v52 }
  0x9e   : > { %v1688_v60 = vsub.f32 %v1632_v16, %v327_v56 }
  0xa0   : > { %v345_v62 = vmul.f32 %v1688_v60, %v1688_v60 }
  0xa2   : > { %v354_v0 = vsel %vm292_vm0, %v345_v62, 0.0 }
  0xa4   : > { %318 = vadd.xlane.f32.xlu1 %v317_v58  ;;  %370 = vadd.xlane.f32.xlu0 %v369_v59 }
  0xac   : > { %373 = vadd.xlane.f32.xlu1 %v372_v63  ;;  %355 = vadd.xlane.f32.xlu0 %v354_v0 }
 0x106   : > { %v368_v7 = vpop.xlane.xlu2 %367 }
 0x107   : > { %v362_v2 = vpop.xlane.xlu0 %361  ;;  %v385_v13 = vmul.f32 %v368_v7, %v1636_v24 }
 0x108   : > { %v383_v6 = vmul.f32 %v362_v2, %v1636_v24 }
 0x109   : > { %v1704_v14 = vadd.f32 1e-05, %v385_v13 }
 0x10a   : > { %v392_v12 = vadd.f32 1e-05, %v383_v6  ;;  %v1737_v6 = vld [vmem:[%s1973_s1] ss:$0 sm:$0xff] }
 0x10b   : > { %vm445_vm10 = vweird.f32 %v1704_v14 }
 0x10c   : > { %1381 = vrsqrt.f32 %v392_v12  ;;  %vm425_vm3 = vweird.f32 %v392_v12 }
 0x10d   : > { %1383 = vrsqrt.f32 %v1704_v14 }
 0x10e   : > { %v377_v33 = vpop.xlane.xlu2 %376 }
 0x10f   : > { %v365_v15 = vpop.xlane.xlu1 %364  ;;  %v298_v17 = vpop.xlane.xlu0 %297  ;;  %v388_v41 = vmul.f32 %v377_v33, %v1636_v24 }
 0x110   : > { %v384_v18 = vmul.f32 %v365_v15, %v1636_v24  ;;  %v328_v19 = vmul.f32 %v1636_v24, %v298_v17 }
 0x111   : > { %v1728_v53 = vadd.f32 1e-05, %v388_v41 }
 0x112   : > { %v1382_v20 = vpop.eup %1381  ;;  %v393_v21 = vadd.f32 1e-05, %v384_v18  ;;  %v1709_v22 = vsub.f32 %v1655_v42, %v328_v19 }
 0x113   : > { %v420_v23 = vmul.f32 %v1382_v20, %v392_v12  ;;  %v1717_v36 = vpop.eup %1383  ;;  %vm426_vm2 = vweird.f32 %v1382_v20  ;;  %vm475_vm1 = vweird.f32 %v1728_v53 }
 0x114   : > { %1385 = vrsqrt.f32 %v393_v21  ;;  %v346_v25 = vmul.f32 %v1709_v22, %v1709_v22  ;;  %v440_v47 = vmul.f32 %v1717_v36, %v1704_v14  ;;  %vm427_vm4 = vmor %vm425_vm3, %vm426_vm2  ;;  %vm435_vm6 = vweird.f32 %v393_v21 }
 0x115   : > { %v421_v26 = vmul.f32 %v1382_v20, %v420_v23  ;;  %vm446_vm11 = vweird.f32 %v1717_v36 }
 0x116   : > { %v357_v27 = vsel %vm292_vm0, %v346_v25, 0.0  ;;  %v441_v59 = vmul.f32 %v1717_v36, %v440_v47  ;;  %vm447_vm13 = vmor %vm445_vm10, %vm446_vm11 }
 0x117   : > { %v422_v28 = vmul.f32 0.5, %v421_v26  ;;  %v319_v29 = vpop.xlane.xlu1 %318  ;;  %358 = vadd.xlane.f32.xlu1 %v357_v27  ;;  %v371_v32 = vpop.xlane.xlu0 %370 }
 0x118   : > { %v335_v34 = vmul.f32 %v1636_v24, %v319_v29  ;;  %v386_v35 = vmul.f32 %v371_v32, %v1636_v24  ;;  %v442_v7 = vmul.f32 0.5, %v441_v59 }
 0x119   : > { %v423_v37 = vsub.f32 1.5, %v422_v28 }
 0x11a   : > { %v1386_v38 = vpop.eup %1385  ;;  %v1720_v39 = vsub.f32 %v1676_v54, %v335_v34  ;;  %v395_v45 = vadd.f32 1e-05, %v386_v35 }
 0x11b   : > { %v430_v40 = vmul.f32 %v1386_v38, %v393_v21  ;;  %v424_v49 = vmul.f32 %v1382_v20, %v423_v37  ;;  %vm436_vm5 = vweird.f32 %v1386_v38 }
 0x11c   : > { %v353_v48 = vmul.f32 %v1720_v39, %v1720_v39  ;;  %1387 = vrsqrt.f32 %v395_v45  ;;  %vm437_vm7 = vmor %vm435_vm6, %vm436_vm5  ;;  %vm455_vm8 = vweird.f32 %v395_v45 }
 0x11d   : > { %v431_v50 = vmul.f32 %v1386_v38, %v430_v40  ;;  %v428_v58 = vsel %vm427_vm4, %v1382_v20, %v424_v49  ;;  %1389 = vrsqrt.f32 %v1728_v53  ;;  %v443_v20 = vsub.f32 1.5, %v442_v7 }
 0x11e   : > { %v378_v51 = vsel %vm292_vm0, %v353_v48, 0.0  ;;  %v491_v2 = vmul.f32 %v428_v58, %v1644_v31 }
 0x11f   : > { %v432_v52 = vmul.f32 0.5, %v431_v50  ;;  %v374_v55 = vpop.xlane.xlu1 %373  ;;  %379 = vadd.xlane.f32.xlu2 %v378_v51 }
 0x120   : > { %v387_v56 = vmul.f32 %v374_v55, %v1636_v24  ;;  %v504_v17 = vmul.f32 %v1737_v6, %v491_v2 }
 0x121   : > { %v433_v61 = vsub.f32 1.5, %v432_v52 }
 0x122   : > { %v396_v62 = vadd.f32 1e-05, %v387_v56  ;;  %v1388_v63 = vpop.eup %1387 }
 0x123   : > { %v434_v0 = vmul.f32 %v1386_v38, %v433_v61  ;;  %v450_v1 = vmul.f32 %v1388_v63, %v395_v45  ;;  %v1390_v19 = vpop.eup %1389  ;;  %vm456_vm9 = vweird.f32 %v1388_v63 }
 0x124   : > { %1391 = vrsqrt.f32 %v396_v62  ;;  %vm457_vm12 = vmor %vm455_vm8, %vm456_vm9  ;;  %v470_v27 = vmul.f32 %v1390_v19, %v1728_v53  ;;  %vm465_vm14 = vweird.f32 %v396_v62  ;;  %vm476_vm2 = vweird.f32 %v1390_v19  ;;  %v356_v53 = vpop.xlane.xlu0 %355 }
 0x125   : > { %v438_v8 = vsel %vm437_vm7, %v1386_v38, %v434_v0  ;;  %v451_v12 = vmul.f32 %v1388_v63, %v450_v1  ;;  %vm477_vm4 = vmor %vm475_vm1, %vm476_vm2  ;;  %v381_v56 = vmul.f32 %v356_v53, %v1636_v24 }
 0x126   : > { %v492_v13 = vmul.f32 %v438_v8, %v1661_v44  ;;  %v444_v44 = vmul.f32 %v1717_v36, %v443_v20  ;;  %v471_v33 = vmul.f32 %v1390_v19, %v470_v27 }
 0x127   : > { %v452_v15 = vmul.f32 0.5, %v451_v12  ;;  %v390_v58 = vadd.f32 1e-05, %v381_v56 }
 0x128   : > { %v505_v18 = vmul.f32 %v1737_v6, %v492_v13  ;;  %v448_v32 = vsel %vm447_vm13, %v1717_v36, %v444_v44  ;;  %v472_v37 = vmul.f32 0.5, %v471_v33 }
 0x129   : > { %v453_v21 = vsub.f32 1.5, %v452_v15  ;;  %v493_v35 = vmul.f32 %v448_v32, %v1641_v30  ;;  %1393 = vrsqrt.f32 %v390_v58  ;;  %vm405_vm5 = vweird.f32 %v390_v58 }
 0x12a   : > { %v1392_v31 = vpop.eup %1391  ;;  %v512_v23 = vpack.c.bf16 %v505_v18, %v504_v17  ;;  %v473_v45 = vsub.f32 1.5, %v472_v37  ;;  %v1245_v37 = vld [vmem:[%s1976_s4 + $0x30] sm:$0xff] }
 0x12b   : > { %v460_v25 = vmul.f32 %v1392_v31, %v396_v62  ;;  %v454_v26 = vmul.f32 %v1388_v63, %v453_v21  ;;  %v506_v41 = vmul.f32 %v1737_v6, %v493_v35  ;;  %vm466_vm15 = vweird.f32 %v1392_v31 }
 0x12c   : > { %1189 = vmatmul.msk.bf16.vlgmr.msra.gmra.mxu3 %vm292_vm0, %v512_v23  ;;  %vm467_vm3 = vmor %vm465_vm14, %vm466_vm15 }
 0x12d   : > { %v458_v28 = vsel %vm457_vm12, %v1388_v63, %v454_v26  ;;  %v461_v29 = vmul.f32 %v1392_v31, %v460_v25 }
 0x12e   : > { %v494_v34 = vmul.f32 %v458_v28, %v1666_v46  ;;  %v474_v46 = vmul.f32 %v1390_v19, %v473_v45 }
 0x12f   : > { %v462_v14 = vmul.f32 0.5, %v461_v29  ;;  %v1394_v59 = vpop.eup %1393 }
 0x130   : > { %v507_v38 = vmul.f32 %v1737_v6, %v494_v34  ;;  %v478_v48 = vsel %vm477_vm4, %v1390_v19, %v474_v46  ;;  %v400_v61 = vmul.f32 %v1394_v59, %v390_v58  ;;  %vm406_vm6 = vweird.f32 %v1394_v59  ;;  %v1240_v58 = vld [vmem:[%s1976_s4 + $0x8] sm:$0xff] }
 0x131   : > { %v463_v40 = vsub.f32 1.5, %v462_v14  ;;  %v496_v50 = vmul.f32 %v478_v48, %v1658_v43  ;;  %vm407_vm7 = vmor %vm405_vm5, %vm406_vm6  ;;  %v1242_v48 = vld [vmem:[%s1976_s4 + $0x18] sm:$0xff] }
 0x132   : > { %v513_v47 = vpack.c.bf16 %v507_v38, %v506_v41  ;;  %v1778_v38 = vld [vmem:[%s1975_s3] ss:$0 sm:$0xff] }
 0x133   : > { %v464_v36 = vmul.f32 %v1392_v31, %v463_v40  ;;  %v509_v52 = vmul.f32 %v1737_v6, %v496_v50 }
 0x135   : > { %v468_v30 = vsel %vm467_vm3, %v1392_v31, %v464_v36 }
 0x136   : > { %v495_v49 = vmul.f32 %v468_v30, %v1682_v57  ;;  %v401_v57 = vmul.f32 %v1394_v59, %v400_v61 }
 0x138   : > { %v508_v51 = vmul.f32 %v1737_v6, %v495_v49  ;;  %v402_v43 = vmul.f32 0.5, %v401_v57 }
 0x13a   : > { %v514_v55 = vpack.c.bf16 %v509_v52, %v508_v51  ;;  %v403_v7 = vsub.f32 1.5, %v402_v43  ;;  %v1241_v52 = vld [vmem:[%s1976_s4 + $0x10] sm:$0xff] }
 0x13c   : > { %1190 = vmatmul.msk.bf16.gmra.mxu3 %vm292_vm0, %v513_v47  ;;  %v404_v15 = vmul.f32 %v1394_v59, %v403_v7  ;;  %v1243_v47 = vld [vmem:[%s1976_s4 + $0x20] sm:$0xff] }
 0x13e   : > { %v408_v19 = vsel %vm407_vm7, %v1394_v59, %v404_v15 }
 0x14c   : > { %1191 = vmatmul.msk.bf16.gmra.mxu3 %vm292_vm0, %v514_v55 }
 0x18a   : > { %v359_v62 = vpop.xlane.xlu1 %358 }
 0x18b   : > { %v382_v63 = vmul.f32 %v359_v62, %v1636_v24 }
 0x18d   : > { %v391_v0 = vadd.f32 1e-05, %v382_v63 }
 0x18f   : > { %1395 = vrsqrt.f32 %v391_v0  ;;  %vm415_vm9 = vweird.f32 %v391_v0 }
 0x192   : > { %v380_v1 = vpop.xlane.xlu2 %379 }
 0x193   : > { %v389_v2 = vmul.f32 %v380_v1, %v1636_v24  ;;  %v489_v24 = vmul.f32 %v408_v19, %v1688_v60  ;;  %v1246_v60 = vld [vmem:[%s1976_s4 + $0x38] sm:$0xff]  ;;  %v1239_v1 = vld [vmem:[%s1976_s4] sm:$0xff] }
 0x194   : > { %1269 = vmatpush.bf16.msra.mxu1 %v1246_v60  ;;  %1270 = vmatpush.bf16.msra.mxu2 %v1246_v60 }
 0x195   : > { %v1396_v8 = vpop.eup %1395  ;;  %v398_v12 = vadd.f32 1e-05, %v389_v2  ;;  %v502_v28 = vmul.f32 %v1737_v6, %v489_v24  ;;  %864 = vmatpush.bf16.msrb.mxu0 %v1246_v60 }
 0x196   : > { %v410_v13 = vmul.f32 %v1396_v8, %v391_v0  ;;  %vm416_vm8 = vweird.f32 %v1396_v8 }
 0x197   : > { %1397 = vrsqrt.f32 %v398_v12  ;;  %vm417_vm10 = vmor %vm415_vm9, %vm416_vm8  ;;  %vm485_vm12 = vweird.f32 %v398_v12 }
 0x198   : > { %v411_v17 = vmul.f32 %v1396_v8, %v410_v13  ;;  %1271 = vmatpush.bf16.msra.mxu1 %v1245_v37  ;;  %1272 = vmatpush.bf16.msra.mxu2 %v1245_v37 }
 0x199   : > { %865 = vmatpush.bf16.msrb.mxu0 %v1245_v37 }
 0x19a   : > { %v412_v18 = vmul.f32 0.5, %v411_v17 }
 0x19c   : > { %v413_v20 = vsub.f32 1.5, %v412_v18 }
 0x19d   : > { %v1398_v31 = vpop.eup %1397 }
 0x19e   : > { %v414_v21 = vmul.f32 %v1396_v8, %v413_v20  ;;  %v480_v23 = vmul.f32 %v1398_v31, %v398_v12  ;;  %vm486_vm11 = vweird.f32 %v1398_v31 }
 0x19f   : > { %vm487_vm13 = vmor %vm485_vm12, %vm486_vm11 }
 0x1a0   : > { %v418_v25 = vsel %vm417_vm10, %v1396_v8, %v414_v21  ;;  %v481_v26 = vmul.f32 %v1398_v31, %v480_v23 }
 0x1a1   : > { %v490_v44 = vmul.f32 %v418_v25, %v1709_v22 }
 0x1a2   : > { %v482_v27 = vmul.f32 0.5, %v481_v26 }
 0x1a3   : > { %v503_v29 = vmul.f32 %v1737_v6, %v490_v44 }
 0x1a4   : > { %v483_v32 = vsub.f32 1.5, %v482_v27 }
 0x1a5   : > { %v511_v33 = vpack.c.bf16 %v503_v29, %v502_v28 }
 0x1a6   : > { %v484_v34 = vmul.f32 %v1398_v31, %v483_v32 }
 0x1a7   : > { %1188 = vmatmul.msk.bf16.vlgmr.msra.gmra.mxu0 %vm292_vm0, %v511_v33 }
 0x1a8   : > { %v488_v14 = vsel %vm487_vm13, %v1398_v31, %v484_v34 }
 0x1a9   : > { %v497_v22 = vmul.f32 %v488_v14, %v1720_v39  ;;  %v1244_v39 = vld [vmem:[%s1976_s4 + $0x28] sm:$0xff] }
 0x1aa   : > { %1273 = vmatpush.bf16.msra.mxu1 %v1244_v39  ;;  %1274 = vmatpush.bf16.msra.mxu2 %v1244_v39 }
 0x1ab   : > { %v510_v35 = vmul.f32 %v1737_v6, %v497_v22  ;;  %866 = vmatpush.bf16.msrb.mxu0 %v1244_v39 }
 0x1ad   : > { %v515_v40 = vpack.c.bf16 %v510_v35, %v510_v35 }
 0x1ae   : > { %1275 = vmatpush.bf16.msra.mxu1 %v1243_v47  ;;  %1276 = vmatpush.bf16.msra.mxu2 %v1243_v47 }
 0x1af   : > { %v565_v41 = vpop.f32.mrf.mxu3  ;;  %1192 = vmatmul.msk.bf16.gmra.mxu3 %vm292_vm0, %v515_v40  ;;  %867 = vmatpush.bf16.msrb.mxu0 %v1243_v47  ;;  %vm915_vm0 = vcmask 257024  }
 0x1b0   : > { %v1785_v6 = vadd.f32 %v1778_v38, %v565_v41 }
 0x1b2   : > { %v586_v45 = vand.u32 2147483647, %v1785_v6  ;;  %1277 = vmatpush.bf16.msra.mxu1 %v1242_v48  ;;  %1278 = vmatpush.bf16.msra.mxu2 %v1242_v48 }
 0x1b3   : > { %868 = vmatpush.bf16.msrb.mxu0 %v1242_v48 }
 0x1b4   : > { %v595_v36 = vmul.f32 0.70710677, %v586_v45 }
 0x1b6   : > { %v604_v46 = vmul.f32 0.3275911, %v595_v36  ;;  %1279 = vmatpush.bf16.msra.mxu1 %v1241_v52  ;;  %1280 = vmatpush.bf16.msra.mxu2 %v1241_v52  ;;  %v712_v61 = vsub.f32 0.0, %v595_v36 }
 0x1b7   : > { %v567_v30 = vpop.f32.mrf.mxu3  ;;  %869 = vmatpush.bf16.msrb.mxu0 %v1241_v52 }
 0x1b8   : > { %v613_v49 = vadd.f32 1.0, %v604_v46  ;;  %v1797_v50 = vadd.f32 %v1778_v38, %v567_v30  ;;  %v721_v2 = vmul.f32 %v712_v61, %v595_v36 }
 0x1ba   : > { %1399 = vrcp.f32 %v613_v49  ;;  %v587_v51 = vand.u32 2147483647, %v1797_v50  ;;  %1281 = vmatpush.bf16.msra.mxu1 %v1240_v58  ;;  %1282 = vmatpush.bf16.msra.mxu2 %v1240_v58  ;;  %v732_v18 = vmul.f32 1.442695, %v721_v2 }
 0x1bb   : > { %870 = vmatpush.bf16.msrb.mxu0 %v1240_v58 }
 0x1bc   : > { %v596_v55 = vmul.f32 0.70710677, %v587_v51 }
 0x1be   : > { %v605_v53 = vmul.f32 0.3275911, %v596_v55  ;;  %1283 = vmatpush.bf16.msra.mxu1 %v1239_v1  ;;  %1284 = vmatpush.bf16.msra.mxu2 %v1239_v1  ;;  %v713_v19 = vsub.f32 0.0, %v596_v55 }
 0x1bf   : > { %v570_v56 = vpop.f32.mrf.mxu3  ;;  %871 = vmatpush.bf16.msrb.mxu0 %v1239_v1 }
 0x1c0   : > { %v1400_v59 = vpop.eup %1399  ;;  %v614_v62 = vadd.f32 1.0, %v605_v53  ;;  %v1809_v63 = vadd.f32 %v1778_v38, %v570_v56  ;;  %v722_v44 = vmul.f32 %v713_v19, %v596_v55 }
 0x1c1   : > { %v631_v57 = vmul.f32 1.0614054, %v1400_v59 }
 0x1c2   : > { %1401 = vrcp.f32 %v614_v62  ;;  %v588_v0 = vand.u32 2147483647, %v1809_v63  ;;  %v734_v22 = vmul.f32 1.442695, %v722_v44 }
 0x1c3   : > { %v640_v43 = vadd.f32 -1.4531521, %v631_v57 }
 0x1c4   : > { %v597_v7 = vmul.f32 0.70710677, %v588_v0 }
 0x1c5   : > { %v649_v8 = vmul.f32 %v1400_v59, %v640_v43 }
 0x1c6   : > { %v606_v12 = vmul.f32 0.3275911, %v597_v7  ;;  %v714_v35 = vsub.f32 0.0, %v597_v7 }
 0x1c7   : > { %v658_v13 = vadd.f32 1.4214138, %v649_v8  ;;  %v572_v15 = vpop.f32.mrf.mxu3 }
 0x1c8   : > { %v1402_v17 = vpop.eup %1401  ;;  %v615_v20 = vadd.f32 1.0, %v606_v12  ;;  %v1818_v31 = vadd.f32 %v1778_v38, %v572_v15  ;;  %v723_v52 = vmul.f32 %v714_v35, %v597_v7 }
 0x1c9   : > { %v667_v21 = vmul.f32 %v1400_v59, %v658_v13  ;;  %v632_v23 = vmul.f32 1.0614054, %v1402_v17 }
 0x1ca   : > { %1403 = vrcp.f32 %v615_v20  ;;  %v589_v24 = vand.u32 2147483647, %v1818_v31  ;;  %v736_v1 = vmul.f32 1.442695, %v723_v52 }
 0x1cb   : > { %v676_v25 = vadd.f32 -0.28449672, %v667_v21  ;;  %v641_v26 = vadd.f32 -1.4531521, %v632_v23  ;;  %1405 = vpow2.f32 %v732_v18 }
 0x1cc   : > { %v598_v27 = vmul.f32 0.70710677, %v589_v24 }
 0x1cd   : > { %v685_v28 = vmul.f32 %v1400_v59, %v676_v25  ;;  %v650_v29 = vmul.f32 %v1402_v17, %v641_v26 }
 0x1ce   : > { %v607_v32 = vmul.f32 0.3275911, %v598_v27  ;;  %v715_v2 = vsub.f32 0.0, %v598_v27 }
 0x1cf   : > { %v694_v33 = vadd.f32 0.2548296, %v685_v28  ;;  %v659_v34 = vadd.f32 1.4214138, %v650_v29  ;;  %v575_v60 = vpop.f32.mrf.mxu3 }
 0x1d0   : > { %v1404_v14 = vpop.eup %1403  ;;  %v616_v37 = vadd.f32 1.0, %v607_v32  ;;  %v1824_v40 = vadd.f32 %v1778_v38, %v575_v60  ;;  %v724_v26 = vmul.f32 %v715_v2, %v598_v27 }
 0x1d1   : > { %v703_v41 = vmul.f32 %v1400_v59, %v694_v33  ;;  %v668_v39 = vmul.f32 %v1402_v17, %v659_v34  ;;  %v633_v47 = vmul.f32 1.0614054, %v1404_v14  ;;  %v1406_v36 = vpop.eup %1405 }
 0x1d2   : > { %1407 = vrcp.f32 %v616_v37  ;;  %v590_v46 = vand.u32 2147483647, %v1824_v40  ;;  %v738_v35 = vmul.f32 1.442695, %v724_v26 }
 0x1d3   : > { %v748_v30 = vmul.f32 %v1406_v36, %v703_v41  ;;  %v677_v48 = vadd.f32 -0.28449672, %v668_v39  ;;  %v642_v49 = vadd.f32 -1.4531521, %v633_v47  ;;  %1409 = vpow2.f32 %v734_v22 }
 0x1d4   : > { %v599_v55 = vmul.f32 0.70710677, %v590_v46 }
 0x1d5   : > { %v686_v53 = vmul.f32 %v1402_v17, %v677_v48  ;;  %v651_v56 = vmul.f32 %v1404_v14, %v642_v49  ;;  %v757_v58 = vsub.f32 1.0, %v748_v30 }
 0x1d6   : > { %v608_v61 = vmul.f32 0.3275911, %v599_v55  ;;  %v716_v37 = vsub.f32 0.0, %v599_v55 }
 0x1d7   : > { %v695_v62 = vadd.f32 0.2548296, %v686_v53  ;;  %v660_v59 = vadd.f32 1.4214138, %v651_v56  ;;  %v577_v57 = vpop.f32.mrf.mxu3  ;;  %v766_v19 = vmul.f32 %v757_v58, %v586_v45 }
 0x1d8   : > { %v1408_v43 = vpop.eup %1407  ;;  %v617_v8 = vadd.f32 1.0, %v608_v61  ;;  %v1830_v12 = vadd.f32 %v1778_v38, %v577_v57 }
 0x1d9   : > { %v704_v13 = vmul.f32 %v1402_v17, %v695_v62  ;;  %v669_v15 = vmul.f32 %v1404_v14, %v660_v59  ;;  %v634_v7 = vmul.f32 1.0614054, %v1408_v43  ;;  %v1410_v18 = vpop.eup %1409  ;;  %v775_v32 = vadd.f32 %v766_v19, %v1785_v6 }
 0x1da   : > { %1411 = vrcp.f32 %v617_v8  ;;  %v591_v20 = vand.u32 2147483647, %v1830_v12 }
 0x1db   : > { %v749_v21 = vmul.f32 %v1410_v18, %v704_v13  ;;  %v678_v23 = vadd.f32 -0.28449672, %v669_v15  ;;  %v643_v25 = vadd.f32 -1.4531521, %v634_v7  ;;  %1413 = vpow2.f32 %v736_v1 }
 0x1dc   : > { %v600_v44 = vmul.f32 0.70710677, %v591_v20  ;;  %v784_v48 = vmul.f32 0.5, %v775_v32 }
 0x1dd   : > { %v758_v28 = vsub.f32 1.0, %v749_v21  ;;  %v687_v29 = vmul.f32 %v1404_v14, %v678_v23  ;;  %v652_v17 = vmul.f32 %v1408_v43, %v643_v25 }
 0x1de   : > { %v609_v33 = vmul.f32 0.3275911, %v600_v44  ;;  %v717_v1 = vsub.f32 0.0, %v600_v44 }
 0x1df   : > { %v767_v45 = vmul.f32 %v758_v28, %v587_v51  ;;  %v696_v34 = vadd.f32 0.2548296, %v687_v29  ;;  %v661_v60 = vadd.f32 1.4214138, %v652_v17  ;;  %v725_v51 = vmul.f32 %v716_v37, %v599_v55 }
 0x1e0   : > { %v1412_v22 = vpop.eup %1411  ;;  %v618_v41 = vadd.f32 1.0, %v609_v33  ;;  %v726_v21 = vmul.f32 %v717_v1, %v600_v44 }
 0x1e1   : > { %v776_v27 = vadd.f32 %v767_v45, %v1797_v50  ;;  %v705_v39 = vmul.f32 %v1404_v14, %v696_v34  ;;  %v670_v47 = vmul.f32 %v1408_v43, %v661_v60  ;;  %v635_v36 = vmul.f32 1.0614054, %v1412_v22  ;;  %v1414_v30 = vpop.eup %1413 }
 0x1e2   : > { %1415 = vrcp.f32 %v618_v41  ;;  %v740_v14 = vmul.f32 1.442695, %v725_v51  ;;  %v742_v32 = vmul.f32 1.442695, %v726_v21 }
 0x1e3   : > { %v785_v49 = vmul.f32 0.5, %v776_v27  ;;  %v750_v6 = vmul.f32 %v1414_v30, %v705_v39  ;;  %v679_v52 = vadd.f32 -0.28449672, %v670_v47  ;;  %v644_v53 = vadd.f32 -1.4531521, %v635_v36 }
 0x1e4   : > { %1417 = vpow2.f32 %v738_v35 }
 0x1e5   : > { %v688_v56 = vmul.f32 %v1408_v43, %v679_v52  ;;  %v653_v58 = vmul.f32 %v1412_v22, %v644_v53  ;;  %v792_v61 = vpack.c.bf16 %v785_v49, %v784_v48  ;;  %v759_v62 = vsub.f32 1.0, %v750_v6 }
 0x1e6   : > { %1419 = vpow2.f32 %v740_v14 }
 0x1e7   : > { %v697_v59 = vadd.f32 0.2548296, %v688_v56  ;;  %v662_v57 = vadd.f32 1.4214138, %v653_v58  ;;  %877 = vmatmul.bf16.vlgmr.msra.gmra.mxu1 %v792_v61  ;;  %v768_v7 = vmul.f32 %v759_v62, %v588_v0  ;;  %1421 = vpow2.f32 %v742_v32 }
 0x1e8   : > { %v1416_v50 = vpop.eup %1415 }
 0x1e9   : > { %v706_v2 = vmul.f32 %v1408_v43, %v697_v59  ;;  %v671_v8 = vmul.f32 %v1412_v22, %v662_v57  ;;  %v636_v13 = vmul.f32 1.0614054, %v1416_v50  ;;  %v777_v28 = vadd.f32 %v768_v7, %v1809_v63 }
 0x1ea   : > { %v1418_v15 = vpop.eup %1417 }
 0x1eb   : > { %v751_v18 = vmul.f32 %v1418_v15, %v706_v2  ;;  %v680_v19 = vadd.f32 -0.28449672, %v671_v8  ;;  %v645_v55 = vadd.f32 -1.4531521, %v636_v13  ;;  %v786_v60 = vmul.f32 0.5, %v777_v28 }
 0x1ec   : > { %v1420_v34 = vpop.eup %1419 }
 0x1ed   : > { %v760_v23 = vsub.f32 1.0, %v751_v18  ;;  %v689_v25 = vmul.f32 %v1412_v22, %v680_v19  ;;  %v654_v26 = vmul.f32 %v1416_v50, %v645_v55 }
 0x1ef   : > { %v769_v29 = vmul.f32 %v760_v23, %v589_v24  ;;  %v698_v43 = vadd.f32 0.2548296, %v689_v25  ;;  %v663_v17 = vadd.f32 1.4214138, %v654_v26  ;;  %v1422_v24 = vpop.eup %1421 }
 0x1f1   : > { %v778_v33 = vadd.f32 %v769_v29, %v1818_v31  ;;  %v707_v45 = vmul.f32 %v1412_v22, %v698_v43  ;;  %v672_v0 = vmul.f32 %v1416_v50, %v663_v17 }
 0x1f3   : > { %v787_v35 = vmul.f32 0.5, %v778_v33  ;;  %v752_v37 = vmul.f32 %v1420_v34, %v707_v45  ;;  %v681_v44 = vadd.f32 -0.28449672, %v672_v0 }
 0x1f5   : > { %v690_v41 = vmul.f32 %v1416_v50, %v681_v44  ;;  %v793_v27 = vpack.c.bf16 %v787_v35, %v786_v60  ;;  %v761_v39 = vsub.f32 1.0, %v752_v37 }
 0x1f7   : > { %v699_v63 = vadd.f32 0.2548296, %v690_v41  ;;  %882 = vmatmul.bf16.gmra.mxu1 %v793_v27  ;;  %v770_v36 = vmul.f32 %v761_v39, %v590_v46 }
 0x1f9   : > { %v708_v47 = vmul.f32 %v1416_v50, %v699_v63  ;;  %v779_v22 = vadd.f32 %v770_v36, %v1824_v40 }
 0x1fb   : > { %v753_v30 = vmul.f32 %v1422_v24, %v708_v47  ;;  %v788_v6 = vmul.f32 0.5, %v779_v22 }
 0x1fd   : > { %v762_v31 = vsub.f32 1.0, %v753_v30 }
 0x1ff   : > { %v771_v48 = vmul.f32 %v762_v31, %v591_v20 }
 0x201   : > { %v780_v49 = vadd.f32 %v771_v48, %v1830_v12 }
 0x203   : > { %v789_v52 = vmul.f32 0.5, %v780_v49 }
 0x205   : > { %v794_v53 = vpack.c.bf16 %v789_v52, %v788_v6 }
 0x207   : > { %887 = vmatmul.bf16.vlgmr.msra.gmra.mxu2 %v794_v53 }
 0x224   : > { %v560_v51 = vpop.f32.mrf.mxu0 }
 0x225   : > { %v1854_v56 = vadd.f32 %v1778_v38, %v560_v51 }
 0x227   : > { %v584_v58 = vand.u32 2147483647, %v1854_v56 }
 0x229   : > { %v593_v46 = vmul.f32 0.70710677, %v584_v58 }
 0x22b   : > { %v602_v61 = vmul.f32 0.3275911, %v593_v46  ;;  %v710_v2 = vsub.f32 0.0, %v593_v46 }
 0x22c   : > { %v562_v40 = vpop.f32.mrf.mxu0 }
 0x22d   : > { %v611_v62 = vadd.f32 1.0, %v602_v61  ;;  %v1860_v20 = vadd.f32 %v1778_v38, %v562_v40  ;;  %v719_v19 = vmul.f32 %v710_v2, %v593_v46 }
 0x22f   : > { %1423 = vrcp.f32 %v611_v62  ;;  %v585_v12 = vand.u32 2147483647, %v1860_v20 }
 0x231   : > { %v594_v59 = vmul.f32 0.70710677, %v585_v12 }
 0x232   : > { %v580_v57 = vpop.f32.mrf.mxu3 }
 0x233   : > { %v603_v50 = vmul.f32 0.3275911, %v594_v59  ;;  %v1864_v14 = vadd.f32 %v1778_v38, %v580_v57  ;;  %v728_v38 = vmul.f32 1.442695, %v719_v19  ;;  %v711_v29 = vsub.f32 0.0, %v594_v59 }
 0x235   : > { %v1424_v1 = vpop.eup %1423  ;;  %v612_v8 = vadd.f32 1.0, %v603_v50  ;;  %v592_v13 = vand.u32 2147483647, %v1864_v14  ;;  %v720_v45 = vmul.f32 %v711_v29, %v594_v59 }
 0x236   : > { %v629_v15 = vmul.f32 1.0614054, %v1424_v1 }
 0x237   : > { %1425 = vrcp.f32 %v612_v8  ;;  %v601_v7 = vmul.f32 0.70710677, %v592_v13  ;;  %v730_v27 = vmul.f32 1.442695, %v720_v45 }
 0x238   : > { %v638_v18 = vadd.f32 -1.4531521, %v629_v15 }
 0x239   : > { %v610_v55 = vmul.f32 0.3275911, %v601_v7  ;;  %v718_v35 = vsub.f32 0.0, %v601_v7 }
 0x23a   : > { %v647_v21 = vmul.f32 %v1424_v1, %v638_v18  ;;  %v582_v23 = vpop.f32.mrf.mxu3 }
 0x23b   : > { %v619_v25 = vadd.f32 1.0, %v610_v55  ;;  %v727_v36 = vmul.f32 %v718_v35, %v601_v7 }
 0x23c   : > { %v656_v26 = vadd.f32 1.4214138, %v647_v21 }
 0x23d   : > { %v1426_v28 = vpop.eup %1425  ;;  %1427 = vrcp.f32 %v619_v25  ;;  %v744_v6 = vmul.f32 1.442695, %v727_v36 }
 0x23e   : > { %v665_v43 = vmul.f32 %v1424_v1, %v656_v26  ;;  %v630_v17 = vmul.f32 1.0614054, %v1426_v28  ;;  %1429 = vpow2.f32 %v728_v38 }
 0x23f   : > { %1431 = vpow2.f32 %v730_v27 }
 0x240   : > { %v674_v32 = vadd.f32 -0.28449672, %v665_v43  ;;  %v639_v33 = vadd.f32 -1.4531521, %v630_v17  ;;  %1433 = vpow2.f32 %v744_v6 }
 0x242   : > { %v683_v0 = vmul.f32 %v1424_v1, %v674_v32  ;;  %v648_v34 = vmul.f32 %v1426_v28, %v639_v33 }
 0x243   : > { %v1428_v60 = vpop.eup %1427 }
 0x244   : > { %v692_v37 = vadd.f32 0.2548296, %v683_v0  ;;  %v657_v44 = vadd.f32 1.4214138, %v648_v34  ;;  %v637_v41 = vmul.f32 1.0614054, %v1428_v60  ;;  %v1430_v24 = vpop.eup %1429 }
 0x245   : > { %v1432_v40 = vpop.eup %1431 }
 0x246   : > { %v701_v39 = vmul.f32 %v1424_v1, %v692_v37  ;;  %v666_v63 = vmul.f32 %v1426_v28, %v657_v44  ;;  %v646_v47 = vadd.f32 -1.4531521, %v637_v41  ;;  %v1434_v7 = vpop.eup %1433 }
 0x248   : > { %v746_v30 = vmul.f32 %v1430_v24, %v701_v39  ;;  %v675_v31 = vadd.f32 -0.28449672, %v666_v63  ;;  %v655_v22 = vmul.f32 %v1428_v60, %v646_v47 }
 0x24a   : > { %v684_v48 = vmul.f32 %v1426_v28, %v675_v31  ;;  %v664_v49 = vadd.f32 1.4214138, %v655_v22  ;;  %v755_v52 = vsub.f32 1.0, %v746_v30 }
 0x24c   : > { %v693_v53 = vadd.f32 0.2548296, %v684_v48  ;;  %v673_v51 = vmul.f32 %v1428_v60, %v664_v49  ;;  %v764_v62 = vmul.f32 %v755_v52, %v584_v58 }
 0x24e   : > { %v702_v46 = vmul.f32 %v1426_v28, %v693_v53  ;;  %v682_v61 = vadd.f32 -0.28449672, %v673_v51  ;;  %v773_v2 = vadd.f32 %v764_v62, %v1854_v56  ;;  %v1378_v56 = vld [vmem:[%s1977_s5] ss:$0 sm:$0xff] }
 0x250   : > { %v747_v59 = vmul.f32 %v1432_v40, %v702_v46  ;;  %v691_v57 = vmul.f32 %v1428_v60, %v682_v61  ;;  %v782_v55 = vmul.f32 0.5, %v773_v2 }
 0x252   : > { %v756_v50 = vsub.f32 1.0, %v747_v59  ;;  %v700_v1 = vadd.f32 0.2548296, %v691_v57 }
 0x254   : > { %v765_v8 = vmul.f32 %v756_v50, %v585_v12  ;;  %v709_v15 = vmul.f32 %v1428_v60, %v700_v1 }
 0x256   : > { %v774_v18 = vadd.f32 %v765_v8, %v1860_v20  ;;  %v754_v19 = vmul.f32 %v1434_v7, %v709_v15 }
 0x258   : > { %v783_v21 = vmul.f32 0.5, %v774_v18  ;;  %v763_v23 = vsub.f32 1.0, %v754_v19 }
 0x25a   : > { %v791_v25 = vpack.c.bf16 %v783_v21, %v782_v55  ;;  %v772_v58 = vmul.f32 %v763_v23, %v592_v13 }
 0x25c   : > { %872 = vmatmul.bf16.vlgmr.msrb.gmra.mxu0 %v791_v25  ;;  %v781_v26 = vadd.f32 %v772_v58, %v1864_v14 }
 0x25e   : > { %v790_v28 = vmul.f32 0.5, %v781_v26 }
 0x260   : > { %v795_v38 = vpack.c.bf16 %v790_v28, %v790_v28 }
 0x262   : > { %892 = vmatmul.bf16.gmra.mxu2 %v795_v38 }
 0x264   : > { %v878_v20 = vpop.f32.mrf.mxu1 }
 0x265   : > { %v879_v12 = vadd.f32 %v1378_v56, %v878_v20 }
 0x267   : > { %v899_v29 = vadd.f32 %v1611_v5, %v879_v12 }
 0x269   : > { %v908_v43 = vpack.c.bf16 %v899_v29, %v899_v29 }
 0x26b   : > { %918 = vst.msk [vmem:[%s1881_s27 + $0x8] sm:$0xf] %vm915_vm0, %v908_v43 }
 0x26c   : > { %v880_v14 = vpop.f32.mrf.mxu1 }
 0x26d   : > { %v881_v13 = vadd.f32 %v1378_v56, %v880_v14 }
 0x26f   : > { %v900_v17 = vadd.f32 %v1623_v11, %v881_v13 }
 0x271   : > { %v909_v32 = vpack.c.bf16 %v900_v17, %v900_v17 }
 0x273   : > { %919 = vst.msk [vmem:[%s1881_s27 + $0xc] sm:$0xf] %vm915_vm0, %v909_v32 }
 0x274   : > { %v883_v33 = vpop.f32.mrf.mxu1 }
 0x275   : > { %v884_v5 = vadd.f32 %v1378_v56, %v883_v33 }
 0x277   : > { %v901_v45 = vadd.f32 %v1609_v4, %v884_v5 }
 0x279   : > { %v910_v0 = vpack.c.bf16 %v901_v45, %v901_v45 }
 0x27b   : > { %920 = vst.msk [vmem:[%s1881_s27 + $0x10] sm:$0xf] %vm915_vm0, %v910_v0 }
 0x27c   : > { %v885_v34 = vpop.f32.mrf.mxu1 }
 0x27d   : > { %v886_v60 = vadd.f32 %v1378_v56, %v885_v34 }
 0x27f   : > { %v902_v35 = vadd.f32 %v1621_v10, %v886_v60 }
 0x281   : > { %v911_v37 = vpack.c.bf16 %v902_v35, %v902_v35 }
 0x283   : > { %921 = vst.msk [vmem:[%s1881_s27 + $0x14] sm:$0xf] %vm915_vm0, %v911_v37 }
 0x28a   : > { %v888_v11 = vpop.f32.mrf.mxu2 }
 0x28b   : > { %v889_v44 = vadd.f32 %v1378_v56, %v888_v11 }
 0x28d   : > { %v903_v41 = vadd.f32 %v1607_v3, %v889_v44 }
 0x28f   : > { %v912_v27 = vpack.c.bf16 %v903_v41, %v903_v41 }
 0x291   : > { %922 = vst.msk [vmem:[%s1881_s27 + $0x18] sm:$0xf] %vm915_vm0, %v912_v27 }
 0x292   : > { %v890_v4 = vpop.f32.mrf.mxu2 }
 0x293   : > { %v891_v39 = vadd.f32 %v1378_v56, %v890_v4 }
 0x295   : > { %v904_v63 = vadd.f32 %v1619_v9, %v891_v39 }
 0x297   : > { %v913_v47 = vpack.c.bf16 %v904_v63, %v904_v63 }
 0x299   : > { %923 = vst.msk [vmem:[%s1881_s27 + $0x1c] sm:$0xf] %vm915_vm0, %v913_v47 }
 0x2d9   : > { %v873_v10 = vpop.f32.mrf.mxu0 }
 0x2da   : > { %v874_v24 = vadd.f32 %v1378_v56, %v873_v10 }
 0x2dc   : > { %v897_v36 = vadd.f32 %v1632_v16, %v874_v24 }
 0x2de   : > { %v906_v30 = vpack.c.bf16 %v897_v36, %v897_v36 }
 0x2e0   : > { %916 = vst.msk [vmem:[%s1881_s27] sm:$0xf] %vm915_vm0, %v906_v30 }
 0x2e1   : > { %v875_v3 = vpop.f32.mrf.mxu0 }
 0x2e2   : > { %v876_v31 = vadd.f32 %v1378_v56, %v875_v3 }
 0x2e4   : > { %v898_v22 = vadd.f32 %v1655_v42, %v876_v31 }
 0x2e5   : > { %v893_v48 = vpop.f32.mrf.mxu2 }
 0x2e6   : > { %v907_v49 = vpack.c.bf16 %v898_v22, %v898_v22  ;;  %v894_v6 = vadd.f32 %v1378_v56, %v893_v48 }
 0x2e8   : > { %917 = vst.msk [vmem:[%s1881_s27 + $0x4] sm:$0xf] %vm915_vm0, %v907_v49  ;;  %v905_v9 = vadd.f32 %v894_v6, %v1676_v54 }
 0x2e9   : > { %931 = sbr.rel (!%p1590_p4) target bundleno = 809 (0x329), region = 48 }
 0x2ea   : > { %v914_v52 = vpack.c.bf16 %v905_v9, %v905_v9 }
 0x2ec   : > { %924 = vst.msk [vmem:[%s1881_s27 + $0x20] sm:$0xf] %vm915_vm0, %v914_v52 }
 0x2ed   : > { %v895_v53 = vpop.f32.mrf.mxu2 }
 0x2ee   : > { %s1988_s21 = smov (!%p934_p8, %s933_s21), 9 }
 0x2ef   : > { %s1225_s11 = sshll.u32 %s1988_s21, 2 }
 0x2f0   : > { %p1228_p9 = scmp.eq.s32.totalorder %s1225_s11, 0 }
 0x2f1   : > { %1435 = sdivrem.u32 (!%p1228_p9), %s1988_s21, 9 }
 0x2f2   : > { %942 = sbr.rel (%p1228_p9) target bundleno = 809 (0x329), region = 52 }
 0x2fa   : > { %s1922_s29 = spop.drf %1435 }
 0x2fb   : > { %s1437_s12 = spop.drf %1435  ;;  %p1229_p10 = scmp.le.s32.totalorder %s1922_s29, 0 }
 0x2fc   : > { %s1980_s24 = smov (!%p1229_p10), %s1916_s10  ;;  %s1981_s30 = smov (!%p1229_p10), %s1881_s27 }
 0x2fd   : > { %1131 = sbr.rel (%p1229_p10) target bundleno = 783 (0x30f), region = 124  ;;  %s1931_s13 = smov (!%p1229_p10), 0  }
 0x2fe   : > { %s1933_s14 = smov (!%p1229_p10), 0  }
 0x302 LB: >> { %v960_v16 = vld [vmem:[%s1503_s30] sm:$0xf]  ;;  %v962_v42 = vld [vmem:[%s1503_s30 + $0x4] sm:$0xf]  ;;  %v964_v54 = vld [vmem:[%s1503_s30 + $0x8] sm:$0xf]  ;;  %s1511_s14 = sphi %s1933_s14, %s954_s14   ;;  %s1507_s13 = sphi %s1931_s13, %s1983_s13   ;;  %s1503_s30 = sphi %s1981_s30, %s983_s30   ;;  %s1499_s24 = sphi %s1980_s24, %s1982_s24  }
 0x303   : >> { %961 = vst [vmem:[%s1499_s24] sm:$0xf] %v960_v16  ;;  %v966_v51 = vld [vmem:[%s1503_s30 + $0xc] sm:$0xf]  ;;  %s978_s15 = sadd.s32 1, %s1507_s13  ;;  %v968_v46 = vld [vmem:[%s1503_s30 + $0x10] sm:$0xf] }
 0x304   : >> { %963 = vst [vmem:[%s1499_s24 + $0x4] sm:$0xf] %v962_v42  ;;  %p979_p11 = scmp.ge.s32.totalorder %s978_s15, %s1922_s29  ;;  %v970_v61 = vld [vmem:[%s1503_s30 + $0x14] sm:$0xf]  ;;  %v972_v40 = vld [vmem:[%s1503_s30 + $0x18] sm:$0xf] }
 0x305   : >> { %965 = vst [vmem:[%s1499_s24 + $0x8] sm:$0xf] %v964_v54  ;;  %v974_v62 = vld [vmem:[%s1503_s30 + $0x1c] sm:$0xf]  ;;  %v976_v59 = vld [vmem:[%s1503_s30 + $0x20] sm:$0xf] }
 0x306   : >> { %967 = vst [vmem:[%s1499_s24 + $0xc] sm:$0xf] %v966_v51  ;;  %s1990_s15 = smov (%p979_p11, %s978_s15), 0  ;;  %s954_s14 = sadd.s32 1, %s1511_s14  }
 0x307   : >> { %969 = vst [vmem:[%s1499_s24 + $0x10] sm:$0xf] %v968_v46  ;;  %s981_s16 = smul.u32 36, %s1990_s15  ;;  %p953_p12 = scmp.ge.s32.totalorder %s954_s14, %s1922_s29 }
 0x308   : >> { %971 = vst [vmem:[%s1499_s24 + $0x14] sm:$0xf] %v970_v61  ;;  %s1983_s13 = smov %s1990_s15 }
 0x309   : >> { %973 = vst [vmem:[%s1499_s24 + $0x18] sm:$0xf] %v972_v40  ;;  %s983_s30 = scalar_lea.vmem %s1881_s27, %s981_s16 [#allocation2]   ;;  %s984_s17 = scalar_lea.vmem %s1916_s10, %s981_s16  }
 0x30a   : >> { %975 = vst [vmem:[%s1499_s24 + $0x1c] sm:$0xf] %v974_v62  ;;  %956 = sbr.rel (!%p953_p12) target bundleno = 770 (0x302), region = 130 }
 0x30b   : >> { %977 = vst [vmem:[%s1499_s24 + $0x20] sm:$0xf] %v976_v59  ;;  %s1982_s24 = smov %s984_s17 }
 0x30f PF: > { %1438 = sdivrem.u32 %s1988_s21, 9 }
 0x310   : > { %s1230_s18 = smul.u32 36, %s1922_s29 }
 0x312   : > { %s1957_s19 = scalar_lea.vmem %s1881_s27, %s1230_s18 [#allocation2]   ;;  %s991_s20 = scalar_lea.vmem %s1916_s10, %s1230_s18  }
 0x318   : > { %s1439_s23 = spop.drf %1438 }
 0x319   : > { %s1440_s26 = spop.drf %1438 }
 0x31a   : > { %p1232_p13 = scmp.le.s32.totalorder %s1440_s26, 0 }
 0x31b   : > { %s1513_s7 = smov (!%p1232_p13), %s991_s20   ;;  %s1517_s8 = smov (!%p1232_p13), %s1957_s19  }
 0x31c   : > { %1145 = sbr.rel (%p1232_p13) target bundleno = 809 (0x329), region = 135  ;;  %s1521_s9 = smov (!%p1232_p13), 0  }
 0x31d   : > { %s1525_s11 = smov (!%p1232_p13), 0  }
 0x321 LB: >> { %v1001_v57 = vld [vmem:[%s1519_s8] sm:$0xf]  ;;  %s1003_s27 = sadd.s32 1, %s1523_s9  ;;  %s995_s11 = sadd.s32 1, %s1527_s11   ;;  %s1527_s11 = sphi %s1525_s11, %s995_s11   ;;  %s1523_s9 = sphi %s1521_s9, %s1522_s9   ;;  %s1519_s8 = sphi %s1517_s8, %s1008_s8   ;;  %s1515_s7 = sphi %s1513_s7, %s1009_s7  }
 0x322   : >> { %1002 = vst [vmem:[%s1515_s7] sm:$0xf] %v1001_v57  ;;  %p1004_p0 = scmp.ge.s32.totalorder %s1003_s27, %s1440_s26  ;;  %p994_p1 = scmp.ge.s32.totalorder %s995_s11, %s1440_s26 }
 0x324   : >> { %s1992_s27 = smov (%p1004_p0, %s1003_s27), 0  ;;  %997 = sbr.rel (!%p994_p1) target bundleno = 801 (0x321), region = 141 }
 0x325   : >> { %s1233_s21 = sshll.u32 %s1992_s27, 2  ;;  %s1522_s9 = smov %s1992_s27  }
 0x326   : >> { %s1008_s8 = scalar_lea.vmem %s1957_s19, %s1233_s21 [#allocation2]   ;;  %s1009_s7 = scalar_lea.vmem %s991_s20, %s1233_s21  }
 0x329 PF: > { %p13_p2 = scmp.ge.s32.totalorder %s1580_s25, 4   ;;  %s1984_s21 = smov %s1491_s22 }
 0x32a   : > { %s1985_s22 = smov %s1588_s28  ;;  %s1986_s23 = smov %s1580_s25 }
 0x32b   :  { %15 = sbr.rel (!%p13_p2) target bundleno = 2 (0x2), region = 152 }

// kernel: _lambda_.21
= control target key start
LH: loop header
LB: loop body
LE: loop exit
PB: predicated region body
PF: predicated region fallthrough
CT: control target
= control target key end

     0   :  { %s657_s15 = smov 0   ;;  %s841_s0 = inlined_call_operand.vmem [shape: bf16[128,32], index: 0, kind: input, shape index: {}]   ;;  %s842_s1 = inlined_call_operand.vmem [shape: f32[1,32], index: 1, kind: input, shape index: {}]   ;;  %s843_s2 = inlined_call_operand.vmem [shape: bf16[32,4], index: 2, kind: input, shape index: {}]   ;;  %s844_s3 = inlined_call_operand.vmem [shape: f32[1,4], index: 3, kind: input, shape index: {}]   ;;  %s845_s4 = inlined_call_operand.vmem [shape: f32[128,4], index: 4, kind: output, shape index: {}]  }
   0x1 LB: > { %s544_s16 = sadd.s32 4294967295, %s629_s15   ;;  %p548_p0 = scmp.ge.s32.totalorder %s629_s15, 1  ;;  %s629_s15 = sphi %s657_s15, %s14_s15  }
   0x2   : > { %p163_p1 = scmp.lt.s32.totalorder %s629_s15, 3 }
   0x4   : > { %p164_p2 = pnand %p548_p0, %p163_p1 }
   0x5   : > { %s549_s17 = sshll.u32 (!%p164_p2), %s544_s16, 3 }
   0x6   : > { %167 = sbr.rel (%p164_p2) target bundleno = 447 (0x1bf), region = 36  ;;  %p190_p3 = scmp.lt.s32.totalorder (!%p164_p2), %s549_s17, 15 }
   0xb   : > { %s853_s17 = smov (!%p190_p3, %s549_s17), 15  ;;  %vm218_vm0 = vcmask 261120   ;;  %v631_v20 = vmov 32.0  }
   0xc   : > { %s550_s18 = sshll.u32 %s853_s17, 2  ;;  %605 = vrcp.f32 %v631_v20  ;;  %s552_s28 = sshll.u32 %s853_s17, 3 }
   0xd   : > { %s193_s21 = scalar_lea.vmem %s841_s0, %s550_s18  ;;  %s199_s7 = scalar_lea.vmem %s845_s4, %s552_s28 }
   0xe   : > { %v587_v0 = vld [vmem:[%s193_s21 + $0x18] sm:$0xff]   ;;  %v586_v1 = vld [vmem:[%s193_s21 + $0x10] sm:$0xff]   ;;  %v570_v2 = vld [vmem:[%s193_s21] sm:$0xff]  }
   0xf   : > { %v583_v3 = vunpack.c.l.bf16 %v587_v0  ;;  %v579_v4 = vunpack.c.l.bf16 %v586_v1  ;;  %v571_v5 = vunpack.c.l.bf16 %v570_v2  ;;  %v584_v9 = vunpack.c.h.bf16 %v587_v0  ;;  %v585_v15 = vld [vmem:[%s193_s21 + $0x8] sm:$0xff]  }
  0x10   : > { %v580_v10 = vunpack.c.h.bf16 %v586_v1  ;;  %v572_v11 = vunpack.c.h.bf16 %v570_v2  ;;  %v575_v16 = vunpack.c.l.bf16 %v585_v15  ;;  %v576_v17 = vunpack.c.h.bf16 %v585_v15 }
  0x11   : > { %v237_v6 = vsel %vm218_vm0, %v583_v3, 0.0  ;;  %v231_v7 = vsel %vm218_vm0, %v579_v4, 0.0  ;;  %v219_v8 = vsel %vm218_vm0, %v571_v5, 0.0  ;;  %v240_v12 = vsel %vm218_vm0, %v584_v9, 0.0 }
  0x12   : > { %238 = vadd.xlane.f32.xlu1 %v237_v6  ;;  %232 = vadd.xlane.f32.xlu0 %v231_v7  ;;  %v234_v13 = vsel %vm218_vm0, %v580_v10, 0.0  ;;  %v222_v14 = vsel %vm218_vm0, %v572_v11, 0.0  ;;  %v225_v18 = vsel %vm218_vm0, %v575_v16, 0.0  ;;  %v228_v19 = vsel %vm218_vm0, %v576_v17, 0.0  ;;  %v606_v21 = vpop.eup %605 }
  0x13   : > { %220 = vadd.xlane.f32.xlu2 %v219_v8  ;;  %v244_v22 = vmul.f32 32.0, %v606_v21  ;;  %vm248_vm1 = vweird.f32 %v606_v21  ;;  %v567_v8 = vld [vmem:[%s843_s2] sm:$0xff] }
  0x15   : > { %v245_v23 = vsub.f32 1.0, %v244_v22 }
  0x17   : > { %v246_v24 = vmul.f32 %v606_v21, %v245_v23 }
  0x19   : > { %v247_v25 = vadd.f32 %v606_v21, %v246_v24 }
  0x1a   : > { %241 = vadd.xlane.f32.xlu1 %v240_v12  ;;  %235 = vadd.xlane.f32.xlu0 %v234_v13 }
  0x1b   : > { %223 = vadd.xlane.f32.xlu2 %v222_v14  ;;  %v679_v26 = vsel %vm248_vm1, %v606_v21, %v247_v25 }
  0x22   : > { %226 = vadd.xlane.f32.xlu0 %v225_v18  ;;  %229 = vadd.xlane.f32.xlu1 %v228_v19 }
  0x85   : > { %v239_v27 = vpop.xlane.xlu1 %238  ;;  %v233_v28 = vpop.xlane.xlu0 %232 }
  0x86   : > { %v256_v29 = vmul.f32 %v679_v26, %v239_v27  ;;  %v254_v30 = vmul.f32 %v679_v26, %v233_v28  ;;  %v221_v31 = vpop.xlane.xlu2 %220 }
  0x87   : > { %v250_v40 = vmul.f32 %v679_v26, %v221_v31 }
  0x88   : > { %v683_v32 = vsub.f32 %v583_v3, %v256_v29  ;;  %v685_v33 = vsub.f32 %v579_v4, %v254_v30  ;;  %v568_v3 = vld [vmem:[%s843_s2 + $0x8] sm:$0xff] }
  0x89   : > { %v703_v48 = vsub.f32 %v571_v5, %v250_v40  ;;  %589 = vmatpush.bf16.msra.mxu2 %v568_v3  ;;  %590 = vmatpush.bf16.msra.mxu3 %v568_v3 }
  0x8a   : > { %v272_v34 = vmul.f32 %v683_v32, %v683_v32  ;;  %v270_v35 = vmul.f32 %v685_v33, %v685_v33  ;;  %456 = vmatpush.bf16.msra.mxu0 %v568_v3  ;;  %588 = vmatpush.bf16.msra.mxu1 %v568_v3 }
  0x8b   : > { %v266_v59 = vmul.f32 %v703_v48, %v703_v48 }
  0x8c   : > { %v292_v36 = vsel %vm218_vm0, %v272_v34, 0.0  ;;  %v286_v37 = vsel %vm218_vm0, %v270_v35, 0.0 }
  0x8d   : > { %v242_v38 = vpop.xlane.xlu1 %241  ;;  %v236_v39 = vpop.xlane.xlu0 %235  ;;  %293 = vadd.xlane.f32.xlu1 %v292_v36  ;;  %287 = vadd.xlane.f32.xlu2 %v286_v37  ;;  %v274_v63 = vsel %vm218_vm0, %v266_v59, 0.0 }
  0x8e   : > { %v257_v41 = vmul.f32 %v679_v26, %v242_v38  ;;  %v255_v42 = vmul.f32 %v679_v26, %v236_v39  ;;  %v224_v43 = vpop.xlane.xlu2 %223  ;;  %592 = vmatpush.bf16.msra.mxu2 %v567_v8  ;;  %593 = vmatpush.bf16.msra.mxu3 %v567_v8 }
  0x8f   : > { %v251_v44 = vmul.f32 %v679_v26, %v224_v43  ;;  %457 = vmatpush.bf16.msra.mxu0 %v567_v8  ;;  %591 = vmatpush.bf16.msra.mxu1 %v567_v8 }
  0x90   : > { %v697_v45 = vsub.f32 %v584_v9, %v257_v41  ;;  %v699_v46 = vsub.f32 %v580_v10, %v255_v42 }
  0x91   : > { %v701_v47 = vsub.f32 %v572_v11, %v251_v44 }
  0x92   : > { %v271_v49 = vmul.f32 %v699_v46, %v699_v46  ;;  %v273_v50 = vmul.f32 %v697_v45, %v697_v45 }
  0x93   : > { %v267_v51 = vmul.f32 %v701_v47, %v701_v47 }
  0x94   : > { %v289_v52 = vsel %vm218_vm0, %v271_v49, 0.0  ;;  %v295_v53 = vsel %vm218_vm0, %v273_v50, 0.0 }
  0x95   : > { %290 = vadd.xlane.f32.xlu0 %v289_v52  ;;  %v227_v54 = vpop.xlane.xlu0 %226  ;;  %296 = vadd.xlane.f32.xlu2 %v295_v53  ;;  %v277_v55 = vsel %vm218_vm0, %v267_v51, 0.0  ;;  %v230_v56 = vpop.xlane.xlu1 %229 }
  0x96   : > { %v252_v57 = vmul.f32 %v679_v26, %v227_v54  ;;  %278 = vadd.xlane.f32.xlu1 %v277_v55  ;;  %v253_v58 = vmul.f32 %v679_v26, %v230_v56 }
  0x98   : > { %v718_v60 = vsub.f32 %v575_v16, %v252_v57  ;;  %v720_v61 = vsub.f32 %v576_v17, %v253_v58 }
  0x9a   : > { %v268_v62 = vmul.f32 %v718_v60, %v718_v60  ;;  %v269_v1 = vmul.f32 %v720_v61, %v720_v61 }
  0x9c   : > { %v280_v0 = vsel %vm218_vm0, %v268_v62, 0.0  ;;  %v283_v2 = vsel %vm218_vm0, %v269_v1, 0.0 }
  0x9d   : > { %281 = vadd.xlane.f32.xlu2 %v280_v0  ;;  %275 = vadd.xlane.f32.xlu0 %v274_v63 }
  0xa5   : > { %284 = vadd.xlane.f32.xlu0 %v283_v2 }
 0x100   : > { %v294_v4 = vpop.xlane.xlu1 %293  ;;  %v288_v5 = vpop.xlane.xlu2 %287 }
 0x101   : > { %v304_v6 = vmul.f32 %v294_v4, %v679_v26  ;;  %v302_v7 = vmul.f32 %v288_v5, %v679_v26 }
 0x103   : > { %v312_v9 = vadd.f32 1e-05, %v304_v6  ;;  %v310_v10 = vadd.f32 1e-05, %v302_v7 }
 0x105   : > { %607 = vrsqrt.f32 %v312_v9  ;;  %vm380_vm2 = vweird.f32 %v312_v9  ;;  %vm360_vm5 = vweird.f32 %v310_v10 }
 0x106   : > { %609 = vrsqrt.f32 %v310_v10 }
 0x108   : > { %v291_v11 = vpop.xlane.xlu0 %290  ;;  %v297_v12 = vpop.xlane.xlu2 %296 }
 0x109   : > { %v303_v13 = vmul.f32 %v291_v11, %v679_v26  ;;  %v279_v14 = vpop.xlane.xlu1 %278  ;;  %v305_v15 = vmul.f32 %v297_v12, %v679_v26 }
 0x10a   : > { %v299_v16 = vmul.f32 %v279_v14, %v679_v26 }
 0x10b   : > { %v740_v17 = vpop.eup %607  ;;  %v311_v18 = vadd.f32 1e-05, %v303_v13  ;;  %v742_v19 = vadd.f32 1e-05, %v305_v15 }
 0x10c   : > { %v744_v20 = vpop.eup %609  ;;  %v375_v21 = vmul.f32 %v740_v17, %v312_v9  ;;  %v747_v22 = vadd.f32 1e-05, %v299_v16  ;;  %vm381_vm4 = vweird.f32 %v740_v17 }
 0x10d   : > { %v355_v23 = vmul.f32 %v744_v20, %v310_v10  ;;  %611 = vrsqrt.f32 %v311_v18  ;;  %vm361_vm3 = vweird.f32 %v744_v20  ;;  %vm370_vm6 = vweird.f32 %v311_v18  ;;  %vm780_vm10 = vmor %vm380_vm2, %vm381_vm4  ;;  %v603_v10 = vld [vmem:[%s842_s1] ss:$0 sm:$0xff] }
 0x10e   : > { %v376_v24 = vmul.f32 %v740_v17, %v375_v21  ;;  %613 = vrsqrt.f32 %v747_v22  ;;  %vm772_vm7 = vmor %vm360_vm5, %vm361_vm3  ;;  %vm330_vm8 = vweird.f32 %v747_v22  ;;  %vm390_vm9 = vweird.f32 %v742_v19 }
 0x10f   : > { %v356_v25 = vmul.f32 %v744_v20, %v355_v23  ;;  %615 = vrsqrt.f32 %v742_v19 }
 0x110   : > { %v377_v27 = vmul.f32 0.5, %v376_v24  ;;  %v276_v28 = vpop.xlane.xlu0 %275  ;;  %v282_v29 = vpop.xlane.xlu2 %281 }
 0x111   : > { %v357_v30 = vmul.f32 0.5, %v356_v25  ;;  %v298_v31 = vmul.f32 %v276_v28, %v679_v26  ;;  %v300_v34 = vmul.f32 %v282_v29, %v679_v26 }
 0x112   : > { %v378_v36 = vsub.f32 1.5, %v377_v27 }
 0x113   : > { %v612_v35 = vpop.eup %611  ;;  %v358_v37 = vsub.f32 1.5, %v357_v30  ;;  %v756_v38 = vadd.f32 1e-05, %v298_v31  ;;  %v758_v39 = vadd.f32 1e-05, %v300_v34 }
 0x114   : > { %v760_v40 = vpop.eup %613  ;;  %v365_v41 = vmul.f32 %v612_v35, %v311_v18  ;;  %v379_v51 = vmul.f32 %v740_v17, %v378_v36  ;;  %vm371_vm11 = vweird.f32 %v612_v35 }
 0x115   : > { %v616_v42 = vpop.eup %615  ;;  %v325_v43 = vmul.f32 %v760_v40, %v747_v22  ;;  %617 = vrsqrt.f32 %v756_v38  ;;  %v359_v44 = vmul.f32 %v744_v20, %v358_v37  ;;  %vm331_vm12 = vweird.f32 %v760_v40  ;;  %vm372_vm14 = vmor %vm370_vm6, %vm371_vm11 }
 0x116   : > { %v366_v49 = vmul.f32 %v612_v35, %v365_v41  ;;  %v385_v50 = vmul.f32 %v616_v42, %v742_v19  ;;  %619 = vrsqrt.f32 %v758_v39  ;;  %v383_v2 = vsel %vm780_vm10, %v740_v17, %v379_v51  ;;  %vm800_vm15 = vmor %vm330_vm8, %vm331_vm12 }
 0x117   : > { %v326_v52 = vmul.f32 %v760_v40, %v325_v43  ;;  %v363_v62 = vsel %vm772_vm7, %v744_v20, %v359_v44  ;;  %vm391_vm13 = vweird.f32 %v616_v42  ;;  %v400_v16 = vmul.f32 %v383_v2, %v683_v32 }
 0x118   : > { %v367_v53 = vmul.f32 0.5, %v366_v49  ;;  %v386_v54 = vmul.f32 %v616_v42, %v385_v50  ;;  %v285_v55 = vpop.xlane.xlu0 %284  ;;  %v398_v9 = vmul.f32 %v363_v62, %v685_v33  ;;  %vm392_vm1 = vmor %vm390_vm9, %vm391_vm13  ;;  %vm320_vm3 = vweird.f32 %v756_v38 }
 0x119   : > { %v327_v57 = vmul.f32 0.5, %v326_v52  ;;  %v301_v58 = vmul.f32 %v285_v55, %v679_v26  ;;  %v412_v29 = vmul.f32 %v603_v10, %v400_v16  ;;  %vm340_vm5 = vweird.f32 %v758_v39 }
 0x11a   : > { %v368_v63 = vsub.f32 1.5, %v367_v53  ;;  %v387_v0 = vmul.f32 0.5, %v386_v54  ;;  %v410_v21 = vmul.f32 %v603_v10, %v398_v9  ;;  %v604_v54 = vld [vmem:[%s844_s3] ss:$0 sm:$0xff]  ;;  %vm479_vm11 = vcmask 31744  }
 0x11b   : > { %v618_v1 = vpop.eup %617  ;;  %v328_v3 = vsub.f32 1.5, %v327_v57  ;;  %v309_v26 = vadd.f32 1e-05, %v301_v58 }
 0x11c   : > { %v369_v4 = vmul.f32 %v612_v35, %v368_v63  ;;  %v388_v5 = vsub.f32 1.5, %v387_v0  ;;  %v315_v6 = vmul.f32 %v618_v1, %v756_v38  ;;  %v620_v7 = vpop.eup %619  ;;  %vm321_vm2 = vweird.f32 %v618_v1 }
 0x11d   : > { %v329_v8 = vmul.f32 %v760_v40, %v328_v3  ;;  %621 = vrsqrt.f32 %v309_v26  ;;  %v335_v15 = vmul.f32 %v620_v7, %v758_v39  ;;  %vm322_vm4 = vmor %vm320_vm3, %vm321_vm2  ;;  %vm341_vm6 = vweird.f32 %v620_v7 }
 0x11e   : > { %v373_v11 = vsel %vm372_vm14, %v612_v35, %v369_v4  ;;  %v389_v13 = vmul.f32 %v616_v42, %v388_v5  ;;  %v316_v14 = vmul.f32 %v618_v1, %v315_v6  ;;  %vm342_vm7 = vmor %vm340_vm5, %vm341_vm6  ;;  %vm350_vm9 = vweird.f32 %v309_v26 }
 0x11f   : > { %v399_v33 = vmul.f32 %v373_v11, %v699_v46  ;;  %v336_v20 = vmul.f32 %v620_v7, %v335_v15  ;;  %v333_v24 = vsel %vm800_vm15, %v760_v40, %v329_v8 }
 0x120   : > { %v393_v17 = vsel %vm392_vm1, %v616_v42, %v389_v13  ;;  %v317_v18 = vmul.f32 0.5, %v316_v14  ;;  %v395_v34 = vmul.f32 %v333_v24, %v701_v47 }
 0x121   : > { %v411_v22 = vmul.f32 %v603_v10, %v399_v33  ;;  %v401_v23 = vmul.f32 %v393_v17, %v697_v45  ;;  %v337_v27 = vmul.f32 0.5, %v336_v20 }
 0x122   : > { %v318_v25 = vsub.f32 1.5, %v317_v18  ;;  %v407_v42 = vmul.f32 %v603_v10, %v395_v34 }
 0x123   : > { %v622_v19 = vpop.eup %621  ;;  %v416_v28 = vpack.c.bf16 %v411_v22, %v410_v21  ;;  %v413_v46 = vmul.f32 %v603_v10, %v401_v23  ;;  %v338_v32 = vsub.f32 1.5, %v337_v27 }
 0x124   : > { %v319_v30 = vmul.f32 %v618_v1, %v318_v25  ;;  %v345_v31 = vmul.f32 %v622_v19, %v309_v26  ;;  %vm351_vm8 = vweird.f32 %v622_v19 }
 0x125   : > { %563 = vmatmul.msk.bf16.vlgmr.msra.gmra.mxu2 %vm218_vm0, %v416_v28  ;;  %v417_v45 = vpack.c.bf16 %v413_v46, %v412_v29  ;;  %v339_v36 = vmul.f32 %v620_v7, %v338_v32  ;;  %vm352_vm10 = vmor %vm350_vm9, %vm351_vm8 }
 0x126   : > { %v323_v35 = vsel %vm322_vm4, %v618_v1, %v319_v30  ;;  %v346_v37 = vmul.f32 %v622_v19, %v345_v31 }
 0x127   : > { %564 = vmatmul.msk.bf16.vlgmr.msra.gmra.mxu3 %vm218_vm0, %v417_v45  ;;  %v394_v40 = vmul.f32 %v323_v35, %v703_v48  ;;  %v343_v43 = vsel %vm342_vm7, %v620_v7, %v339_v36 }
 0x128   : > { %v347_v41 = vmul.f32 0.5, %v346_v37  ;;  %v396_v47 = vmul.f32 %v343_v43, %v718_v60 }
 0x129   : > { %v406_v38 = vmul.f32 %v603_v10, %v394_v40 }
 0x12a   : > { %v348_v39 = vsub.f32 1.5, %v347_v41  ;;  %v408_v48 = vmul.f32 %v603_v10, %v396_v47 }
 0x12b   : > { %v414_v44 = vpack.c.bf16 %v407_v42, %v406_v38 }
 0x12c   : > { %v349_v49 = vmul.f32 %v622_v19, %v348_v39 }
 0x12d   : > { %561 = vmatmul.msk.bf16.vlgmr.msra.gmra.mxu0 %vm218_vm0, %v414_v44 }
 0x12e   : > { %v353_v50 = vsel %vm352_vm10, %v622_v19, %v349_v49 }
 0x12f   : > { %v397_v51 = vmul.f32 %v353_v50, %v720_v61 }
 0x131   : > { %v409_v52 = vmul.f32 %v603_v10, %v397_v51 }
 0x133   : > { %v415_v53 = vpack.c.bf16 %v409_v52, %v408_v48 }
 0x135   : > { %562 = vmatmul.msk.bf16.vlgmr.msra.gmra.mxu1 %vm218_vm0, %v415_v53 }
 0x1a8   : > { %v469_v55 = vpop.f32.mrf.mxu2 }
 0x1a9   : > { %v470_v60 = vadd.f32 %v604_v54, %v469_v55 }
 0x1aa   : > { %v474_v56 = vpop.f32.mrf.mxu3  ;;  %v459_v57 = vpop.f32.mrf.mxu0 }
 0x1ab   : > { %484 = vst.msk [vmem:[%s199_s7 + $0x20] sm:$0xff] %vm479_vm11, %v470_v60  ;;  %v475_v61 = vadd.f32 %v604_v54, %v474_v56  ;;  %v460_v58 = vadd.f32 %v604_v54, %v459_v57 }
 0x1ad   : > { %486 = vst.msk [vmem:[%s199_s7 + $0x30] sm:$0xff] %vm479_vm11, %v475_v61 }
 0x1ae   : > { %480 = vst.msk [vmem:[%s199_s7] sm:$0xff] %vm479_vm11, %v460_v58 }
 0x1b0   : > { %v471_v59 = vpop.f32.mrf.mxu2 }
 0x1b1   : > { %v472_v62 = vadd.f32 %v604_v54, %v471_v59 }
 0x1b2   : > { %v476_v63 = vpop.f32.mrf.mxu3  ;;  %v461_v0 = vpop.f32.mrf.mxu0 }
 0x1b3   : > { %485 = vst.msk [vmem:[%s199_s7 + $0x28] sm:$0xff] %vm479_vm11, %v472_v62  ;;  %v477_v1 = vadd.f32 %v604_v54, %v476_v63  ;;  %v462_v2 = vadd.f32 %v604_v54, %v461_v0  ;;  %v464_v3 = vpop.f32.mrf.mxu1 }
 0x1b4   : > { %v465_v26 = vadd.f32 %v604_v54, %v464_v3 }
 0x1b5   : > { %487 = vst.msk [vmem:[%s199_s7 + $0x38] sm:$0xff] %vm479_vm11, %v477_v1 }
 0x1b6   : > { %481 = vst.msk [vmem:[%s199_s7 + $0x8] sm:$0xff] %vm479_vm11, %v462_v2 }
 0x1b7   : > { %482 = vst.msk [vmem:[%s199_s7 + $0x10] sm:$0xff] %vm479_vm11, %v465_v26 }
 0x1bb   : > { %v466_v4 = vpop.f32.mrf.mxu1 }
 0x1bc   : > { %v467_v5 = vadd.f32 %v604_v54, %v466_v4 }
 0x1be   : > { %483 = vst.msk [vmem:[%s199_s7 + $0x18] sm:$0xff] %vm479_vm11, %v467_v5 }
 0x1bf PF: > { %s14_s15 = sadd.s32 1, %s629_s15  }
 0x1c0   : > { %p11_p4 = scmp.ge.s32.totalorder %s14_s15, 4  }
 0x1c2   :  { %13 = sbr.rel (!%p11_p4) target bundleno = 1 (0x1), region = 66 }

</bundles_post_ra>
